<compile_context>
chip_gen: v7x
topology: tpu7x:2x2x1
jax: 0.10.0
libtpu: 0.0.40
codegen_flags: <defaults>
</compile_context>

<pallas_src>
import functools

import jax
import jax.numpy as jnp
from jax import lax
from jax.experimental import pallas as pl
from jax.experimental.pallas import tpu as pltpu


def _round_up(x, m):
    return (x + m - 1) // m * m


def _largest_tile(n, cap):
    """Largest lane-friendly tile (multiple of 128, <= cap) dividing n."""
    for t in (512, 384, 256, 128):
        if t <= cap and n % t == 0:
            return t
    return 128


# Static architecture metadata (kernel, stride, pad) per conv layer; threshold.
CONV_META = {
    "l1": (11, 4, 2),
    "l2": (5, 2, 1),
    "l3": (3, 2, 0),
    "l4": (3, 1, 1),
    "l5": (3, 2, 0),
}
THR = 1.0


# ----------------------------------------------------------------------------
# Pallas kernel 1: tiled matmul + bias epilogue (BN scale pre-folded into w)
# ----------------------------------------------------------------------------
def _matmul_bias_kernel(x_ref, w_ref, b_ref, o_ref, acc_ref):
    k = pl.program_id(2)

    @pl.when(k == 0)
    def _():
        acc_ref[...] = jnp.zeros_like(acc_ref)

    acc_ref[...] += jnp.dot(x_ref[...], w_ref[...],
                            preferred_element_type=jnp.float32)

    @pl.when(k == pl.num_programs(2) - 1)
    def _():
        o_ref[...] = acc_ref[...] + b_ref[...]


def matmul_bias(x, w, bias, *, tm=512, tn=512, tk=512):
    """out = x @ w + bias (bias broadcast over rows).

    x arrives bf16 (spikes are exactly {0, thr}); w already has the folded BN
    scale multiplied in (f32 fold at init, then bf16 cast).  Accumulation is
    f32 on the MXU; the bias add happens once per output tile.  The output
    keeps the padded channel columns (they are exactly zero-biased).
    """
    M, K = x.shape
    K2, Np = w.shape
    assert K == K2
    assert Np % 128 == 0 and bias.shape == (Np,)

    tm = min(tm, _round_up(M, 16))            # bf16 packs two sublanes -> 16
    tn = _largest_tile(Np, tn)                # divides Np -> no N pad/slice
    tk = _largest_tile(_round_up(K, 128), tk)
    Mp = _round_up(M, tm)
    Kp = _round_up(K, tk)

    if x.dtype != jnp.bfloat16:
        x = x.astype(jnp.bfloat16)            # only layer1's image path
    if (Mp, Kp) != (M, K):
        x = jnp.pad(x, ((0, Mp - M), (0, Kp - K)))
    if Kp != K:                               # only layer1 (K = 11*11*3)
        w = jnp.pad(w, ((0, Kp - K), (0, 0)))
    b2 = bias.astype(jnp.float32).reshape(1, Np)

    cost = pl.CostEstimate(
        flops=2 * Mp * Kp * Np,
        transcendentals=0,
        bytes_accessed=Mp * Kp * 2 + Kp * Np * 2 + Mp * Np * 4,
    )
    out = pl.pallas_call(
        _matmul_bias_kernel,
        out_shape=jax.ShapeDtypeStruct((Mp, Np), jnp.float32),
        grid=(Mp // tm, Np // tn, Kp // tk),
        in_specs=[
            pl.BlockSpec((tm, tk), lambda i, j, k: (i, k)),
            pl.BlockSpec((tk, tn), lambda i, j, k: (k, j)),
            pl.BlockSpec((1, tn), lambda i, j, k: (0, j)),
        ],
        out_specs=pl.BlockSpec((tm, tn), lambda i, j, k: (i, j)),
        scratch_shapes=[pltpu.VMEM((tm, tn), jnp.float32)],
        compiler_params=pltpu.CompilerParams(
            dimension_semantics=("parallel", "parallel", "arbitrary")),
        cost_estimate=cost,
    )(x, w, b2)
    return out[:M] if Mp != M else out        # padded channels carried forward


# ----------------------------------------------------------------------------
# Pallas kernel 2: integrate-and-fire — (rows, channels)-parallel, T inner loop
# ----------------------------------------------------------------------------
def _if_kernel(x_ref, o_ref, mem_ref, *, thr, t_steps, broadcast_input, unroll):
    mem_ref[...] = jnp.zeros_like(mem_ref)
    thr_f = jnp.float32(thr)

    def body(t, carry):
        xt = x_ref[0] if broadcast_input else x_ref[t]
        mem = mem_ref[...] + xt
        spike = jnp.where(mem >= thr_f, thr_f, jnp.float32(0.0))
        mem_ref[...] = mem - spike                      # soft reset (f32)
        o_ref[t] = spike.astype(o_ref.dtype)            # bf16 spike store
        return carry

    lax.fori_loop(0, t_steps, body, 0, unroll=unroll)


def _choose_if_blocks(rows, Np, Tin, T):
    """(row_block, chan_block, needs_row_pad) for the IF kernel.

    Lane-dense channel blocks (multiple of 128, up to 512); row blocks that are
    multiples of 16 (bf16 output packing), chosen under a conservative VMEM
    budget and — when the channel grid alone has a single block — split so the
    parallel grid keeps >=2 blocks (v7x has two TensorCores).
    """
    cn = _largest_tile(Np, 512)
    nchan = Np // cn
    budget = 8 * 1024 * 1024

    def block_bytes(rb):
        # double-buffered charge (f32) + spike (bf16) blocks, + membrane scratch
        return 2 * (Tin * rb * cn * 4 + T * rb * cn * 2) + rb * cn * 4

    if rows % 16 != 0:
        return rows, cn, block_bytes(rows) > budget     # full-dim block (or pad)
    cap = rows if nchan >= 2 else max(16, (rows // 2) // 16 * 16)
    cand = (min(cap, rows) // 16) * 16
    while cand >= 16:
        if rows % cand == 0 and block_bytes(cand) <= budget:
            return cand, cn, False
        cand -= 16
    return rows, cn, False


def if_over_time(charge, thr, T):
    """charge: (Tin, rows, Cp) f32 membrane charge, Tin in {1, T}.

    Returns spikes (T, rows, Cp) in bf16 with values in {0, thr}.  Tin == 1
    means the same charge is injected every timestep (first layer) — the
    broadcast happens inside the kernel, never in HBM.  Cp is already a
    multiple of 128 (padded channels carry zero charge and never spike).
    """
    Tin, rows0, Np = charge.shape
    broadcast_input = (Tin == 1) and (T > 1)
    assert broadcast_input or Tin == T
    assert Np % 128 == 0

    rb, cn, need_pad = _choose_if_blocks(rows0, Np, Tin, T)
    rows = rows0
    if need_pad:
        # Unaligned row count whose single full block would blow VMEM: pad rows
        # (zero charge -> padded rows never spike) and re-pick the blocking.
        rows = _round_up(rows0, 16)
        charge = jnp.pad(charge, ((0, 0), (0, rows - rows0), (0, 0)))
        rb, cn, _ = _choose_if_blocks(rows, Np, Tin, T)

    unroll = T if T <= 8 else 8               # partial unroll for large T

    spikes = pl.pallas_call(
        functools.partial(_if_kernel, thr=float(thr), t_steps=T,
                          broadcast_input=broadcast_input, unroll=unroll),
        out_shape=jax.ShapeDtypeStruct((T, rows, Np), jnp.bfloat16),
        grid=(rows // rb, Np // cn),
        in_specs=[pl.BlockSpec((Tin, rb, cn), lambda r, c: (0, r, c))],
        out_specs=pl.BlockSpec((T, rb, cn), lambda r, c: (0, r, c)),
        scratch_shapes=[pltpu.VMEM((rb, cn), jnp.float32)],
        compiler_params=pltpu.CompilerParams(
            dimension_semantics=("parallel", "parallel")),
    )(charge)
    if rows != rows0:
        spikes = spikes[:, :rows0]
    return spikes


# ----------------------------------------------------------------------------
# Conv / Linear glue (NHWC, bf16 im2col in plain JAX; all compute in Pallas)
# ----------------------------------------------------------------------------
def _im2col_nhwc(x, kh, kw, stride, pad):
    # TODO(synk): still materializes the kh*kw-fold patch blow-up in HBM (bf16
    # now); in-kernel patch extraction over the padded NHWC activation would
    # remove it.
    if pad:
        x = jnp.pad(x, ((0, 0), (pad, pad), (pad, pad), (0, 0)))
    N, H, W, C = x.shape
    OH = (H - kh) // stride + 1
    OW = (W - kw) // stride + 1
    cols = []
    for i in range(kh):
        for j in range(kw):
            cols.append(x[:, i:i + stride * OH:stride,
                           j:j + stride * OW:stride, :])
    patches = jnp.concatenate(cols, axis=-1)            # (N, OH, OW, kh*kw*C)
    return patches.reshape(N * OH * OW, kh * kw * C), OH, OW


# ----------------------------------------------------------------------------
# S_AlexNet forward (spike trains carried as (T, B, ...), NHWC, padded channels)
# ----------------------------------------------------------------------------
def s_alexnet_forward(x_nchw, params, T, num_classes):
    B = x_nchw.shape[0]
    x = jnp.transpose(x_nchw, (0, 2, 3, 1)).astype(jnp.bfloat16)  # NHWC, once

    # layer1 (is_first): conv+BN once on the static image; the IF kernel
    # injects the same charge every timestep (no T-fold HBM broadcast).
    k, st, pd = CONV_META["l1"]
    patches, OH, OW = _im2col_nhwc(x, k, k, st, pd)
    charge = matmul_bias(patches, params["l1"]["wmat"], params["l1"]["bias"])
    C1p = charge.shape[-1]
    s = if_over_time(charge.reshape(1, B * OH * OW, C1p), THR, T)
    s = s.reshape(T, B, OH, OW, C1p)                    # bf16 spike frames

    def spiking_conv(s, p, meta):
        kk, ss, pp = meta
        Tt, Bb = s.shape[:2]
        patches, OH, OW = _im2col_nhwc(s.reshape(Tt * Bb, *s.shape[2:]),
                                       kk, kk, ss, pp)
        charge = matmul_bias(patches, p["wmat"], p["bias"])
        Cp = charge.shape[-1]
        sp = if_over_time(charge.reshape(Tt, Bb * OH * OW, Cp), THR, Tt)
        return sp.reshape(Tt, Bb, OH, OW, Cp)

    for name in ("l2", "l3", "l4", "l5"):
        s = spiking_conv(s, params[name], CONV_META[name])

    # flat = Dummy(nn.Flatten(2)): (T, B, H, W, Cp) -> (T, B, F).  Padded
    # channels stay zero and hit zero weight rows in layer6.
    s = s.reshape(T, B, -1)

    def spiking_fc(s, p):
        Tt, Bb, F = s.shape
        charge = matmul_bias(s.reshape(Tt * Bb, F), p["wmat"], p["bias"])
        return if_over_time(charge.reshape(Tt, Bb, -1), THR, Tt)

    s = spiking_fc(s, params["l6"])
    s = spiking_fc(s, params["l7"])

    # layer8 = last_Spiking(last_fc): fc per timestep, integrate (sum) over T.
    Tt, Bb, F = s.shape
    out = matmul_bias(s.reshape(Tt * Bb, F), params["l8"]["wmat"],
                      params["l8"]["bias"])
    out = out.reshape(Tt, Bb, -1).sum(axis=0)           # (B, ncls_pad)
    return out[:, :num_classes]


# ----------------------------------------------------------------------------
# Deterministic parameter construction (synthetic; BN folded + padded at init)
# ----------------------------------------------------------------------------
def _bn_fold(key, c):
    k1, k2, k3, k4 = jax.random.split(key, 4)
    gamma = jax.random.uniform(k1, (c,), minval=0.5, maxval=1.5)
    beta = 0.1 * jax.random.normal(k2, (c,))
    mean = 0.1 * jax.random.normal(k3, (c,))
    var = jax.random.uniform(k4, (c,), minval=0.5, maxval=1.5)
    scale = gamma / jnp.sqrt(var + 1e-5)
    shift = beta - mean * scale
    return scale.astype(jnp.float32), shift.astype(jnp.float32)


def _conv_layer(key, cin, cout, k, cin_pad, cout_pad):
    k1, k2, k3 = jax.random.split(key, 3)
    fan = cin * k * k
    w = (jax.random.normal(k1, (cout, cin, k, k)) / jnp.sqrt(fan)).astype(jnp.float32)
    b = (0.05 * jax.random.normal(k2, (cout,))).astype(jnp.float32)
    scale, shift = _bn_fold(k3, cout)
    w = w * scale[:, None, None, None]            # fold BN scale in f32 ...
    bias = scale * b + shift
    wm = jnp.transpose(w, (2, 3, 1, 0))           # (kh, kw, cin, cout) = im2col order
    wm = jnp.pad(wm, ((0, 0), (0, 0),
                      (0, cin_pad - cin), (0, cout_pad - cout)))
    wmat = wm.reshape(k * k * cin_pad, cout_pad).astype(jnp.bfloat16)  # ... then bf16
    # Zero bias in padded output lanes => padded channels never spike (invariant
    # the carried-padding layout relies on).
    bias = jnp.pad(bias, (0, cout_pad - cout))
    return {"wmat": wmat, "bias": bias.astype(jnp.float32)}


def _fc_from_conv_layer(key, spatial, cin, cin_pad, fout, fout_pad):
    """Linear over the flattened (oh, ow, c_pad) conv output (layer6)."""
    k1, k2, k3 = jax.random.split(key, 3)
    fin = spatial * cin
    w = (jax.random.normal(k1, (spatial, cin, fout)) / jnp.sqrt(fin)).astype(jnp.float32)
    b = (0.05 * jax.random.normal(k2, (fout,))).astype(jnp.float32)
    scale, shift = _bn_fold(k3, fout)
    w = w * scale[None, None, :]
    bias = scale * b + shift
    w = jnp.pad(w, ((0, 0), (0, cin_pad - cin), (0, 0)))
    w = w.reshape(spatial * cin_pad, fout)
    w = jnp.pad(w, ((0, 0), (0, fout_pad - fout)))
    bias = jnp.pad(bias, (0, fout_pad - fout))
    return {"wmat": w.astype(jnp.bfloat16), "bias": bias.astype(jnp.float32)}


def _fc_layer(key, fin, fin_pad, fout, fout_pad, bn=True):
    k1, k2, k3 = jax.random.split(key, 3)
    w = (jax.random.normal(k1, (fin, fout)) / jnp.sqrt(fin)).astype(jnp.float32)
    b = (0.05 * jax.random.normal(k2, (fout,))).astype(jnp.float32)
    if bn:
        scale, shift = _bn_fold(k3, fout)
        w = w * scale[None, :]
        bias = scale * b + shift
    else:
        bias = b
    w = jnp.pad(w, ((0, fin_pad - fin), (0, fout_pad - fout)))
    bias = jnp.pad(bias, (0, fout_pad - fout))
    return {"wmat": w.astype(jnp.bfloat16), "bias": bias.astype(jnp.float32)}


def _conv_out(h, k, s, p):
    return (h + 2 * p - k) // s + 1


def init_params(key, cfg):
    ks = jax.random.split(key, 8)
    c = cfg["channels"]
    cp = [_round_up(ci, 128) for ci in c]
    hidden, ncls = cfg["hidden"], cfg["num_classes"]
    hp = _round_up(hidden, 128)
    nclsp = _round_up(ncls, 128)

    h = cfg["image_hw"]
    for name in ("l1", "l2", "l3", "l4", "l5"):
        kk, ss, pp = CONV_META[name]
        h = _conv_out(h, kk, ss, pp)
    spatial = h * h                                     # conv->fc flatten size

    return {
        "l1": _conv_layer(ks[0], 3, c[0], CONV_META["l1"][0], 3, cp[0]),
        "l2": _conv_layer(ks[1], c[0], c[1], CONV_META["l2"][0], cp[0], cp[1]),
        "l3": _conv_layer(ks[2], c[1], c[2], CONV_META["l3"][0], cp[1], cp[2]),
        "l4": _conv_layer(ks[3], c[2], c[3], CONV_META["l4"][0], cp[2], cp[3]),
        "l5": _conv_layer(ks[4], c[3], c[4], CONV_META["l5"][0], cp[3], cp[4]),
        "l6": _fc_from_conv_layer(ks[5], spatial, c[4], cp[4], hidden, hp),
        "l7": _fc_layer(ks[6], hidden, hp, hidden, hp, bn=True),
        "l8": _fc_layer(ks[7], hidden, hp, ncls, nclsp, bn=False),
    }


if __name__ == "__main__":
    # Small-shape configuration consistent with the module's conv arithmetic
    # (AlexNet stride/kernel/padding pattern): 64x64 input -> 1x1 final map.
    T = 4                        # timesteps (stands in for T = bit = 32)
    cfg = {
        "image_hw": 64,
        "channels": (16, 32, 48, 32, 32),
        "hidden": 64,            # analogue of 4096
        "num_classes": 10,       # analogue of 1000
    }

    key = jax.random.PRNGKey(0)
    kx, kp = jax.random.split(key)
    x = jax.random.normal(kx, (2, 3, 64, 64), dtype=jnp.float32)   # NCHW, batch=2
    params = init_params(kp, cfg)

    fwd = jax.jit(functools.partial(s_alexnet_forward, T=T,
                                    num_classes=cfg["num_classes"]))
    out = jax.block_until_ready(fwd(x, params))
    assert out.shape == (2, cfg["num_classes"]), out.shape
    assert bool(jnp.all(jnp.isfinite(out)))
    print("KERNEL_OK")
</pallas_src>

<mosaic_0001>
module attributes {stable_mosaic.version = 11 : i64} {
  func.func @_matmul_bias_kernel(%arg0: i32, %arg1: i32, %arg2: i32, %arg3: memref<464x384xbf16, #tpu.memory_space<vmem>>, %arg4: memref<384x128xbf16, #tpu.memory_space<vmem>>, %arg5: memref<1x128xf32, #tpu.memory_space<vmem>>, %arg6: memref<464x128xf32, #tpu.memory_space<vmem>>, %arg7: memref<464x128xf32, #tpu.memory_space<vmem>>) attributes {dimension_semantics = [#tpu.dimension_semantics<parallel>, #tpu.dimension_semantics<parallel>, #tpu.dimension_semantics<arbitrary>], iteration_bounds = array<i64: 1, 1, 1>, scalar_prefetch = 0 : i64, scratch_operands = 1 : i64, tpu.core_type = #tpu.core_type<tc>, window_params = [{transform_indices = @transform_0, window_bounds = array<i64: 464, 384>}, {transform_indices = @transform_1, window_bounds = array<i64: 384, 128>}, {transform_indices = @transform_2, window_bounds = array<i64: 1, 128>}, {transform_indices = @transform_3, window_bounds = array<i64: 464, 128>}]} {
    %c0_i32 = arith.constant 0 : i32
    %0 = arith.cmpi eq, %arg2, %c0_i32 : i32
    %1 = arith.extui %0 : i1 to i32
    %c0_i32_0 = arith.constant 0 : i32
    %2 = arith.cmpi ne, %1, %c0_i32_0 : i32
    scf.if %2 {
      %cst_10 = arith.constant 0.000000e+00 : f32
      %12 = vector.broadcast %cst_10 : f32 to vector<464x128xf32>
      %c0_11 = arith.constant 0 : index
      %c0_12 = arith.constant 0 : index
      %13 = vector.load %arg7[%c0_11, %c0_12] : memref<464x128xf32, #tpu.memory_space<vmem>>, vector<464x128xf32>
      tpu.vector_store %arg7[%c0_11, %c0_12], %12 {strides = array<i32>} : memref<464x128xf32, #tpu.memory_space<vmem>>, vector<464x128xf32>,
    } else {
    }
    %c0 = arith.constant 0 : index
    %c0_1 = arith.constant 0 : index
    %3 = vector.load %arg7[%c0, %c0_1] : memref<464x128xf32, #tpu.memory_space<vmem>>, vector<464x128xf32>
    %c0_2 = arith.constant 0 : index
    %c0_3 = arith.constant 0 : index
    %4 = vector.load %arg3[%c0_2, %c0_3] : memref<464x384xbf16, #tpu.memory_space<vmem>>, vector<464x384xbf16>
    %c0_4 = arith.constant 0 : index
    %c0_5 = arith.constant 0 : index
    %5 = vector.load %arg4[%c0_4, %c0_5] : memref<384x128xbf16, #tpu.memory_space<vmem>>, vector<384x128xbf16>
    %cst = arith.constant dense<0.000000e+00> : vector<464x128xf32>
    %6 = tpu.matmul %4, %5, %cst {dimension_numbers = #tpu.dot_dimension_numbers<[1], [0], [0], [1], [0, 0, 1, 1], [], []>} : vector<464x384xbf16>, vector<384x128xbf16>, vector<464x128xf32> -> vector<464x128xf32>
    %7 = arith.addf %3, %6 : vector<464x128xf32>
    %c0_6 = arith.constant 0 : index
    %c0_7 = arith.constant 0 : index
    %8 = vector.load %arg7[%c0_6, %c0_7] : memref<464x128xf32, #tpu.memory_space<vmem>>, vector<464x128xf32>
    tpu.vector_store %arg7[%c0_6, %c0_7], %7 {strides = array<i32>} : memref<464x128xf32, #tpu.memory_space<vmem>>, vector<464x128xf32>,
    %c0_i32_8 = arith.constant 0 : i32
    %9 = arith.cmpi eq, %arg2, %c0_i32_8 : i32
    %10 = arith.extui %9 : i1 to i32
    %c0_i32_9 = arith.constant 0 : i32
    %11 = arith.cmpi ne, %10, %c0_i32_9 : i32
    scf.if %11 {
      %c0_10 = arith.constant 0 : index
      %c0_11 = arith.constant 0 : index
      %12 = vector.load %arg7[%c0_10, %c0_11] : memref<464x128xf32, #tpu.memory_space<vmem>>, vector<464x128xf32>
      %c0_12 = arith.constant 0 : index
      %c0_13 = arith.constant 0 : index
      %13 = vector.load %arg5[%c0_12, %c0_13] : memref<1x128xf32, #tpu.memory_space<vmem>>, vector<1x128xf32>
      %14 = vector.broadcast %13 : vector<1x128xf32> to vector<464x128xf32>
      %15 = arith.addf %12, %14 : vector<464x128xf32>
      %c0_14 = arith.constant 0 : index
      %c0_15 = arith.constant 0 : index
      %16 = vector.load %arg6[%c0_14, %c0_15] : memref<464x128xf32, #tpu.memory_space<vmem>>, vector<464x128xf32>
      tpu.vector_store %arg6[%c0_14, %c0_15], %15 {strides = array<i32>} : memref<464x128xf32, #tpu.memory_space<vmem>>, vector<464x128xf32>,
    } else {
    }
    return
  }
  func.func @transform_0(%arg0: i32, %arg1: i32, %arg2: i32) -> (i32, i32) {
    %c0_i32 = arith.constant 0 : i32
    return %arg0, %arg2 : i32, i32
  }
  func.func @transform_1(%arg0: i32, %arg1: i32, %arg2: i32) -> (i32, i32) {
    %c0_i32 = arith.constant 0 : i32
    return %arg2, %arg1 : i32, i32
  }
  func.func @transform_2(%arg0: i32, %arg1: i32, %arg2: i32) -> (i32, i32) {
    %c0_i32 = arith.constant 0 : i32
    %c0_i32_0 = arith.constant 0 : i32
    return %c0_i32, %arg1 : i32, i32
  }
  func.func @transform_3(%arg0: i32, %arg1: i32, %arg2: i32) -> (i32, i32) {
    %c0_i32 = arith.constant 0 : i32
    return %arg0, %arg1 : i32, i32
  }
}

module attributes {stable_mosaic.version = 11 : i64} {
  func.func @_if_kernel(%arg0: i32, %arg1: i32, %arg2: memref<1x450x128xf32, #tpu.memory_space<vmem>>, %arg3: memref<4x450x128xbf16, #tpu.memory_space<vmem>>, %arg4: memref<450x128xf32, #tpu.memory_space<vmem>>) attributes {dimension_semantics = [#tpu.dimension_semantics<parallel>, #tpu.dimension_semantics<parallel>], iteration_bounds = array<i64: 1, 1>, scalar_prefetch = 0 : i64, scratch_operands = 1 : i64, tpu.core_type = #tpu.core_type<tc>, window_params = [{transform_indices = @transform_0, window_bounds = array<i64: 1, 450, 128>}, {transform_indices = @transform_1, window_bounds = array<i64: 4, 450, 128>}]} {
    %cst = arith.constant 0.000000e+00 : f32
    %0 = vector.broadcast %cst : f32 to vector<450x128xf32>
    %c0 = arith.constant 0 : index
    %c0_0 = arith.constant 0 : index
    %1 = vector.load %arg4[%c0, %c0_0] : memref<450x128xf32, #tpu.memory_space<vmem>>, vector<450x128xf32>
    tpu.vector_store %arg4[%c0, %c0_0], %0 {strides = array<i32>} : memref<450x128xf32, #tpu.memory_space<vmem>>, vector<450x128xf32>,
    %cst_1 = arith.constant 1.000000e+00 : f32
    %c0_i32 = arith.constant 0 : i32
    %c0_2 = arith.constant 0 : index
    %c0_3 = arith.constant 0 : index
    %c0_4 = arith.constant 0 : index
    %2 = vector.load %arg2[%c0_2, %c0_3, %c0_4] : memref<1x450x128xf32, #tpu.memory_space<vmem>>, vector<1x450x128xf32>
    %3 = vector.shape_cast %2 : vector<1x450x128xf32> to vector<450x128xf32>
    %c0_5 = arith.constant 0 : index
    %c0_6 = arith.constant 0 : index
    %4 = vector.load %arg4[%c0_5, %c0_6] : memref<450x128xf32, #tpu.memory_space<vmem>>, vector<450x128xf32>
    %5 = arith.addf %4, %3 : vector<450x128xf32>
    %6 = vector.broadcast %cst_1 : f32 to vector<450x128xf32>
    %7 = arith.cmpf oge, %5, %6 : vector<450x128xf32>
    %cst_7 = arith.constant 0.000000e+00 : f32
    %8 = vector.broadcast %cst_1 : f32 to vector<450x128xf32>
    %9 = vector.broadcast %cst_7 : f32 to vector<450x128xf32>
    %10 = arith.select %7, %8, %9 : vector<450x128xi1>, vector<450x128xf32>
    %11 = arith.subf %5, %10 : vector<450x128xf32>
    %c0_8 = arith.constant 0 : index
    %c0_9 = arith.constant 0 : index
    %12 = vector.load %arg4[%c0_8, %c0_9] : memref<450x128xf32, #tpu.memory_space<vmem>>, vector<450x128xf32>
    tpu.vector_store %arg4[%c0_8, %c0_9], %11 {strides = array<i32>} : memref<450x128xf32, #tpu.memory_space<vmem>>, vector<450x128xf32>,
    %13 = arith.truncf %10 : vector<450x128xf32> to vector<450x128xbf16>
    %14 = arith.index_cast %c0_i32 : i32 to index
    %c0_10 = arith.constant 0 : index
    %c0_11 = arith.constant 0 : index
    %15 = vector.load %arg3[%14, %c0_10, %c0_11] : memref<4x450x128xbf16, #tpu.memory_space<vmem>>, vector<1x450x128xbf16>
    %16 = vector.shape_cast %15 : vector<1x450x128xbf16> to vector<450x128xbf16>
    %17 = vector.shape_cast %13 : vector<450x128xbf16> to vector<1x450x128xbf16>
    tpu.vector_store %arg3[%14, %c0_10, %c0_11], %17 {strides = array<i32>} : memref<4x450x128xbf16, #tpu.memory_space<vmem>>, vector<1x450x128xbf16>,
    %c1_i32 = arith.constant 1 : i32
    %c0_12 = arith.constant 0 : index
    %c0_13 = arith.constant 0 : index
    %c0_14 = arith.constant 0 : index
    %18 = vector.load %arg2[%c0_12, %c0_13, %c0_14] : memref<1x450x128xf32, #tpu.memory_space<vmem>>, vector<1x450x128xf32>
    %19 = vector.shape_cast %18 : vector<1x450x128xf32> to vector<450x128xf32>
    %c0_15 = arith.constant 0 : index
    %c0_16 = arith.constant 0 : index
    %20 = vector.load %arg4[%c0_15, %c0_16] : memref<450x128xf32, #tpu.memory_space<vmem>>, vector<450x128xf32>
    %21 = arith.addf %20, %19 : vector<450x128xf32>
    %22 = vector.broadcast %cst_1 : f32 to vector<450x128xf32>
    %23 = arith.cmpf oge, %21, %22 : vector<450x128xf32>
    %cst_17 = arith.constant 0.000000e+00 : f32
    %24 = vector.broadcast %cst_1 : f32 to vector<450x128xf32>
    %25 = vector.broadcast %cst_17 : f32 to vector<450x128xf32>
    %26 = arith.select %23, %24, %25 : vector<450x128xi1>, vector<450x128xf32>
    %27 = arith.subf %21, %26 : vector<450x128xf32>
    %c0_18 = arith.constant 0 : index
    %c0_19 = arith.constant 0 : index
    %28 = vector.load %arg4[%c0_18, %c0_19] : memref<450x128xf32, #tpu.memory_space<vmem>>, vector<450x128xf32>
    tpu.vector_store %arg4[%c0_18, %c0_19], %27 {strides = array<i32>} : memref<450x128xf32, #tpu.memory_space<vmem>>, vector<450x128xf32>,
    %29 = arith.truncf %26 : vector<450x128xf32> to vector<450x128xbf16>
    %30 = arith.index_cast %c1_i32 : i32 to index
    %c0_20 = arith.constant 0 : index
    %c0_21 = arith.constant 0 : index
    %31 = vector.load %arg3[%30, %c0_20, %c0_21] : memref<4x450x128xbf16, #tpu.memory_space<vmem>>, vector<1x450x128xbf16>
    %32 = vector.shape_cast %31 : vector<1x450x128xbf16> to vector<450x128xbf16>
    %33 = vector.shape_cast %29 : vector<450x128xbf16> to vector<1x450x128xbf16>
    tpu.vector_store %arg3[%30, %c0_20, %c0_21], %33 {strides = array<i32>} : memref<4x450x128xbf16, #tpu.memory_space<vmem>>, vector<1x450x128xbf16>,
    %c2_i32 = arith.constant 2 : i32
    %c0_22 = arith.constant 0 : index
    %c0_23 = arith.constant 0 : index
    %c0_24 = arith.constant 0 : index
    %34 = vector.load %arg2[%c0_22, %c0_23, %c0_24] : memref<1x450x128xf32, #tpu.memory_space<vmem>>, vector<1x450x128xf32>
    %35 = vector.shape_cast %34 : vector<1x450x128xf32> to vector<450x128xf32>
    %c0_25 = arith.constant 0 : index
    %c0_26 = arith.constant 0 : index
    %36 = vector.load %arg4[%c0_25, %c0_26] : memref<450x128xf32, #tpu.memory_space<vmem>>, vector<450x128xf32>
    %37 = arith.addf %36, %35 : vector<450x128xf32>
    %38 = vector.broadcast %cst_1 : f32 to vector<450x128xf32>
    %39 = arith.cmpf oge, %37, %38 : vector<450x128xf32>
    %cst_27 = arith.constant 0.000000e+00 : f32
    %40 = vector.broadcast %cst_1 : f32 to vector<450x128xf32>
    %41 = vector.broadcast %cst_27 : f32 to vector<450x128xf32>
    %42 = arith.select %39, %40, %41 : vector<450x128xi1>, vector<450x128xf32>
    %43 = arith.subf %37, %42 : vector<450x128xf32>
    %c0_28 = arith.constant 0 : index
    %c0_29 = arith.constant 0 : index
    %44 = vector.load %arg4[%c0_28, %c0_29] : memref<450x128xf32, #tpu.memory_space<vmem>>, vector<450x128xf32>
    tpu.vector_store %arg4[%c0_28, %c0_29], %43 {strides = array<i32>} : memref<450x128xf32, #tpu.memory_space<vmem>>, vector<450x128xf32>,
    %45 = arith.truncf %42 : vector<450x128xf32> to vector<450x128xbf16>
    %46 = arith.index_cast %c2_i32 : i32 to index
    %c0_30 = arith.constant 0 : index
    %c0_31 = arith.constant 0 : index
    %47 = vector.load %arg3[%46, %c0_30, %c0_31] : memref<4x450x128xbf16, #tpu.memory_space<vmem>>, vector<1x450x128xbf16>
    %48 = vector.shape_cast %47 : vector<1x450x128xbf16> to vector<450x128xbf16>
    %49 = vector.shape_cast %45 : vector<450x128xbf16> to vector<1x450x128xbf16>
    tpu.vector_store %arg3[%46, %c0_30, %c0_31], %49 {strides = array<i32>} : memref<4x450x128xbf16, #tpu.memory_space<vmem>>, vector<1x450x128xbf16>,
    %c3_i32 = arith.constant 3 : i32
    %c0_32 = arith.constant 0 : index
    %c0_33 = arith.constant 0 : index
    %c0_34 = arith.constant 0 : index
    %50 = vector.load %arg2[%c0_32, %c0_33, %c0_34] : memref<1x450x128xf32, #tpu.memory_space<vmem>>, vector<1x450x128xf32>
    %51 = vector.shape_cast %50 : vector<1x450x128xf32> to vector<450x128xf32>
    %c0_35 = arith.constant 0 : index
    %c0_36 = arith.constant 0 : index
    %52 = vector.load %arg4[%c0_35, %c0_36] : memref<450x128xf32, #tpu.memory_space<vmem>>, vector<450x128xf32>
    %53 = arith.addf %52, %51 : vector<450x128xf32>
    %54 = vector.broadcast %cst_1 : f32 to vector<450x128xf32>
    %55 = arith.cmpf oge, %53, %54 : vector<450x128xf32>
    %cst_37 = arith.constant 0.000000e+00 : f32
    %56 = vector.broadcast %cst_1 : f32 to vector<450x128xf32>
    %57 = vector.broadcast %cst_37 : f32 to vector<450x128xf32>
    %58 = arith.select %55, %56, %57 : vector<450x128xi1>, vector<450x128xf32>
    %59 = arith.subf %53, %58 : vector<450x128xf32>
    %c0_38 = arith.constant 0 : index
    %c0_39 = arith.constant 0 : index
    %60 = vector.load %arg4[%c0_38, %c0_39] : memref<450x128xf32, #tpu.memory_space<vmem>>, vector<450x128xf32>
    tpu.vector_store %arg4[%c0_38, %c0_39], %59 {strides = array<i32>} : memref<450x128xf32, #tpu.memory_space<vmem>>, vector<450x128xf32>,
    %61 = arith.truncf %58 : vector<450x128xf32> to vector<450x128xbf16>
    %62 = arith.index_cast %c3_i32 : i32 to index
    %c0_40 = arith.constant 0 : index
    %c0_41 = arith.constant 0 : index
    %63 = vector.load %arg3[%62, %c0_40, %c0_41] : memref<4x450x128xbf16, #tpu.memory_space<vmem>>, vector<1x450x128xbf16>
    %64 = vector.shape_cast %63 : vector<1x450x128xbf16> to vector<450x128xbf16>
    %65 = vector.shape_cast %61 : vector<450x128xbf16> to vector<1x450x128xbf16>
    tpu.vector_store %arg3[%62, %c0_40, %c0_41], %65 {strides = array<i32>} : memref<4x450x128xbf16, #tpu.memory_space<vmem>>, vector<1x450x128xbf16>,
    %c4_i32 = arith.constant 4 : i32
    return
  }
  func.func @transform_0(%arg0: i32, %arg1: i32) -> (i32, i32, i32) {
    %c0_i32 = arith.constant 0 : i32
    %c0_i32_0 = arith.constant 0 : i32
    return %c0_i32, %arg0, %arg1 : i32, i32, i32
  }
  func.func @transform_1(%arg0: i32, %arg1: i32) -> (i32, i32, i32) {
    %c0_i32 = arith.constant 0 : i32
    %c0_i32_0 = arith.constant 0 : i32
    return %c0_i32, %arg0, %arg1 : i32, i32, i32
  }
}

module attributes {stable_mosaic.version = 11 : i64} {
  func.func @_matmul_bias_kernel(%arg0: i32, %arg1: i32, %arg2: i32, %arg3: memref<400x128xbf16, #tpu.memory_space<vmem>>, %arg4: memref<128x128xbf16, #tpu.memory_space<vmem>>, %arg5: memref<1x128xf32, #tpu.memory_space<vmem>>, %arg6: memref<400x128xf32, #tpu.memory_space<vmem>>, %arg7: memref<400x128xf32, #tpu.memory_space<vmem>>) attributes {dimension_semantics = [#tpu.dimension_semantics<parallel>, #tpu.dimension_semantics<parallel>, #tpu.dimension_semantics<arbitrary>], iteration_bounds = array<i64: 1, 1, 25>, scalar_prefetch = 0 : i64, scratch_operands = 1 : i64, tpu.core_type = #tpu.core_type<tc>, window_params = [{transform_indices = @transform_0, window_bounds = array<i64: 400, 128>}, {transform_indices = @transform_1, window_bounds = array<i64: 128, 128>}, {transform_indices = @transform_2, window_bounds = array<i64: 1, 128>}, {transform_indices = @transform_3, window_bounds = array<i64: 400, 128>}]} {
    %c0_i32 = arith.constant 0 : i32
    %0 = arith.cmpi eq, %arg2, %c0_i32 : i32
    %1 = arith.extui %0 : i1 to i32
    %c0_i32_0 = arith.constant 0 : i32
    %2 = arith.cmpi ne, %1, %c0_i32_0 : i32
    scf.if %2 {
      %cst_9 = arith.constant 0.000000e+00 : f32
      %12 = vector.broadcast %cst_9 : f32 to vector<400x128xf32>
      %c0_10 = arith.constant 0 : index
      %c0_11 = arith.constant 0 : index
      %13 = vector.load %arg7[%c0_10, %c0_11] : memref<400x128xf32, #tpu.memory_space<vmem>>, vector<400x128xf32>
      tpu.vector_store %arg7[%c0_10, %c0_11], %12 {strides = array<i32>} : memref<400x128xf32, #tpu.memory_space<vmem>>, vector<400x128xf32>,
    } else {
    }
    %c0 = arith.constant 0 : index
    %c0_1 = arith.constant 0 : index
    %3 = vector.load %arg7[%c0, %c0_1] : memref<400x128xf32, #tpu.memory_space<vmem>>, vector<400x128xf32>
    %c0_2 = arith.constant 0 : index
    %c0_3 = arith.constant 0 : index
    %4 = vector.load %arg3[%c0_2, %c0_3] : memref<400x128xbf16, #tpu.memory_space<vmem>>, vector<400x128xbf16>
    %c0_4 = arith.constant 0 : index
    %c0_5 = arith.constant 0 : index
    %5 = vector.load %arg4[%c0_4, %c0_5] : memref<128x128xbf16, #tpu.memory_space<vmem>>, vector<128x128xbf16>
    %cst = arith.constant dense<0.000000e+00> : vector<400x128xf32>
    %6 = tpu.matmul %4, %5, %cst {dimension_numbers = #tpu.dot_dimension_numbers<[1], [0], [0], [1], [0, 0, 1, 1], [], []>} : vector<400x128xbf16>, vector<128x128xbf16>, vector<400x128xf32> -> vector<400x128xf32>
    %7 = arith.addf %3, %6 : vector<400x128xf32>
    %c0_6 = arith.constant 0 : index
    %c0_7 = arith.constant 0 : index
    %8 = vector.load %arg7[%c0_6, %c0_7] : memref<400x128xf32, #tpu.memory_space<vmem>>, vector<400x128xf32>
    tpu.vector_store %arg7[%c0_6, %c0_7], %7 {strides = array<i32>} : memref<400x128xf32, #tpu.memory_space<vmem>>, vector<400x128xf32>,
    %c24_i32 = arith.constant 24 : i32
    %9 = arith.cmpi eq, %arg2, %c24_i32 : i32
    %10 = arith.extui %9 : i1 to i32
    %c0_i32_8 = arith.constant 0 : i32
    %11 = arith.cmpi ne, %10, %c0_i32_8 : i32
    scf.if %11 {
      %c0_9 = arith.constant 0 : index
      %c0_10 = arith.constant 0 : index
      %12 = vector.load %arg7[%c0_9, %c0_10] : memref<400x128xf32, #tpu.memory_space<vmem>>, vector<400x128xf32>
      %c0_11 = arith.constant 0 : index
      %c0_12 = arith.constant 0 : index
      %13 = vector.load %arg5[%c0_11, %c0_12] : memref<1x128xf32, #tpu.memory_space<vmem>>, vector<1x128xf32>
      %14 = vector.broadcast %13 : vector<1x128xf32> to vector<400x128xf32>
      %15 = arith.addf %12, %14 : vector<400x128xf32>
      %c0_13 = arith.constant 0 : index
      %c0_14 = arith.constant 0 : index
      %16 = vector.load %arg6[%c0_13, %c0_14] : memref<400x128xf32, #tpu.memory_space<vmem>>, vector<400x128xf32>
      tpu.vector_store %arg6[%c0_13, %c0_14], %15 {strides = array<i32>} : memref<400x128xf32, #tpu.memory_space<vmem>>, vector<400x128xf32>,
    } else {
    }
    return
  }
  func.func @transform_0(%arg0: i32, %arg1: i32, %arg2: i32) -> (i32, i32) {
    %c0_i32 = arith.constant 0 : i32
    return %arg0, %arg2 : i32, i32
  }
  func.func @transform_1(%arg0: i32, %arg1: i32, %arg2: i32) -> (i32, i32) {
    %c0_i32 = arith.constant 0 : i32
    return %arg2, %arg1 : i32, i32
  }
  func.func @transform_2(%arg0: i32, %arg1: i32, %arg2: i32) -> (i32, i32) {
    %c0_i32 = arith.constant 0 : i32
    %c0_i32_0 = arith.constant 0 : i32
    return %c0_i32, %arg1 : i32, i32
  }
  func.func @transform_3(%arg0: i32, %arg1: i32, %arg2: i32) -> (i32, i32) {
    %c0_i32 = arith.constant 0 : i32
    return %arg0, %arg1 : i32, i32
  }
}

module attributes {stable_mosaic.version = 11 : i64} {
  func.func @_if_kernel(%arg0: i32, %arg1: i32, %arg2: memref<4x98x128xf32, #tpu.memory_space<vmem>>, %arg3: memref<4x98x128xbf16, #tpu.memory_space<vmem>>, %arg4: memref<98x128xf32, #tpu.memory_space<vmem>>) attributes {dimension_semantics = [#tpu.dimension_semantics<parallel>, #tpu.dimension_semantics<parallel>], iteration_bounds = array<i64: 1, 1>, scalar_prefetch = 0 : i64, scratch_operands = 1 : i64, tpu.core_type = #tpu.core_type<tc>, window_params = [{transform_indices = @transform_0, window_bounds = array<i64: 4, 98, 128>}, {transform_indices = @transform_1, window_bounds = array<i64: 4, 98, 128>}]} {
    %cst = arith.constant 0.000000e+00 : f32
    %0 = vector.broadcast %cst : f32 to vector<98x128xf32>
    %c0 = arith.constant 0 : index
    %c0_0 = arith.constant 0 : index
    %1 = vector.load %arg4[%c0, %c0_0] : memref<98x128xf32, #tpu.memory_space<vmem>>, vector<98x128xf32>
    tpu.vector_store %arg4[%c0, %c0_0], %0 {strides = array<i32>} : memref<98x128xf32, #tpu.memory_space<vmem>>, vector<98x128xf32>,
    %cst_1 = arith.constant 1.000000e+00 : f32
    %c0_i32 = arith.constant 0 : i32
    %2 = arith.index_cast %c0_i32 : i32 to index
    %c0_2 = arith.constant 0 : index
    %c0_3 = arith.constant 0 : index
    %3 = vector.load %arg2[%2, %c0_2, %c0_3] : memref<4x98x128xf32, #tpu.memory_space<vmem>>, vector<1x98x128xf32>
    %4 = vector.shape_cast %3 : vector<1x98x128xf32> to vector<98x128xf32>
    %c0_4 = arith.constant 0 : index
    %c0_5 = arith.constant 0 : index
    %5 = vector.load %arg4[%c0_4, %c0_5] : memref<98x128xf32, #tpu.memory_space<vmem>>, vector<98x128xf32>
    %6 = arith.addf %5, %4 : vector<98x128xf32>
    %7 = vector.broadcast %cst_1 : f32 to vector<98x128xf32>
    %8 = arith.cmpf oge, %6, %7 : vector<98x128xf32>
    %cst_6 = arith.constant 0.000000e+00 : f32
    %9 = vector.broadcast %cst_1 : f32 to vector<98x128xf32>
    %10 = vector.broadcast %cst_6 : f32 to vector<98x128xf32>
    %11 = arith.select %8, %9, %10 : vector<98x128xi1>, vector<98x128xf32>
    %12 = arith.subf %6, %11 : vector<98x128xf32>
    %c0_7 = arith.constant 0 : index
    %c0_8 = arith.constant 0 : index
    %13 = vector.load %arg4[%c0_7, %c0_8] : memref<98x128xf32, #tpu.memory_space<vmem>>, vector<98x128xf32>
    tpu.vector_store %arg4[%c0_7, %c0_8], %12 {strides = array<i32>} : memref<98x128xf32, #tpu.memory_space<vmem>>, vector<98x128xf32>,
    %14 = arith.truncf %11 : vector<98x128xf32> to vector<98x128xbf16>
    %15 = arith.index_cast %c0_i32 : i32 to index
    %c0_9 = arith.constant 0 : index
    %c0_10 = arith.constant 0 : index
    %16 = vector.load %arg3[%15, %c0_9, %c0_10] : memref<4x98x128xbf16, #tpu.memory_space<vmem>>, vector<1x98x128xbf16>
    %17 = vector.shape_cast %16 : vector<1x98x128xbf16> to vector<98x128xbf16>
    %18 = vector.shape_cast %14 : vector<98x128xbf16> to vector<1x98x128xbf16>
    tpu.vector_store %arg3[%15, %c0_9, %c0_10], %18 {strides = array<i32>} : memref<4x98x128xbf16, #tpu.memory_space<vmem>>, vector<1x98x128xbf16>,
    %c1_i32 = arith.constant 1 : i32
    %19 = arith.index_cast %c1_i32 : i32 to index
    %c0_11 = arith.constant 0 : index
    %c0_12 = arith.constant 0 : index
    %20 = vector.load %arg2[%19, %c0_11, %c0_12] : memref<4x98x128xf32, #tpu.memory_space<vmem>>, vector<1x98x128xf32>
    %21 = vector.shape_cast %20 : vector<1x98x128xf32> to vector<98x128xf32>
    %c0_13 = arith.constant 0 : index
    %c0_14 = arith.constant 0 : index
    %22 = vector.load %arg4[%c0_13, %c0_14] : memref<98x128xf32, #tpu.memory_space<vmem>>, vector<98x128xf32>
    %23 = arith.addf %22, %21 : vector<98x128xf32>
    %24 = vector.broadcast %cst_1 : f32 to vector<98x128xf32>
    %25 = arith.cmpf oge, %23, %24 : vector<98x128xf32>
    %cst_15 = arith.constant 0.000000e+00 : f32
    %26 = vector.broadcast %cst_1 : f32 to vector<98x128xf32>
    %27 = vector.broadcast %cst_15 : f32 to vector<98x128xf32>
    %28 = arith.select %25, %26, %27 : vector<98x128xi1>, vector<98x128xf32>
    %29 = arith.subf %23, %28 : vector<98x128xf32>
    %c0_16 = arith.constant 0 : index
    %c0_17 = arith.constant 0 : index
    %30 = vector.load %arg4[%c0_16, %c0_17] : memref<98x128xf32, #tpu.memory_space<vmem>>, vector<98x128xf32>
    tpu.vector_store %arg4[%c0_16, %c0_17], %29 {strides = array<i32>} : memref<98x128xf32, #tpu.memory_space<vmem>>, vector<98x128xf32>,
    %31 = arith.truncf %28 : vector<98x128xf32> to vector<98x128xbf16>
    %32 = arith.index_cast %c1_i32 : i32 to index
    %c0_18 = arith.constant 0 : index
    %c0_19 = arith.constant 0 : index
    %33 = vector.load %arg3[%32, %c0_18, %c0_19] : memref<4x98x128xbf16, #tpu.memory_space<vmem>>, vector<1x98x128xbf16>
    %34 = vector.shape_cast %33 : vector<1x98x128xbf16> to vector<98x128xbf16>
    %35 = vector.shape_cast %31 : vector<98x128xbf16> to vector<1x98x128xbf16>
    tpu.vector_store %arg3[%32, %c0_18, %c0_19], %35 {strides = array<i32>} : memref<4x98x128xbf16, #tpu.memory_space<vmem>>, vector<1x98x128xbf16>,
    %c2_i32 = arith.constant 2 : i32
    %36 = arith.index_cast %c2_i32 : i32 to index
    %c0_20 = arith.constant 0 : index
    %c0_21 = arith.constant 0 : index
    %37 = vector.load %arg2[%36, %c0_20, %c0_21] : memref<4x98x128xf32, #tpu.memory_space<vmem>>, vector<1x98x128xf32>
    %38 = vector.shape_cast %37 : vector<1x98x128xf32> to vector<98x128xf32>
    %c0_22 = arith.constant 0 : index
    %c0_23 = arith.constant 0 : index
    %39 = vector.load %arg4[%c0_22, %c0_23] : memref<98x128xf32, #tpu.memory_space<vmem>>, vector<98x128xf32>
    %40 = arith.addf %39, %38 : vector<98x128xf32>
    %41 = vector.broadcast %cst_1 : f32 to vector<98x128xf32>
    %42 = arith.cmpf oge, %40, %41 : vector<98x128xf32>
    %cst_24 = arith.constant 0.000000e+00 : f32
    %43 = vector.broadcast %cst_1 : f32 to vector<98x128xf32>
    %44 = vector.broadcast %cst_24 : f32 to vector<98x128xf32>
    %45 = arith.select %42, %43, %44 : vector<98x128xi1>, vector<98x128xf32>
    %46 = arith.subf %40, %45 : vector<98x128xf32>
    %c0_25 = arith.constant 0 : index
    %c0_26 = arith.constant 0 : index
    %47 = vector.load %arg4[%c0_25, %c0_26] : memref<98x128xf32, #tpu.memory_space<vmem>>, vector<98x128xf32>
    tpu.vector_store %arg4[%c0_25, %c0_26], %46 {strides = array<i32>} : memref<98x128xf32, #tpu.memory_space<vmem>>, vector<98x128xf32>,
    %48 = arith.truncf %45 : vector<98x128xf32> to vector<98x128xbf16>
    %49 = arith.index_cast %c2_i32 : i32 to index
    %c0_27 = arith.constant 0 : index
    %c0_28 = arith.constant 0 : index
    %50 = vector.load %arg3[%49, %c0_27, %c0_28] : memref<4x98x128xbf16, #tpu.memory_space<vmem>>, vector<1x98x128xbf16>
    %51 = vector.shape_cast %50 : vector<1x98x128xbf16> to vector<98x128xbf16>
    %52 = vector.shape_cast %48 : vector<98x128xbf16> to vector<1x98x128xbf16>
    tpu.vector_store %arg3[%49, %c0_27, %c0_28], %52 {strides = array<i32>} : memref<4x98x128xbf16, #tpu.memory_space<vmem>>, vector<1x98x128xbf16>,
    %c3_i32 = arith.constant 3 : i32
    %53 = arith.index_cast %c3_i32 : i32 to index
    %c0_29 = arith.constant 0 : index
    %c0_30 = arith.constant 0 : index
    %54 = vector.load %arg2[%53, %c0_29, %c0_30] : memref<4x98x128xf32, #tpu.memory_space<vmem>>, vector<1x98x128xf32>
    %55 = vector.shape_cast %54 : vector<1x98x128xf32> to vector<98x128xf32>
    %c0_31 = arith.constant 0 : index
    %c0_32 = arith.constant 0 : index
    %56 = vector.load %arg4[%c0_31, %c0_32] : memref<98x128xf32, #tpu.memory_space<vmem>>, vector<98x128xf32>
    %57 = arith.addf %56, %55 : vector<98x128xf32>
    %58 = vector.broadcast %cst_1 : f32 to vector<98x128xf32>
    %59 = arith.cmpf oge, %57, %58 : vector<98x128xf32>
    %cst_33 = arith.constant 0.000000e+00 : f32
    %60 = vector.broadcast %cst_1 : f32 to vector<98x128xf32>
    %61 = vector.broadcast %cst_33 : f32 to vector<98x128xf32>
    %62 = arith.select %59, %60, %61 : vector<98x128xi1>, vector<98x128xf32>
    %63 = arith.subf %57, %62 : vector<98x128xf32>
    %c0_34 = arith.constant 0 : index
    %c0_35 = arith.constant 0 : index
    %64 = vector.load %arg4[%c0_34, %c0_35] : memref<98x128xf32, #tpu.memory_space<vmem>>, vector<98x128xf32>
    tpu.vector_store %arg4[%c0_34, %c0_35], %63 {strides = array<i32>} : memref<98x128xf32, #tpu.memory_space<vmem>>, vector<98x128xf32>,
    %65 = arith.truncf %62 : vector<98x128xf32> to vector<98x128xbf16>
    %66 = arith.index_cast %c3_i32 : i32 to index
    %c0_36 = arith.constant 0 : index
    %c0_37 = arith.constant 0 : index
    %67 = vector.load %arg3[%66, %c0_36, %c0_37] : memref<4x98x128xbf16, #tpu.memory_space<vmem>>, vector<1x98x128xbf16>
    %68 = vector.shape_cast %67 : vector<1x98x128xbf16> to vector<98x128xbf16>
    %69 = vector.shape_cast %65 : vector<98x128xbf16> to vector<1x98x128xbf16>
    tpu.vector_store %arg3[%66, %c0_36, %c0_37], %69 {strides = array<i32>} : memref<4x98x128xbf16, #tpu.memory_space<vmem>>, vector<1x98x128xbf16>,
    %c4_i32 = arith.constant 4 : i32
    return
  }
  func.func @transform_0(%arg0: i32, %arg1: i32) -> (i32, i32, i32) {
    %c0_i32 = arith.constant 0 : i32
    %c0_i32_0 = arith.constant 0 : i32
    return %c0_i32, %arg0, %arg1 : i32, i32, i32
  }
  func.func @transform_1(%arg0: i32, %arg1: i32) -> (i32, i32, i32) {
    %c0_i32 = arith.constant 0 : i32
    %c0_i32_0 = arith.constant 0 : i32
    return %c0_i32, %arg0, %arg1 : i32, i32, i32
  }
}

module attributes {stable_mosaic.version = 11 : i64} {
  func.func @_matmul_bias_kernel(%arg0: i32, %arg1: i32, %arg2: i32, %arg3: memref<80x384xbf16, #tpu.memory_space<vmem>>, %arg4: memref<384x128xbf16, #tpu.memory_space<vmem>>, %arg5: memref<1x128xf32, #tpu.memory_space<vmem>>, %arg6: memref<80x128xf32, #tpu.memory_space<vmem>>, %arg7: memref<80x128xf32, #tpu.memory_space<vmem>>) attributes {dimension_semantics = [#tpu.dimension_semantics<parallel>, #tpu.dimension_semantics<parallel>, #tpu.dimension_semantics<arbitrary>], iteration_bounds = array<i64: 1, 1, 3>, scalar_prefetch = 0 : i64, scratch_operands = 1 : i64, tpu.core_type = #tpu.core_type<tc>, window_params = [{transform_indices = @transform_0, window_bounds = array<i64: 80, 384>}, {transform_indices = @transform_1, window_bounds = array<i64: 384, 128>}, {transform_indices = @transform_2, window_bounds = array<i64: 1, 128>}, {transform_indices = @transform_3, window_bounds = array<i64: 80, 128>}]} {
    %c0_i32 = arith.constant 0 : i32
    %0 = arith.cmpi eq, %arg2, %c0_i32 : i32
    %1 = arith.extui %0 : i1 to i32
    %c0_i32_0 = arith.constant 0 : i32
    %2 = arith.cmpi ne, %1, %c0_i32_0 : i32
    scf.if %2 {
      %cst_9 = arith.constant 0.000000e+00 : f32
      %12 = vector.broadcast %cst_9 : f32 to vector<80x128xf32>
      %c0_10 = arith.constant 0 : index
      %c0_11 = arith.constant 0 : index
      %13 = vector.load %arg7[%c0_10, %c0_11] : memref<80x128xf32, #tpu.memory_space<vmem>>, vector<80x128xf32>
      tpu.vector_store %arg7[%c0_10, %c0_11], %12 {strides = array<i32>} : memref<80x128xf32, #tpu.memory_space<vmem>>, vector<80x128xf32>,
    } else {
    }
    %c0 = arith.constant 0 : index
    %c0_1 = arith.constant 0 : index
    %3 = vector.load %arg7[%c0, %c0_1] : memref<80x128xf32, #tpu.memory_space<vmem>>, vector<80x128xf32>
    %c0_2 = arith.constant 0 : index
    %c0_3 = arith.constant 0 : index
    %4 = vector.load %arg3[%c0_2, %c0_3] : memref<80x384xbf16, #tpu.memory_space<vmem>>, vector<80x384xbf16>
    %c0_4 = arith.constant 0 : index
    %c0_5 = arith.constant 0 : index
    %5 = vector.load %arg4[%c0_4, %c0_5] : memref<384x128xbf16, #tpu.memory_space<vmem>>, vector<384x128xbf16>
    %cst = arith.constant dense<0.000000e+00> : vector<80x128xf32>
    %6 = tpu.matmul %4, %5, %cst {dimension_numbers = #tpu.dot_dimension_numbers<[1], [0], [0], [1], [0, 0, 1, 1], [], []>} : vector<80x384xbf16>, vector<384x128xbf16>, vector<80x128xf32> -> vector<80x128xf32>
    %7 = arith.addf %3, %6 : vector<80x128xf32>
    %c0_6 = arith.constant 0 : index
    %c0_7 = arith.constant 0 : index
    %8 = vector.load %arg7[%c0_6, %c0_7] : memref<80x128xf32, #tpu.memory_space<vmem>>, vector<80x128xf32>
    tpu.vector_store %arg7[%c0_6, %c0_7], %7 {strides = array<i32>} : memref<80x128xf32, #tpu.memory_space<vmem>>, vector<80x128xf32>,
    %c2_i32 = arith.constant 2 : i32
    %9 = arith.cmpi eq, %arg2, %c2_i32 : i32
    %10 = arith.extui %9 : i1 to i32
    %c0_i32_8 = arith.constant 0 : i32
    %11 = arith.cmpi ne, %10, %c0_i32_8 : i32
    scf.if %11 {
      %c0_9 = arith.constant 0 : index
      %c0_10 = arith.constant 0 : index
      %12 = vector.load %arg7[%c0_9, %c0_10] : memref<80x128xf32, #tpu.memory_space<vmem>>, vector<80x128xf32>
      %c0_11 = arith.constant 0 : index
      %c0_12 = arith.constant 0 : index
      %13 = vector.load %arg5[%c0_11, %c0_12] : memref<1x128xf32, #tpu.memory_space<vmem>>, vector<1x128xf32>
      %14 = vector.broadcast %13 : vector<1x128xf32> to vector<80x128xf32>
      %15 = arith.addf %12, %14 : vector<80x128xf32>
      %c0_13 = arith.constant 0 : index
      %c0_14 = arith.constant 0 : index
      %16 = vector.load %arg6[%c0_13, %c0_14] : memref<80x128xf32, #tpu.memory_space<vmem>>, vector<80x128xf32>
      tpu.vector_store %arg6[%c0_13, %c0_14], %15 {strides = array<i32>} : memref<80x128xf32, #tpu.memory_space<vmem>>, vector<80x128xf32>,
    } else {
    }
    return
  }
  func.func @transform_0(%arg0: i32, %arg1: i32, %arg2: i32) -> (i32, i32) {
    %c0_i32 = arith.constant 0 : i32
    return %arg0, %arg2 : i32, i32
  }
  func.func @transform_1(%arg0: i32, %arg1: i32, %arg2: i32) -> (i32, i32) {
    %c0_i32 = arith.constant 0 : i32
    return %arg2, %arg1 : i32, i32
  }
  func.func @transform_2(%arg0: i32, %arg1: i32, %arg2: i32) -> (i32, i32) {
    %c0_i32 = arith.constant 0 : i32
    %c0_i32_0 = arith.constant 0 : i32
    return %c0_i32, %arg1 : i32, i32
  }
  func.func @transform_3(%arg0: i32, %arg1: i32, %arg2: i32) -> (i32, i32) {
    %c0_i32 = arith.constant 0 : i32
    return %arg0, %arg1 : i32, i32
  }
}

module attributes {stable_mosaic.version = 11 : i64} {
  func.func @_if_kernel(%arg0: i32, %arg1: i32, %arg2: memref<4x18x128xf32, #tpu.memory_space<vmem>>, %arg3: memref<4x18x128xbf16, #tpu.memory_space<vmem>>, %arg4: memref<18x128xf32, #tpu.memory_space<vmem>>) attributes {dimension_semantics = [#tpu.dimension_semantics<parallel>, #tpu.dimension_semantics<parallel>], iteration_bounds = array<i64: 1, 1>, scalar_prefetch = 0 : i64, scratch_operands = 1 : i64, tpu.core_type = #tpu.core_type<tc>, window_params = [{transform_indices = @transform_0, window_bounds = array<i64: 4, 18, 128>}, {transform_indices = @transform_1, window_bounds = array<i64: 4, 18, 128>}]} {
    %cst = arith.constant 0.000000e+00 : f32
    %0 = vector.broadcast %cst : f32 to vector<18x128xf32>
    %c0 = arith.constant 0 : index
    %c0_0 = arith.constant 0 : index
    %1 = vector.load %arg4[%c0, %c0_0] : memref<18x128xf32, #tpu.memory_space<vmem>>, vector<18x128xf32>
    tpu.vector_store %arg4[%c0, %c0_0], %0 {strides = array<i32>} : memref<18x128xf32, #tpu.memory_space<vmem>>, vector<18x128xf32>,
    %cst_1 = arith.constant 1.000000e+00 : f32
    %c0_i32 = arith.constant 0 : i32
    %2 = arith.index_cast %c0_i32 : i32 to index
    %c0_2 = arith.constant 0 : index
    %c0_3 = arith.constant 0 : index
    %3 = vector.load %arg2[%2, %c0_2, %c0_3] : memref<4x18x128xf32, #tpu.memory_space<vmem>>, vector<1x18x128xf32>
    %4 = vector.shape_cast %3 : vector<1x18x128xf32> to vector<18x128xf32>
    %c0_4 = arith.constant 0 : index
    %c0_5 = arith.constant 0 : index
    %5 = vector.load %arg4[%c0_4, %c0_5] : memref<18x128xf32, #tpu.memory_space<vmem>>, vector<18x128xf32>
    %6 = arith.addf %5, %4 : vector<18x128xf32>
    %7 = vector.broadcast %cst_1 : f32 to vector<18x128xf32>
    %8 = arith.cmpf oge, %6, %7 : vector<18x128xf32>
    %cst_6 = arith.constant 0.000000e+00 : f32
    %9 = vector.broadcast %cst_1 : f32 to vector<18x128xf32>
    %10 = vector.broadcast %cst_6 : f32 to vector<18x128xf32>
    %11 = arith.select %8, %9, %10 : vector<18x128xi1>, vector<18x128xf32>
    %12 = arith.subf %6, %11 : vector<18x128xf32>
    %c0_7 = arith.constant 0 : index
    %c0_8 = arith.constant 0 : index
    %13 = vector.load %arg4[%c0_7, %c0_8] : memref<18x128xf32, #tpu.memory_space<vmem>>, vector<18x128xf32>
    tpu.vector_store %arg4[%c0_7, %c0_8], %12 {strides = array<i32>} : memref<18x128xf32, #tpu.memory_space<vmem>>, vector<18x128xf32>,
    %14 = arith.truncf %11 : vector<18x128xf32> to vector<18x128xbf16>
    %15 = arith.index_cast %c0_i32 : i32 to index
    %c0_9 = arith.constant 0 : index
    %c0_10 = arith.constant 0 : index
    %16 = vector.load %arg3[%15, %c0_9, %c0_10] : memref<4x18x128xbf16, #tpu.memory_space<vmem>>, vector<1x18x128xbf16>
    %17 = vector.shape_cast %16 : vector<1x18x128xbf16> to vector<18x128xbf16>
    %18 = vector.shape_cast %14 : vector<18x128xbf16> to vector<1x18x128xbf16>
    tpu.vector_store %arg3[%15, %c0_9, %c0_10], %18 {strides = array<i32>} : memref<4x18x128xbf16, #tpu.memory_space<vmem>>, vector<1x18x128xbf16>,
    %c1_i32 = arith.constant 1 : i32
    %19 = arith.index_cast %c1_i32 : i32 to index
    %c0_11 = arith.constant 0 : index
    %c0_12 = arith.constant 0 : index
    %20 = vector.load %arg2[%19, %c0_11, %c0_12] : memref<4x18x128xf32, #tpu.memory_space<vmem>>, vector<1x18x128xf32>
    %21 = vector.shape_cast %20 : vector<1x18x128xf32> to vector<18x128xf32>
    %c0_13 = arith.constant 0 : index
    %c0_14 = arith.constant 0 : index
    %22 = vector.load %arg4[%c0_13, %c0_14] : memref<18x128xf32, #tpu.memory_space<vmem>>, vector<18x128xf32>
    %23 = arith.addf %22, %21 : vector<18x128xf32>
    %24 = vector.broadcast %cst_1 : f32 to vector<18x128xf32>
    %25 = arith.cmpf oge, %23, %24 : vector<18x128xf32>
    %cst_15 = arith.constant 0.000000e+00 : f32
    %26 = vector.broadcast %cst_1 : f32 to vector<18x128xf32>
    %27 = vector.broadcast %cst_15 : f32 to vector<18x128xf32>
    %28 = arith.select %25, %26, %27 : vector<18x128xi1>, vector<18x128xf32>
    %29 = arith.subf %23, %28 : vector<18x128xf32>
    %c0_16 = arith.constant 0 : index
    %c0_17 = arith.constant 0 : index
    %30 = vector.load %arg4[%c0_16, %c0_17] : memref<18x128xf32, #tpu.memory_space<vmem>>, vector<18x128xf32>
    tpu.vector_store %arg4[%c0_16, %c0_17], %29 {strides = array<i32>} : memref<18x128xf32, #tpu.memory_space<vmem>>, vector<18x128xf32>,
    %31 = arith.truncf %28 : vector<18x128xf32> to vector<18x128xbf16>
    %32 = arith.index_cast %c1_i32 : i32 to index
    %c0_18 = arith.constant 0 : index
    %c0_19 = arith.constant 0 : index
    %33 = vector.load %arg3[%32, %c0_18, %c0_19] : memref<4x18x128xbf16, #tpu.memory_space<vmem>>, vector<1x18x128xbf16>
    %34 = vector.shape_cast %33 : vector<1x18x128xbf16> to vector<18x128xbf16>
    %35 = vector.shape_cast %31 : vector<18x128xbf16> to vector<1x18x128xbf16>
    tpu.vector_store %arg3[%32, %c0_18, %c0_19], %35 {strides = array<i32>} : memref<4x18x128xbf16, #tpu.memory_space<vmem>>, vector<1x18x128xbf16>,
    %c2_i32 = arith.constant 2 : i32
    %36 = arith.index_cast %c2_i32 : i32 to index
    %c0_20 = arith.constant 0 : index
    %c0_21 = arith.constant 0 : index
    %37 = vector.load %arg2[%36, %c0_20, %c0_21] : memref<4x18x128xf32, #tpu.memory_space<vmem>>, vector<1x18x128xf32>
    %38 = vector.shape_cast %37 : vector<1x18x128xf32> to vector<18x128xf32>
    %c0_22 = arith.constant 0 : index
    %c0_23 = arith.constant 0 : index
    %39 = vector.load %arg4[%c0_22, %c0_23] : memref<18x128xf32, #tpu.memory_space<vmem>>, vector<18x128xf32>
    %40 = arith.addf %39, %38 : vector<18x128xf32>
    %41 = vector.broadcast %cst_1 : f32 to vector<18x128xf32>
    %42 = arith.cmpf oge, %40, %41 : vector<18x128xf32>
    %cst_24 = arith.constant 0.000000e+00 : f32
    %43 = vector.broadcast %cst_1 : f32 to vector<18x128xf32>
    %44 = vector.broadcast %cst_24 : f32 to vector<18x128xf32>
    %45 = arith.select %42, %43, %44 : vector<18x128xi1>, vector<18x128xf32>
    %46 = arith.subf %40, %45 : vector<18x128xf32>
    %c0_25 = arith.constant 0 : index
    %c0_26 = arith.constant 0 : index
    %47 = vector.load %arg4[%c0_25, %c0_26] : memref<18x128xf32, #tpu.memory_space<vmem>>, vector<18x128xf32>
    tpu.vector_store %arg4[%c0_25, %c0_26], %46 {strides = array<i32>} : memref<18x128xf32, #tpu.memory_space<vmem>>, vector<18x128xf32>,
    %48 = arith.truncf %45 : vector<18x128xf32> to vector<18x128xbf16>
    %49 = arith.index_cast %c2_i32 : i32 to index
    %c0_27 = arith.constant 0 : index
    %c0_28 = arith.constant 0 : index
    %50 = vector.load %arg3[%49, %c0_27, %c0_28] : memref<4x18x128xbf16, #tpu.memory_space<vmem>>, vector<1x18x128xbf16>
    %51 = vector.shape_cast %50 : vector<1x18x128xbf16> to vector<18x128xbf16>
    %52 = vector.shape_cast %48 : vector<18x128xbf16> to vector<1x18x128xbf16>
    tpu.vector_store %arg3[%49, %c0_27, %c0_28], %52 {strides = array<i32>} : memref<4x18x128xbf16, #tpu.memory_space<vmem>>, vector<1x18x128xbf16>,
    %c3_i32 = arith.constant 3 : i32
    %53 = arith.index_cast %c3_i32 : i32 to index
    %c0_29 = arith.constant 0 : index
    %c0_30 = arith.constant 0 : index
    %54 = vector.load %arg2[%53, %c0_29, %c0_30] : memref<4x18x128xf32, #tpu.memory_space<vmem>>, vector<1x18x128xf32>
    %55 = vector.shape_cast %54 : vector<1x18x128xf32> to vector<18x128xf32>
    %c0_31 = arith.constant 0 : index
    %c0_32 = arith.constant 0 : index
    %56 = vector.load %arg4[%c0_31, %c0_32] : memref<18x128xf32, #tpu.memory_space<vmem>>, vector<18x128xf32>
    %57 = arith.addf %56, %55 : vector<18x128xf32>
    %58 = vector.broadcast %cst_1 : f32 to vector<18x128xf32>
    %59 = arith.cmpf oge, %57, %58 : vector<18x128xf32>
    %cst_33 = arith.constant 0.000000e+00 : f32
    %60 = vector.broadcast %cst_1 : f32 to vector<18x128xf32>
    %61 = vector.broadcast %cst_33 : f32 to vector<18x128xf32>
    %62 = arith.select %59, %60, %61 : vector<18x128xi1>, vector<18x128xf32>
    %63 = arith.subf %57, %62 : vector<18x128xf32>
    %c0_34 = arith.constant 0 : index
    %c0_35 = arith.constant 0 : index
    %64 = vector.load %arg4[%c0_34, %c0_35] : memref<18x128xf32, #tpu.memory_space<vmem>>, vector<18x128xf32>
    tpu.vector_store %arg4[%c0_34, %c0_35], %63 {strides = array<i32>} : memref<18x128xf32, #tpu.memory_space<vmem>>, vector<18x128xf32>,
    %65 = arith.truncf %62 : vector<18x128xf32> to vector<18x128xbf16>
    %66 = arith.index_cast %c3_i32 : i32 to index
    %c0_36 = arith.constant 0 : index
    %c0_37 = arith.constant 0 : index
    %67 = vector.load %arg3[%66, %c0_36, %c0_37] : memref<4x18x128xbf16, #tpu.memory_space<vmem>>, vector<1x18x128xbf16>
    %68 = vector.shape_cast %67 : vector<1x18x128xbf16> to vector<18x128xbf16>
    %69 = vector.shape_cast %65 : vector<18x128xbf16> to vector<1x18x128xbf16>
    tpu.vector_store %arg3[%66, %c0_36, %c0_37], %69 {strides = array<i32>} : memref<4x18x128xbf16, #tpu.memory_space<vmem>>, vector<1x18x128xbf16>,
    %c4_i32 = arith.constant 4 : i32
    return
  }
  func.func @transform_0(%arg0: i32, %arg1: i32) -> (i32, i32, i32) {
    %c0_i32 = arith.constant 0 : i32
    %c0_i32_0 = arith.constant 0 : i32
    return %c0_i32, %arg0, %arg1 : i32, i32, i32
  }
  func.func @transform_1(%arg0: i32, %arg1: i32) -> (i32, i32, i32) {
    %c0_i32 = arith.constant 0 : i32
    %c0_i32_0 = arith.constant 0 : i32
    return %c0_i32, %arg0, %arg1 : i32, i32, i32
  }
}

module attributes {stable_mosaic.version = 11 : i64} {
  func.func @_matmul_bias_kernel(%arg0: i32, %arg1: i32, %arg2: i32, %arg3: memref<16x384xbf16, #tpu.memory_space<vmem>>, %arg4: memref<384x128xbf16, #tpu.memory_space<vmem>>, %arg5: memref<1x128xf32, #tpu.memory_space<vmem>>, %arg6: memref<16x128xf32, #tpu.memory_space<vmem>>, %arg7: memref<16x128xf32, #tpu.memory_space<vmem>>) attributes {dimension_semantics = [#tpu.dimension_semantics<parallel>, #tpu.dimension_semantics<parallel>, #tpu.dimension_semantics<arbitrary>], iteration_bounds = array<i64: 1, 1, 3>, scalar_prefetch = 0 : i64, scratch_operands = 1 : i64, tpu.core_type = #tpu.core_type<tc>, window_params = [{transform_indices = @transform_0, window_bounds = array<i64: 16, 384>}, {transform_indices = @transform_1, window_bounds = array<i64: 384, 128>}, {transform_indices = @transform_2, window_bounds = array<i64: 1, 128>}, {transform_indices = @transform_3, window_bounds = array<i64: 16, 128>}]} {
    %c0_i32 = arith.constant 0 : i32
    %0 = arith.cmpi eq, %arg2, %c0_i32 : i32
    %1 = arith.extui %0 : i1 to i32
    %c0_i32_0 = arith.constant 0 : i32
    %2 = arith.cmpi ne, %1, %c0_i32_0 : i32
    scf.if %2 {
      %cst_9 = arith.constant 0.000000e+00 : f32
      %12 = vector.broadcast %cst_9 : f32 to vector<16x128xf32>
      %c0_10 = arith.constant 0 : index
      %c0_11 = arith.constant 0 : index
      %13 = vector.load %arg7[%c0_10, %c0_11] : memref<16x128xf32, #tpu.memory_space<vmem>>, vector<16x128xf32>
      tpu.vector_store %arg7[%c0_10, %c0_11], %12 {strides = array<i32>} : memref<16x128xf32, #tpu.memory_space<vmem>>, vector<16x128xf32>,
    } else {
    }
    %c0 = arith.constant 0 : index
    %c0_1 = arith.constant 0 : index
    %3 = vector.load %arg7[%c0, %c0_1] : memref<16x128xf32, #tpu.memory_space<vmem>>, vector<16x128xf32>
    %c0_2 = arith.constant 0 : index
    %c0_3 = arith.constant 0 : index
    %4 = vector.load %arg3[%c0_2, %c0_3] : memref<16x384xbf16, #tpu.memory_space<vmem>>, vector<16x384xbf16>
    %c0_4 = arith.constant 0 : index
    %c0_5 = arith.constant 0 : index
    %5 = vector.load %arg4[%c0_4, %c0_5] : memref<384x128xbf16, #tpu.memory_space<vmem>>, vector<384x128xbf16>
    %cst = arith.constant dense<0.000000e+00> : vector<16x128xf32>
    %6 = tpu.matmul %4, %5, %cst {dimension_numbers = #tpu.dot_dimension_numbers<[1], [0], [0], [1], [0, 0, 1, 1], [], []>} : vector<16x384xbf16>, vector<384x128xbf16>, vector<16x128xf32> -> vector<16x128xf32>
    %7 = arith.addf %3, %6 : vector<16x128xf32>
    %c0_6 = arith.constant 0 : index
    %c0_7 = arith.constant 0 : index
    %8 = vector.load %arg7[%c0_6, %c0_7] : memref<16x128xf32, #tpu.memory_space<vmem>>, vector<16x128xf32>
    tpu.vector_store %arg7[%c0_6, %c0_7], %7 {strides = array<i32>} : memref<16x128xf32, #tpu.memory_space<vmem>>, vector<16x128xf32>,
    %c2_i32 = arith.constant 2 : i32
    %9 = arith.cmpi eq, %arg2, %c2_i32 : i32
    %10 = arith.extui %9 : i1 to i32
    %c0_i32_8 = arith.constant 0 : i32
    %11 = arith.cmpi ne, %10, %c0_i32_8 : i32
    scf.if %11 {
      %c0_9 = arith.constant 0 : index
      %c0_10 = arith.constant 0 : index
      %12 = vector.load %arg7[%c0_9, %c0_10] : memref<16x128xf32, #tpu.memory_space<vmem>>, vector<16x128xf32>
      %c0_11 = arith.constant 0 : index
      %c0_12 = arith.constant 0 : index
      %13 = vector.load %arg5[%c0_11, %c0_12] : memref<1x128xf32, #tpu.memory_space<vmem>>, vector<1x128xf32>
      %14 = vector.broadcast %13 : vector<1x128xf32> to vector<16x128xf32>
      %15 = arith.addf %12, %14 : vector<16x128xf32>
      %c0_13 = arith.constant 0 : index
      %c0_14 = arith.constant 0 : index
      %16 = vector.load %arg6[%c0_13, %c0_14] : memref<16x128xf32, #tpu.memory_space<vmem>>, vector<16x128xf32>
      tpu.vector_store %arg6[%c0_13, %c0_14], %15 {strides = array<i32>} : memref<16x128xf32, #tpu.memory_space<vmem>>, vector<16x128xf32>,
    } else {
    }
    return
  }
  func.func @transform_0(%arg0: i32, %arg1: i32, %arg2: i32) -> (i32, i32) {
    %c0_i32 = arith.constant 0 : i32
    return %arg0, %arg2 : i32, i32
  }
  func.func @transform_1(%arg0: i32, %arg1: i32, %arg2: i32) -> (i32, i32) {
    %c0_i32 = arith.constant 0 : i32
    return %arg2, %arg1 : i32, i32
  }
  func.func @transform_2(%arg0: i32, %arg1: i32, %arg2: i32) -> (i32, i32) {
    %c0_i32 = arith.constant 0 : i32
    %c0_i32_0 = arith.constant 0 : i32
    return %c0_i32, %arg1 : i32, i32
  }
  func.func @transform_3(%arg0: i32, %arg1: i32, %arg2: i32) -> (i32, i32) {
    %c0_i32 = arith.constant 0 : i32
    return %arg0, %arg1 : i32, i32
  }
}

module attributes {stable_mosaic.version = 11 : i64} {
  func.func @_if_kernel(%arg0: i32, %arg1: i32, %arg2: memref<4x2x128xf32, #tpu.memory_space<vmem>>, %arg3: memref<4x2x128xbf16, #tpu.memory_space<vmem>>, %arg4: memref<2x128xf32, #tpu.memory_space<vmem>>) attributes {dimension_semantics = [#tpu.dimension_semantics<parallel>, #tpu.dimension_semantics<parallel>], iteration_bounds = array<i64: 1, 1>, scalar_prefetch = 0 : i64, scratch_operands = 1 : i64, tpu.core_type = #tpu.core_type<tc>, window_params = [{transform_indices = @transform_0, window_bounds = array<i64: 4, 2, 128>}, {transform_indices = @transform_1, window_bounds = array<i64: 4, 2, 128>}]} {
    %cst = arith.constant 0.000000e+00 : f32
    %0 = vector.broadcast %cst : f32 to vector<2x128xf32>
    %c0 = arith.constant 0 : index
    %c0_0 = arith.constant 0 : index
    %1 = vector.load %arg4[%c0, %c0_0] : memref<2x128xf32, #tpu.memory_space<vmem>>, vector<2x128xf32>
    tpu.vector_store %arg4[%c0, %c0_0], %0 {strides = array<i32>} : memref<2x128xf32, #tpu.memory_space<vmem>>, vector<2x128xf32>,
    %cst_1 = arith.constant 1.000000e+00 : f32
    %c0_i32 = arith.constant 0 : i32
    %2 = arith.index_cast %c0_i32 : i32 to index
    %c0_2 = arith.constant 0 : index
    %c0_3 = arith.constant 0 : index
    %3 = vector.load %arg2[%2, %c0_2, %c0_3] : memref<4x2x128xf32, #tpu.memory_space<vmem>>, vector<1x2x128xf32>
    %4 = vector.shape_cast %3 : vector<1x2x128xf32> to vector<2x128xf32>
    %c0_4 = arith.constant 0 : index
    %c0_5 = arith.constant 0 : index
    %5 = vector.load %arg4[%c0_4, %c0_5] : memref<2x128xf32, #tpu.memory_space<vmem>>, vector<2x128xf32>
    %6 = arith.addf %5, %4 : vector<2x128xf32>
    %7 = vector.broadcast %cst_1 : f32 to vector<2x128xf32>
    %8 = arith.cmpf oge, %6, %7 : vector<2x128xf32>
    %cst_6 = arith.constant 0.000000e+00 : f32
    %9 = vector.broadcast %cst_1 : f32 to vector<2x128xf32>
    %10 = vector.broadcast %cst_6 : f32 to vector<2x128xf32>
    %11 = arith.select %8, %9, %10 : vector<2x128xi1>, vector<2x128xf32>
    %12 = arith.subf %6, %11 : vector<2x128xf32>
    %c0_7 = arith.constant 0 : index
    %c0_8 = arith.constant 0 : index
    %13 = vector.load %arg4[%c0_7, %c0_8] : memref<2x128xf32, #tpu.memory_space<vmem>>, vector<2x128xf32>
    tpu.vector_store %arg4[%c0_7, %c0_8], %12 {strides = array<i32>} : memref<2x128xf32, #tpu.memory_space<vmem>>, vector<2x128xf32>,
    %14 = arith.truncf %11 : vector<2x128xf32> to vector<2x128xbf16>
    %15 = arith.index_cast %c0_i32 : i32 to index
    %c0_9 = arith.constant 0 : index
    %c0_10 = arith.constant 0 : index
    %16 = vector.load %arg3[%15, %c0_9, %c0_10] : memref<4x2x128xbf16, #tpu.memory_space<vmem>>, vector<1x2x128xbf16>
    %17 = vector.shape_cast %16 : vector<1x2x128xbf16> to vector<2x128xbf16>
    %18 = vector.shape_cast %14 : vector<2x128xbf16> to vector<1x2x128xbf16>
    tpu.vector_store %arg3[%15, %c0_9, %c0_10], %18 {strides = array<i32>} : memref<4x2x128xbf16, #tpu.memory_space<vmem>>, vector<1x2x128xbf16>,
    %c1_i32 = arith.constant 1 : i32
    %19 = arith.index_cast %c1_i32 : i32 to index
    %c0_11 = arith.constant 0 : index
    %c0_12 = arith.constant 0 : index
    %20 = vector.load %arg2[%19, %c0_11, %c0_12] : memref<4x2x128xf32, #tpu.memory_space<vmem>>, vector<1x2x128xf32>
    %21 = vector.shape_cast %20 : vector<1x2x128xf32> to vector<2x128xf32>
    %c0_13 = arith.constant 0 : index
    %c0_14 = arith.constant 0 : index
    %22 = vector.load %arg4[%c0_13, %c0_14] : memref<2x128xf32, #tpu.memory_space<vmem>>, vector<2x128xf32>
    %23 = arith.addf %22, %21 : vector<2x128xf32>
    %24 = vector.broadcast %cst_1 : f32 to vector<2x128xf32>
    %25 = arith.cmpf oge, %23, %24 : vector<2x128xf32>
    %cst_15 = arith.constant 0.000000e+00 : f32
    %26 = vector.broadcast %cst_1 : f32 to vector<2x128xf32>
    %27 = vector.broadcast %cst_15 : f32 to vector<2x128xf32>
    %28 = arith.select %25, %26, %27 : vector<2x128xi1>, vector<2x128xf32>
    %29 = arith.subf %23, %28 : vector<2x128xf32>
    %c0_16 = arith.constant 0 : index
    %c0_17 = arith.constant 0 : index
    %30 = vector.load %arg4[%c0_16, %c0_17] : memref<2x128xf32, #tpu.memory_space<vmem>>, vector<2x128xf32>
    tpu.vector_store %arg4[%c0_16, %c0_17], %29 {strides = array<i32>} : memref<2x128xf32, #tpu.memory_space<vmem>>, vector<2x128xf32>,
    %31 = arith.truncf %28 : vector<2x128xf32> to vector<2x128xbf16>
    %32 = arith.index_cast %c1_i32 : i32 to index
    %c0_18 = arith.constant 0 : index
    %c0_19 = arith.constant 0 : index
    %33 = vector.load %arg3[%32, %c0_18, %c0_19] : memref<4x2x128xbf16, #tpu.memory_space<vmem>>, vector<1x2x128xbf16>
    %34 = vector.shape_cast %33 : vector<1x2x128xbf16> to vector<2x128xbf16>
    %35 = vector.shape_cast %31 : vector<2x128xbf16> to vector<1x2x128xbf16>
    tpu.vector_store %arg3[%32, %c0_18, %c0_19], %35 {strides = array<i32>} : memref<4x2x128xbf16, #tpu.memory_space<vmem>>, vector<1x2x128xbf16>,
    %c2_i32 = arith.constant 2 : i32
    %36 = arith.index_cast %c2_i32 : i32 to index
    %c0_20 = arith.constant 0 : index
    %c0_21 = arith.constant 0 : index
    %37 = vector.load %arg2[%36, %c0_20, %c0_21] : memref<4x2x128xf32, #tpu.memory_space<vmem>>, vector<1x2x128xf32>
    %38 = vector.shape_cast %37 : vector<1x2x128xf32> to vector<2x128xf32>
    %c0_22 = arith.constant 0 : index
    %c0_23 = arith.constant 0 : index
    %39 = vector.load %arg4[%c0_22, %c0_23] : memref<2x128xf32, #tpu.memory_space<vmem>>, vector<2x128xf32>
    %40 = arith.addf %39, %38 : vector<2x128xf32>
    %41 = vector.broadcast %cst_1 : f32 to vector<2x128xf32>
    %42 = arith.cmpf oge, %40, %41 : vector<2x128xf32>
    %cst_24 = arith.constant 0.000000e+00 : f32
    %43 = vector.broadcast %cst_1 : f32 to vector<2x128xf32>
    %44 = vector.broadcast %cst_24 : f32 to vector<2x128xf32>
    %45 = arith.select %42, %43, %44 : vector<2x128xi1>, vector<2x128xf32>
    %46 = arith.subf %40, %45 : vector<2x128xf32>
    %c0_25 = arith.constant 0 : index
    %c0_26 = arith.constant 0 : index
    %47 = vector.load %arg4[%c0_25, %c0_26] : memref<2x128xf32, #tpu.memory_space<vmem>>, vector<2x128xf32>
    tpu.vector_store %arg4[%c0_25, %c0_26], %46 {strides = array<i32>} : memref<2x128xf32, #tpu.memory_space<vmem>>, vector<2x128xf32>,
    %48 = arith.truncf %45 : vector<2x128xf32> to vector<2x128xbf16>
    %49 = arith.index_cast %c2_i32 : i32 to index
    %c0_27 = arith.constant 0 : index
    %c0_28 = arith.constant 0 : index
    %50 = vector.load %arg3[%49, %c0_27, %c0_28] : memref<4x2x128xbf16, #tpu.memory_space<vmem>>, vector<1x2x128xbf16>
    %51 = vector.shape_cast %50 : vector<1x2x128xbf16> to vector<2x128xbf16>
    %52 = vector.shape_cast %48 : vector<2x128xbf16> to vector<1x2x128xbf16>
    tpu.vector_store %arg3[%49, %c0_27, %c0_28], %52 {strides = array<i32>} : memref<4x2x128xbf16, #tpu.memory_space<vmem>>, vector<1x2x128xbf16>,
    %c3_i32 = arith.constant 3 : i32
    %53 = arith.index_cast %c3_i32 : i32 to index
    %c0_29 = arith.constant 0 : index
    %c0_30 = arith.constant 0 : index
    %54 = vector.load %arg2[%53, %c0_29, %c0_30] : memref<4x2x128xf32, #tpu.memory_space<vmem>>, vector<1x2x128xf32>
    %55 = vector.shape_cast %54 : vector<1x2x128xf32> to vector<2x128xf32>
    %c0_31 = arith.constant 0 : index
    %c0_32 = arith.constant 0 : index
    %56 = vector.load %arg4[%c0_31, %c0_32] : memref<2x128xf32, #tpu.memory_space<vmem>>, vector<2x128xf32>
    %57 = arith.addf %56, %55 : vector<2x128xf32>
    %58 = vector.broadcast %cst_1 : f32 to vector<2x128xf32>
    %59 = arith.cmpf oge, %57, %58 : vector<2x128xf32>
    %cst_33 = arith.constant 0.000000e+00 : f32
    %60 = vector.broadcast %cst_1 : f32 to vector<2x128xf32>
    %61 = vector.broadcast %cst_33 : f32 to vector<2x128xf32>
    %62 = arith.select %59, %60, %61 : vector<2x128xi1>, vector<2x128xf32>
    %63 = arith.subf %57, %62 : vector<2x128xf32>
    %c0_34 = arith.constant 0 : index
    %c0_35 = arith.constant 0 : index
    %64 = vector.load %arg4[%c0_34, %c0_35] : memref<2x128xf32, #tpu.memory_space<vmem>>, vector<2x128xf32>
    tpu.vector_store %arg4[%c0_34, %c0_35], %63 {strides = array<i32>} : memref<2x128xf32, #tpu.memory_space<vmem>>, vector<2x128xf32>,
    %65 = arith.truncf %62 : vector<2x128xf32> to vector<2x128xbf16>
    %66 = arith.index_cast %c3_i32 : i32 to index
    %c0_36 = arith.constant 0 : index
    %c0_37 = arith.constant 0 : index
    %67 = vector.load %arg3[%66, %c0_36, %c0_37] : memref<4x2x128xbf16, #tpu.memory_space<vmem>>, vector<1x2x128xbf16>
    %68 = vector.shape_cast %67 : vector<1x2x128xbf16> to vector<2x128xbf16>
    %69 = vector.shape_cast %65 : vector<2x128xbf16> to vector<1x2x128xbf16>
    tpu.vector_store %arg3[%66, %c0_36, %c0_37], %69 {strides = array<i32>} : memref<4x2x128xbf16, #tpu.memory_space<vmem>>, vector<1x2x128xbf16>,
    %c4_i32 = arith.constant 4 : i32
    return
  }
  func.func @transform_0(%arg0: i32, %arg1: i32) -> (i32, i32, i32) {
    %c0_i32 = arith.constant 0 : i32
    %c0_i32_0 = arith.constant 0 : i32
    return %c0_i32, %arg0, %arg1 : i32, i32, i32
  }
  func.func @transform_1(%arg0: i32, %arg1: i32) -> (i32, i32, i32) {
    %c0_i32 = arith.constant 0 : i32
    %c0_i32_0 = arith.constant 0 : i32
    return %c0_i32, %arg0, %arg1 : i32, i32, i32
  }
}

module attributes {stable_mosaic.version = 11 : i64} {
  func.func @_matmul_bias_kernel(%arg0: i32, %arg1: i32, %arg2: i32, %arg3: memref<16x128xbf16, #tpu.memory_space<vmem>>, %arg4: memref<128x128xbf16, #tpu.memory_space<vmem>>, %arg5: memref<1x128xf32, #tpu.memory_space<vmem>>, %arg6: memref<16x128xf32, #tpu.memory_space<vmem>>, %arg7: memref<16x128xf32, #tpu.memory_space<vmem>>) attributes {dimension_semantics = [#tpu.dimension_semantics<parallel>, #tpu.dimension_semantics<parallel>, #tpu.dimension_semantics<arbitrary>], iteration_bounds = array<i64: 1, 1, 1>, scalar_prefetch = 0 : i64, scratch_operands = 1 : i64, tpu.core_type = #tpu.core_type<tc>, window_params = [{transform_indices = @transform_0, window_bounds = array<i64: 16, 128>}, {transform_indices = @transform_1, window_bounds = array<i64: 128, 128>}, {transform_indices = @transform_2, window_bounds = array<i64: 1, 128>}, {transform_indices = @transform_3, window_bounds = array<i64: 16, 128>}]} {
    %c0_i32 = arith.constant 0 : i32
    %0 = arith.cmpi eq, %arg2, %c0_i32 : i32
    %1 = arith.extui %0 : i1 to i32
    %c0_i32_0 = arith.constant 0 : i32
    %2 = arith.cmpi ne, %1, %c0_i32_0 : i32
    scf.if %2 {
      %cst_10 = arith.constant 0.000000e+00 : f32
      %12 = vector.broadcast %cst_10 : f32 to vector<16x128xf32>
      %c0_11 = arith.constant 0 : index
      %c0_12 = arith.constant 0 : index
      %13 = vector.load %arg7[%c0_11, %c0_12] : memref<16x128xf32, #tpu.memory_space<vmem>>, vector<16x128xf32>
      tpu.vector_store %arg7[%c0_11, %c0_12], %12 {strides = array<i32>} : memref<16x128xf32, #tpu.memory_space<vmem>>, vector<16x128xf32>,
    } else {
    }
    %c0 = arith.constant 0 : index
    %c0_1 = arith.constant 0 : index
    %3 = vector.load %arg7[%c0, %c0_1] : memref<16x128xf32, #tpu.memory_space<vmem>>, vector<16x128xf32>
    %c0_2 = arith.constant 0 : index
    %c0_3 = arith.constant 0 : index
    %4 = vector.load %arg3[%c0_2, %c0_3] : memref<16x128xbf16, #tpu.memory_space<vmem>>, vector<16x128xbf16>
    %c0_4 = arith.constant 0 : index
    %c0_5 = arith.constant 0 : index
    %5 = vector.load %arg4[%c0_4, %c0_5] : memref<128x128xbf16, #tpu.memory_space<vmem>>, vector<128x128xbf16>
    %cst = arith.constant dense<0.000000e+00> : vector<16x128xf32>
    %6 = tpu.matmul %4, %5, %cst {dimension_numbers = #tpu.dot_dimension_numbers<[1], [0], [0], [1], [0, 0, 1, 1], [], []>} : vector<16x128xbf16>, vector<128x128xbf16>, vector<16x128xf32> -> vector<16x128xf32>
    %7 = arith.addf %3, %6 : vector<16x128xf32>
    %c0_6 = arith.constant 0 : index
    %c0_7 = arith.constant 0 : index
    %8 = vector.load %arg7[%c0_6, %c0_7] : memref<16x128xf32, #tpu.memory_space<vmem>>, vector<16x128xf32>
    tpu.vector_store %arg7[%c0_6, %c0_7], %7 {strides = array<i32>} : memref<16x128xf32, #tpu.memory_space<vmem>>, vector<16x128xf32>,
    %c0_i32_8 = arith.constant 0 : i32
    %9 = arith.cmpi eq, %arg2, %c0_i32_8 : i32
    %10 = arith.extui %9 : i1 to i32
    %c0_i32_9 = arith.constant 0 : i32
    %11 = arith.cmpi ne, %10, %c0_i32_9 : i32
    scf.if %11 {
      %c0_10 = arith.constant 0 : index
      %c0_11 = arith.constant 0 : index
      %12 = vector.load %arg7[%c0_10, %c0_11] : memref<16x128xf32, #tpu.memory_space<vmem>>, vector<16x128xf32>
      %c0_12 = arith.constant 0 : index
      %c0_13 = arith.constant 0 : index
      %13 = vector.load %arg5[%c0_12, %c0_13] : memref<1x128xf32, #tpu.memory_space<vmem>>, vector<1x128xf32>
      %14 = vector.broadcast %13 : vector<1x128xf32> to vector<16x128xf32>
      %15 = arith.addf %12, %14 : vector<16x128xf32>
      %c0_14 = arith.constant 0 : index
      %c0_15 = arith.constant 0 : index
      %16 = vector.load %arg6[%c0_14, %c0_15] : memref<16x128xf32, #tpu.memory_space<vmem>>, vector<16x128xf32>
      tpu.vector_store %arg6[%c0_14, %c0_15], %15 {strides = array<i32>} : memref<16x128xf32, #tpu.memory_space<vmem>>, vector<16x128xf32>,
    } else {
    }
    return
  }
  func.func @transform_0(%arg0: i32, %arg1: i32, %arg2: i32) -> (i32, i32) {
    %c0_i32 = arith.constant 0 : i32
    return %arg0, %arg2 : i32, i32
  }
  func.func @transform_1(%arg0: i32, %arg1: i32, %arg2: i32) -> (i32, i32) {
    %c0_i32 = arith.constant 0 : i32
    return %arg2, %arg1 : i32, i32
  }
  func.func @transform_2(%arg0: i32, %arg1: i32, %arg2: i32) -> (i32, i32) {
    %c0_i32 = arith.constant 0 : i32
    %c0_i32_0 = arith.constant 0 : i32
    return %c0_i32, %arg1 : i32, i32
  }
  func.func @transform_3(%arg0: i32, %arg1: i32, %arg2: i32) -> (i32, i32) {
    %c0_i32 = arith.constant 0 : i32
    return %arg0, %arg1 : i32, i32
  }
}

</mosaic_0001>

<bundles_post_ra>
// kernel: s_alexnet_forward.15
= control target key start
LH: loop header
LB: loop body
LE: loop exit
PB: predicated region body
PF: predicated region fallthrough
CT: control target
= control target key end

     0   :  { %v2165_v0 = vmov 0   ;;  %v2166_v2 = vmov 0.0   ;;  %vm2167_vm0 = vmmov 0   ;;  %s2840_s1 = inlined_call_operand.vmem [shape: bf16[384,128], index: 1, kind: input, shape index: {}]   ;;  %s2841_s0 = inlined_call_operand.vmem [shape: bf16[464,384], index: 0, kind: input, shape index: {}]   ;;  %s2842_s2 = inlined_call_operand.vmem [shape: f32[1,128], index: 2, kind: input, shape index: {}]   ;;  %s2843_s3 = inlined_call_operand.vmem [shape: f32[464,128], index: 3, kind: output, shape index: {}]  }
   0x1   :  { %907 = vmatprep.subr.bf16.mxu0 %v2165_v0  ;;  %v2025_v1 = vld [vmem:[%s2840_s1] sm:$0xff]   ;;  %1890 = vmatprep.subr.bf16.mxu1 %v2166_v2  ;;  %v2026_v3 = vld [vmem:[%s2840_s1 + $0x8] sm:$0xff]   ;;  %v2027_v4 = vld [vmem:[%s2840_s1 + $0x10] sm:$0xff]  }
   0x2   :  { %1906 = vmatprep.mubr.msk.bf16.mxu1 %vm2167_vm0, %v2166_v2  ;;  %908 = vmatpush1.bf16.msra.mxu0 %v2025_v1  ;;  %v2033_v5 = vld [vmem:[%s2840_s1 + $0x80] sm:$0xff]   ;;  %v2028_v6 = vld [vmem:[%s2840_s1 + $0x18] sm:$0xff]   ;;  %v2035_v7 = vld [vmem:[%s2840_s1 + $0x88] sm:$0xff]  }
   0x3   :  { %909 = vmatprep.subr.bf16.mxu0 %v2165_v0  ;;  %1891 = vmatpush3.bf16.msra.mxu1 %v2033_v5  ;;  %v2029_v8 = vld [vmem:[%s2840_s1 + $0x20] sm:$0xff]   ;;  %v2037_v9 = vld [vmem:[%s2840_s1 + $0x90] sm:$0xff]   ;;  %v2030_v10 = vld [vmem:[%s2840_s1 + $0x28] sm:$0xff]  }
   0x4   :  { %1892 = vmatprep.subr.bf16.mxu1 %v2166_v2  ;;  %v2039_v11 = vld [vmem:[%s2840_s1 + $0x98] sm:$0xff]   ;;  %v2031_v12 = vld [vmem:[%s2840_s1 + $0x30] sm:$0xff]   ;;  %v2041_v13 = vld [vmem:[%s2840_s1 + $0xa0] sm:$0xff]  }
   0x5   :  { %v2032_v14 = vld [vmem:[%s2840_s1 + $0x38] sm:$0xff]   ;;  %v2043_v15 = vld [vmem:[%s2840_s1 + $0xa8] sm:$0xff]   ;;  %v2052_v16 = vld [vmem:[%s2841_s0 + $0x4] ss:$12 sps:$4 sm:$0xff]  }
   0x6   :  { %910 = vmatpush1.bf16.msra.mxu0 %v2026_v3  ;;  %939 = vmatprep.mubr.bf16.mxu0 %v2052_v16  ;;  %v2034_v17 = vld [vmem:[%s2840_s1 + $0x40] sm:$0xff]   ;;  %v2045_v18 = vld [vmem:[%s2840_s1 + $0xb0] sm:$0xff]   ;;  %v2036_v19 = vld [vmem:[%s2840_s1 + $0x48] sm:$0xff]  }
   0x7   :  { %911 = vmatprep.subr.bf16.mxu0 %v2165_v0  ;;  %1893 = vmatpush3.bf16.msra.mxu1 %v2035_v7  ;;  %v2047_v20 = vld [vmem:[%s2840_s1 + $0xb8] sm:$0xff]   ;;  %v2049_v21 = vld [vmem:[%s2841_s0 + $0x8] ss:$12 sps:$4 sm:$0xff]   ;;  %v2053_v24 = vld [vmem:[%s2841_s0 + $0x20] ss:$12 sps:$4 sm:$0xff]  }
   0x8   :  { %1894 = vmatprep.subr.bf16.mxu1 %v2166_v2  ;;  %v2038_v22 = vld [vmem:[%s2840_s1 + $0x50] sm:$0xff]   ;;  %v2040_v23 = vld [vmem:[%s2840_s1 + $0x58] sm:$0xff]   ;;  %v2042_v25 = vld [vmem:[%s2840_s1 + $0x60] sm:$0xff]  }
   0x9   :  { %v2044_v26 = vld [vmem:[%s2840_s1 + $0x68] sm:$0xff]   ;;  %v2057_v27 = vld [vmem:[%s2841_s0 + $0x38] ss:$12 sps:$4 sm:$0xff]   ;;  %v2046_v28 = vld [vmem:[%s2840_s1 + $0x70] sm:$0xff]  }
   0xa   :  { %912 = vmatpush1.bf16.msra.mxu0 %v2027_v4  ;;  %v2048_v29 = vld [vmem:[%s2840_s1 + $0x78] sm:$0xff]   ;;  %v2050_v30 = vld [vmem:[%s2841_s0] ss:$12 sps:$4 sm:$0xff]   ;;  %v2065_v34 = vld [vmem:[%s2841_s0 + $0x68] ss:$12 sps:$4 sm:$0xff]  }
   0xb   :  { %913 = vmatprep.subr.bf16.mxu0 %v2165_v0  ;;  %1895 = vmatpush3.bf16.msra.mxu1 %v2037_v9  ;;  %v2061_v31 = vld [vmem:[%s2841_s0 + $0x50] ss:$12 sps:$4 sm:$0xff]   ;;  %v2056_v33 = vld [vmem:[%s2841_s0 + $0x18] ss:$12 sps:$4 sm:$0xff]   ;;  %v2058_v35 = vld [vmem:[%s2841_s0 + $0x34] ss:$12 sps:$4 sm:$0xff]  }
   0xc   :  { %1896 = vmatprep.subr.bf16.mxu1 %v2166_v2  ;;  %v2054_v32 = vld [vmem:[%s2841_s0 + $0x1c] ss:$12 sps:$4 sm:$0xff]   ;;  %v2069_v37 = vld [vmem:[%s2841_s0 + $0x80] ss:$12 sps:$4 sm:$0xff]   ;;  %v2073_v40 = vld [vmem:[%s2841_s0 + $0x98] ss:$12 sps:$4 sm:$0xff]  }
   0xd   :  { %v2060_v36 = vld [vmem:[%s2841_s0 + $0x30] ss:$12 sps:$4 sm:$0xff]   ;;  %v2062_v38 = vld [vmem:[%s2841_s0 + $0x4c] ss:$12 sps:$4 sm:$0xff]   ;;  %v2064_v39 = vld [vmem:[%s2841_s0 + $0x48] ss:$12 sps:$4 sm:$0xff]  }
   0xe   :  { %914 = vmatpush1.bf16.msra.mxu0 %v2028_v6  ;;  %v2066_v41 = vld [vmem:[%s2841_s0 + $0x64] ss:$12 sps:$4 sm:$0xff]   ;;  %v2068_v42 = vld [vmem:[%s2841_s0 + $0x60] ss:$12 sps:$4 sm:$0xff]   ;;  %v2070_v44 = vld [vmem:[%s2841_s0 + $0x7c] ss:$12 sps:$4 sm:$0xff]  }
   0xf   :  { %915 = vmatprep.subr.bf16.mxu0 %v2165_v0  ;;  %1897 = vmatpush3.bf16.msra.mxu1 %v2039_v11  ;;  %v2077_v43 = vld [vmem:[%s2841_s0 + $0xb0] ss:$12 sps:$4 sm:$0xff]   ;;  %v2072_v45 = vld [vmem:[%s2841_s0 + $0x78] ss:$12 sps:$4 sm:$0xff]   ;;  %v2081_v46 = vld [vmem:[%s2841_s0 + $0xc8] ss:$12 sps:$4 sm:$0xff]  }
  0x10   :  { %1898 = vmatprep.subr.bf16.mxu1 %v2166_v2  ;;  %v2074_v47 = vld [vmem:[%s2841_s0 + $0x94] ss:$12 sps:$4 sm:$0xff]   ;;  %v2076_v48 = vld [vmem:[%s2841_s0 + $0x90] ss:$12 sps:$4 sm:$0xff]   ;;  %v2078_v50 = vld [vmem:[%s2841_s0 + $0xac] ss:$12 sps:$4 sm:$0xff]  }
  0x11   :  { %v2085_v49 = vld [vmem:[%s2841_s0 + $0xe0] ss:$12 sps:$4 sm:$0xff]   ;;  %v2080_v51 = vld [vmem:[%s2841_s0 + $0xa8] ss:$12 sps:$4 sm:$0xff]   ;;  %v2089_v52 = vld [vmem:[%s2841_s0 + $0xf8] ss:$12 sps:$4 sm:$0xff]  }
  0x12   :  { %916 = vmatpush1.bf16.msra.mxu0 %v2029_v8  ;;  %v2082_v53 = vld [vmem:[%s2841_s0 + $0xc4] ss:$12 sps:$4 sm:$0xff]   ;;  %v2084_v54 = vld [vmem:[%s2841_s0 + $0xc0] ss:$12 sps:$4 sm:$0xff]   ;;  %v2086_v56 = vld [vmem:[%s2841_s0 + $0xdc] ss:$12 sps:$4 sm:$0xff]  }
  0x13   :  { %917 = vmatprep.subr.bf16.mxu0 %v2165_v0  ;;  %1899 = vmatpush3.bf16.msra.mxu1 %v2041_v13  ;;  %v2093_v55 = vld [vmem:[%s2841_s0 + $0x110] ss:$12 sps:$4 sm:$0xff]   ;;  %v2088_v57 = vld [vmem:[%s2841_s0 + $0xd8] ss:$12 sps:$4 sm:$0xff]   ;;  %v2097_v58 = vld [vmem:[%s2841_s0 + $0x128] ss:$12 sps:$4 sm:$0xff]  }
  0x14   :  { %1900 = vmatprep.subr.bf16.mxu1 %v2166_v2  ;;  %v2090_v59 = vld [vmem:[%s2841_s0 + $0xf4] ss:$12 sps:$4 sm:$0xff]   ;;  %v2092_v60 = vld [vmem:[%s2841_s0 + $0xf0] ss:$12 sps:$4 sm:$0xff]   ;;  %v2094_v62 = vld [vmem:[%s2841_s0 + $0x10c] ss:$12 sps:$4 sm:$0xff]  }
  0x15   :  { %v2101_v61 = vld [vmem:[%s2841_s0 + $0x140] ss:$12 sps:$4 sm:$0xff]   ;;  %v2096_v63 = vld [vmem:[%s2841_s0 + $0x108] ss:$12 sps:$4 sm:$0xff]   ;;  %v2098_v1 = vld [vmem:[%s2841_s0 + $0x124] ss:$12 sps:$4 sm:$0xff]  }
  0x16   :  { %918 = vmatpush1.bf16.msra.mxu0 %v2030_v10  ;;  %v2100_v3 = vld [vmem:[%s2841_s0 + $0x120] ss:$12 sps:$4 sm:$0xff]   ;;  %v2109_v4 = vld [vmem:[%s2841_s0 + $0x170] ss:$12 sps:$4 sm:$0xff]   ;;  %v2104_v6 = vld [vmem:[%s2841_s0 + $0x138] ss:$12 sps:$4 sm:$0xff]  }
  0x17   :  { %919 = vmatprep.subr.bf16.mxu0 %v2165_v0  ;;  %1901 = vmatpush3.bf16.msra.mxu1 %v2043_v15  ;;  %v2102_v5 = vld [vmem:[%s2841_s0 + $0x13c] ss:$12 sps:$4 sm:$0xff]   ;;  %v2106_v8 = vld [vmem:[%s2841_s0 + $0x154] ss:$12 sps:$4 sm:$0xff]   ;;  %v2110_v11 = vld [vmem:[%s2841_s0 + $0x16c] ss:$12 sps:$4 sm:$0xff]  }
  0x18   :  { %1902 = vmatprep.subr.bf16.mxu1 %v2166_v2  ;;  %v2113_v7 = vld [vmem:[%s2841_s0 + $0x188] ss:$12 sps:$4 sm:$0xff]   ;;  %v2108_v9 = vld [vmem:[%s2841_s0 + $0x150] ss:$12 sps:$4 sm:$0xff]   ;;  %v2117_v10 = vld [vmem:[%s2841_s0 + $0x1a0] ss:$12 sps:$4 sm:$0xff]  }
  0x19   :  { %v2121_v13 = vld [vmem:[%s2841_s0 + $0x1b8] ss:$12 sps:$4 sm:$0xff]   ;;  %v2116_v15 = vld [vmem:[%s2841_s0 + $0x180] ss:$12 sps:$4 sm:$0xff]   ;;  %v2125_v16 = vld [vmem:[%s2841_s0 + $0x1d0] ss:$12 sps:$4 sm:$0xff]  }
  0x1a   :  { %920 = vmatpush1.bf16.msra.mxu0 %v2031_v12  ;;  %v2112_v12 = vld [vmem:[%s2841_s0 + $0x168] ss:$12 sps:$4 sm:$0xff]  }
  0x1b   :  { %921 = vmatprep.subr.bf16.mxu0 %v2165_v0  ;;  %1903 = vmatpush3.bf16.msra.mxu1 %v2045_v18  ;;  %v2120_v18 = vld [vmem:[%s2841_s0 + $0x198] ss:$12 sps:$4 sm:$0xff]  }
  0x1c   :  { %1904 = vmatprep.subr.bf16.mxu1 %v2166_v2 }
  0x1e   :  { %922 = vmatpush1.bf16.msra.mxu0 %v2032_v14  ;;  %v2114_v14 = vld [vmem:[%s2841_s0 + $0x184] ss:$12 sps:$4 sm:$0xff]  }
  0x1f   :  { %923 = vmatprep.subr.bf16.mxu0 %v2165_v0  ;;  %1905 = vmatpush3.bf16.msra.mxu1 %v2047_v20  ;;  %v2122_v20 = vld [vmem:[%s2841_s0 + $0x1b4] ss:$12 sps:$4 sm:$0xff]  }
  0x22   :  { %924 = vmatpush1.bf16.msra.mxu0 %v2034_v17  ;;  %1907 = vmatmul.mubr.bf16.vlgmr.msra.gmra.mrb[0].mxu1 %v2049_v21  ;;  %v2118_v17 = vld [vmem:[%s2841_s0 + $0x19c] ss:$12 sps:$4 sm:$0xff]  }
  0x23   :  { %925 = vmatprep.subr.bf16.mxu0 %v2165_v0  ;;  %1910 = vmatprep.mubr.msk.bf16.mxu1 %vm2167_vm0, %v2166_v2  ;;  %v2124_v21 = vld [vmem:[%s2841_s0 + $0x1b0] ss:$12 sps:$4 sm:$0xff]  }
  0x26   :  { %926 = vmatpush1.bf16.msra.mxu0 %v2036_v19  ;;  %v2129_v19 = vld [vmem:[%s2841_s0 + $0x1e8] ss:$12 sps:$4 sm:$0xff]  }
  0x27   :  { %927 = vmatprep.subr.bf16.mxu0 %v2165_v0 }
  0x2a   :  { %928 = vmatpush1.bf16.msra.mxu0 %v2038_v22  ;;  %1911 = vmatmul.mubr.bf16.gmra.mrb[4].mxu1 %v2053_v24  ;;  %v2133_v22 = vld [vmem:[%s2841_s0 + $0x200] ss:$12 sps:$4 sm:$0xff]   ;;  %v2128_v24 = vld [vmem:[%s2841_s0 + $0x1c8] ss:$12 sps:$4 sm:$0xff]  }
  0x2b   :  { %929 = vmatprep.subr.bf16.mxu0 %v2165_v0  ;;  %1914 = vmatprep.mubr.msk.bf16.mxu1 %vm2167_vm0, %v2166_v2 }
  0x2e   :  { %930 = vmatpush1.bf16.msra.mxu0 %v2040_v23  ;;  %v2126_v23 = vld [vmem:[%s2841_s0 + $0x1cc] ss:$12 sps:$4 sm:$0xff]  }
  0x2f   :  { %931 = vmatprep.subr.bf16.mxu0 %v2165_v0 }
  0x32   :  { %932 = vmatpush1.bf16.msra.mxu0 %v2042_v25  ;;  %1915 = vmatmul.mubr.bf16.gmra.mrb[8].mxu1 %v2057_v27  ;;  %v2137_v25 = vld [vmem:[%s2841_s0 + $0x218] ss:$12 sps:$4 sm:$0xff]   ;;  %v2132_v27 = vld [vmem:[%s2841_s0 + $0x1e0] ss:$12 sps:$4 sm:$0xff]  }
  0x33   :  { %933 = vmatprep.subr.bf16.mxu0 %v2165_v0  ;;  %1918 = vmatprep.mubr.msk.bf16.mxu1 %vm2167_vm0, %v2166_v2 }
  0x36   :  { %934 = vmatpush1.bf16.msra.mxu0 %v2044_v26  ;;  %v2130_v26 = vld [vmem:[%s2841_s0 + $0x1e4] ss:$12 sps:$4 sm:$0xff]  }
  0x37   :  { %935 = vmatprep.subr.bf16.mxu0 %v2165_v0 }
  0x3a   :  { %936 = vmatpush1.bf16.msra.mxu0 %v2046_v28  ;;  %1919 = vmatmul.mubr.bf16.gmra.mrb[12].mxu1 %v2061_v31  ;;  %v2141_v28 = vld [vmem:[%s2841_s0 + $0x230] ss:$12 sps:$4 sm:$0xff]   ;;  %v2145_v31 = vld [vmem:[%s2841_s0 + $0x248] ss:$12 sps:$4 sm:$0xff]  }
  0x3b   :  { %937 = vmatprep.subr.bf16.mxu0 %v2165_v0  ;;  %1922 = vmatprep.mubr.msk.bf16.mxu1 %vm2167_vm0, %v2166_v2  ;;  %v2105_v0 = vld [vmem:[%s2841_s0 + $0x158] ss:$12 sps:$4 sm:$0xff]  }
  0x3e   :  { %938 = vmatpush1.bf16.msra.mxu0 %v2048_v29  ;;  %v2134_v29 = vld [vmem:[%s2841_s0 + $0x1fc] ss:$12 sps:$4 sm:$0xff]  }
  0x41   :  { %940 = vmatmul.mubr.bf16.vlgmr.msra.gmra.mrb[0].mxu0 %v2050_v30  ;;  %v2136_v30 = vld [vmem:[%s2841_s0 + $0x1f8] ss:$12 sps:$4 sm:$0xff]  }
  0x42   :  { %947 = vmatprep.mubr.bf16.mxu0 %v2054_v32  ;;  %1923 = vmatmul.mubr.bf16.gmra.mrb[16].mxu1 %v2065_v34  ;;  %v2138_v32 = vld [vmem:[%s2841_s0 + $0x214] ss:$12 sps:$4 sm:$0xff]  }
  0x43   :  { %1926 = vmatprep.mubr.msk.bf16.mxu1 %vm2167_vm0, %v2166_v2  ;;  %v2149_v34 = vld [vmem:[%s2841_s0 + $0x260] ss:$12 sps:$4 sm:$0xff]  }
  0x49   :  { %948 = vmatmul.mubr.bf16.gmra.mrb[4].mxu0 %v2056_v33  ;;  %v2140_v33 = vld [vmem:[%s2841_s0 + $0x210] ss:$12 sps:$4 sm:$0xff]  }
  0x4a   :  { %955 = vmatprep.mubr.bf16.mxu0 %v2058_v35  ;;  %1927 = vmatmul.mubr.bf16.gmra.mrb[20].mxu1 %v2069_v37  ;;  %v2142_v35 = vld [vmem:[%s2841_s0 + $0x22c] ss:$12 sps:$4 sm:$0xff]  }
  0x4b   :  { %1930 = vmatprep.mubr.msk.bf16.mxu1 %vm2167_vm0, %v2166_v2  ;;  %v2153_v37 = vld [vmem:[%s2841_s0 + $0x278] ss:$12 sps:$4 sm:$0xff]  }
  0x51   :  { %956 = vmatmul.mubr.bf16.gmra.mrb[8].mxu0 %v2060_v36  ;;  %v2144_v36 = vld [vmem:[%s2841_s0 + $0x228] ss:$12 sps:$4 sm:$0xff]  }
  0x52   :  { %963 = vmatprep.mubr.bf16.mxu0 %v2062_v38  ;;  %1931 = vmatmul.mubr.bf16.gmra.mrb[24].mxu1 %v2073_v40  ;;  %v2146_v38 = vld [vmem:[%s2841_s0 + $0x244] ss:$12 sps:$4 sm:$0xff]   ;;  %v2148_v40 = vld [vmem:[%s2841_s0 + $0x240] ss:$12 sps:$4 sm:$0xff]  }
  0x53   :  { %1934 = vmatprep.mubr.msk.bf16.mxu1 %vm2167_vm0, %v2166_v2 }
  0x59   :  { %964 = vmatmul.mubr.bf16.gmra.mrb[12].mxu0 %v2064_v39 }
  0x5a   :  { %971 = vmatprep.mubr.bf16.mxu0 %v2066_v41  ;;  %1935 = vmatmul.mubr.bf16.gmra.mrb[28].mxu1 %v2077_v43  ;;  %v2150_v43 = vld [vmem:[%s2841_s0 + $0x25c] ss:$12 sps:$4 sm:$0xff]  }
  0x5b   :  { %1938 = vmatprep.mubr.msk.bf16.mxu1 %vm2167_vm0, %v2166_v2 }
  0x61   :  { %972 = vmatmul.mubr.bf16.gmra.mrb[16].mxu0 %v2068_v42  ;;  %v2157_v42 = vld [vmem:[%s2841_s0 + $0x290] ss:$12 sps:$4 sm:$0xff]  }
  0x62   :  { %979 = vmatprep.mubr.bf16.mxu0 %v2070_v44  ;;  %1939 = vmatmul.mubr.bf16.gmra.mrb[32].mxu1 %v2081_v46 }
  0x63   :  { %1942 = vmatprep.mubr.msk.bf16.mxu1 %vm2167_vm0, %v2166_v2 }
  0x69   :  { %980 = vmatmul.mubr.bf16.gmra.mrb[20].mxu0 %v2072_v45 }
  0x6a   :  { %987 = vmatprep.mubr.bf16.mxu0 %v2074_v47  ;;  %1943 = vmatmul.mubr.bf16.gmra.mrb[36].mxu1 %v2085_v49  ;;  %v2152_v47 = vld [vmem:[%s2841_s0 + $0x258] ss:$12 sps:$4 sm:$0xff]   ;;  %v2161_v49 = vld [vmem:[%s2841_s0 + $0x2a8] ss:$12 sps:$4 sm:$0xff]  }
  0x6b   :  { %1946 = vmatprep.mubr.msk.bf16.mxu1 %vm2167_vm0, %v2166_v2 }
  0x71   :  { %988 = vmatmul.mubr.bf16.gmra.mrb[24].mxu0 %v2076_v48 }
  0x72   :  { %995 = vmatprep.mubr.bf16.mxu0 %v2078_v50  ;;  %1947 = vmatmul.mubr.bf16.gmra.mrb[40].mxu1 %v2089_v52  ;;  %v2154_v50 = vld [vmem:[%s2841_s0 + $0x274] ss:$12 sps:$4 sm:$0xff]  }
  0x73   :  { %1950 = vmatprep.mubr.msk.bf16.mxu1 %vm2167_vm0, %v2166_v2 }
  0x79   :  { %996 = vmatmul.mubr.bf16.gmra.mrb[28].mxu0 %v2080_v51 }
  0x7a   :  { %1003 = vmatprep.mubr.bf16.mxu0 %v2082_v53  ;;  %1951 = vmatmul.mubr.bf16.gmra.mrb[44].mxu1 %v2093_v55  ;;  %v2156_v53 = vld [vmem:[%s2841_s0 + $0x270] ss:$12 sps:$4 sm:$0xff]   ;;  %v2158_v55 = vld [vmem:[%s2841_s0 + $0x28c] ss:$12 sps:$4 sm:$0xff]  }
  0x7b   :  { %1954 = vmatprep.mubr.msk.bf16.mxu1 %vm2167_vm0, %v2166_v2 }
  0x81   :  { %1004 = vmatmul.mubr.bf16.gmra.mrb[32].mxu0 %v2084_v54 }
  0x82   :  { %1011 = vmatprep.mubr.bf16.mxu0 %v2086_v56  ;;  %1955 = vmatmul.mubr.bf16.gmra.mrb[48].mxu1 %v2097_v58 }
  0x83   :  { %1958 = vmatprep.mubr.msk.bf16.mxu1 %vm2167_vm0, %v2166_v2 }
  0x89   :  { %1012 = vmatmul.mubr.bf16.gmra.mrb[36].mxu0 %v2088_v57 }
  0x8a   :  { %1019 = vmatprep.mubr.bf16.mxu0 %v2090_v59  ;;  %1959 = vmatmul.mubr.bf16.gmra.mrb[52].mxu1 %v2101_v61  ;;  %v2597_v59 = vld [vmem:[%s2842_s2] ss:$0 sm:$0xff] }
  0x8b   :  { %1962 = vmatprep.mubr.msk.bf16.mxu1 %vm2167_vm0, %v2166_v2 }
  0x91   :  { %1020 = vmatmul.mubr.bf16.gmra.mrb[40].mxu0 %v2092_v60 }
  0x92   :  { %1027 = vmatprep.mubr.bf16.mxu0 %v2094_v62  ;;  %1963 = vmatmul.mubr.bf16.gmra.mrb[56].mxu1 %v2105_v0 }
  0x93   :  { %1966 = vmatprep.mubr.msk.bf16.mxu1 %vm2167_vm0, %v2166_v2 }
  0x99   :  { %1028 = vmatmul.mubr.bf16.gmra.mrb[44].mxu0 %v2096_v63  ;;  %v2160_v63 = vld [vmem:[%s2841_s0 + $0x288] ss:$12 sps:$4 sm:$0xff]  }
  0x9a   :  { %1035 = vmatprep.mubr.bf16.mxu0 %v2098_v1  ;;  %1967 = vmatmul.mubr.bf16.gmra.mrb[60].mxu1 %v2109_v4 }
  0x9b   :  { %1970 = vmatprep.mubr.msk.bf16.mxu1 %vm2167_vm0, %v2166_v2 }
  0xa1   :  { %1036 = vmatmul.mubr.bf16.gmra.mrb[48].mxu0 %v2100_v3  ;;  %v2162_v3 = vld [vmem:[%s2841_s0 + $0x2a4] ss:$12 sps:$4 sm:$0xff]  }
  0xa2   :  { %1043 = vmatprep.mubr.bf16.mxu0 %v2102_v5  ;;  %1971 = vmatmul.mubr.bf16.gmra.mrb[64].mxu1 %v2113_v7 }
  0xa3   :  { %1974 = vmatprep.mubr.msk.bf16.mxu1 %vm2167_vm0, %v2166_v2 }
  0xa9   :  { %1044 = vmatmul.mubr.bf16.gmra.mrb[52].mxu0 %v2104_v6 }
  0xaa   :  { %1051 = vmatprep.mubr.bf16.mxu0 %v2106_v8  ;;  %1975 = vmatmul.mubr.bf16.gmra.mrb[68].mxu1 %v2117_v10 }
  0xab   :  { %1978 = vmatprep.mubr.msk.bf16.mxu1 %vm2167_vm0, %v2166_v2 }
  0xb1   :  { %1052 = vmatmul.mubr.bf16.gmra.mrb[56].mxu0 %v2108_v9 }
  0xb2   :  { %1059 = vmatprep.mubr.bf16.mxu0 %v2110_v11  ;;  %1979 = vmatmul.mubr.bf16.gmra.mrb[72].mxu1 %v2121_v13 }
  0xb3   :  { %1982 = vmatprep.mubr.msk.bf16.mxu1 %vm2167_vm0, %v2166_v2 }
  0xb9   :  { %1060 = vmatmul.mubr.bf16.gmra.mrb[60].mxu0 %v2112_v12 }
  0xba   :  { %1067 = vmatprep.mubr.bf16.mxu0 %v2114_v14  ;;  %1983 = vmatmul.mubr.bf16.gmra.mrb[76].mxu1 %v2125_v16  ;;  %v2164_v14 = vld [vmem:[%s2841_s0 + $0x2a0] ss:$12 sps:$4 sm:$0xff]  }
  0xbb   :  { %1986 = vmatprep.mubr.msk.bf16.mxu1 %vm2167_vm0, %v2166_v2 }
  0xc1   :  { %1068 = vmatmul.mubr.bf16.gmra.mrb[64].mxu0 %v2116_v15 }
  0xc2   :  { %1075 = vmatprep.mubr.bf16.mxu0 %v2118_v17  ;;  %1987 = vmatmul.mubr.bf16.gmra.mrb[80].mxu1 %v2129_v19 }
  0xc3   :  { %1990 = vmatprep.mubr.msk.bf16.mxu1 %vm2167_vm0, %v2166_v2 }
  0xc9   :  { %1076 = vmatmul.mubr.bf16.gmra.mrb[68].mxu0 %v2120_v18 }
  0xca   :  { %1083 = vmatprep.mubr.bf16.mxu0 %v2122_v20  ;;  %1991 = vmatmul.mubr.bf16.gmra.mrb[84].mxu1 %v2133_v22 }
  0xcb   :  { %1994 = vmatprep.mubr.msk.bf16.mxu1 %vm2167_vm0, %v2166_v2 }
  0xd1   :  { %1084 = vmatmul.mubr.bf16.gmra.mrb[72].mxu0 %v2124_v21 }
  0xd2   :  { %1091 = vmatprep.mubr.bf16.mxu0 %v2126_v23  ;;  %1995 = vmatmul.mubr.bf16.gmra.mrb[88].mxu1 %v2137_v25 }
  0xd3   :  { %1998 = vmatprep.mubr.msk.bf16.mxu1 %vm2167_vm0, %v2166_v2 }
  0xd9   :  { %1092 = vmatmul.mubr.bf16.gmra.mrb[76].mxu0 %v2128_v24 }
  0xda   :  { %1099 = vmatprep.mubr.bf16.mxu0 %v2130_v26  ;;  %1999 = vmatmul.mubr.bf16.gmra.mrb[92].mxu1 %v2141_v28 }
  0xdb   :  { %2002 = vmatprep.mubr.msk.bf16.mxu1 %vm2167_vm0, %v2166_v2 }
  0xe1   :  { %1100 = vmatmul.mubr.bf16.gmra.mrb[80].mxu0 %v2132_v27 }
  0xe2   :  { %1107 = vmatprep.mubr.bf16.mxu0 %v2134_v29  ;;  %2003 = vmatmul.mubr.bf16.gmra.mrb[96].mxu1 %v2145_v31 }
  0xe3   :  { %2006 = vmatprep.mubr.msk.bf16.mxu1 %vm2167_vm0, %v2166_v2 }
  0xe9   :  { %1108 = vmatmul.mubr.bf16.gmra.mrb[84].mxu0 %v2136_v30 }
  0xea   :  { %1115 = vmatprep.mubr.bf16.mxu0 %v2138_v32  ;;  %2007 = vmatmul.mubr.bf16.gmra.mrb[100].mxu1 %v2149_v34 }
  0xeb   :  { %2010 = vmatprep.mubr.msk.bf16.mxu1 %vm2167_vm0, %v2166_v2 }
  0xf1   :  { %1116 = vmatmul.mubr.bf16.gmra.mrb[88].mxu0 %v2140_v33 }
  0xf2   :  { %1123 = vmatprep.mubr.bf16.mxu0 %v2142_v35  ;;  %2011 = vmatmul.mubr.bf16.gmra.mrb[104].mxu1 %v2153_v37 }
  0xf3   :  { %2014 = vmatprep.mubr.msk.bf16.mxu1 %vm2167_vm0, %v2166_v2 }
  0xf5   :  { %v1206_v39 = vpop.f32.mrb[0].mxu1 }
  0xf6   :  { %v1908_v41 = vpop.f32.mrb[1].mxu1 }
  0xf7   :  { %v1209_v44 = vpop.f32.mrb[2].mxu1 }
  0xf8   :  { %v1909_v45 = vpop.f32.mrb[3].mxu1 }
  0xf9   :  { %1124 = vmatmul.mubr.bf16.gmra.mrb[92].mxu0 %v2144_v36 }
  0xfa   :  { %1131 = vmatprep.mubr.bf16.mxu0 %v2146_v38  ;;  %2015 = vmatmul.mubr.bf16.gmra.mrb[108].mxu1 %v2157_v42 }
  0xfb   :  { %2018 = vmatprep.mubr.msk.bf16.mxu1 %vm2167_vm0, %v2166_v2 }
  0xfd   :  { %v1214_v46 = vpop.f32.mrb[4].mxu1 }
  0xfe   :  { %v1912_v48 = vpop.f32.mrb[5].mxu1 }
  0xff   :  { %v1217_v51 = vpop.f32.mrb[6].mxu1 }
 0x100   :  { %v1913_v52 = vpop.f32.mrb[7].mxu1 }
 0x101   :  { %1132 = vmatmul.mubr.bf16.gmra.mrb[96].mxu0 %v2148_v40 }
 0x102   :  { %1139 = vmatprep.mubr.bf16.mxu0 %v2150_v43  ;;  %2019 = vmatmul.mubr.bf16.gmra.mrb[112].mxu1 %v2161_v49 }
 0x105   :  { %v1222_v2 = vpop.f32.mrb[8].mxu1 }
 0x106   :  { %v1916_v54 = vpop.f32.mrb[9].mxu1 }
 0x107   :  { %v1225_v56 = vpop.f32.mrb[10].mxu1 }
 0x108   :  { %v1917_v57 = vpop.f32.mrb[11].mxu1 }
 0x109   :  { %1140 = vmatmul.mubr.bf16.gmra.mrb[100].mxu0 %v2152_v47 }
 0x10a   :  { %1147 = vmatprep.mubr.bf16.mxu0 %v2154_v50 }
 0x10d   :  { %v1230_v60 = vpop.f32.mrb[12].mxu1 }
 0x10e   :  { %v1920_v0 = vpop.f32.mrb[13].mxu1 }
 0x10f   :  { %v1233_v4 = vpop.f32.mrb[14].mxu1 }
 0x110   :  { %v1921_v8 = vpop.f32.mrb[15].mxu1 }
 0x111   :  { %1148 = vmatmul.mubr.bf16.gmra.mrb[104].mxu0 %v2156_v53 }
 0x112   :  { %1155 = vmatprep.mubr.bf16.mxu0 %v2158_v55 }
 0x114   :  { %v941_v58 = vpop.f32.mrb[0].mxu0 }
 0x115   :  { %v1207_v61 = vadd.f32 %v1206_v39, %v941_v58  ;;  %v943_v62 = vpop.f32.mrb[1].mxu0  ;;  %v1238_v11 = vpop.f32.mrb[16].mxu1 }
 0x116   :  { %v944_v1 = vpop.f32.mrb[2].mxu0  ;;  %v1924_v15 = vpop.f32.mrb[17].mxu1 }
 0x117   :  { %v1621_v5 = vadd.f32 %v2597_v59, %v1207_v61  ;;  %v1210_v6 = vadd.f32 %v1209_v44, %v944_v1  ;;  %v946_v7 = vpop.f32.mrb[3].mxu0  ;;  %v1241_v17 = vpop.f32.mrb[18].mxu1 }
 0x118   :  { %v1925_v21 = vpop.f32.mrb[19].mxu1 }
 0x119   :  { %1679 = vst [vmem:[%s2843_s3] sm:$0xff] %v1621_v5  ;;  %v1622_v9 = vadd.f32 %v2597_v59, %v1210_v6  ;;  %1156 = vmatmul.mubr.bf16.gmra.mrb[108].mxu0 %v2160_v63 }
 0x11a   :  { %1163 = vmatprep.mubr.bf16.mxu0 %v2162_v3 }
 0x11b   :  { %1680 = vst [vmem:[%s2843_s3 + $0x8] sm:$0xff] %v1622_v9 }
 0x11c   :  { %v949_v10 = vpop.f32.mrb[4].mxu0 }
 0x11d   :  { %v1215_v12 = vadd.f32 %v1214_v46, %v949_v10  ;;  %v951_v13 = vpop.f32.mrb[5].mxu0  ;;  %v1246_v24 = vpop.f32.mrb[20].mxu1 }
 0x11e   :  { %v952_v16 = vpop.f32.mrb[6].mxu0  ;;  %v1928_v27 = vpop.f32.mrb[21].mxu1 }
 0x11f   :  { %v1623_v18 = vadd.f32 %v2597_v59, %v1215_v12  ;;  %v1218_v19 = vadd.f32 %v1217_v51, %v952_v16  ;;  %v954_v20 = vpop.f32.mrb[7].mxu0  ;;  %v1249_v29 = vpop.f32.mrb[22].mxu1 }
 0x120   :  { %v1929_v33 = vpop.f32.mrb[23].mxu1 }
 0x121   :  { %1681 = vst [vmem:[%s2843_s3 + $0x10] sm:$0xff] %v1623_v18  ;;  %v1624_v22 = vadd.f32 %v2597_v59, %v1218_v19  ;;  %1164 = vmatmul.mubr.bf16.gmra.mrb[112].mxu0 %v2164_v14 }
 0x123   :  { %1682 = vst [vmem:[%s2843_s3 + $0x18] sm:$0xff] %v1624_v22 }
 0x124   :  { %v957_v23 = vpop.f32.mrb[8].mxu0 }
 0x125   :  { %v1223_v25 = vadd.f32 %v1222_v2, %v957_v23  ;;  %v959_v26 = vpop.f32.mrb[9].mxu0  ;;  %v1254_v36 = vpop.f32.mrb[24].mxu1 }
 0x126   :  { %v960_v28 = vpop.f32.mrb[10].mxu0  ;;  %v1932_v39 = vpop.f32.mrb[25].mxu1 }
 0x127   :  { %v1625_v30 = vadd.f32 %v2597_v59, %v1223_v25  ;;  %v1226_v31 = vadd.f32 %v1225_v56, %v960_v28  ;;  %v962_v32 = vpop.f32.mrb[11].mxu0  ;;  %v1257_v41 = vpop.f32.mrb[26].mxu1 }
 0x128   :  { %v1933_v45 = vpop.f32.mrb[27].mxu1 }
 0x129   :  { %1683 = vst [vmem:[%s2843_s3 + $0x20] sm:$0xff] %v1625_v30  ;;  %v1626_v34 = vadd.f32 %v2597_v59, %v1226_v31 }
 0x12b   :  { %1684 = vst [vmem:[%s2843_s3 + $0x28] sm:$0xff] %v1626_v34 }
 0x12c   :  { %v965_v35 = vpop.f32.mrb[12].mxu0 }
 0x12d   :  { %v1231_v37 = vadd.f32 %v1230_v60, %v965_v35  ;;  %v967_v38 = vpop.f32.mrb[13].mxu0  ;;  %v1262_v48 = vpop.f32.mrb[28].mxu1 }
 0x12e   :  { %v968_v40 = vpop.f32.mrb[14].mxu0  ;;  %v1936_v51 = vpop.f32.mrb[29].mxu1 }
 0x12f   :  { %v1627_v42 = vadd.f32 %v2597_v59, %v1231_v37  ;;  %v1234_v43 = vadd.f32 %v1233_v4, %v968_v40  ;;  %v970_v44 = vpop.f32.mrb[15].mxu0  ;;  %v1265_v2 = vpop.f32.mrb[30].mxu1 }
 0x130   :  { %v1937_v56 = vpop.f32.mrb[31].mxu1 }
 0x131   :  { %1685 = vst [vmem:[%s2843_s3 + $0x30] sm:$0xff] %v1627_v42  ;;  %v1628_v46 = vadd.f32 %v2597_v59, %v1234_v43 }
 0x133   :  { %1686 = vst [vmem:[%s2843_s3 + $0x38] sm:$0xff] %v1628_v46 }
 0x134   :  { %v973_v47 = vpop.f32.mrb[16].mxu0 }
 0x135   :  { %v1239_v49 = vadd.f32 %v1238_v11, %v973_v47  ;;  %v975_v50 = vpop.f32.mrb[17].mxu0  ;;  %v1270_v60 = vpop.f32.mrb[32].mxu1 }
 0x136   :  { %v976_v52 = vpop.f32.mrb[18].mxu0  ;;  %v1940_v63 = vpop.f32.mrb[33].mxu1 }
 0x137   :  { %v1629_v53 = vadd.f32 %v2597_v59, %v1239_v49  ;;  %v1242_v54 = vadd.f32 %v1241_v17, %v976_v52  ;;  %v978_v55 = vpop.f32.mrb[19].mxu0  ;;  %v1273_v1 = vpop.f32.mrb[34].mxu1 }
 0x138   :  { %v1941_v6 = vpop.f32.mrb[35].mxu1 }
 0x139   :  { %1687 = vst [vmem:[%s2843_s3 + $0x40] sm:$0xff] %v1629_v53  ;;  %v1630_v57 = vadd.f32 %v2597_v59, %v1242_v54 }
 0x13b   :  { %1688 = vst [vmem:[%s2843_s3 + $0x48] sm:$0xff] %v1630_v57 }
 0x13c   :  { %v981_v58 = vpop.f32.mrb[20].mxu0 }
 0x13d   :  { %v1247_v61 = vadd.f32 %v1246_v24, %v981_v58  ;;  %v983_v62 = vpop.f32.mrb[21].mxu0  ;;  %v1278_v9 = vpop.f32.mrb[36].mxu1 }
 0x13e   :  { %v984_v0 = vpop.f32.mrb[22].mxu0  ;;  %v1944_v12 = vpop.f32.mrb[37].mxu1 }
 0x13f   :  { %v1631_v3 = vadd.f32 %v2597_v59, %v1247_v61  ;;  %v1250_v4 = vadd.f32 %v1249_v29, %v984_v0  ;;  %v986_v5 = vpop.f32.mrb[23].mxu0  ;;  %v1281_v14 = vpop.f32.mrb[38].mxu1 }
 0x140   :  { %v1945_v18 = vpop.f32.mrb[39].mxu1 }
 0x141   :  { %1689 = vst [vmem:[%s2843_s3 + $0x50] sm:$0xff] %v1631_v3  ;;  %v1632_v7 = vadd.f32 %v2597_v59, %v1250_v4 }
 0x143   :  { %1690 = vst [vmem:[%s2843_s3 + $0x58] sm:$0xff] %v1632_v7 }
 0x144   :  { %v989_v8 = vpop.f32.mrb[24].mxu0 }
 0x145   :  { %v1255_v10 = vadd.f32 %v1254_v36, %v989_v8  ;;  %v991_v11 = vpop.f32.mrb[25].mxu0  ;;  %v1286_v21 = vpop.f32.mrb[40].mxu1 }
 0x146   :  { %v992_v13 = vpop.f32.mrb[26].mxu0  ;;  %v1948_v24 = vpop.f32.mrb[41].mxu1 }
 0x147   :  { %v1633_v15 = vadd.f32 %v2597_v59, %v1255_v10  ;;  %v1258_v16 = vadd.f32 %v1257_v41, %v992_v13  ;;  %v994_v17 = vpop.f32.mrb[27].mxu0  ;;  %v1289_v26 = vpop.f32.mrb[42].mxu1 }
 0x148   :  { %v1949_v30 = vpop.f32.mrb[43].mxu1 }
 0x149   :  { %1691 = vst [vmem:[%s2843_s3 + $0x60] sm:$0xff] %v1633_v15  ;;  %v1634_v19 = vadd.f32 %v2597_v59, %v1258_v16 }
 0x14b   :  { %1692 = vst [vmem:[%s2843_s3 + $0x68] sm:$0xff] %v1634_v19 }
 0x14c   :  { %v997_v20 = vpop.f32.mrb[28].mxu0 }
 0x14d   :  { %v1263_v22 = vadd.f32 %v1262_v48, %v997_v20  ;;  %v999_v23 = vpop.f32.mrb[29].mxu0  ;;  %v1294_v33 = vpop.f32.mrb[44].mxu1 }
 0x14e   :  { %v1000_v25 = vpop.f32.mrb[30].mxu0  ;;  %v1952_v36 = vpop.f32.mrb[45].mxu1 }
 0x14f   :  { %v1635_v27 = vadd.f32 %v2597_v59, %v1263_v22  ;;  %v1266_v28 = vadd.f32 %v1265_v2, %v1000_v25  ;;  %v1002_v29 = vpop.f32.mrb[31].mxu0  ;;  %v1297_v38 = vpop.f32.mrb[46].mxu1 }
 0x150   :  { %v1953_v42 = vpop.f32.mrb[47].mxu1 }
 0x151   :  { %1693 = vst [vmem:[%s2843_s3 + $0x70] sm:$0xff] %v1635_v27  ;;  %v1636_v31 = vadd.f32 %v2597_v59, %v1266_v28 }
 0x153   :  { %1694 = vst [vmem:[%s2843_s3 + $0x78] sm:$0xff] %v1636_v31 }
 0x154   :  { %v1005_v32 = vpop.f32.mrb[32].mxu0 }
 0x155   :  { %v1271_v34 = vadd.f32 %v1270_v60, %v1005_v32  ;;  %v1007_v35 = vpop.f32.mrb[33].mxu0  ;;  %v1302_v45 = vpop.f32.mrb[48].mxu1 }
 0x156   :  { %v1008_v37 = vpop.f32.mrb[34].mxu0  ;;  %v1956_v48 = vpop.f32.mrb[49].mxu1 }
 0x157   :  { %v1637_v39 = vadd.f32 %v2597_v59, %v1271_v34  ;;  %v1274_v40 = vadd.f32 %v1273_v1, %v1008_v37  ;;  %v1010_v41 = vpop.f32.mrb[35].mxu0  ;;  %v1305_v50 = vpop.f32.mrb[50].mxu1 }
 0x158   :  { %v1957_v53 = vpop.f32.mrb[51].mxu1 }
 0x159   :  { %1695 = vst [vmem:[%s2843_s3 + $0x80] sm:$0xff] %v1637_v39  ;;  %v1638_v43 = vadd.f32 %v2597_v59, %v1274_v40 }
 0x15b   :  { %1696 = vst [vmem:[%s2843_s3 + $0x88] sm:$0xff] %v1638_v43 }
 0x15c   :  { %v1013_v44 = vpop.f32.mrb[36].mxu0 }
 0x15d   :  { %v1279_v46 = vadd.f32 %v1278_v9, %v1013_v44  ;;  %v1015_v47 = vpop.f32.mrb[37].mxu0  ;;  %v1310_v56 = vpop.f32.mrb[52].mxu1 }
 0x15e   :  { %v1016_v49 = vpop.f32.mrb[38].mxu0  ;;  %v1960_v60 = vpop.f32.mrb[53].mxu1 }
 0x15f   :  { %v1639_v51 = vadd.f32 %v2597_v59, %v1279_v46  ;;  %v1282_v52 = vadd.f32 %v1281_v14, %v1016_v49  ;;  %v1018_v2 = vpop.f32.mrb[39].mxu0  ;;  %v1313_v62 = vpop.f32.mrb[54].mxu1 }
 0x160   :  { %v1961_v3 = vpop.f32.mrb[55].mxu1 }
 0x161   :  { %1697 = vst [vmem:[%s2843_s3 + $0x90] sm:$0xff] %v1639_v51  ;;  %v1640_v54 = vadd.f32 %v2597_v59, %v1282_v52 }
 0x163   :  { %1698 = vst [vmem:[%s2843_s3 + $0x98] sm:$0xff] %v1640_v54 }
 0x164   :  { %v1021_v55 = vpop.f32.mrb[40].mxu0 }
 0x165   :  { %v1287_v57 = vadd.f32 %v1286_v21, %v1021_v55  ;;  %v1023_v58 = vpop.f32.mrb[41].mxu0  ;;  %v1318_v6 = vpop.f32.mrb[56].mxu1 }
 0x166   :  { %v1024_v61 = vpop.f32.mrb[42].mxu0  ;;  %v1964_v9 = vpop.f32.mrb[57].mxu1 }
 0x167   :  { %v1641_v63 = vadd.f32 %v2597_v59, %v1287_v57  ;;  %v1290_v0 = vadd.f32 %v1289_v26, %v1024_v61  ;;  %v1026_v1 = vpop.f32.mrb[43].mxu0  ;;  %v1321_v11 = vpop.f32.mrb[58].mxu1 }
 0x168   :  { %v1965_v15 = vpop.f32.mrb[59].mxu1 }
 0x169   :  { %1699 = vst [vmem:[%s2843_s3 + $0xa0] sm:$0xff] %v1641_v63  ;;  %v1642_v4 = vadd.f32 %v2597_v59, %v1290_v0 }
 0x16b   :  { %1700 = vst [vmem:[%s2843_s3 + $0xa8] sm:$0xff] %v1642_v4 }
 0x16c   :  { %v1029_v5 = vpop.f32.mrb[44].mxu0 }
 0x16d   :  { %v1295_v7 = vadd.f32 %v1294_v33, %v1029_v5  ;;  %v1031_v8 = vpop.f32.mrb[45].mxu0  ;;  %v1326_v18 = vpop.f32.mrb[60].mxu1 }
 0x16e   :  { %v1032_v10 = vpop.f32.mrb[46].mxu0  ;;  %v1968_v21 = vpop.f32.mrb[61].mxu1 }
 0x16f   :  { %v1643_v12 = vadd.f32 %v2597_v59, %v1295_v7  ;;  %v1298_v13 = vadd.f32 %v1297_v38, %v1032_v10  ;;  %v1034_v14 = vpop.f32.mrb[47].mxu0  ;;  %v1329_v23 = vpop.f32.mrb[62].mxu1 }
 0x170   :  { %v1969_v27 = vpop.f32.mrb[63].mxu1 }
 0x171   :  { %1701 = vst [vmem:[%s2843_s3 + $0xb0] sm:$0xff] %v1643_v12  ;;  %v1644_v16 = vadd.f32 %v2597_v59, %v1298_v13 }
 0x173   :  { %1702 = vst [vmem:[%s2843_s3 + $0xb8] sm:$0xff] %v1644_v16 }
 0x174   :  { %v1037_v17 = vpop.f32.mrb[48].mxu0 }
 0x175   :  { %v1303_v19 = vadd.f32 %v1302_v45, %v1037_v17  ;;  %v1039_v20 = vpop.f32.mrb[49].mxu0  ;;  %v1334_v30 = vpop.f32.mrb[64].mxu1 }
 0x176   :  { %v1040_v22 = vpop.f32.mrb[50].mxu0  ;;  %v1972_v33 = vpop.f32.mrb[65].mxu1 }
 0x177   :  { %v1645_v24 = vadd.f32 %v2597_v59, %v1303_v19  ;;  %v1306_v25 = vadd.f32 %v1305_v50, %v1040_v22  ;;  %v1042_v26 = vpop.f32.mrb[51].mxu0  ;;  %v1337_v35 = vpop.f32.mrb[66].mxu1 }
 0x178   :  { %v1973_v39 = vpop.f32.mrb[67].mxu1 }
 0x179   :  { %1703 = vst [vmem:[%s2843_s3 + $0xc0] sm:$0xff] %v1645_v24  ;;  %v1646_v28 = vadd.f32 %v2597_v59, %v1306_v25 }
 0x17b   :  { %1704 = vst [vmem:[%s2843_s3 + $0xc8] sm:$0xff] %v1646_v28 }
 0x17c   :  { %v1045_v29 = vpop.f32.mrb[52].mxu0 }
 0x17d   :  { %v1311_v31 = vadd.f32 %v1310_v56, %v1045_v29  ;;  %v1047_v32 = vpop.f32.mrb[53].mxu0  ;;  %v1342_v42 = vpop.f32.mrb[68].mxu1 }
 0x17e   :  { %v1048_v34 = vpop.f32.mrb[54].mxu0  ;;  %v1976_v45 = vpop.f32.mrb[69].mxu1 }
 0x17f   :  { %v1647_v36 = vadd.f32 %v2597_v59, %v1311_v31  ;;  %v1314_v37 = vadd.f32 %v1313_v62, %v1048_v34  ;;  %v1050_v38 = vpop.f32.mrb[55].mxu0  ;;  %v1345_v47 = vpop.f32.mrb[70].mxu1 }
 0x180   :  { %v1977_v51 = vpop.f32.mrb[71].mxu1 }
 0x181   :  { %1705 = vst [vmem:[%s2843_s3 + $0xd0] sm:$0xff] %v1647_v36  ;;  %v1648_v40 = vadd.f32 %v2597_v59, %v1314_v37 }
 0x183   :  { %1706 = vst [vmem:[%s2843_s3 + $0xd8] sm:$0xff] %v1648_v40 }
 0x184   :  { %v1053_v41 = vpop.f32.mrb[56].mxu0 }
 0x185   :  { %v1319_v43 = vadd.f32 %v1318_v6, %v1053_v41  ;;  %v1055_v44 = vpop.f32.mrb[57].mxu0  ;;  %v1350_v53 = vpop.f32.mrb[72].mxu1 }
 0x186   :  { %v1056_v46 = vpop.f32.mrb[58].mxu0  ;;  %v1980_v56 = vpop.f32.mrb[73].mxu1 }
 0x187   :  { %v1649_v48 = vadd.f32 %v2597_v59, %v1319_v43  ;;  %v1322_v49 = vadd.f32 %v1321_v11, %v1056_v46  ;;  %v1058_v50 = vpop.f32.mrb[59].mxu0  ;;  %v1353_v58 = vpop.f32.mrb[74].mxu1 }
 0x188   :  { %v1981_v63 = vpop.f32.mrb[75].mxu1 }
 0x189   :  { %1707 = vst [vmem:[%s2843_s3 + $0xe0] sm:$0xff] %v1649_v48  ;;  %v1650_v52 = vadd.f32 %v2597_v59, %v1322_v49 }
 0x18b   :  { %1708 = vst [vmem:[%s2843_s3 + $0xe8] sm:$0xff] %v1650_v52 }
 0x18c   :  { %v1061_v2 = vpop.f32.mrb[60].mxu0 }
 0x18d   :  { %v1327_v54 = vadd.f32 %v1326_v18, %v1061_v2  ;;  %v1063_v55 = vpop.f32.mrb[61].mxu0  ;;  %v1358_v3 = vpop.f32.mrb[76].mxu1 }
 0x18e   :  { %v1064_v57 = vpop.f32.mrb[62].mxu0  ;;  %v1984_v6 = vpop.f32.mrb[77].mxu1 }
 0x18f   :  { %v1651_v60 = vadd.f32 %v2597_v59, %v1327_v54  ;;  %v1330_v61 = vadd.f32 %v1329_v23, %v1064_v57  ;;  %v1066_v62 = vpop.f32.mrb[63].mxu0  ;;  %v1361_v8 = vpop.f32.mrb[78].mxu1 }
 0x190   :  { %v1985_v12 = vpop.f32.mrb[79].mxu1 }
 0x191   :  { %1709 = vst [vmem:[%s2843_s3 + $0xf0] sm:$0xff] %v1651_v60  ;;  %v1652_v0 = vadd.f32 %v2597_v59, %v1330_v61 }
 0x193   :  { %1710 = vst [vmem:[%s2843_s3 + $0xf8] sm:$0xff] %v1652_v0 }
 0x194   :  { %v1069_v1 = vpop.f32.mrb[64].mxu0 }
 0x195   :  { %v1335_v4 = vadd.f32 %v1334_v30, %v1069_v1  ;;  %v1071_v5 = vpop.f32.mrb[65].mxu0  ;;  %v1366_v15 = vpop.f32.mrb[80].mxu1 }
 0x196   :  { %v1072_v7 = vpop.f32.mrb[66].mxu0  ;;  %v1988_v18 = vpop.f32.mrb[81].mxu1 }
 0x197   :  { %v1653_v9 = vadd.f32 %v2597_v59, %v1335_v4  ;;  %v1338_v10 = vadd.f32 %v1337_v35, %v1072_v7  ;;  %v1074_v11 = vpop.f32.mrb[67].mxu0  ;;  %v1369_v20 = vpop.f32.mrb[82].mxu1 }
 0x198   :  { %v1989_v24 = vpop.f32.mrb[83].mxu1 }
 0x199   :  { %1711 = vst [vmem:[%s2843_s3 + $0x100] sm:$0xff] %v1653_v9  ;;  %v1654_v13 = vadd.f32 %v2597_v59, %v1338_v10 }
 0x19b   :  { %1712 = vst [vmem:[%s2843_s3 + $0x108] sm:$0xff] %v1654_v13 }
 0x19c   :  { %v1077_v14 = vpop.f32.mrb[68].mxu0 }
 0x19d   :  { %v1343_v16 = vadd.f32 %v1342_v42, %v1077_v14  ;;  %v1079_v17 = vpop.f32.mrb[69].mxu0  ;;  %v1374_v27 = vpop.f32.mrb[84].mxu1 }
 0x19e   :  { %v1080_v19 = vpop.f32.mrb[70].mxu0  ;;  %v1992_v30 = vpop.f32.mrb[85].mxu1 }
 0x19f   :  { %v1655_v21 = vadd.f32 %v2597_v59, %v1343_v16  ;;  %v1346_v22 = vadd.f32 %v1345_v47, %v1080_v19  ;;  %v1082_v23 = vpop.f32.mrb[71].mxu0  ;;  %v1377_v32 = vpop.f32.mrb[86].mxu1 }
 0x1a0   :  { %v1993_v36 = vpop.f32.mrb[87].mxu1 }
 0x1a1   :  { %1713 = vst [vmem:[%s2843_s3 + $0x110] sm:$0xff] %v1655_v21  ;;  %v1656_v25 = vadd.f32 %v2597_v59, %v1346_v22 }
 0x1a3   :  { %1714 = vst [vmem:[%s2843_s3 + $0x118] sm:$0xff] %v1656_v25 }
 0x1a4   :  { %v1085_v26 = vpop.f32.mrb[72].mxu0 }
 0x1a5   :  { %v1351_v28 = vadd.f32 %v1350_v53, %v1085_v26  ;;  %v1087_v29 = vpop.f32.mrb[73].mxu0  ;;  %v1382_v39 = vpop.f32.mrb[88].mxu1 }
 0x1a6   :  { %v1088_v31 = vpop.f32.mrb[74].mxu0  ;;  %v1996_v42 = vpop.f32.mrb[89].mxu1 }
 0x1a7   :  { %v1657_v33 = vadd.f32 %v2597_v59, %v1351_v28  ;;  %v1354_v34 = vadd.f32 %v1353_v58, %v1088_v31  ;;  %v1090_v35 = vpop.f32.mrb[75].mxu0  ;;  %v1385_v44 = vpop.f32.mrb[90].mxu1 }
 0x1a8   :  { %v1997_v48 = vpop.f32.mrb[91].mxu1 }
 0x1a9   :  { %1715 = vst [vmem:[%s2843_s3 + $0x120] sm:$0xff] %v1657_v33  ;;  %v1658_v37 = vadd.f32 %v2597_v59, %v1354_v34 }
 0x1ab   :  { %1716 = vst [vmem:[%s2843_s3 + $0x128] sm:$0xff] %v1658_v37 }
 0x1ac   :  { %v1093_v38 = vpop.f32.mrb[76].mxu0 }
 0x1ad   :  { %v1359_v40 = vadd.f32 %v1358_v3, %v1093_v38  ;;  %v1095_v41 = vpop.f32.mrb[77].mxu0  ;;  %v1390_v51 = vpop.f32.mrb[92].mxu1 }
 0x1ae   :  { %v1096_v43 = vpop.f32.mrb[78].mxu0  ;;  %v2000_v53 = vpop.f32.mrb[93].mxu1 }
 0x1af   :  { %v1659_v45 = vadd.f32 %v2597_v59, %v1359_v40  ;;  %v1362_v46 = vadd.f32 %v1361_v8, %v1096_v43  ;;  %v1098_v47 = vpop.f32.mrb[79].mxu0  ;;  %v1393_v55 = vpop.f32.mrb[94].mxu1 }
 0x1b0   :  { %v2001_v60 = vpop.f32.mrb[95].mxu1 }
 0x1b1   :  { %1717 = vst [vmem:[%s2843_s3 + $0x130] sm:$0xff] %v1659_v45  ;;  %v1660_v49 = vadd.f32 %v2597_v59, %v1362_v46 }
 0x1b3   :  { %1718 = vst [vmem:[%s2843_s3 + $0x138] sm:$0xff] %v1660_v49 }
 0x1b4   :  { %v1101_v50 = vpop.f32.mrb[80].mxu0 }
 0x1b5   :  { %v1367_v52 = vadd.f32 %v1366_v15, %v1101_v50  ;;  %v1103_v2 = vpop.f32.mrb[81].mxu0  ;;  %v1398_v63 = vpop.f32.mrb[96].mxu1 }
 0x1b6   :  { %v1104_v54 = vpop.f32.mrb[82].mxu0  ;;  %v2004_v3 = vpop.f32.mrb[97].mxu1 }
 0x1b7   :  { %v1661_v56 = vadd.f32 %v2597_v59, %v1367_v52  ;;  %v1370_v57 = vadd.f32 %v1369_v20, %v1104_v54  ;;  %v1106_v58 = vpop.f32.mrb[83].mxu0  ;;  %v1401_v5 = vpop.f32.mrb[98].mxu1 }
 0x1b8   :  { %v2005_v9 = vpop.f32.mrb[99].mxu1 }
 0x1b9   :  { %1719 = vst [vmem:[%s2843_s3 + $0x140] sm:$0xff] %v1661_v56  ;;  %v1662_v61 = vadd.f32 %v2597_v59, %v1370_v57 }
 0x1bb   :  { %1720 = vst [vmem:[%s2843_s3 + $0x148] sm:$0xff] %v1662_v61 }
 0x1bc   :  { %v1109_v62 = vpop.f32.mrb[84].mxu0 }
 0x1bd   :  { %v1375_v0 = vadd.f32 %v1374_v27, %v1109_v62  ;;  %v1111_v1 = vpop.f32.mrb[85].mxu0  ;;  %v1406_v12 = vpop.f32.mrb[100].mxu1 }
 0x1be   :  { %v1112_v4 = vpop.f32.mrb[86].mxu0  ;;  %v2008_v15 = vpop.f32.mrb[101].mxu1 }
 0x1bf   :  { %v1663_v6 = vadd.f32 %v2597_v59, %v1375_v0  ;;  %v1378_v7 = vadd.f32 %v1377_v32, %v1112_v4  ;;  %v1114_v8 = vpop.f32.mrb[87].mxu0  ;;  %v1409_v17 = vpop.f32.mrb[102].mxu1 }
 0x1c0   :  { %v2009_v21 = vpop.f32.mrb[103].mxu1 }
 0x1c1   :  { %1721 = vst [vmem:[%s2843_s3 + $0x150] sm:$0xff] %v1663_v6  ;;  %v1664_v10 = vadd.f32 %v2597_v59, %v1378_v7 }
 0x1c3   :  { %1722 = vst [vmem:[%s2843_s3 + $0x158] sm:$0xff] %v1664_v10 }
 0x1c4   :  { %v1117_v11 = vpop.f32.mrb[88].mxu0 }
 0x1c5   :  { %v1383_v13 = vadd.f32 %v1382_v39, %v1117_v11  ;;  %v1119_v14 = vpop.f32.mrb[89].mxu0  ;;  %v1414_v24 = vpop.f32.mrb[104].mxu1 }
 0x1c6   :  { %v1120_v16 = vpop.f32.mrb[90].mxu0  ;;  %v2012_v27 = vpop.f32.mrb[105].mxu1 }
 0x1c7   :  { %v1665_v18 = vadd.f32 %v2597_v59, %v1383_v13  ;;  %v1386_v19 = vadd.f32 %v1385_v44, %v1120_v16  ;;  %v1122_v20 = vpop.f32.mrb[91].mxu0  ;;  %v1417_v29 = vpop.f32.mrb[106].mxu1 }
 0x1c8   :  { %v2013_v33 = vpop.f32.mrb[107].mxu1 }
 0x1c9   :  { %1723 = vst [vmem:[%s2843_s3 + $0x160] sm:$0xff] %v1665_v18  ;;  %v1666_v22 = vadd.f32 %v2597_v59, %v1386_v19 }
 0x1cb   :  { %1724 = vst [vmem:[%s2843_s3 + $0x168] sm:$0xff] %v1666_v22 }
 0x1cc   :  { %v1125_v23 = vpop.f32.mrb[92].mxu0 }
 0x1cd   :  { %v1391_v25 = vadd.f32 %v1390_v51, %v1125_v23  ;;  %v1127_v26 = vpop.f32.mrb[93].mxu0  ;;  %v1422_v36 = vpop.f32.mrb[108].mxu1 }
 0x1ce   :  { %v1128_v28 = vpop.f32.mrb[94].mxu0  ;;  %v2016_v39 = vpop.f32.mrb[109].mxu1 }
 0x1cf   :  { %v1667_v30 = vadd.f32 %v2597_v59, %v1391_v25  ;;  %v1394_v31 = vadd.f32 %v1393_v55, %v1128_v28  ;;  %v1130_v32 = vpop.f32.mrb[95].mxu0  ;;  %v1425_v41 = vpop.f32.mrb[110].mxu1 }
 0x1d0   :  { %v2017_v45 = vpop.f32.mrb[111].mxu1 }
 0x1d1   :  { %1725 = vst [vmem:[%s2843_s3 + $0x170] sm:$0xff] %v1667_v30  ;;  %v1668_v34 = vadd.f32 %v2597_v59, %v1394_v31 }
 0x1d3   :  { %1726 = vst [vmem:[%s2843_s3 + $0x178] sm:$0xff] %v1668_v34 }
 0x1d4   :  { %v1133_v35 = vpop.f32.mrb[96].mxu0 }
 0x1d5   :  { %v1399_v37 = vadd.f32 %v1398_v63, %v1133_v35  ;;  %v1135_v38 = vpop.f32.mrb[97].mxu0  ;;  %v1430_v48 = vpop.f32.mrb[112].mxu1 }
 0x1d6   :  { %v1136_v40 = vpop.f32.mrb[98].mxu0  ;;  %v2020_v51 = vpop.f32.mrb[113].mxu1 }
 0x1d7   :  { %v1669_v42 = vadd.f32 %v2597_v59, %v1399_v37  ;;  %v1402_v43 = vadd.f32 %v1401_v5, %v1136_v40  ;;  %v1138_v44 = vpop.f32.mrb[99].mxu0  ;;  %v1433_v2 = vpop.f32.mrb[114].mxu1 }
 0x1d8   :  { %v2021_v56 = vpop.f32.mrb[115].mxu1 }
 0x1d9   :  { %1727 = vst [vmem:[%s2843_s3 + $0x180] sm:$0xff] %v1669_v42  ;;  %v1670_v46 = vadd.f32 %v2597_v59, %v1402_v43 }
 0x1db   :  { %1728 = vst [vmem:[%s2843_s3 + $0x188] sm:$0xff] %v1670_v46 }
 0x1dc   :  { %v1141_v47 = vpop.f32.mrb[100].mxu0 }
 0x1dd   :  { %v1407_v49 = vadd.f32 %v1406_v12, %v1141_v47  ;;  %v1143_v50 = vpop.f32.mrb[101].mxu0 }
 0x1de   :  { %v1144_v52 = vpop.f32.mrb[102].mxu0 }
 0x1df   :  { %v1671_v53 = vadd.f32 %v2597_v59, %v1407_v49  ;;  %v1410_v54 = vadd.f32 %v1409_v17, %v1144_v52  ;;  %v1146_v55 = vpop.f32.mrb[103].mxu0 }
 0x1e1   :  { %1729 = vst [vmem:[%s2843_s3 + $0x190] sm:$0xff] %v1671_v53  ;;  %v1672_v57 = vadd.f32 %v2597_v59, %v1410_v54 }
 0x1e3   :  { %1730 = vst [vmem:[%s2843_s3 + $0x198] sm:$0xff] %v1672_v57 }
 0x1e4   :  { %v1149_v58 = vpop.f32.mrb[104].mxu0 }
 0x1e5   :  { %v1415_v60 = vadd.f32 %v1414_v24, %v1149_v58  ;;  %v1151_v61 = vpop.f32.mrb[105].mxu0 }
 0x1e6   :  { %v1152_v62 = vpop.f32.mrb[106].mxu0 }
 0x1e7   :  { %v1673_v63 = vadd.f32 %v2597_v59, %v1415_v60  ;;  %v1418_v0 = vadd.f32 %v1417_v29, %v1152_v62  ;;  %v1154_v1 = vpop.f32.mrb[107].mxu0 }
 0x1e9   :  { %1731 = vst [vmem:[%s2843_s3 + $0x1a0] sm:$0xff] %v1673_v63  ;;  %v1674_v3 = vadd.f32 %v2597_v59, %v1418_v0 }
 0x1eb   :  { %1732 = vst [vmem:[%s2843_s3 + $0x1a8] sm:$0xff] %v1674_v3 }
 0x1ec   :  { %v1157_v4 = vpop.f32.mrb[108].mxu0 }
 0x1ed   :  { %v1423_v5 = vadd.f32 %v1422_v36, %v1157_v4  ;;  %v1159_v6 = vpop.f32.mrb[109].mxu0 }
 0x1ee   :  { %v1160_v7 = vpop.f32.mrb[110].mxu0 }
 0x1ef   :  { %v1675_v8 = vadd.f32 %v2597_v59, %v1423_v5  ;;  %v1426_v9 = vadd.f32 %v1425_v41, %v1160_v7  ;;  %v1162_v10 = vpop.f32.mrb[111].mxu0 }
 0x1f1   :  { %1733 = vst [vmem:[%s2843_s3 + $0x1b0] sm:$0xff] %v1675_v8  ;;  %v1676_v11 = vadd.f32 %v2597_v59, %v1426_v9 }
 0x1f3   :  { %1734 = vst [vmem:[%s2843_s3 + $0x1b8] sm:$0xff] %v1676_v11 }
 0x1f4   :  { %v1165_v12 = vpop.f32.mrb[112].mxu0 }
 0x1f5   :  { %v1431_v13 = vadd.f32 %v1430_v48, %v1165_v12  ;;  %v1167_v14 = vpop.f32.mrb[113].mxu0 }
 0x1f6   :  { %v1168_v15 = vpop.f32.mrb[114].mxu0 }
 0x1f7   :  { %v1677_v16 = vadd.f32 %v2597_v59, %v1431_v13  ;;  %v1434_v17 = vadd.f32 %v1433_v2, %v1168_v15  ;;  %v1170_v18 = vpop.f32.mrb[115].mxu0 }
 0x1f9   :  { %1735 = vst [vmem:[%s2843_s3 + $0x1c0] sm:$0xff] %v1677_v16  ;;  %v1678_v19 = vadd.f32 %v2597_v59, %v1434_v17 }
 0x1fb   :  { %1736 = vst [vmem:[%s2843_s3 + $0x1c8] sm:$0xff] %v1678_v19 }

// kernel: s_alexnet_forward.16
= control target key start
LH: loop header
LB: loop body
LE: loop exit
PB: predicated region body
PF: predicated region fallthrough
CT: control target
= control target key end

     0   :  { %v7246_v0 = vmov 0.0   ;;  %s7126_s0 = inlined_call_operand.vmem [shape: f32[1,450,128], index: 0, kind: input, shape index: {}]   ;;  %s7127_s1 = inlined_call_operand.vmem [shape: bf16[4,450,128], index: 1, kind: output, shape index: {}]  }
   0x1   :  { %64 = vst [vmem:[#allocation2 + $0x1c0] sm:$0x3] %v7246_v0  ;;  %v3894_v1 = vld [vmem:[%s7126_s0] sm:$0xff]  ;;  %v3899_v2 = vld [vmem:[%s7126_s0 + $0x8] sm:$0xff]  ;;  %v3904_v3 = vld [vmem:[%s7126_s0 + $0x10] sm:$0xff] }
   0x2   :  { %7470 = vst [vmem:[#allocation3_spill] sm:$0xff] %v3894_v1  ;;  %7471 = vst [vmem:[#allocation4_spill] sm:$0xff] %v3899_v2  ;;  %v3909_v4 = vld [vmem:[%s7126_s0 + $0x18] sm:$0xff]  ;;  %v3914_v5 = vld [vmem:[%s7126_s0 + $0x20] sm:$0xff]  ;;  %vm236_vm0 = vcmp.ge.f32.partialorder %v3894_v1, 1.0  ;;  %vm237_vm1 = vcmp.ge.f32.partialorder %v3899_v2, 1.0 }
   0x3   :  { %7472 = vst [vmem:[#allocation5_spill] sm:$0xff] %v3904_v3  ;;  %7473 = vst [vmem:[#allocation6_spill] sm:$0xff] %v3909_v4  ;;  %v3919_v6 = vld [vmem:[%s7126_s0 + $0x28] sm:$0xff]  ;;  %v3924_v7 = vld [vmem:[%s7126_s0 + $0x30] sm:$0xff]  ;;  %vm238_vm2 = vcmp.ge.f32.partialorder %v3904_v3, 1.0  ;;  %v3930_v8 = vsel %vm236_vm0, 1.0, %v7246_v0 }
   0x4   :  { %7474 = vst [vmem:[#allocation7_spill] sm:$0xff] %v3914_v5  ;;  %7475 = vst [vmem:[#allocation8_spill] sm:$0xff] %v3919_v6  ;;  %v3933_v9 = vsel %vm237_vm1, 1.0, %v7246_v0  ;;  %v3936_v10 = vsel %vm238_vm2, 1.0, %v7246_v0  ;;  %vm239_vm3 = vcmp.ge.f32.partialorder %v3909_v4, 1.0  ;;  %v3942_v11 = vld [vmem:[%s7126_s0 + $0x38] sm:$0xff] }
   0x5   :  { %7476 = vst [vmem:[#allocation9_spill] sm:$0xff] %v3924_v7  ;;  %7477 = vst [vmem:[#allocation10_spill] sm:$0xff] %v3942_v11  ;;  %v3951_v15 = vsel %vm239_vm3, 1.0, %v7246_v0  ;;  %v3956_v16 = vld [vmem:[%s7126_s0 + $0x40] sm:$0xff]  ;;  %vm240_vm4 = vcmp.ge.f32.partialorder %v3914_v5, 1.0  ;;  %vm241_vm5 = vcmp.ge.f32.partialorder %v3919_v6, 1.0 }
   0x6   :  { %7478 = vst [vmem:[#allocation11_spill] sm:$0xff] %v3956_v16  ;;  %vm242_vm6 = vcmp.ge.f32.partialorder %v3924_v7, 1.0  ;;  %v3966_v18 = vld [vmem:[%s7126_s0 + $0x48] sm:$0xff]  ;;  %v3971_v19 = vld [vmem:[%s7126_s0 + $0x50] sm:$0xff]  ;;  %v3976_v20 = vld [vmem:[%s7126_s0 + $0x58] sm:$0xff]  ;;  %v3979_v21 = vsel %vm240_vm4, 1.0, %v7246_v0 }
   0x7   :  { %7479 = vst [vmem:[#allocation12_spill] sm:$0xff] %v3966_v18  ;;  %7480 = vst [vmem:[#allocation13_spill] sm:$0xff] %v3971_v19  ;;  %v3982_v22 = vsel %vm241_vm5, 1.0, %v7246_v0  ;;  %v3985_v23 = vsel %vm242_vm6, 1.0, %v7246_v0  ;;  %v3990_v24 = vld [vmem:[%s7126_s0 + $0x60] sm:$0xff]  ;;  %v3995_v25 = vld [vmem:[%s7126_s0 + $0x68] sm:$0xff] }
   0x8   :  { %7481 = vst [vmem:[#allocation14_spill] sm:$0xff] %v3976_v20  ;;  %7482 = vst [vmem:[#allocation15_spill] sm:$0xff] %v3990_v24  ;;  %vm243_vm7 = vcmp.ge.f32.partialorder %v3942_v11, 1.0  ;;  %vm244_vm8 = vcmp.ge.f32.partialorder %v3956_v16, 1.0  ;;  %vm245_vm9 = vcmp.ge.f32.partialorder %v3966_v18, 1.0  ;;  %vm246_vm10 = vcmp.ge.f32.partialorder %v3971_v19, 1.0 }
   0x9   :  { %7483 = vst [vmem:[#allocation16_spill] sm:$0xff] %v3995_v25  ;;  %v4005_v29 = vsel %vm243_vm7, 1.0, %v7246_v0  ;;  %v4011_v31 = vsel %vm244_vm8, 1.0, %v7246_v0  ;;  %v4018_v32 = vld [vmem:[%s7126_s0 + $0x70] sm:$0xff]  ;;  %v4023_v34 = vsel %vm245_vm9, 1.0, %v7246_v0  ;;  %v4026_v35 = vsel %vm246_vm10, 1.0, %v7246_v0 }
   0xa   :  { %7484 = vst [vmem:[#allocation17_spill] sm:$0xff] %v4018_v32  ;;  %vm247_vm11 = vcmp.ge.f32.partialorder %v3976_v20, 1.0  ;;  %v4032_v36 = vld [vmem:[%s7126_s0 + $0x78] sm:$0xff]  ;;  %v4037_v37 = vld [vmem:[%s7126_s0 + $0x80] sm:$0xff]  ;;  %vm248_vm12 = vcmp.ge.f32.partialorder %v3990_v24, 1.0  ;;  %v4050_v41 = vld [vmem:[%s7126_s0 + $0x88] sm:$0xff] }
   0xb   :  { %7485 = vst [vmem:[#allocation18_spill] sm:$0xff] %v4032_v36  ;;  %7486 = vst [vmem:[#allocation19_spill] sm:$0xff] %v4037_v37  ;;  %v4044_v40 = vsel %vm247_vm11, 1.0, %v7246_v0  ;;  %v4055_v42 = vld [vmem:[%s7126_s0 + $0x90] sm:$0xff]  ;;  %v4060_v44 = vsel %vm248_vm12, 1.0, %v7246_v0  ;;  %vm249_vm13 = vcmp.ge.f32.partialorder %v3995_v25, 1.0 }
   0xc   :  { %7487 = vst [vmem:[#allocation20_spill] sm:$0xff] %v4050_v41  ;;  %7488 = vst [vmem:[#allocation21_spill] sm:$0xff] %v4055_v42  ;;  %v4066_v45 = vld [vmem:[%s7126_s0 + $0x98] sm:$0xff]  ;;  %v4071_v47 = vsel %vm249_vm13, 1.0, %v7246_v0  ;;  %vm250_vm14 = vcmp.ge.f32.partialorder %v4018_v32, 1.0  ;;  %vm251_vm15 = vcmp.ge.f32.partialorder %v4032_v36, 1.0 }
   0xd   :  { %7489 = vst [vmem:[#allocation22_spill] sm:$0xff] %v4066_v45  ;;  %v4077_v49 = vsel %vm250_vm14, 1.0, %v7246_v0  ;;  %vm252_vm0 = vcmp.ge.f32.partialorder %v4037_v37, 1.0  ;;  %v4084_v50 = vld [vmem:[%s7126_s0 + $0xa0] sm:$0xff]  ;;  %v4089_v52 = vsel %vm251_vm15, 1.0, %v7246_v0  ;;  %vm253_vm1 = vcmp.ge.f32.partialorder %v4050_v41, 1.0 }
   0xe   :  { %7490 = vst [vmem:[#allocation23_spill] sm:$0xff] %v4084_v50  ;;  %v4092_v53 = vsel %vm252_vm0, 1.0, %v7246_v0  ;;  %v4098_v54 = vld [vmem:[%s7126_s0 + $0xa8] sm:$0xff]  ;;  %v4103_v55 = vld [vmem:[%s7126_s0 + $0xb0] sm:$0xff]  ;;  %v4110_v58 = vsel %vm253_vm1, 1.0, %v7246_v0  ;;  %vm254_vm2 = vcmp.ge.f32.partialorder %v4055_v42, 1.0 }
   0xf   :  { %7491 = vst [vmem:[#allocation24_spill] sm:$0xff] %v4098_v54  ;;  %7492 = vst [vmem:[#allocation25_spill] sm:$0xff] %v4103_v55  ;;  %v4116_v59 = vld [vmem:[%s7126_s0 + $0xb8] sm:$0xff]  ;;  %v4121_v60 = vld [vmem:[%s7126_s0 + $0xc0] sm:$0xff]  ;;  %v4126_v62 = vsel %vm254_vm2, 1.0, %v7246_v0  ;;  %vm255_vm3 = vcmp.ge.f32.partialorder %v4066_v45, 1.0 }
  0x10   :  { %7493 = vst [vmem:[#allocation26_spill] sm:$0xff] %v4116_v59  ;;  %7494 = vst [vmem:[#allocation27_spill] sm:$0xff] %v4121_v60  ;;  %v4132_v63 = vld [vmem:[%s7126_s0 + $0xc8] sm:$0xff]  ;;  %v4137_v56 = vsel %vm255_vm3, 1.0, %v7246_v0  ;;  %vm256_vm4 = vcmp.ge.f32.partialorder %v4084_v50, 1.0  ;;  %vm257_vm5 = vcmp.ge.f32.partialorder %v4098_v54, 1.0 }
  0x11   :  { %7495 = vst [vmem:[#allocation28_spill] sm:$0xff] %v4132_v63  ;;  %v4143_v61 = vsel %vm256_vm4, 1.0, %v7246_v0  ;;  %vm258_vm6 = vcmp.ge.f32.partialorder %v4103_v55, 1.0  ;;  %v4150_v48 = vld [vmem:[%s7126_s0 + $0xd0] sm:$0xff]  ;;  %v4155_v46 = vsel %vm257_vm5, 1.0, %v7246_v0  ;;  %vm259_vm7 = vcmp.ge.f32.partialorder %v4116_v59, 1.0 }
  0x12   :  { %7496 = vst [vmem:[#allocation29_spill] sm:$0xff] %v4150_v48  ;;  %v4158_v51 = vsel %vm258_vm6, 1.0, %v7246_v0  ;;  %v4164_v43 = vld [vmem:[%s7126_s0 + $0xd8] sm:$0xff]  ;;  %v4169_v39 = vld [vmem:[%s7126_s0 + $0xe0] sm:$0xff]  ;;  %v4176_v33 = vsel %vm259_vm7, 1.0, %v7246_v0  ;;  %vm260_vm8 = vcmp.ge.f32.partialorder %v4121_v60, 1.0 }
  0x13   :  { %7497 = vst [vmem:[#allocation30_spill] sm:$0xff] %v4164_v43  ;;  %7498 = vst [vmem:[#allocation31_spill] sm:$0xff] %v4169_v39  ;;  %v4182_v30 = vld [vmem:[%s7126_s0 + $0xe8] sm:$0xff]  ;;  %v4187_v28 = vld [vmem:[%s7126_s0 + $0xf0] sm:$0xff]  ;;  %v4192_v38 = vsel %vm260_vm8, 1.0, %v7246_v0  ;;  %vm261_vm9 = vcmp.ge.f32.partialorder %v4132_v63, 1.0 }
  0x14   :  { %7499 = vst [vmem:[#allocation32_spill] sm:$0xff] %v4182_v30  ;;  %7500 = vst [vmem:[#allocation33_spill] sm:$0xff] %v4187_v28  ;;  %v4198_v27 = vld [vmem:[%s7126_s0 + $0xf8] sm:$0xff]  ;;  %v4203_v17 = vsel %vm261_vm9, 1.0, %v7246_v0  ;;  %vm262_vm10 = vcmp.ge.f32.partialorder %v4150_v48, 1.0  ;;  %vm263_vm11 = vcmp.ge.f32.partialorder %v4164_v43, 1.0 }
  0x15   :  { %7501 = vst [vmem:[#allocation34_spill] sm:$0xff] %v4198_v27  ;;  %v4209_v57 = vsel %vm262_vm10, 1.0, %v7246_v0  ;;  %vm264_vm12 = vcmp.ge.f32.partialorder %v4169_v39, 1.0  ;;  %v4216_v13 = vld [vmem:[%s7126_s0 + $0x100] sm:$0xff]  ;;  %v4221_v12 = vsel %vm263_vm11, 1.0, %v7246_v0  ;;  %vm265_vm13 = vcmp.ge.f32.partialorder %v4182_v30, 1.0 }
  0x16   :  { %7502 = vst [vmem:[#allocation35_spill] sm:$0xff] %v4216_v13  ;;  %v4224_v14 = vsel %vm264_vm12, 1.0, %v7246_v0  ;;  %v4230_v63 = vld [vmem:[%s7126_s0 + $0x108] sm:$0xff]  ;;  %v4235_v60 = vld [vmem:[%s7126_s0 + $0x110] sm:$0xff]  ;;  %v4242_v59 = vsel %vm265_vm13, 1.0, %v7246_v0  ;;  %vm266_vm14 = vcmp.ge.f32.partialorder %v4187_v28, 1.0 }
  0x17   :  { %7503 = vst [vmem:[#allocation36_spill] sm:$0xff] %v4230_v63  ;;  %7504 = vst [vmem:[#allocation37_spill] sm:$0xff] %v4235_v60  ;;  %v4248_v55 = vld [vmem:[%s7126_s0 + $0x118] sm:$0xff]  ;;  %v4253_v54 = vld [vmem:[%s7126_s0 + $0x120] sm:$0xff]  ;;  %v4258_v48 = vsel %vm266_vm14, 1.0, %v7246_v0  ;;  %vm267_vm15 = vcmp.ge.f32.partialorder %v4198_v27, 1.0 }
  0x18   :  { %7505 = vst [vmem:[#allocation38_spill] sm:$0xff] %v4248_v55  ;;  %7506 = vst [vmem:[#allocation39_spill] sm:$0xff] %v4253_v54  ;;  %v4264_v39 = vld [vmem:[%s7126_s0 + $0x128] sm:$0xff]  ;;  %v4269_v50 = vsel %vm267_vm15, 1.0, %v7246_v0  ;;  %vm268_vm0 = vcmp.ge.f32.partialorder %v4216_v13, 1.0  ;;  %vm269_vm1 = vcmp.ge.f32.partialorder %v4230_v63, 1.0 }
  0x19   :  { %7507 = vst [vmem:[#allocation40_spill] sm:$0xff] %v4264_v39  ;;  %v4275_v26 = vsel %vm268_vm0, 1.0, %v7246_v0  ;;  %vm270_vm2 = vcmp.ge.f32.partialorder %v4235_v60, 1.0  ;;  %v4282_v30 = vld [vmem:[%s7126_s0 + $0x130] sm:$0xff]  ;;  %v4287_v28 = vsel %vm269_vm1, 1.0, %v7246_v0  ;;  %vm271_vm3 = vcmp.ge.f32.partialorder %v4248_v55, 1.0 }
  0x1a   :  { %7508 = vst [vmem:[#allocation41_spill] sm:$0xff] %v4282_v30  ;;  %v4290_v45 = vsel %vm270_vm2, 1.0, %v7246_v0  ;;  %v4296_v27 = vld [vmem:[%s7126_s0 + $0x138] sm:$0xff]  ;;  %v4301_v42 = vld [vmem:[%s7126_s0 + $0x140] sm:$0xff]  ;;  %v4308_v41 = vsel %vm271_vm3, 1.0, %v7246_v0  ;;  %vm272_vm4 = vcmp.ge.f32.partialorder %v4253_v54, 1.0 }
  0x1b   :  { %7509 = vst [vmem:[#allocation42_spill] sm:$0xff] %v4296_v27  ;;  %7510 = vst [vmem:[#allocation43_spill] sm:$0xff] %v4301_v42  ;;  %v4314_v37 = vld [vmem:[%s7126_s0 + $0x148] sm:$0xff]  ;;  %v4319_v36 = vld [vmem:[%s7126_s0 + $0x150] sm:$0xff]  ;;  %v4324_v13 = vsel %vm272_vm4, 1.0, %v7246_v0  ;;  %vm273_vm5 = vcmp.ge.f32.partialorder %v4264_v39, 1.0 }
  0x1c   :  { %7511 = vst [vmem:[#allocation44_spill] sm:$0xff] %v4314_v37  ;;  %7512 = vst [vmem:[#allocation45_spill] sm:$0xff] %v4319_v36  ;;  %v4330_v60 = vld [vmem:[%s7126_s0 + $0x158] sm:$0xff]  ;;  %v4335_v32 = vsel %vm273_vm5, 1.0, %v7246_v0  ;;  %vm274_vm6 = vcmp.ge.f32.partialorder %v4282_v30, 1.0  ;;  %vm275_vm7 = vcmp.ge.f32.partialorder %v4296_v27, 1.0 }
  0x1d   :  { %7513 = vst [vmem:[#allocation46_spill] sm:$0xff] %v4330_v60  ;;  %v4341_v43 = vsel %vm274_vm6, 1.0, %v7246_v0  ;;  %vm276_vm8 = vcmp.ge.f32.partialorder %v4301_v42, 1.0  ;;  %v4348_v55 = vld [vmem:[%s7126_s0 + $0x160] sm:$0xff]  ;;  %v4353_v54 = vsel %vm275_vm7, 1.0, %v7246_v0  ;;  %vm277_vm9 = vcmp.ge.f32.partialorder %v4314_v37, 1.0 }
  0x1e   :  { %7514 = vst [vmem:[#allocation47_spill] sm:$0xff] %v4348_v55  ;;  %v4356_v25 = vsel %vm276_vm8, 1.0, %v7246_v0  ;;  %v4362_v39 = vld [vmem:[%s7126_s0 + $0x168] sm:$0xff]  ;;  %v4367_v24 = vld [vmem:[%s7126_s0 + $0x170] sm:$0xff]  ;;  %v4374_v20 = vsel %vm277_vm9, 1.0, %v7246_v0  ;;  %vm278_vm10 = vcmp.ge.f32.partialorder %v4319_v36, 1.0 }
  0x1f   :  { %7515 = vst [vmem:[#allocation48_spill] sm:$0xff] %v4362_v39  ;;  %7516 = vst [vmem:[#allocation49_spill] sm:$0xff] %v4367_v24  ;;  %v4380_v19 = vld [vmem:[%s7126_s0 + $0x178] sm:$0xff]  ;;  %v4385_v18 = vld [vmem:[%s7126_s0 + $0x180] sm:$0xff]  ;;  %v4390_v30 = vsel %vm278_vm10, 1.0, %v7246_v0  ;;  %vm279_vm11 = vcmp.ge.f32.partialorder %v4330_v60, 1.0 }
  0x20   :  { %7517 = vst [vmem:[#allocation50_spill] sm:$0xff] %v4374_v20  ;;  %7518 = vst [vmem:[#allocation51_spill] sm:$0xff] %v4380_v19  ;;  %v4396_v42 = vld [vmem:[%s7126_s0 + $0x188] sm:$0xff]  ;;  %v4401_v16 = vsel %vm279_vm11, 1.0, %v7246_v0  ;;  %vm280_vm12 = vcmp.ge.f32.partialorder %v4348_v55, 1.0  ;;  %vm281_vm13 = vcmp.ge.f32.partialorder %v4362_v39, 1.0 }
  0x21   :  { %7519 = vst [vmem:[#allocation52_spill] sm:$0xff] %v4385_v18  ;;  %7520 = vst [vmem:[#allocation53_spill] sm:$0xff] %v4390_v30  ;;  %v4407_v63 = vsel %vm280_vm12, 1.0, %v7246_v0  ;;  %vm282_vm14 = vcmp.ge.f32.partialorder %v4367_v24, 1.0  ;;  %v4414_v37 = vld [vmem:[%s7126_s0 + $0x190] sm:$0xff]  ;;  %v4419_v36 = vsel %vm281_vm13, 1.0, %v7246_v0 }
  0x22   :  { %7521 = vst [vmem:[#allocation54_spill] sm:$0xff] %v4396_v42  ;;  %7522 = vst [vmem:[#allocation55_spill] sm:$0xff] %v4401_v16  ;;  %v4422_v11 = vsel %vm282_vm14, 1.0, %v7246_v0  ;;  %vm283_vm15 = vcmp.ge.f32.partialorder %v4380_v19, 1.0  ;;  %v4428_v60 = vld [vmem:[%s7126_s0 + $0x198] sm:$0xff]  ;;  %v4433_v7 = vld [vmem:[%s7126_s0 + $0x1a0] sm:$0xff] }
  0x23   :  { %7523 = vst [vmem:[#allocation56_spill] sm:$0xff] %v4414_v37  ;;  %7524 = vst [vmem:[#allocation57_spill] sm:$0xff] %v4428_v60  ;;  %v4440_v6 = vsel %vm283_vm15, 1.0, %v7246_v0  ;;  %vm284_vm0 = vcmp.ge.f32.partialorder %v4385_v18, 1.0  ;;  %v4446_v5 = vld [vmem:[%s7126_s0 + $0x1a8] sm:$0xff]  ;;  %v4451_v4 = vld [vmem:[%s7126_s0 + $0x1b0] sm:$0xff]  ;;  %v3452_v18 = vpack.c.bf16 %v4023_v34, %v4011_v31 }
  0x24   :  { %7525 = vst [vmem:[#allocation58_spill] sm:$0xff] %v4433_v7  ;;  %7526 = vst [vmem:[#allocation59_spill] sm:$0xff] %v4446_v5  ;;  %v4456_v55 = vsel %vm284_vm0, 1.0, %v7246_v0  ;;  %vm285_vm1 = vcmp.ge.f32.partialorder %v4396_v42, 1.0  ;;  %v4462_v24 = vld [vmem:[%s7126_s0 + $0x1b8] sm:$0xff]  ;;  %vm286_vm2 = vcmp.ge.f32.partialorder %v4414_v37, 1.0  ;;  %v3455_v42 = vpack.c.bf16 %v4044_v40, %v4026_v35 }
  0x25   :  { %7527 = vst [vmem:[#allocation60_spill] sm:$0xff] %v4451_v4  ;;  %7528 = vst [vmem:[#allocation61_spill] sm:$0xff] %v4456_v55  ;;  %v4467_v3 = vsel %vm285_vm1, 1.0, %v7246_v0  ;;  %v121_v27 = vld [vmem:[%s7126_s0 + $0x1c0] sm:$0x3]  ;;  %v4476_v19 = vsel %vm286_vm2, 1.0, %v7246_v0 }
  0x26   :  { %7529 = vst [vmem:[#allocation62_spill] sm:$0xff] %v4462_v24  ;;  %7530 = vst [vmem:[#allocation63_spill] sm:$0xff] %v4467_v3  ;;  %vm287_vm3 = vcmp.ge.f32.partialorder %v4428_v60, 1.0  ;;  %vm288_vm4 = vcmp.ge.f32.partialorder %v4433_v7, 1.0  ;;  %v178_v39 = vld [vmem:[#allocation2 + $0x1c0] sm:$0x3]  ;;  %v3440_v3 = vpack.c.bf16 %v3933_v9, %v3930_v8  ;;  %v3443_v7 = vpack.c.bf16 %v3951_v15, %v3936_v10 }
  0x27   :  { %7531 = vst [vmem:[#allocation64_spill] sm:$0xff] %v4476_v19  ;;  %v4483_v1 = vsel %vm287_vm3, 1.0, %v7246_v0  ;;  %v4486_v2 = vsel %vm288_vm4, 1.0, %v7246_v0  ;;  %vm289_vm5 = vcmp.ge.f32.partialorder %v4446_v5, 1.0  ;;  %vm290_vm6 = vcmp.ge.f32.partialorder %v4451_v4, 1.0  ;;  %3772 = vst [vmem:[%s7127_s1 + $0x20] sm:$0xff] %v3452_v18  }
  0x28   :  { %7532 = vst [vmem:[#allocation65_spill] sm:$0xff] %v4483_v1  ;;  %v4494_v55 = vsel %vm289_vm5, 1.0, %v7246_v0  ;;  %v4500_v37 = vsel %vm290_vm6, 1.0, %v7246_v0  ;;  %vm291_vm7 = vcmp.ge.f32.partialorder %v4462_v24, 1.0  ;;  %v235_v19 = vadd.f32 %v178_v39, %v121_v27  ;;  %3441 = vst [vmem:[%s7127_s1] sm:$0xff] %v3440_v3  }
  0x29   :  { %7533 = vst [vmem:[#allocation66_spill] sm:$0xff] %v4500_v37  ;;  %v4506_v60 = vsel %vm291_vm7, 1.0, %v7246_v0  ;;  %v3446_v5 = vpack.c.bf16 %v3982_v22, %v3979_v21  ;;  %v3449_v27 = vpack.c.bf16 %v4005_v29, %v3985_v23  ;;  %3769 = vst [vmem:[%s7127_s1 + $0x8] sm:$0xff] %v3443_v7   ;;  %v3458_v24 = vpack.c.bf16 %v4071_v47, %v4060_v44 }
  0x2a   :  { %7534 = vst [vmem:[#allocation67_spill] sm:$0xff] %v4506_v60  ;;  %vm292_vm8 = vcmp.ge.f32.partialorder %v235_v19, 1.0  ;;  %v3461_v3 = vpack.c.bf16 %v4089_v52, %v4077_v49  ;;  %v3464_v7 = vpack.c.bf16 %v4110_v58, %v4092_v53  ;;  %3773 = vst [vmem:[%s7127_s1 + $0x28] sm:$0xff] %v3455_v42   ;;  %v3479_v18 = vpack.c.bf16 %v4221_v12, %v4209_v57 }
  0x2b   :  { %v349_v39 = vsel %vm292_vm8, 1.0, %v7246_v0  ;;  %3770 = vst [vmem:[%s7127_s1 + $0x10] sm:$0xff] %v3446_v5   ;;  %3771 = vst [vmem:[%s7127_s1 + $0x18] sm:$0xff] %v3449_v27   ;;  %v3467_v0 = vpack.c.bf16 %v4137_v56, %v4126_v62  ;;  %v3470_v5 = vpack.c.bf16 %v4155_v46, %v4143_v61  ;;  %v3476_v27 = vpack.c.bf16 %v4203_v17, %v4192_v38 }
  0x2c   :  { %v406_v4 = vsub.f32 %v235_v19, %v349_v39  ;;  %3774 = vst [vmem:[%s7127_s1 + $0x30] sm:$0xff] %v3458_v24   ;;  %v3473_v19 = vpack.c.bf16 %v4176_v33, %v4158_v51  ;;  %3775 = vst [vmem:[%s7127_s1 + $0x38] sm:$0xff] %v3461_v3   ;;  %v3482_v24 = vpack.c.bf16 %v4242_v59, %v4224_v14 }
  0x2d   :  { %3776 = vst [vmem:[%s7127_s1 + $0x40] sm:$0xff] %v3464_v7   ;;  %3777 = vst [vmem:[%s7127_s1 + $0x48] sm:$0xff] %v3467_v0   ;;  %v3485_v42 = vpack.c.bf16 %v4269_v50, %v4258_v48  ;;  %v3491_v3 = vpack.c.bf16 %v4308_v41, %v4290_v45  ;;  %v3494_v0 = vpack.c.bf16 %v4335_v32, %v4324_v13 }
  0x2e   :  { %463 = vst [vmem:[#allocation2 + $0x1c0] sm:$0x3] %v406_v4  ;;  %v3488_v4 = vpack.c.bf16 %v4287_v28, %v4275_v26  ;;  %3778 = vst [vmem:[%s7127_s1 + $0x50] sm:$0xff] %v3470_v5   ;;  %v3497_v7 = vpack.c.bf16 %v4353_v54, %v4341_v43  ;;  %v3500_v5 = vpack.c.bf16 %v4374_v20, %v4356_v25  ;;  %v7537_v20 = vld [vmem:[#allocation64_spill] sm:$0xff] }
  0x2f   :  { %3779 = vst [vmem:[%s7127_s1 + $0x58] sm:$0xff] %v3473_v19   ;;  %3780 = vst [vmem:[%s7127_s1 + $0x60] sm:$0xff] %v3476_v27   ;;  %v3503_v19 = vpack.c.bf16 %v4401_v16, %v4390_v30  ;;  %v3506_v27 = vpack.c.bf16 %v4419_v36, %v4407_v63  ;;  %v7535_v16 = vld [vmem:[#allocation61_spill] sm:$0xff] }
  0x30   :  { %3781 = vst [vmem:[%s7127_s1 + $0x68] sm:$0xff] %v3479_v18   ;;  %3782 = vst [vmem:[%s7127_s1 + $0x70] sm:$0xff] %v3482_v24   ;;  %v3509_v18 = vpack.c.bf16 %v4440_v6, %v4422_v11  ;;  %v7536_v24 = vld [vmem:[#allocation63_spill] sm:$0xff] }
  0x31   :  { %3783 = vst [vmem:[%s7127_s1 + $0x78] sm:$0xff] %v3485_v42   ;;  %3784 = vst [vmem:[%s7127_s1 + $0x80] sm:$0xff] %v3488_v4   ;;  %v3512_v30 = vpack.c.bf16 %v7536_v24, %v7535_v16  ;;  %v3515_v42 = vpack.c.bf16 %v4483_v1, %v7537_v20  ;;  %v3518_v4 = vpack.c.bf16 %v4494_v55, %v4486_v2 }
  0x32   :  { %3785 = vst [vmem:[%s7127_s1 + $0x88] sm:$0xff] %v3491_v3   ;;  %3786 = vst [vmem:[%s7127_s1 + $0x90] sm:$0xff] %v3494_v0   ;;  %v3521_v3 = vpack.c.bf16 %v4506_v60, %v4500_v37  ;;  %v3267_v1 = vpack.c.bf16 %v349_v39, %v349_v39  ;;  %v7538_v0 = vld [vmem:[#allocation3_spill] sm:$0xff]  ;;  %v7541_v39 = vld [vmem:[#allocation4_spill] sm:$0xff] }
  0x33   :  { %3787 = vst [vmem:[%s7127_s1 + $0x98] sm:$0xff] %v3497_v7   ;;  %3788 = vst [vmem:[%s7127_s1 + $0xa0] sm:$0xff] %v3500_v5   ;;  %v7539_v20 = vsub.f32 %v7538_v0, %v3930_v8  ;;  %v7542_v8 = vsub.f32 %v7541_v39, %v3933_v9  ;;  %v7544_v5 = vld [vmem:[#allocation5_spill] sm:$0xff]  ;;  %v7550_v60 = vld [vmem:[#allocation7_spill] sm:$0xff] }
  0x34   :  { %3789 = vst [vmem:[%s7127_s1 + $0xa8] sm:$0xff] %v3503_v19   ;;  %3790 = vst [vmem:[%s7127_s1 + $0xb0] sm:$0xff] %v3506_v27   ;;  %v7545_v19 = vsub.f32 %v7544_v5, %v3936_v10  ;;  %v7553_v9 = vld [vmem:[#allocation8_spill] sm:$0xff] }
  0x35   :  { %v4637_v7 = vadd.f32 %v7539_v20, %v7538_v0  ;;  %3791 = vst [vmem:[%s7127_s1 + $0xb8] sm:$0xff] %v3509_v18   ;;  %3792 = vst [vmem:[%s7127_s1 + $0xc0] sm:$0xff] %v3512_v30   ;;  %v4655_v20 = vadd.f32 %v7542_v8, %v7541_v39  ;;  %v7547_v18 = vld [vmem:[#allocation6_spill] sm:$0xff]  ;;  %v7554_v10 = vsub.f32 %v7553_v9, %v3982_v22 }
  0x36   :  { %3793 = vst [vmem:[%s7127_s1 + $0xc8] sm:$0xff] %v3515_v42   ;;  %v4661_v27 = vadd.f32 %v7545_v19, %v7544_v5  ;;  %v7548_v30 = vsub.f32 %v7547_v18, %v3951_v15  ;;  %v7551_v42 = vsub.f32 %v7550_v60, %v3979_v21  ;;  %3794 = vst [vmem:[%s7127_s1 + $0xd0] sm:$0xff] %v3518_v4   ;;  %v7556_v21 = vld [vmem:[#allocation9_spill] sm:$0xff]  ;;  %v7559_v39 = vld [vmem:[#allocation10_spill] sm:$0xff] }
  0x37   :  { %7540 = vst [vmem:[#allocation61_spill] sm:$0xff] %v4637_v7  ;;  %7543 = vst [vmem:[#allocation63_spill] sm:$0xff] %v4655_v20  ;;  %vm921_vm9 = vcmp.ge.f32.partialorder %v4637_v7, 1.0  ;;  %v4689_v15 = vadd.f32 %v7554_v10, %v7553_v9  ;;  %vm922_vm10 = vcmp.ge.f32.partialorder %v4655_v20, 1.0  ;;  %v7569_v20 = vld [vmem:[#allocation13_spill] sm:$0xff] }
  0x38   :  { %7546 = vst [vmem:[#allocation3_spill] sm:$0xff] %v4661_v27  ;;  %v4667_v0 = vadd.f32 %v7548_v30, %v7547_v18  ;;  %v4673_v37 = vadd.f32 %v7551_v42, %v7550_v60  ;;  %3795 = vst [vmem:[%s7127_s1 + $0xd8] sm:$0xff] %v3521_v3   ;;  %v7557_v60 = vsub.f32 %v7556_v21, %v3985_v23  ;;  %vm923_vm11 = vcmp.ge.f32.partialorder %v4661_v27, 1.0  ;;  %v7563_v18 = vld [vmem:[#allocation11_spill] sm:$0xff]  ;;  %v7670_v7 = vld [vmem:[#allocation45_spill] sm:$0xff] }
  0x39   :  { %749 = vst [vmem:[%s7127_s1 + $0xe0] sm:$0x1] %v3267_v1  ;;  %7555 = vst [vmem:[#allocation6_spill] sm:$0xff] %v4689_v15  ;;  %v7560_v3 = vsub.f32 %v7559_v39, %v4005_v29  ;;  %v7562_v1 = vmov 0.0   ;;  %vm926_vm14 = vcmp.ge.f32.partialorder %v4689_v15, 1.0  ;;  %v7564_v10 = vsub.f32 %v7563_v18, %v4011_v31  ;;  %v7575_v31 = vld [vmem:[#allocation15_spill] sm:$0xff] }
  0x3a   :  { %7549 = vst [vmem:[#allocation4_spill] sm:$0xff] %v4667_v0  ;;  %7552 = vst [vmem:[#allocation5_spill] sm:$0xff] %v4673_v37  ;;  %v4695_v4 = vadd.f32 %v7557_v60, %v7556_v21  ;;  %v4704_v5 = vsel %vm921_vm9, 1.0, %v7562_v1  ;;  %vm924_vm12 = vcmp.ge.f32.partialorder %v4667_v0, 1.0  ;;  %v4712_v23 = vsel %vm922_vm10, 1.0, %v7562_v1  ;;  %v7593_v15 = vld [vmem:[#allocation21_spill] sm:$0xff] }
  0x3b   :  { %v4701_v8 = vadd.f32 %v7560_v3, %v7559_v39  ;;  %v4715_v19 = vsel %vm923_vm11, 1.0, %v7562_v1  ;;  %v4718_v29 = vsel %vm924_vm12, 1.0, %v7562_v1  ;;  %vm925_vm13 = vcmp.ge.f32.partialorder %v4673_v37, 1.0  ;;  %v7566_v37 = vld [vmem:[#allocation12_spill] sm:$0xff] }
  0x3c   :  { %7558 = vst [vmem:[#allocation7_spill] sm:$0xff] %v4695_v4  ;;  %v4728_v9 = vsel %vm925_vm13, 1.0, %v7562_v1  ;;  %vm927_vm15 = vcmp.ge.f32.partialorder %v4695_v4, 1.0  ;;  %v4736_v21 = vsel %vm926_vm14, 1.0, %v7562_v1  ;;  %v4754_v22 = vadd.f32 %v7564_v10, %v7563_v18  ;;  %v7572_v4 = vld [vmem:[#allocation14_spill] sm:$0xff] }
  0x3d   :  { %7561 = vst [vmem:[#allocation8_spill] sm:$0xff] %v4701_v8  ;;  %vm928_vm0 = vcmp.ge.f32.partialorder %v4701_v8, 1.0  ;;  %v4739_v60 = vsel %vm927_vm15, 1.0, %v7562_v1  ;;  %v7567_v0 = vsub.f32 %v7566_v37, %v4023_v34  ;;  %v7570_v3 = vsub.f32 %v7569_v20, %v4026_v35  ;;  %v7578_v34 = vld [vmem:[#allocation16_spill] sm:$0xff] }
  0x3e   :  { %v4742_v39 = vsel %vm928_vm0, 1.0, %v7562_v1  ;;  %7565 = vst [vmem:[#allocation9_spill] sm:$0xff] %v4754_v22  ;;  %v7573_v30 = vsub.f32 %v7572_v4, %v4044_v40  ;;  %v7576_v18 = vsub.f32 %v7575_v31, %v4060_v44  ;;  %vm929_vm1 = vcmp.ge.f32.partialorder %v4754_v22, 1.0 }
  0x3f   :  { %v4760_v27 = vadd.f32 %v7567_v0, %v7566_v37  ;;  %v4766_v42 = vadd.f32 %v7570_v3, %v7569_v20  ;;  %v7579_v35 = vsub.f32 %v7578_v34, %v4071_v47  ;;  %v7581_v20 = vld [vmem:[#allocation17_spill] sm:$0xff]  ;;  %v4800_v3 = vsel %vm929_vm1, 1.0, %v7562_v1 }
  0x40   :  { %v4772_v8 = vadd.f32 %v7573_v30, %v7572_v4  ;;  %v4778_v10 = vadd.f32 %v7576_v18, %v7575_v31  ;;  %v7582_v40 = vsub.f32 %v7581_v20, %v4077_v49  ;;  %v7584_v4 = vld [vmem:[#allocation18_spill] sm:$0xff] }
  0x41   :  { %7568 = vst [vmem:[#allocation10_spill] sm:$0xff] %v4760_v27  ;;  %7571 = vst [vmem:[#allocation11_spill] sm:$0xff] %v4766_v42  ;;  %v4785_v37 = vadd.f32 %v7579_v35, %v7578_v34  ;;  %v7585_v44 = vsub.f32 %v7584_v4, %v4089_v52  ;;  %vm930_vm2 = vcmp.ge.f32.partialorder %v4760_v27, 1.0  ;;  %vm931_vm3 = vcmp.ge.f32.partialorder %v4766_v42, 1.0  ;;  %v7590_v42 = vld [vmem:[#allocation20_spill] sm:$0xff] }
  0x42   :  { %7574 = vst [vmem:[#allocation12_spill] sm:$0xff] %v4772_v8  ;;  %7577 = vst [vmem:[#allocation13_spill] sm:$0xff] %v4778_v10  ;;  %v4791_v0 = vadd.f32 %v7582_v40, %v7581_v20  ;;  %vm932_vm4 = vcmp.ge.f32.partialorder %v4772_v8, 1.0  ;;  %v4808_v49 = vsel %vm930_vm2, 1.0, %v7562_v1  ;;  %v4811_v31 = vsel %vm931_vm3, 1.0, %v7562_v1  ;;  %v7587_v8 = vld [vmem:[#allocation19_spill] sm:$0xff] }
  0x43   :  { %7580 = vst [vmem:[#allocation14_spill] sm:$0xff] %v4785_v37  ;;  %v4797_v30 = vadd.f32 %v7585_v44, %v7584_v4  ;;  %v4814_v52 = vsel %vm932_vm4, 1.0, %v7562_v1  ;;  %vm933_vm5 = vcmp.ge.f32.partialorder %v4778_v10, 1.0  ;;  %vm934_vm6 = vcmp.ge.f32.partialorder %v4785_v37, 1.0  ;;  %v7617_v37 = vld [vmem:[#allocation29_spill] sm:$0xff] }
  0x44   :  { %7583 = vst [vmem:[#allocation15_spill] sm:$0xff] %v4791_v0  ;;  %v4824_v20 = vsel %vm933_vm5, 1.0, %v7562_v1  ;;  %vm935_vm7 = vcmp.ge.f32.partialorder %v4791_v0, 1.0  ;;  %v4832_v4 = vsel %vm934_vm6, 1.0, %v7562_v1  ;;  %v7588_v40 = vsub.f32 %v7587_v8, %v4092_v53  ;;  %v7596_v0 = vld [vmem:[#allocation22_spill] sm:$0xff]  ;;  %v7599_v53 = vld [vmem:[#allocation23_spill] sm:$0xff] }
  0x45   :  { %7586 = vst [vmem:[#allocation16_spill] sm:$0xff] %v4797_v30  ;;  %vm936_vm8 = vcmp.ge.f32.partialorder %v4797_v30, 1.0  ;;  %v4835_v44 = vsel %vm935_vm7, 1.0, %v7562_v1  ;;  %v7591_v27 = vsub.f32 %v7590_v42, %v4110_v58  ;;  %v7594_v34 = vsub.f32 %v7593_v15, %v4126_v62  ;;  %v7602_v58 = vld [vmem:[#allocation24_spill] sm:$0xff] }
  0x46   :  { %v4838_v35 = vsel %vm936_vm8, 1.0, %v7562_v1  ;;  %v4850_v10 = vadd.f32 %v7588_v40, %v7587_v8  ;;  %v7597_v47 = vsub.f32 %v7596_v0, %v4137_v56  ;;  %v7600_v8 = vsub.f32 %v7599_v53, %v4143_v61 }
  0x47   :  { %v4856_v22 = vadd.f32 %v7591_v27, %v7590_v42  ;;  %v4862_v18 = vadd.f32 %v7594_v34, %v7593_v15  ;;  %v7603_v62 = vsub.f32 %v7602_v58, %v4155_v46  ;;  %v7605_v15 = vld [vmem:[#allocation25_spill] sm:$0xff] }
  0x48   :  { %7589 = vst [vmem:[#allocation17_spill] sm:$0xff] %v4850_v10  ;;  %v4868_v30 = vadd.f32 %v7597_v47, %v7596_v0  ;;  %v4874_v40 = vadd.f32 %v7600_v8, %v7599_v53  ;;  %vm937_vm9 = vcmp.ge.f32.partialorder %v4850_v10, 1.0  ;;  %v7606_v56 = vsub.f32 %v7605_v15, %v4158_v51  ;;  %v7608_v0 = vld [vmem:[#allocation26_spill] sm:$0xff] }
  0x49   :  { %7592 = vst [vmem:[#allocation18_spill] sm:$0xff] %v4856_v22  ;;  %7595 = vst [vmem:[#allocation19_spill] sm:$0xff] %v4862_v18  ;;  %v4881_v27 = vadd.f32 %v7603_v62, %v7602_v58  ;;  %v7609_v61 = vsub.f32 %v7608_v0, %v4176_v33  ;;  %v4896_v34 = vsel %vm937_vm9, 1.0, %v7562_v1  ;;  %vm938_vm10 = vcmp.ge.f32.partialorder %v4856_v22, 1.0 }
  0x4a   :  { %7598 = vst [vmem:[#allocation20_spill] sm:$0xff] %v4868_v30  ;;  %7601 = vst [vmem:[#allocation21_spill] sm:$0xff] %v4874_v40  ;;  %v4887_v42 = vadd.f32 %v7606_v56, %v7605_v15  ;;  %vm939_vm11 = vcmp.ge.f32.partialorder %v4862_v18, 1.0  ;;  %vm940_vm12 = vcmp.ge.f32.partialorder %v4868_v30, 1.0  ;;  %v4904_v51 = vsel %vm938_vm10, 1.0, %v7562_v1  ;;  %v7611_v30 = vld [vmem:[#allocation27_spill] sm:$0xff] }
  0x4b   :  { %7604 = vst [vmem:[#allocation22_spill] sm:$0xff] %v4881_v27  ;;  %v4893_v47 = vadd.f32 %v7609_v61, %v7608_v0  ;;  %v4907_v53 = vsel %vm939_vm11, 1.0, %v7562_v1  ;;  %v4910_v33 = vsel %vm940_vm12, 1.0, %v7562_v1  ;;  %vm941_vm13 = vcmp.ge.f32.partialorder %v4874_v40, 1.0  ;;  %v7614_v18 = vld [vmem:[#allocation28_spill] sm:$0xff] }
  0x4c   :  { %7607 = vst [vmem:[#allocation23_spill] sm:$0xff] %v4887_v42  ;;  %v4920_v15 = vsel %vm941_vm13, 1.0, %v7562_v1  ;;  %vm942_vm14 = vcmp.ge.f32.partialorder %v4881_v27, 1.0  ;;  %vm943_vm15 = vcmp.ge.f32.partialorder %v4887_v42, 1.0  ;;  %v7612_v56 = vsub.f32 %v7611_v30, %v4192_v38  ;;  %v7620_v42 = vld [vmem:[#allocation30_spill] sm:$0xff]  ;;  %v7623_v38 = vld [vmem:[#allocation31_spill] sm:$0xff] }
  0x4d   :  { %7610 = vst [vmem:[#allocation24_spill] sm:$0xff] %v4893_v47  ;;  %vm944_vm0 = vcmp.ge.f32.partialorder %v4893_v47, 1.0  ;;  %v4928_v0 = vsel %vm942_vm14, 1.0, %v7562_v1  ;;  %v4931_v61 = vsel %vm943_vm15, 1.0, %v7562_v1  ;;  %v7615_v22 = vsub.f32 %v7614_v18, %v4203_v17  ;;  %v7626_v17 = vld [vmem:[#allocation32_spill] sm:$0xff]  ;;  %v7641_v27 = vld [vmem:[#allocation37_spill] sm:$0xff] }
  0x4e   :  { %v4934_v62 = vsel %vm944_vm0, 1.0, %v7562_v1  ;;  %v4946_v40 = vadd.f32 %v7612_v56, %v7611_v30  ;;  %v7618_v58 = vsub.f32 %v7617_v37, %v4209_v57  ;;  %v7621_v46 = vsub.f32 %v7620_v42, %v4221_v12 }
  0x4f   :  { %v4952_v10 = vadd.f32 %v7615_v22, %v7614_v18  ;;  %v7624_v30 = vsub.f32 %v7623_v38, %v4224_v14  ;;  %v7627_v57 = vsub.f32 %v7626_v17, %v4242_v59 }
  0x50   :  { %7613 = vst [vmem:[#allocation25_spill] sm:$0xff] %v4946_v40  ;;  %v4958_v8 = vadd.f32 %v7618_v58, %v7617_v37  ;;  %v4964_v47 = vadd.f32 %v7621_v46, %v7620_v42  ;;  %vm945_vm1 = vcmp.ge.f32.partialorder %v4946_v40, 1.0  ;;  %v7629_v37 = vld [vmem:[#allocation33_spill] sm:$0xff]  ;;  %v7632_v42 = vld [vmem:[#allocation34_spill] sm:$0xff] }
  0x51   :  { %7616 = vst [vmem:[#allocation26_spill] sm:$0xff] %v4952_v10  ;;  %v4970_v56 = vadd.f32 %v7624_v30, %v7623_v38  ;;  %v4977_v22 = vadd.f32 %v7627_v57, %v7626_v17  ;;  %v7630_v12 = vsub.f32 %v7629_v37, %v4258_v48  ;;  %v7633_v14 = vsub.f32 %v7632_v42, %v4269_v50 }
  0x52   :  { %7619 = vst [vmem:[#allocation27_spill] sm:$0xff] %v4958_v8  ;;  %7622 = vst [vmem:[#allocation28_spill] sm:$0xff] %v4964_v47  ;;  %v4992_v58 = vsel %vm945_vm1, 1.0, %v7562_v1  ;;  %vm946_vm2 = vcmp.ge.f32.partialorder %v4952_v10, 1.0  ;;  %vm947_vm3 = vcmp.ge.f32.partialorder %v4958_v8, 1.0  ;;  %vm948_vm4 = vcmp.ge.f32.partialorder %v4964_v47, 1.0 }
  0x53   :  { %7625 = vst [vmem:[#allocation29_spill] sm:$0xff] %v4970_v56  ;;  %7628 = vst [vmem:[#allocation30_spill] sm:$0xff] %v4977_v22  ;;  %v4983_v18 = vadd.f32 %v7630_v12, %v7629_v37  ;;  %v4989_v46 = vadd.f32 %v7633_v14, %v7632_v42  ;;  %v5000_v59 = vsel %vm946_vm2, 1.0, %v7562_v1  ;;  %v5003_v38 = vsel %vm947_vm3, 1.0, %v7562_v1  ;;  %v7635_v47 = vld [vmem:[#allocation35_spill] sm:$0xff]  ;;  %v7638_v8 = vld [vmem:[#allocation36_spill] sm:$0xff] }
  0x54   :  { %v5006_v50 = vsel %vm948_vm4, 1.0, %v7562_v1  ;;  %vm949_vm5 = vcmp.ge.f32.partialorder %v4970_v56, 1.0  ;;  %vm950_vm6 = vcmp.ge.f32.partialorder %v4977_v22, 1.0  ;;  %v7636_v12 = vsub.f32 %v7635_v47, %v4275_v26  ;;  %v7647_v26 = vld [vmem:[#allocation39_spill] sm:$0xff] }
  0x55   :  { %7631 = vst [vmem:[#allocation31_spill] sm:$0xff] %v4983_v18  ;;  %7634 = vst [vmem:[#allocation32_spill] sm:$0xff] %v4989_v46  ;;  %v5016_v37 = vsel %vm949_vm5, 1.0, %v7562_v1  ;;  %vm951_vm7 = vcmp.ge.f32.partialorder %v4983_v18, 1.0  ;;  %vm952_vm8 = vcmp.ge.f32.partialorder %v4989_v46, 1.0  ;;  %v5024_v42 = vsel %vm950_vm6, 1.0, %v7562_v1 }
  0x56   :  { %v5027_v14 = vsel %vm951_vm7, 1.0, %v7562_v1  ;;  %v5030_v57 = vsel %vm952_vm8, 1.0, %v7562_v1  ;;  %v5042_v56 = vadd.f32 %v7636_v12, %v7635_v47  ;;  %v7639_v10 = vsub.f32 %v7638_v8, %v4287_v28  ;;  %v7644_v18 = vld [vmem:[#allocation38_spill] sm:$0xff]  ;;  %v7650_v28 = vld [vmem:[#allocation40_spill] sm:$0xff] }
  0x57   :  { %v7642_v17 = vsub.f32 %v7641_v27, %v4290_v45  ;;  %v7645_v48 = vsub.f32 %v7644_v18, %v4308_v41  ;;  %v7648_v47 = vsub.f32 %v7647_v26, %v4324_v13  ;;  %v7651_v45 = vsub.f32 %v7650_v28, %v4335_v32  ;;  %v7675_v32 = vld [vmem:[#allocation55_spill] sm:$0xff] }
  0x58   :  { %7637 = vst [vmem:[#allocation33_spill] sm:$0xff] %v5042_v56  ;;  %v5048_v40 = vadd.f32 %v7639_v10, %v7638_v8  ;;  %vm953_vm9 = vcmp.ge.f32.partialorder %v5042_v56, 1.0 }
  0x59   :  { %v5054_v30 = vadd.f32 %v7642_v17, %v7641_v27  ;;  %v5060_v46 = vadd.f32 %v7645_v48, %v7644_v18  ;;  %v5066_v12 = vadd.f32 %v7648_v47, %v7647_v26  ;;  %v5073_v10 = vadd.f32 %v7651_v45, %v7650_v28  ;;  %v7653_v27 = vld [vmem:[#allocation41_spill] sm:$0xff]  ;;  %v7656_v18 = vld [vmem:[#allocation42_spill] sm:$0xff] }
  0x5a   :  { %7640 = vst [vmem:[#allocation34_spill] sm:$0xff] %v5048_v40  ;;  %v7654_v41 = vsub.f32 %v7653_v27, %v4341_v43  ;;  %v7657_v13 = vsub.f32 %v7656_v18, %v4353_v54  ;;  %v5088_v17 = vsel %vm953_vm9, 1.0, %v7562_v1  ;;  %vm954_vm10 = vcmp.ge.f32.partialorder %v5048_v40, 1.0  ;;  %v7667_v40 = vld [vmem:[#allocation50_spill] sm:$0xff]  ;;  %v7671_v28 = vld [vmem:[#allocation53_spill] sm:$0xff] }
  0x5b   :  { %7643 = vst [vmem:[#allocation35_spill] sm:$0xff] %v5054_v30  ;;  %7646 = vst [vmem:[#allocation36_spill] sm:$0xff] %v5060_v46  ;;  %vm955_vm11 = vcmp.ge.f32.partialorder %v5054_v30, 1.0  ;;  %vm956_vm12 = vcmp.ge.f32.partialorder %v5060_v46, 1.0  ;;  %v5096_v43 = vsel %vm954_vm10, 1.0, %v7562_v1  ;;  %vm957_vm13 = vcmp.ge.f32.partialorder %v5066_v12, 1.0 }
  0x5c   :  { %7649 = vst [vmem:[#allocation37_spill] sm:$0xff] %v5066_v12  ;;  %7652 = vst [vmem:[#allocation38_spill] sm:$0xff] %v5073_v10  ;;  %v5079_v8 = vadd.f32 %v7654_v41, %v7653_v27  ;;  %v5085_v48 = vadd.f32 %v7657_v13, %v7656_v18  ;;  %v5099_v26 = vsel %vm955_vm11, 1.0, %v7562_v1  ;;  %v5102_v54 = vsel %vm956_vm12, 1.0, %v7562_v1  ;;  %v7663_v46 = vld [vmem:[#allocation43_spill] sm:$0xff]  ;;  %v7666_v30 = vld [vmem:[#allocation44_spill] sm:$0xff] }
  0x5d   :  { %v5112_v27 = vsel %vm957_vm13, 1.0, %v7562_v1  ;;  %vm958_vm14 = vcmp.ge.f32.partialorder %v5073_v10, 1.0  ;;  %v7664_v41 = vsub.f32 %v7663_v46, %v4356_v25  ;;  %v7668_v56 = vsub.f32 %v7666_v30, %v7667_v40  ;;  %v7678_v25 = vld [vmem:[#allocation47_spill] sm:$0xff]  ;;  %v7681_v40 = vld [vmem:[#allocation48_spill] sm:$0xff] }
  0x5e   :  { %7655 = vst [vmem:[#allocation39_spill] sm:$0xff] %v5079_v8  ;;  %7658 = vst [vmem:[#allocation40_spill] sm:$0xff] %v5085_v48  ;;  %vm959_vm15 = vcmp.ge.f32.partialorder %v5079_v8, 1.0  ;;  %vm960_vm0 = vcmp.ge.f32.partialorder %v5085_v48, 1.0  ;;  %v5120_v18 = vsel %vm958_vm14, 1.0, %v7562_v1  ;;  %v7672_v10 = vsub.f32 %v7670_v7, %v7671_v28  ;;  %v7674_v8 = vld [vmem:[#allocation46_spill] sm:$0xff] }
  0x5f   :  { %7659 = vst [vmem:[#allocation41_spill] sm:$0xff] %v5112_v27  ;;  %7660 = vst [vmem:[#allocation42_spill] sm:$0xff] %v5120_v18  ;;  %v5123_v13 = vsel %vm959_vm15, 1.0, %v7562_v1  ;;  %v5126_v45 = vsel %vm960_vm0, 1.0, %v7562_v1  ;;  %v5138_v12 = vadd.f32 %v7664_v41, %v7663_v46  ;;  %v5144_v22 = vadd.f32 %v7668_v56, %v7666_v30  ;;  %v7684_v30 = vld [vmem:[#allocation49_spill] sm:$0xff] }
  0x60   :  { %7661 = vst [vmem:[#allocation68_spill] sm:$0xff] %v5123_v13  ;;  %7662 = vst [vmem:[#allocation69_spill] sm:$0xff] %v5126_v45  ;;  %v5150_v47 = vadd.f32 %v7672_v10, %v7670_v7  ;;  %v7676_v48 = vsub.f32 %v7674_v8, %v7675_v32  ;;  %v7679_v46 = vsub.f32 %v7678_v25, %v4407_v63 }
  0x61   :  { %7665 = vst [vmem:[#allocation43_spill] sm:$0xff] %v5138_v12  ;;  %7669 = vst [vmem:[#allocation44_spill] sm:$0xff] %v5144_v22  ;;  %vm961_vm1 = vcmp.ge.f32.partialorder %v5138_v12, 1.0  ;;  %v7682_v56 = vsub.f32 %v7681_v40, %v4419_v36  ;;  %v7685_v10 = vsub.f32 %v7684_v30, %v4422_v11  ;;  %vm962_vm2 = vcmp.ge.f32.partialorder %v5144_v22, 1.0  ;;  %v7707_v11 = vld [vmem:[#allocation65_spill] sm:$0xff] }
  0x62   :  { %7673 = vst [vmem:[#allocation50_spill] sm:$0xff] %v5150_v47  ;;  %v5156_v45 = vadd.f32 %v7676_v48, %v7674_v8  ;;  %v5162_v41 = vadd.f32 %v7679_v46, %v7678_v25  ;;  %v7687_v48 = vld [vmem:[#allocation51_spill] sm:$0xff]  ;;  %v5184_v28 = vsel %vm961_vm1, 1.0, %v7562_v1  ;;  %vm963_vm3 = vcmp.ge.f32.partialorder %v5150_v47, 1.0  ;;  %v7699_v47 = vld [vmem:[#allocation54_spill] sm:$0xff] }
  0x63   :  { %v5169_v7 = vadd.f32 %v7682_v56, %v7681_v40  ;;  %v5175_v8 = vadd.f32 %v7685_v10, %v7684_v30  ;;  %v7688_v63 = vsub.f32 %v7687_v48, %v4440_v6  ;;  %7690 = vst [vmem:[#allocation48_spill] sm:$0xff] %v5184_v28  ;;  %v5192_v36 = vsel %vm962_vm2, 1.0, %v7562_v1  ;;  %v7703_v40 = vld [vmem:[#allocation64_spill] sm:$0xff] }
  0x64   :  { %7677 = vst [vmem:[#allocation45_spill] sm:$0xff] %v5156_v45  ;;  %7680 = vst [vmem:[#allocation53_spill] sm:$0xff] %v5162_v41  ;;  %vm964_vm4 = vcmp.ge.f32.partialorder %v5156_v45, 1.0  ;;  %v5195_v25 = vsel %vm963_vm3, 1.0, %v7562_v1  ;;  %vm965_vm5 = vcmp.ge.f32.partialorder %v5162_v41, 1.0  ;;  %v7696_v45 = vld [vmem:[#allocation52_spill] sm:$0xff]  ;;  %v7700_v22 = vsub.f32 %v7699_v47, %v7536_v24 }
  0x65   :  { %7683 = vst [vmem:[#allocation46_spill] sm:$0xff] %v5169_v7  ;;  %7686 = vst [vmem:[#allocation55_spill] sm:$0xff] %v5175_v8  ;;  %v5181_v32 = vadd.f32 %v7688_v63, %v7687_v48  ;;  %v5198_v6 = vsel %vm964_vm4, 1.0, %v7562_v1  ;;  %v5208_v30 = vsel %vm965_vm5, 1.0, %v7562_v1  ;;  %vm966_vm6 = vcmp.ge.f32.partialorder %v5169_v7, 1.0  ;;  %v7713_v24 = vld [vmem:[#allocation59_spill] sm:$0xff] }
  0x66   :  { %7691 = vst [vmem:[#allocation49_spill] sm:$0xff] %v5198_v6  ;;  %7692 = vst [vmem:[#allocation51_spill] sm:$0xff] %v5208_v30  ;;  %vm967_vm7 = vcmp.ge.f32.partialorder %v5175_v8, 1.0  ;;  %v5216_v48 = vsel %vm966_vm6, 1.0, %v7562_v1  ;;  %v7697_v10 = vsub.f32 %v7696_v45, %v7535_v16  ;;  %v5240_v12 = vadd.f32 %v7700_v22, %v7699_v47  ;;  %v7702_v30 = vld [vmem:[#allocation56_spill] sm:$0xff]  ;;  %v7706_v8 = vld [vmem:[#allocation57_spill] sm:$0xff] }
  0x67   :  { %7689 = vst [vmem:[#allocation47_spill] sm:$0xff] %v5181_v32  ;;  %vm968_vm8 = vcmp.ge.f32.partialorder %v5181_v32, 1.0  ;;  %7693 = vst [vmem:[#allocation70_spill] sm:$0xff] %v5216_v48  ;;  %v5219_v63 = vsel %vm967_vm7, 1.0, %v7562_v1  ;;  %v7704_v7 = vsub.f32 %v7702_v30, %v7703_v40  ;;  %v7708_v32 = vsub.f32 %v7706_v8, %v7707_v11  ;;  %v7710_v16 = vld [vmem:[#allocation58_spill] sm:$0xff] }
  0x68   :  { %7694 = vst [vmem:[#allocation71_spill] sm:$0xff] %v5219_v63  ;;  %v5222_v56 = vsel %vm968_vm8, 1.0, %v7562_v1  ;;  %v5234_v41 = vadd.f32 %v7697_v10, %v7696_v45  ;;  %7701 = vst [vmem:[#allocation54_spill] sm:$0xff] %v5240_v12  ;;  %v7711_v45 = vsub.f32 %v7710_v16, %v4486_v2  ;;  %v7714_v22 = vsub.f32 %v7713_v24, %v4494_v55  ;;  %v7717_v40 = vld [vmem:[#allocation66_spill] sm:$0xff] }
  0x69   :  { %7695 = vst [vmem:[#allocation72_spill] sm:$0xff] %v5222_v56  ;;  %v5246_v46 = vadd.f32 %v7704_v7, %v7702_v30  ;;  %v5252_v56 = vadd.f32 %v7708_v32, %v7706_v8  ;;  %v7716_v7 = vld [vmem:[#allocation60_spill] sm:$0xff]  ;;  %v7720_v32 = vld [vmem:[#allocation62_spill] sm:$0xff]  ;;  %v7721_v30 = vld [vmem:[#allocation67_spill] sm:$0xff]  ;;  %vm970_vm10 = vcmp.ge.f32.partialorder %v5240_v12, 1.0  ;;  %v3533_v12 = vpack.c.bf16 %v4800_v3, %v4742_v39 }
  0x6a   :  { %7698 = vst [vmem:[#allocation52_spill] sm:$0xff] %v5234_v41  ;;  %v5258_v10 = vadd.f32 %v7711_v45, %v7710_v16  ;;  %vm969_vm9 = vcmp.ge.f32.partialorder %v5234_v41, 1.0  ;;  %v5265_v47 = vadd.f32 %v7714_v22, %v7713_v24  ;;  %v7718_v11 = vsub.f32 %v7716_v7, %v7717_v40 }
  0x6b   :  { %7705 = vst [vmem:[#allocation56_spill] sm:$0xff] %v5246_v46  ;;  %7709 = vst [vmem:[#allocation64_spill] sm:$0xff] %v5252_v56  ;;  %v7722_v2 = vsub.f32 %v7720_v32, %v7721_v30  ;;  %v5280_v45 = vsel %vm969_vm9, 1.0, %v7562_v1  ;;  %vm971_vm11 = vcmp.ge.f32.partialorder %v5246_v46, 1.0  ;;  %vm972_vm12 = vcmp.ge.f32.partialorder %v5252_v56, 1.0 }
  0x6c   :  { %7712 = vst [vmem:[#allocation57_spill] sm:$0xff] %v5258_v10  ;;  %7715 = vst [vmem:[#allocation65_spill] sm:$0xff] %v5265_v47  ;;  %v5271_v8 = vadd.f32 %v7718_v11, %v7716_v7  ;;  %v5288_v24 = vsel %vm970_vm10, 1.0, %v7562_v1  ;;  %v5291_v22 = vsel %vm971_vm11, 1.0, %v7562_v1  ;;  %v5294_v7 = vsel %vm972_vm12, 1.0, %v7562_v1 }
  0x6d   :  { %v5277_v16 = vadd.f32 %v7722_v2, %v7720_v32  ;;  %7724 = vst [vmem:[#allocation60_spill] sm:$0xff] %v5280_v45  ;;  %7725 = vst [vmem:[#allocation66_spill] sm:$0xff] %v5291_v22  ;;  %vm973_vm13 = vcmp.ge.f32.partialorder %v5258_v10, 1.0  ;;  %v806_v30 = vld [vmem:[%s7126_s0 + $0x1c0] sm:$0x3]  ;;  %vm974_vm14 = vcmp.ge.f32.partialorder %v5265_v47, 1.0  ;;  %v3268_v11 = vpack.c.bf16 %v4704_v5, %v4704_v5 }
  0x6e   :  { %7719 = vst [vmem:[#allocation58_spill] sm:$0xff] %v5271_v8  ;;  %7726 = vst [vmem:[#allocation62_spill] sm:$0xff] %v5294_v7  ;;  %v863_v2 = vld [vmem:[#allocation2 + $0x1c0] sm:$0x3]  ;;  %v5307_v55 = vsel %vm973_vm13, 1.0, %v7562_v1  ;;  %vm975_vm15 = vcmp.ge.f32.partialorder %v5271_v8, 1.0  ;;  %v3524_v10 = vpack.c.bf16 %v4715_v19, %v4712_v23  ;;  %v3530_v22 = vpack.c.bf16 %v4739_v60, %v4736_v21 }
  0x6f   :  { %7723 = vst [vmem:[#allocation59_spill] sm:$0xff] %v5277_v16  ;;  %7727 = vst [vmem:[#allocation67_spill] sm:$0xff] %v5307_v55  ;;  %vm976_vm0 = vcmp.ge.f32.partialorder %v5277_v16, 1.0  ;;  %v5315_v32 = vsel %vm974_vm14, 1.0, %v7562_v1  ;;  %v5318_v40 = vsel %vm975_vm15, 1.0, %v7562_v1  ;;  %v920_v7 = vadd.f32 %v863_v2, %v806_v30  ;;  %v7732_v47 = vld [vmem:[#allocation69_spill] sm:$0xff] }
  0x70   :  { %7728 = vst [vmem:[#allocation73_spill] sm:$0xff] %v5315_v32  ;;  %7729 = vst [vmem:[#allocation74_spill] sm:$0xff] %v5318_v40  ;;  %v5321_v56 = vsel %vm976_vm0, 1.0, %v7562_v1  ;;  %v3527_v55 = vpack.c.bf16 %v4728_v9, %v4718_v29  ;;  %v3536_v41 = vpack.c.bf16 %v4811_v31, %v4808_v49  ;;  %v3539_v30 = vpack.c.bf16 %v4824_v20, %v4814_v52 }
  0x71   :  { %7730 = vst [vmem:[#allocation75_spill] sm:$0xff] %v5321_v56  ;;  %vm977_vm1 = vcmp.ge.f32.partialorder %v920_v7, 1.0  ;;  %2926 = vst [vmem:[%s7127_s1 + $0xe4] sm:$0xf] %v3268_v11  ;;  %v3542_v46 = vpack.c.bf16 %v4835_v44, %v4832_v4  ;;  %v3545_v16 = vpack.c.bf16 %v4896_v34, %v4838_v35  ;;  %v3548_v11 = vpack.c.bf16 %v4907_v53, %v4904_v51 }
  0x72   :  { %v5344_v2 = vsel %vm977_vm1, 1.0, %v7562_v1  ;;  %3796 = vst [vmem:[%s7127_s1 + $0xe8] sm:$0xff] %v3524_v10   ;;  %3797 = vst [vmem:[%s7127_s1 + $0xf0] sm:$0xff] %v3527_v55   ;;  %v3551_v10 = vpack.c.bf16 %v4920_v15, %v4910_v33  ;;  %v3554_v55 = vpack.c.bf16 %v4931_v61, %v4928_v0 }
  0x73   :  { %3798 = vst [vmem:[%s7127_s1 + $0xf8] sm:$0xff] %v3530_v22   ;;  %v1091_v8 = vsub.f32 %v920_v7, %v5344_v2  ;;  %3799 = vst [vmem:[%s7127_s1 + $0x100] sm:$0xff] %v3533_v12   ;;  %v3557_v22 = vpack.c.bf16 %v4992_v58, %v4934_v62  ;;  %v3560_v12 = vpack.c.bf16 %v5003_v38, %v5000_v59 }
  0x74   :  { %3800 = vst [vmem:[%s7127_s1 + $0x108] sm:$0xff] %v3536_v41   ;;  %3801 = vst [vmem:[%s7127_s1 + $0x110] sm:$0xff] %v3539_v30   ;;  %v3563_v41 = vpack.c.bf16 %v5016_v37, %v5006_v50  ;;  %v3566_v7 = vpack.c.bf16 %v5027_v14, %v5024_v42  ;;  %v3572_v30 = vpack.c.bf16 %v5099_v26, %v5096_v43 }
  0x75   :  { %3802 = vst [vmem:[%s7127_s1 + $0x118] sm:$0xff] %v3542_v46   ;;  %3803 = vst [vmem:[%s7127_s1 + $0x120] sm:$0xff] %v3545_v16   ;;  %v3569_v46 = vpack.c.bf16 %v5088_v17, %v5030_v57  ;;  %v5400_v16 = vld [vmem:[%s7126_s0] sm:$0xff] }
  0x76   :  { %3804 = vst [vmem:[%s7127_s1 + $0x128] sm:$0xff] %v3548_v11   ;;  %7731 = vst [vmem:[#allocation76_spill] sm:$0xff] %v5400_v16  ;;  %v3575_v11 = vpack.c.bf16 %v5112_v27, %v5102_v54  ;;  %v5432_v27 = vld [vmem:[%s7126_s0 + $0x18] sm:$0xff] }
  0x77   :  { %1148 = vst [vmem:[#allocation2 + $0x1c0] sm:$0x3] %v1091_v8  ;;  %3805 = vst [vmem:[%s7127_s1 + $0x130] sm:$0xff] %v3551_v10   ;;  %v3578_v8 = vpack.c.bf16 %v5123_v13, %v5120_v18  ;;  %v3581_v10 = vpack.c.bf16 %v5184_v28, %v7732_v47  ;;  %v3584_v28 = vpack.c.bf16 %v5195_v25, %v5192_v36  ;;  %v7736_v47 = vld [vmem:[#allocation51_spill] sm:$0xff]  ;;  %v7737_v18 = vld [vmem:[#allocation72_spill] sm:$0xff] }
  0x78   :  { %3806 = vst [vmem:[%s7127_s1 + $0x138] sm:$0xff] %v3554_v55   ;;  %3807 = vst [vmem:[%s7127_s1 + $0x140] sm:$0xff] %v3557_v22   ;;  %v5422_v55 = vld [vmem:[%s7126_s0 + $0x8] sm:$0xff]  ;;  %v5427_v22 = vld [vmem:[%s7126_s0 + $0x10] sm:$0xff]  ;;  %v3587_v13 = vpack.c.bf16 %v7736_v47, %v5198_v6 }
  0x79   :  { %7733 = vst [vmem:[#allocation77_spill] sm:$0xff] %v5422_v55  ;;  %7734 = vst [vmem:[#allocation78_spill] sm:$0xff] %v5427_v22  ;;  %v5467_v47 = vld [vmem:[%s7126_s0 + $0x30] sm:$0xff] }
  0x7a   :  { %7735 = vst [vmem:[#allocation79_spill] sm:$0xff] %v5432_v27  ;;  %3808 = vst [vmem:[%s7127_s1 + $0x148] sm:$0xff] %v3560_v12   ;;  %v3590_v12 = vpack.c.bf16 %v5219_v63, %v5216_v48  ;;  %v7742_v63 = vld [vmem:[#allocation62_spill] sm:$0xff]  ;;  %v7743_v48 = vld [vmem:[#allocation67_spill] sm:$0xff] }
  0x7b   :  { %3809 = vst [vmem:[%s7127_s1 + $0x150] sm:$0xff] %v3563_v41   ;;  %3810 = vst [vmem:[%s7127_s1 + $0x158] sm:$0xff] %v3566_v7   ;;  %v3593_v41 = vpack.c.bf16 %v5280_v45, %v7737_v18  ;;  %v5457_v7 = vld [vmem:[%s7126_s0 + $0x20] sm:$0xff]  ;;  %v3599_v6 = vpack.c.bf16 %v7743_v48, %v7742_v63 }
  0x7c   :  { %3811 = vst [vmem:[%s7127_s1 + $0x160] sm:$0xff] %v3569_v46   ;;  %7738 = vst [vmem:[#allocation80_spill] sm:$0xff] %v5457_v7  ;;  %v5462_v46 = vld [vmem:[%s7126_s0 + $0x28] sm:$0xff]  ;;  %v7741_v45 = vld [vmem:[#allocation66_spill] sm:$0xff] }
  0x7d   :  { %7739 = vst [vmem:[#allocation81_spill] sm:$0xff] %v5462_v46  ;;  %7740 = vst [vmem:[#allocation82_spill] sm:$0xff] %v5467_v47  ;;  %v3596_v18 = vpack.c.bf16 %v7741_v45, %v5288_v24 }
  0x7e   :  { %3812 = vst [vmem:[%s7127_s1 + $0x168] sm:$0xff] %v3572_v30   ;;  %3813 = vst [vmem:[%s7127_s1 + $0x170] sm:$0xff] %v3575_v11   ;;  %v3602_v30 = vpack.c.bf16 %v5318_v40, %v5315_v32  ;;  %v3323_v11 = vpack.c.bf16 %v5321_v56, %v5321_v56  ;;  %v7745_v56 = vld [vmem:[#allocation61_spill] sm:$0xff]  ;;  %v7748_v32 = vld [vmem:[#allocation63_spill] sm:$0xff] }
  0x7f   :  { %3814 = vst [vmem:[%s7127_s1 + $0x178] sm:$0xff] %v3578_v8   ;;  %3815 = vst [vmem:[%s7127_s1 + $0x180] sm:$0xff] %v3581_v10   ;;  %v5492_v8 = vld [vmem:[%s7126_s0 + $0x38] sm:$0xff]  ;;  %v3324_v10 = vpack.c.bf16 %v5344_v2, %v5344_v2  ;;  %v7746_v40 = vsub.f32 %v7745_v56, %v4704_v5  ;;  %v7754_v5 = vld [vmem:[#allocation4_spill] sm:$0xff] }
  0x80   :  { %7744 = vst [vmem:[#allocation66_spill] sm:$0xff] %v5492_v8  ;;  %3816 = vst [vmem:[%s7127_s1 + $0x188] sm:$0xff] %v3584_v28   ;;  %v7757_v56 = vld [vmem:[#allocation5_spill] sm:$0xff]  ;;  %v7763_v2 = vld [vmem:[#allocation7_spill] sm:$0xff] }
  0x81   :  { %3817 = vst [vmem:[%s7127_s1 + $0x190] sm:$0xff] %v3587_v13   ;;  %3818 = vst [vmem:[%s7127_s1 + $0x198] sm:$0xff] %v3590_v12   ;;  %v5512_v28 = vadd.f32 %v5400_v16, %v7746_v40  ;;  %v7749_v13 = vsub.f32 %v7748_v32, %v4712_v23  ;;  %v7751_v12 = vld [vmem:[#allocation3_spill] sm:$0xff]  ;;  %v7755_v23 = vsub.f32 %v7754_v5, %v4718_v29 }
  0x82   :  { %3819 = vst [vmem:[%s7127_s1 + $0x1a0] sm:$0xff] %v3593_v41   ;;  %v7752_v63 = vsub.f32 %v7751_v12, %v4715_v19  ;;  %3820 = vst [vmem:[%s7127_s1 + $0x1a8] sm:$0xff] %v3596_v18   ;;  %v7758_v18 = vsub.f32 %v7757_v56, %v4728_v9  ;;  %v7766_v9 = vld [vmem:[#allocation8_spill] sm:$0xff]  ;;  %v5596_v56 = vld [vmem:[%s7126_s0 + $0x40] sm:$0xff] }
  0x83   :  { %7747 = vst [vmem:[#allocation61_spill] sm:$0xff] %v5512_v28  ;;  %v5518_v48 = vadd.f32 %v5422_v55, %v7749_v13  ;;  %3821 = vst [vmem:[%s7127_s1 + $0x1b0] sm:$0xff] %v3599_v6   ;;  %v5542_v19 = vadd.f32 %v5432_v27, %v7755_v23  ;;  %v7760_v6 = vld [vmem:[#allocation6_spill] sm:$0xff]  ;;  %vm1607_vm2 = vcmp.ge.f32.partialorder %v5512_v28, 1.0  ;;  %v5636_v5 = vld [vmem:[%s7126_s0 + $0x68] sm:$0xff] }
  0x84   :  { %v5524_v41 = vadd.f32 %v5427_v22, %v7752_v63  ;;  %3822 = vst [vmem:[%s7127_s1 + $0x1b8] sm:$0xff] %v3602_v30   ;;  %2981 = vst [vmem:[%s7127_s1 + $0x1c0] sm:$0xf] %v3323_v11  ;;  %v5548_v63 = vadd.f32 %v5457_v7, %v7758_v18  ;;  %v7761_v40 = vsub.f32 %v7760_v6, %v4736_v21  ;;  %v5601_v18 = vld [vmem:[%s7126_s0 + $0x48] sm:$0xff]  ;;  %v5655_v7 = vld [vmem:[%s7126_s0 + $0x78] sm:$0xff] }
  0x85   :  { %7750 = vst [vmem:[#allocation63_spill] sm:$0xff] %v5518_v48  ;;  %7756 = vst [vmem:[#allocation4_spill] sm:$0xff] %v5542_v19  ;;  %v7764_v30 = vsub.f32 %v7763_v2, %v4739_v60  ;;  %vm1608_vm3 = vcmp.ge.f32.partialorder %v5518_v48, 1.0  ;;  %v7767_v21 = vsub.f32 %v7766_v9, %v4742_v39  ;;  %v5575_v60 = vsel %vm1607_vm2, 1.0, %v7562_v1  ;;  %v5616_v2 = vld [vmem:[%s7126_s0 + $0x58] sm:$0xff]  ;;  %v5641_v39 = vld [vmem:[%s7126_s0 + $0x70] sm:$0xff] }
  0x86   :  { %7753 = vst [vmem:[#allocation3_spill] sm:$0xff] %v5524_v41  ;;  %7759 = vst [vmem:[#allocation5_spill] sm:$0xff] %v5548_v63  ;;  %v5554_v32 = vadd.f32 %v5462_v46, %v7761_v40  ;;  %vm1609_vm4 = vcmp.ge.f32.partialorder %v5524_v41, 1.0  ;;  %v5578_v13 = vsel %vm1608_vm3, 1.0, %v7562_v1  ;;  %vm1610_vm5 = vcmp.ge.f32.partialorder %v5542_v19, 1.0  ;;  %v5611_v40 = vld [vmem:[%s7126_s0 + $0x50] sm:$0xff] }
  0x87   :  { %v5560_v29 = vadd.f32 %v5467_v47, %v7764_v30  ;;  %2982 = vst [vmem:[%s7127_s1 + $0x1c4] sm:$0x1] %v3324_v10  ;;  %v5572_v11 = vadd.f32 %v5492_v8, %v7767_v21  ;;  %v5581_v10 = vsel %vm1609_vm4, 1.0, %v7562_v1  ;;  %v5591_v23 = vsel %vm1610_vm5, 1.0, %v7562_v1  ;;  %7769 = vst [vmem:[#allocation83_spill] sm:$0xff] %v5596_v56  ;;  %v5621_v30 = vld [vmem:[%s7126_s0 + $0x60] sm:$0xff] }
  0x88   :  { %7762 = vst [vmem:[#allocation6_spill] sm:$0xff] %v5554_v32  ;;  %7770 = vst [vmem:[#allocation84_spill] sm:$0xff] %v5601_v18  ;;  %vm1611_vm6 = vcmp.ge.f32.partialorder %v5548_v63, 1.0  ;;  %vm1612_vm7 = vcmp.ge.f32.partialorder %v5554_v32, 1.0  ;;  %v7777_v27 = vld [vmem:[#allocation9_spill] sm:$0xff]  ;;  %v7780_v8 = vld [vmem:[#allocation10_spill] sm:$0xff] }
  0x89   :  { %7765 = vst [vmem:[#allocation7_spill] sm:$0xff] %v5560_v29  ;;  %7768 = vst [vmem:[#allocation8_spill] sm:$0xff] %v5572_v11  ;;  %vm1613_vm8 = vcmp.ge.f32.partialorder %v5560_v29, 1.0  ;;  %v5624_v9 = vsel %vm1611_vm6, 1.0, %v7562_v1  ;;  %v5627_v21 = vsel %vm1612_vm7, 1.0, %v7562_v1  ;;  %vm1614_vm9 = vcmp.ge.f32.partialorder %v5572_v11, 1.0 }
  0x8a   :  { %7771 = vst [vmem:[#allocation85_spill] sm:$0xff] %v5611_v40  ;;  %7772 = vst [vmem:[#allocation86_spill] sm:$0xff] %v5616_v2  ;;  %v5630_v6 = vsel %vm1613_vm8, 1.0, %v7562_v1  ;;  %v5650_v46 = vsel %vm1614_vm9, 1.0, %v7562_v1  ;;  %v7778_v12 = vsub.f32 %v7777_v27, %v4800_v3  ;;  %v7781_v47 = vsub.f32 %v7780_v8, %v4808_v49  ;;  %v7783_v32 = vld [vmem:[#allocation11_spill] sm:$0xff]  ;;  %v7786_v48 = vld [vmem:[#allocation12_spill] sm:$0xff] }
  0x8b   :  { %7773 = vst [vmem:[#allocation87_spill] sm:$0xff] %v5621_v30  ;;  %7774 = vst [vmem:[#allocation88_spill] sm:$0xff] %v5636_v5  ;;  %v7784_v41 = vsub.f32 %v7783_v32, %v4811_v31  ;;  %v7787_v19 = vsub.f32 %v7786_v48, %v4814_v52  ;;  %v7789_v27 = vld [vmem:[#allocation13_spill] sm:$0xff]  ;;  %v7818_v11 = vld [vmem:[#allocation20_spill] sm:$0xff] }
  0x8c   :  { %7775 = vst [vmem:[#allocation89_spill] sm:$0xff] %v5641_v39  ;;  %7776 = vst [vmem:[#allocation90_spill] sm:$0xff] %v5655_v7  ;;  %v5663_v63 = vadd.f32 %v5596_v56, %v7778_v12  ;;  %v5669_v29 = vadd.f32 %v5601_v18, %v7781_v47  ;;  %v7790_v12 = vsub.f32 %v7789_v27, %v4824_v20  ;;  %v7792_v47 = vld [vmem:[#allocation14_spill] sm:$0xff]  ;;  %v7798_v20 = vld [vmem:[#allocation16_spill] sm:$0xff] }
  0x8d   :  { %v5675_v22 = vadd.f32 %v5611_v40, %v7784_v41  ;;  %v5681_v3 = vadd.f32 %v5616_v2, %v7787_v19  ;;  %v7793_v8 = vsub.f32 %v7792_v47, %v4832_v4  ;;  %v7795_v41 = vld [vmem:[#allocation15_spill] sm:$0xff]  ;;  %v7799_v48 = vsub.f32 %v7798_v20, %v4838_v35  ;;  %v5752_v47 = vld [vmem:[%s7126_s0 + $0x98] sm:$0xff]  ;;  %v5757_v20 = vld [vmem:[%s7126_s0 + $0xa0] sm:$0xff] }
  0x8e   :  { %7779 = vst [vmem:[#allocation9_spill] sm:$0xff] %v5663_v63  ;;  %7782 = vst [vmem:[#allocation10_spill] sm:$0xff] %v5669_v29  ;;  %v5687_v49 = vadd.f32 %v5621_v30, %v7790_v12  ;;  %v7796_v32 = vsub.f32 %v7795_v41, %v4835_v44  ;;  %vm1615_vm10 = vcmp.ge.f32.partialorder %v5663_v63, 1.0  ;;  %vm1616_vm11 = vcmp.ge.f32.partialorder %v5669_v29, 1.0  ;;  %v5732_v41 = vld [vmem:[%s7126_s0 + $0x80] sm:$0xff]  ;;  %v5791_v40 = vld [vmem:[%s7126_s0 + $0xb8] sm:$0xff] }
  0x8f   :  { %7785 = vst [vmem:[#allocation11_spill] sm:$0xff] %v5675_v22  ;;  %7788 = vst [vmem:[#allocation12_spill] sm:$0xff] %v5681_v3  ;;  %v5693_v31 = vadd.f32 %v5636_v5, %v7793_v8  ;;  %vm1617_vm12 = vcmp.ge.f32.partialorder %v5675_v22, 1.0  ;;  %v5708_v4 = vadd.f32 %v5655_v7, %v7799_v48  ;;  %v5711_v19 = vsel %vm1615_vm10, 1.0, %v7562_v1  ;;  %v5747_v48 = vld [vmem:[%s7126_s0 + $0x90] sm:$0xff]  ;;  %v7809_v18 = vld [vmem:[#allocation17_spill] sm:$0xff] }
  0x90   :  { %7791 = vst [vmem:[#allocation13_spill] sm:$0xff] %v5687_v49  ;;  %v5699_v52 = vadd.f32 %v5641_v39, %v7796_v32  ;;  %v5714_v44 = vsel %vm1616_vm11, 1.0, %v7562_v1  ;;  %v5717_v27 = vsel %vm1617_vm12, 1.0, %v7562_v1  ;;  %vm1618_vm13 = vcmp.ge.f32.partialorder %v5681_v3, 1.0  ;;  %7801 = vst [vmem:[#allocation91_spill] sm:$0xff] %v5732_v41  ;;  %v5737_v32 = vld [vmem:[%s7126_s0 + $0x88] sm:$0xff] }
  0x91   :  { %7794 = vst [vmem:[#allocation14_spill] sm:$0xff] %v5693_v31  ;;  %7800 = vst [vmem:[#allocation16_spill] sm:$0xff] %v5708_v4  ;;  %v5727_v8 = vsel %vm1618_vm13, 1.0, %v7562_v1  ;;  %vm1619_vm14 = vcmp.ge.f32.partialorder %v5687_v49, 1.0  ;;  %vm1620_vm15 = vcmp.ge.f32.partialorder %v5693_v31, 1.0  ;;  %vm1622_vm1 = vcmp.ge.f32.partialorder %v5708_v4, 1.0 }
  0x92   :  { %7797 = vst [vmem:[#allocation15_spill] sm:$0xff] %v5699_v52  ;;  %7802 = vst [vmem:[#allocation92_spill] sm:$0xff] %v5737_v32  ;;  %vm1621_vm0 = vcmp.ge.f32.partialorder %v5699_v52, 1.0  ;;  %v5760_v35 = vsel %vm1619_vm14, 1.0, %v7562_v1  ;;  %v5763_v12 = vsel %vm1620_vm15, 1.0, %v7562_v1  ;;  %v5772_v39 = vld [vmem:[%s7126_s0 + $0xa8] sm:$0xff]  ;;  %v7810_v30 = vsub.f32 %v7809_v18, %v4896_v34 }
  0x93   :  { %7803 = vst [vmem:[#allocation93_spill] sm:$0xff] %v5747_v48  ;;  %7804 = vst [vmem:[#allocation94_spill] sm:$0xff] %v5752_v47  ;;  %v5766_v7 = vsel %vm1621_vm0, 1.0, %v7562_v1  ;;  %v5777_v5 = vld [vmem:[%s7126_s0 + $0xb0] sm:$0xff]  ;;  %v5786_v22 = vsel %vm1622_vm1, 1.0, %v7562_v1  ;;  %v7812_v3 = vld [vmem:[#allocation18_spill] sm:$0xff]  ;;  %v7819_v29 = vsub.f32 %v7818_v11, %v4910_v33 }
  0x94   :  { %7805 = vst [vmem:[#allocation95_spill] sm:$0xff] %v5757_v20  ;;  %7806 = vst [vmem:[#allocation96_spill] sm:$0xff] %v5772_v39  ;;  %v5799_v49 = vadd.f32 %v5732_v41, %v7810_v30  ;;  %v7813_v2 = vsub.f32 %v7812_v3, %v4904_v51  ;;  %v7815_v31 = vld [vmem:[#allocation19_spill] sm:$0xff]  ;;  %v7821_v18 = vld [vmem:[#allocation21_spill] sm:$0xff] }
  0x95   :  { %7807 = vst [vmem:[#allocation97_spill] sm:$0xff] %v5777_v5  ;;  %7808 = vst [vmem:[#allocation98_spill] sm:$0xff] %v5791_v40  ;;  %v7816_v63 = vsub.f32 %v7815_v31, %v4907_v53  ;;  %v5817_v34 = vadd.f32 %v5752_v47, %v7819_v29  ;;  %v7822_v30 = vsub.f32 %v7821_v18, %v4920_v15  ;;  %v7830_v15 = vld [vmem:[#allocation24_spill] sm:$0xff]  ;;  %v7913_v55 = vld [vmem:[#allocation43_spill] sm:$0xff] }
  0x96   :  { %7811 = vst [vmem:[#allocation17_spill] sm:$0xff] %v5799_v49  ;;  %v5805_v52 = vadd.f32 %v5737_v32, %v7813_v2  ;;  %v7824_v2 = vld [vmem:[#allocation22_spill] sm:$0xff]  ;;  %vm1623_vm2 = vcmp.ge.f32.partialorder %v5799_v49, 1.0  ;;  %v7831_v29 = vsub.f32 %v7830_v15, %v4934_v62  ;;  %v7841_v32 = vld [vmem:[#allocation25_spill] sm:$0xff]  ;;  %v7850_v4 = vld [vmem:[#allocation28_spill] sm:$0xff] }
  0x97   :  { %v5811_v56 = vadd.f32 %v5747_v48, %v7816_v63  ;;  %7820 = vst [vmem:[#allocation20_spill] sm:$0xff] %v5817_v34  ;;  %v5823_v51 = vadd.f32 %v5757_v20, %v7822_v30  ;;  %v7825_v3 = vsub.f32 %v7824_v2, %v4928_v0  ;;  %v7827_v63 = vld [vmem:[#allocation23_spill] sm:$0xff]  ;;  %v5847_v11 = vsel %vm1623_vm2, 1.0, %v7562_v1  ;;  %v5888_v2 = vld [vmem:[%s7126_s0 + $0xd8] sm:$0xff]  ;;  %v5893_v15 = vld [vmem:[%s7126_s0 + $0xe0] sm:$0xff] }
  0x98   :  { %7814 = vst [vmem:[#allocation18_spill] sm:$0xff] %v5805_v52  ;;  %v7828_v31 = vsub.f32 %v7827_v63, %v4931_v61  ;;  %vm1624_vm3 = vcmp.ge.f32.partialorder %v5805_v52, 1.0  ;;  %v5844_v0 = vadd.f32 %v5791_v40, %v7831_v29  ;;  %vm1626_vm5 = vcmp.ge.f32.partialorder %v5817_v34, 1.0  ;;  %v5868_v63 = vld [vmem:[%s7126_s0 + $0xc0] sm:$0xff]  ;;  %v5883_v29 = vld [vmem:[%s7126_s0 + $0xd0] sm:$0xff]  ;;  %7836 = vst [vmem:[#allocation102_spill] sm:$0xff] %v5888_v2 }
  0x99   :  { %7817 = vst [vmem:[#allocation19_spill] sm:$0xff] %v5811_v56  ;;  %7823 = vst [vmem:[#allocation21_spill] sm:$0xff] %v5823_v51  ;;  %v5829_v53 = vadd.f32 %v5772_v39, %v7825_v3  ;;  %vm1625_vm4 = vcmp.ge.f32.partialorder %v5811_v56, 1.0  ;;  %v5850_v61 = vsel %vm1624_vm3, 1.0, %v7562_v1  ;;  %v5863_v3 = vsel %vm1626_vm5, 1.0, %v7562_v1  ;;  %v5913_v39 = vld [vmem:[%s7126_s0 + $0xf0] sm:$0xff] }
  0x9a   :  { %v5835_v33 = vadd.f32 %v5777_v5, %v7828_v31  ;;  %7832 = vst [vmem:[#allocation24_spill] sm:$0xff] %v5844_v0  ;;  %v5853_v18 = vsel %vm1625_vm4, 1.0, %v7562_v1  ;;  %7833 = vst [vmem:[#allocation99_spill] sm:$0xff] %v5868_v63  ;;  %v5873_v31 = vld [vmem:[%s7126_s0 + $0xc8] sm:$0xff]  ;;  %vm1627_vm6 = vcmp.ge.f32.partialorder %v5823_v51, 1.0  ;;  %vm1630_vm9 = vcmp.ge.f32.partialorder %v5844_v0, 1.0 }
  0x9b   :  { %7826 = vst [vmem:[#allocation22_spill] sm:$0xff] %v5829_v53  ;;  %7834 = vst [vmem:[#allocation100_spill] sm:$0xff] %v5873_v31  ;;  %vm1628_vm7 = vcmp.ge.f32.partialorder %v5829_v53, 1.0  ;;  %v5896_v62 = vsel %vm1627_vm6, 1.0, %v7562_v1  ;;  %v5908_v5 = vld [vmem:[%s7126_s0 + $0xe8] sm:$0xff]  ;;  %v5922_v56 = vsel %vm1630_vm9, 1.0, %v7562_v1  ;;  %v7842_v20 = vsub.f32 %v7841_v32, %v4992_v58 }
  0x9c   :  { %7829 = vst [vmem:[#allocation23_spill] sm:$0xff] %v5835_v33  ;;  %vm1629_vm8 = vcmp.ge.f32.partialorder %v5835_v33, 1.0  ;;  %7835 = vst [vmem:[#allocation101_spill] sm:$0xff] %v5883_v29  ;;  %v5899_v30 = vsel %vm1628_vm7, 1.0, %v7562_v1  ;;  %v5927_v48 = vld [vmem:[%s7126_s0 + $0xf8] sm:$0xff]  ;;  %v7844_v34 = vld [vmem:[#allocation26_spill] sm:$0xff]  ;;  %v7851_v52 = vsub.f32 %v7850_v4, %v5006_v50 }
  0x9d   :  { %7837 = vst [vmem:[#allocation103_spill] sm:$0xff] %v5893_v15  ;;  %v5902_v40 = vsel %vm1629_vm8, 1.0, %v7562_v1  ;;  %7838 = vst [vmem:[#allocation104_spill] sm:$0xff] %v5908_v5  ;;  %v5935_v51 = vadd.f32 %v5868_v63, %v7842_v20  ;;  %v7845_v47 = vsub.f32 %v7844_v34, %v5000_v59  ;;  %v7847_v53 = vld [vmem:[#allocation27_spill] sm:$0xff]  ;;  %v7853_v32 = vld [vmem:[#allocation29_spill] sm:$0xff] }
  0x9e   :  { %7839 = vst [vmem:[#allocation105_spill] sm:$0xff] %v5913_v39  ;;  %7840 = vst [vmem:[#allocation106_spill] sm:$0xff] %v5927_v48  ;;  %v7848_v49 = vsub.f32 %v7847_v53, %v5003_v38  ;;  %v5953_v58 = vadd.f32 %v5888_v2, %v7851_v52  ;;  %v7854_v20 = vsub.f32 %v7853_v32, %v5016_v37  ;;  %v7862_v37 = vld [vmem:[#allocation32_spill] sm:$0xff] }
  0x9f   :  { %7843 = vst [vmem:[#allocation25_spill] sm:$0xff] %v5935_v51  ;;  %v5941_v33 = vadd.f32 %v5873_v31, %v7845_v47  ;;  %v7856_v47 = vld [vmem:[#allocation30_spill] sm:$0xff]  ;;  %vm1631_vm10 = vcmp.ge.f32.partialorder %v5935_v51, 1.0  ;;  %v7863_v52 = vsub.f32 %v7862_v37, %v5030_v57  ;;  %v7873_v31 = vld [vmem:[#allocation33_spill] sm:$0xff]  ;;  %v7882_v0 = vld [vmem:[#allocation36_spill] sm:$0xff] }
  0xa0   :  { %v5947_v41 = vadd.f32 %v5883_v29, %v7848_v49  ;;  %7852 = vst [vmem:[#allocation28_spill] sm:$0xff] %v5953_v58  ;;  %v5959_v59 = vadd.f32 %v5893_v15, %v7854_v20  ;;  %v7857_v34 = vsub.f32 %v7856_v47, %v5024_v42  ;;  %v7859_v49 = vld [vmem:[#allocation31_spill] sm:$0xff]  ;;  %v5983_v4 = vsel %vm1631_vm10, 1.0, %v7562_v1  ;;  %v6024_v47 = vld [vmem:[%s7126_s0 + $0x118] sm:$0xff]  ;;  %v6029_v37 = vld [vmem:[%s7126_s0 + $0x120] sm:$0xff] }
  0xa1   :  { %7846 = vst [vmem:[#allocation26_spill] sm:$0xff] %v5941_v33  ;;  %v7860_v53 = vsub.f32 %v7859_v49, %v5027_v14  ;;  %vm1632_vm11 = vcmp.ge.f32.partialorder %v5941_v33, 1.0  ;;  %v5980_v42 = vadd.f32 %v5927_v48, %v7863_v52  ;;  %vm1634_vm13 = vcmp.ge.f32.partialorder %v5953_v58, 1.0  ;;  %v6004_v49 = vld [vmem:[%s7126_s0 + $0x100] sm:$0xff]  ;;  %v6019_v52 = vld [vmem:[%s7126_s0 + $0x110] sm:$0xff]  ;;  %7868 = vst [vmem:[#allocation110_spill] sm:$0xff] %v6024_v47 }
  0xa2   :  { %7849 = vst [vmem:[#allocation27_spill] sm:$0xff] %v5947_v41  ;;  %7855 = vst [vmem:[#allocation29_spill] sm:$0xff] %v5959_v59  ;;  %v5965_v38 = vadd.f32 %v5908_v5, %v7857_v34  ;;  %vm1633_vm12 = vcmp.ge.f32.partialorder %v5947_v41, 1.0  ;;  %v5986_v14 = vsel %vm1632_vm11, 1.0, %v7562_v1  ;;  %v5999_v34 = vsel %vm1634_vm13, 1.0, %v7562_v1  ;;  %v6049_v5 = vld [vmem:[%s7126_s0 + $0x130] sm:$0xff] }
  0xa3   :  { %v5971_v50 = vadd.f32 %v5913_v39, %v7860_v53  ;;  %7864 = vst [vmem:[#allocation32_spill] sm:$0xff] %v5980_v42  ;;  %v5989_v32 = vsel %vm1633_vm12, 1.0, %v7562_v1  ;;  %7865 = vst [vmem:[#allocation107_spill] sm:$0xff] %v6004_v49  ;;  %v6009_v53 = vld [vmem:[%s7126_s0 + $0x108] sm:$0xff]  ;;  %vm1635_vm14 = vcmp.ge.f32.partialorder %v5959_v59, 1.0  ;;  %vm1638_vm1 = vcmp.ge.f32.partialorder %v5980_v42, 1.0 }
  0xa4   :  { %7858 = vst [vmem:[#allocation30_spill] sm:$0xff] %v5965_v38  ;;  %7866 = vst [vmem:[#allocation108_spill] sm:$0xff] %v6009_v53  ;;  %vm1636_vm15 = vcmp.ge.f32.partialorder %v5965_v38, 1.0  ;;  %v6032_v57 = vsel %vm1635_vm14, 1.0, %v7562_v1  ;;  %v6044_v39 = vld [vmem:[%s7126_s0 + $0x128] sm:$0xff]  ;;  %v6058_v41 = vsel %vm1638_vm1, 1.0, %v7562_v1  ;;  %v7874_v15 = vsub.f32 %v7873_v31, %v5088_v17 }
  0xa5   :  { %7861 = vst [vmem:[#allocation31_spill] sm:$0xff] %v5971_v50  ;;  %vm1637_vm0 = vcmp.ge.f32.partialorder %v5971_v50, 1.0  ;;  %7867 = vst [vmem:[#allocation109_spill] sm:$0xff] %v6019_v52  ;;  %v6035_v20 = vsel %vm1636_vm15, 1.0, %v7562_v1  ;;  %v6063_v29 = vld [vmem:[%s7126_s0 + $0x138] sm:$0xff]  ;;  %v7876_v58 = vld [vmem:[#allocation34_spill] sm:$0xff]  ;;  %v7883_v33 = vsub.f32 %v7882_v0, %v5102_v54 }
  0xa6   :  { %7869 = vst [vmem:[#allocation111_spill] sm:$0xff] %v6029_v37  ;;  %v6038_v48 = vsel %vm1637_vm0, 1.0, %v7562_v1  ;;  %7870 = vst [vmem:[#allocation112_spill] sm:$0xff] %v6044_v39  ;;  %v6071_v59 = vadd.f32 %v6004_v49, %v7874_v15  ;;  %v7877_v2 = vsub.f32 %v7876_v58, %v5096_v43  ;;  %v7879_v38 = vld [vmem:[#allocation35_spill] sm:$0xff]  ;;  %v7885_v31 = vld [vmem:[#allocation37_spill] sm:$0xff] }
  0xa7   :  { %7871 = vst [vmem:[#allocation113_spill] sm:$0xff] %v6049_v5  ;;  %7872 = vst [vmem:[#allocation114_spill] sm:$0xff] %v6063_v29  ;;  %v7880_v51 = vsub.f32 %v7879_v38, %v5099_v26  ;;  %v6089_v17 = vadd.f32 %v6024_v47, %v7883_v33  ;;  %v7886_v15 = vld [vmem:[#allocation41_spill] sm:$0xff]  ;;  %v7890_v58 = vld [vmem:[#allocation42_spill] sm:$0xff] }
  0xa8   :  { %7875 = vst [vmem:[#allocation33_spill] sm:$0xff] %v6071_v59  ;;  %v6077_v50 = vadd.f32 %v6009_v53, %v7877_v2  ;;  %v7887_v49 = vsub.f32 %v7885_v31, %v7886_v15  ;;  %v7889_v2 = vld [vmem:[#allocation38_spill] sm:$0xff]  ;;  %v7894_v38 = vld [vmem:[#allocation68_spill] sm:$0xff]  ;;  %vm1639_vm2 = vcmp.ge.f32.partialorder %v6071_v59, 1.0  ;;  %v7898_v0 = vld [vmem:[#allocation69_spill] sm:$0xff] }
  0xa9   :  { %v6083_v63 = vadd.f32 %v6019_v52, %v7880_v51  ;;  %7884 = vst [vmem:[#allocation36_spill] sm:$0xff] %v6089_v17  ;;  %v7891_v53 = vsub.f32 %v7889_v2, %v7890_v58  ;;  %v7893_v51 = vld [vmem:[#allocation39_spill] sm:$0xff]  ;;  %v7897_v33 = vld [vmem:[#allocation40_spill] sm:$0xff]  ;;  %vm1642_vm5 = vcmp.ge.f32.partialorder %v6089_v17, 1.0  ;;  %v6160_v58 = vld [vmem:[%s7126_s0 + $0x158] sm:$0xff] }
  0xaa   :  { %7878 = vst [vmem:[#allocation34_spill] sm:$0xff] %v6077_v50  ;;  %v6095_v43 = vadd.f32 %v6029_v37, %v7887_v49  ;;  %v7895_v52 = vsub.f32 %v7893_v51, %v7894_v38  ;;  %vm1640_vm3 = vcmp.ge.f32.partialorder %v6077_v50, 1.0  ;;  %v7899_v49 = vsub.f32 %v7897_v33, %v7898_v0  ;;  %v6140_v33 = vld [vmem:[%s7126_s0 + $0x140] sm:$0xff]  ;;  %v6145_v0 = vld [vmem:[%s7126_s0 + $0x148] sm:$0xff]  ;;  %v6155_v51 = vld [vmem:[%s7126_s0 + $0x150] sm:$0xff] }
  0xab   :  { %7881 = vst [vmem:[#allocation35_spill] sm:$0xff] %v6083_v63  ;;  %v6101_v26 = vadd.f32 %v6044_v39, %v7891_v53  ;;  %vm1641_vm4 = vcmp.ge.f32.partialorder %v6083_v63, 1.0  ;;  %v6119_v53 = vsel %vm1639_vm2, 1.0, %v7562_v1  ;;  %v6122_v15 = vsel %vm1640_vm3, 1.0, %v7562_v1  ;;  %7902 = vst [vmem:[#allocation68_spill] sm:$0xff] %v6140_v33  ;;  %v6180_v39 = vld [vmem:[%s7126_s0 + $0x168] sm:$0xff] }
  0xac   :  { %7888 = vst [vmem:[#allocation37_spill] sm:$0xff] %v6095_v43  ;;  %v6107_v54 = vadd.f32 %v6049_v5, %v7895_v52  ;;  %v6116_v31 = vadd.f32 %v6063_v29, %v7899_v49  ;;  %v6125_v52 = vsel %vm1641_vm4, 1.0, %v7562_v1  ;;  %v6135_v38 = vsel %vm1642_vm5, 1.0, %v7562_v1  ;;  %7903 = vst [vmem:[#allocation40_spill] sm:$0xff] %v6145_v0  ;;  %v6165_v49 = vld [vmem:[%s7126_s0 + $0x160] sm:$0xff]  ;;  %v6185_v37 = vld [vmem:[%s7126_s0 + $0x170] sm:$0xff] }
  0xad   :  { %7892 = vst [vmem:[#allocation41_spill] sm:$0xff] %v6101_v26  ;;  %7901 = vst [vmem:[#allocation39_spill] sm:$0xff] %v6135_v38  ;;  %vm1643_vm6 = vcmp.ge.f32.partialorder %v6095_v43, 1.0  ;;  %vm1644_vm7 = vcmp.ge.f32.partialorder %v6101_v26, 1.0  ;;  %v6199_v59 = vld [vmem:[%s7126_s0 + $0x178] sm:$0xff]  ;;  %v7914_v28 = vld [vmem:[#allocation48_spill] sm:$0xff] }
  0xae   :  { %7896 = vst [vmem:[#allocation38_spill] sm:$0xff] %v6107_v54  ;;  %7900 = vst [vmem:[#allocation42_spill] sm:$0xff] %v6116_v31  ;;  %vm1645_vm8 = vcmp.ge.f32.partialorder %v6107_v54, 1.0  ;;  %v6168_v2 = vsel %vm1643_vm6, 1.0, %v7562_v1  ;;  %v6171_v29 = vsel %vm1644_vm7, 1.0, %v7562_v1  ;;  %vm1646_vm9 = vcmp.ge.f32.partialorder %v6116_v31, 1.0 }
  0xaf   :  { %7904 = vst [vmem:[#allocation69_spill] sm:$0xff] %v6155_v51  ;;  %7905 = vst [vmem:[#allocation115_spill] sm:$0xff] %v6160_v58  ;;  %v6174_v5 = vsel %vm1645_vm8, 1.0, %v7562_v1  ;;  %v6194_v50 = vsel %vm1646_vm9, 1.0, %v7562_v1  ;;  %v7915_v17 = vsub.f32 %v7913_v55, %v7914_v28  ;;  %v7917_v47 = vld [vmem:[#allocation44_spill] sm:$0xff]  ;;  %v7920_v26 = vld [vmem:[#allocation50_spill] sm:$0xff] }
  0xb0   :  { %7906 = vst [vmem:[#allocation116_spill] sm:$0xff] %v6165_v49  ;;  %7907 = vst [vmem:[#allocation117_spill] sm:$0xff] %v6168_v2  ;;  %v7918_v63 = vsub.f32 %v7917_v47, %v5192_v36  ;;  %v7921_v16 = vsub.f32 %v7920_v26, %v5195_v25  ;;  %v7924_v42 = vld [vmem:[#allocation49_spill] sm:$0xff]  ;;  %v7932_v47 = vld [vmem:[#allocation70_spill] sm:$0xff] }
  0xb1   :  { %7908 = vst [vmem:[#allocation118_spill] sm:$0xff] %v6171_v29  ;;  %7909 = vst [vmem:[#allocation119_spill] sm:$0xff] %v6174_v5  ;;  %v6207_v43 = vadd.f32 %v6140_v33, %v7915_v17  ;;  %v7923_v29 = vld [vmem:[#allocation45_spill] sm:$0xff]  ;;  %v7928_v17 = vld [vmem:[#allocation51_spill] sm:$0xff] }
  0xb2   :  { %7910 = vst [vmem:[#allocation120_spill] sm:$0xff] %v6180_v39  ;;  %7911 = vst [vmem:[#allocation121_spill] sm:$0xff] %v6185_v37  ;;  %v6213_v54 = vadd.f32 %v6145_v0, %v7918_v63  ;;  %v6219_v5 = vadd.f32 %v6155_v51, %v7921_v16  ;;  %v7925_v31 = vsub.f32 %v7923_v29, %v7924_v42  ;;  %v7927_v28 = vld [vmem:[#allocation53_spill] sm:$0xff]  ;;  %v7931_v63 = vld [vmem:[#allocation46_spill] sm:$0xff] }
  0xb3   :  { %7912 = vst [vmem:[#allocation122_spill] sm:$0xff] %v6199_v59  ;;  %7916 = vst [vmem:[#allocation43_spill] sm:$0xff] %v6207_v43  ;;  %v7929_v33 = vsub.f32 %v7927_v28, %v7928_v17  ;;  %v7933_v0 = vsub.f32 %v7931_v63, %v7932_v47  ;;  %v7935_v16 = vld [vmem:[#allocation55_spill] sm:$0xff]  ;;  %vm1647_vm10 = vcmp.ge.f32.partialorder %v6207_v43, 1.0  ;;  %v6296_v47 = vld [vmem:[%s7126_s0 + $0x198] sm:$0xff] }
  0xb4   :  { %7919 = vst [vmem:[#allocation48_spill] sm:$0xff] %v6213_v54  ;;  %7922 = vst [vmem:[#allocation44_spill] sm:$0xff] %v6219_v5  ;;  %v6225_v55 = vadd.f32 %v6160_v58, %v7925_v31  ;;  %v7936_v26 = vld [vmem:[#allocation71_spill] sm:$0xff]  ;;  %vm1648_vm11 = vcmp.ge.f32.partialorder %v6213_v54, 1.0  ;;  %vm1649_vm12 = vcmp.ge.f32.partialorder %v6219_v5, 1.0  ;;  %v7940_v31 = vld [vmem:[#allocation72_spill] sm:$0xff] }
  0xb5   :  { %v6231_v36 = vadd.f32 %v6165_v49, %v7929_v33  ;;  %v6237_v25 = vadd.f32 %v6180_v39, %v7933_v0  ;;  %v7937_v51 = vsub.f32 %v7935_v16, %v7936_v26  ;;  %v7939_v42 = vld [vmem:[#allocation47_spill] sm:$0xff]  ;;  %v6255_v0 = vsel %vm1647_vm10, 1.0, %v7562_v1  ;;  %v6291_v16 = vld [vmem:[%s7126_s0 + $0x190] sm:$0xff]  ;;  %7949 = vst [vmem:[#allocation123_spill] sm:$0xff] %v6296_v47  ;;  %v6335_v43 = vld [vmem:[%s7126_s0 + $0x1b8] sm:$0xff] }
  0xb6   :  { %7926 = vst [vmem:[#allocation50_spill] sm:$0xff] %v6225_v55  ;;  %v7941_v33 = vsub.f32 %v7939_v42, %v7940_v31  ;;  %v6258_v17 = vsel %vm1648_vm11, 1.0, %v7562_v1  ;;  %vm1650_vm13 = vcmp.ge.f32.partialorder %v6225_v55, 1.0  ;;  %v6276_v42 = vld [vmem:[%s7126_s0 + $0x180] sm:$0xff]  ;;  %v6281_v31 = vld [vmem:[%s7126_s0 + $0x188] sm:$0xff]  ;;  %7948 = vst [vmem:[#allocation72_spill] sm:$0xff] %v6291_v16 }
  0xb7   :  { %7930 = vst [vmem:[#allocation45_spill] sm:$0xff] %v6231_v36  ;;  %7934 = vst [vmem:[#allocation49_spill] sm:$0xff] %v6237_v25  ;;  %v6243_v29 = vadd.f32 %v6185_v37, %v7937_v51  ;;  %v6261_v51 = vsel %vm1649_vm12, 1.0, %v7562_v1  ;;  %v6271_v26 = vsel %vm1650_vm13, 1.0, %v7562_v1  ;;  %vm1651_vm14 = vcmp.ge.f32.partialorder %v6231_v36, 1.0  ;;  %v6316_v39 = vld [vmem:[%s7126_s0 + $0x1a8] sm:$0xff] }
  0xb8   :  { %v6252_v28 = vadd.f32 %v6199_v59, %v7941_v33  ;;  %7943 = vst [vmem:[#allocation46_spill] sm:$0xff] %v6258_v17  ;;  %7944 = vst [vmem:[#allocation70_spill] sm:$0xff] %v6261_v51  ;;  %vm1652_vm15 = vcmp.ge.f32.partialorder %v6237_v25, 1.0  ;;  %v6301_v33 = vld [vmem:[%s7126_s0 + $0x1a0] sm:$0xff]  ;;  %v6304_v63 = vsel %vm1651_vm14, 1.0, %v7562_v1  ;;  %v6321_v49 = vld [vmem:[%s7126_s0 + $0x1b0] sm:$0xff] }
  0xb9   :  { %7938 = vst [vmem:[#allocation53_spill] sm:$0xff] %v6243_v29  ;;  %7945 = vst [vmem:[#allocation55_spill] sm:$0xff] %v6271_v26  ;;  %vm1653_vm0 = vcmp.ge.f32.partialorder %v6243_v29, 1.0  ;;  %v6307_v59 = vsel %vm1652_vm15, 1.0, %v7562_v1  ;;  %v7957_v51 = vld [vmem:[#allocation52_spill] sm:$0xff]  ;;  %v7961_v58 = vld [vmem:[#allocation54_spill] sm:$0xff] }
  0xba   :  { %7942 = vst [vmem:[#allocation51_spill] sm:$0xff] %v6252_v28  ;;  %7946 = vst [vmem:[#allocation71_spill] sm:$0xff] %v6276_v42  ;;  %v6310_v37 = vsel %vm1653_vm0, 1.0, %v7562_v1  ;;  %vm1654_vm1 = vcmp.ge.f32.partialorder %v6252_v28, 1.0  ;;  %v7958_v17 = vld [vmem:[#allocation60_spill] sm:$0xff]  ;;  %v7962_v5 = vsub.f32 %v7961_v58, %v5288_v24  ;;  %v7968_v26 = vld [vmem:[#allocation62_spill] sm:$0xff] }
  0xbb   :  { %7947 = vst [vmem:[#allocation47_spill] sm:$0xff] %v6281_v31  ;;  %7950 = vst [vmem:[#allocation124_spill] sm:$0xff] %v6301_v33  ;;  %v6330_v54 = vsel %vm1654_vm1, 1.0, %v7562_v1  ;;  %v7959_v55 = vsub.f32 %v7957_v51, %v7958_v17  ;;  %v7964_v25 = vld [vmem:[#allocation56_spill] sm:$0xff]  ;;  %v7972_v51 = vld [vmem:[#allocation67_spill] sm:$0xff] }
  0xbc   :  { %7951 = vst [vmem:[#allocation125_spill] sm:$0xff] %v6304_v63  ;;  %7952 = vst [vmem:[#allocation126_spill] sm:$0xff] %v6307_v59  ;;  %v6349_v29 = vadd.f32 %v6281_v31, %v7962_v5  ;;  %v7967_v63 = vld [vmem:[#allocation64_spill] sm:$0xff]  ;;  %v7975_v5 = vld [vmem:[#allocation65_spill] sm:$0xff] }
  0xbd   :  { %7953 = vst [vmem:[#allocation127_spill] sm:$0xff] %v6310_v37  ;;  %7954 = vst [vmem:[#allocation128_spill] sm:$0xff] %v6316_v39  ;;  %v6343_v36 = vadd.f32 %v6276_v42, %v7959_v55  ;;  %v7965_v37 = vsub.f32 %v7964_v25, %v7741_v45  ;;  %v7969_v28 = vsub.f32 %v7967_v63, %v7968_v26  ;;  %v7971_v55 = vld [vmem:[#allocation57_spill] sm:$0xff]  ;;  %v7980_v25 = vld [vmem:[#allocation74_spill] sm:$0xff] }
  0xbe   :  { %7955 = vst [vmem:[#allocation129_spill] sm:$0xff] %v6321_v49  ;;  %7956 = vst [vmem:[#allocation130_spill] sm:$0xff] %v6335_v43  ;;  %v7973_v42 = vsub.f32 %v7971_v55, %v7972_v51  ;;  %v7976_v58 = vld [vmem:[#allocation73_spill] sm:$0xff]  ;;  %vm1656_vm3 = vcmp.ge.f32.partialorder %v6349_v29, 1.0  ;;  %v7984_v26 = vld [vmem:[#allocation75_spill] sm:$0xff] }
  0xbf   :  { %7960 = vst [vmem:[#allocation52_spill] sm:$0xff] %v6343_v36  ;;  %7963 = vst [vmem:[#allocation60_spill] sm:$0xff] %v6349_v29  ;;  %v6355_v59 = vadd.f32 %v6291_v16, %v7965_v37  ;;  %v6361_v17 = vadd.f32 %v6296_v47, %v7969_v28  ;;  %v7977_v31 = vsub.f32 %v7975_v5, %v7976_v58  ;;  %v7979_v37 = vld [vmem:[#allocation58_spill] sm:$0xff]  ;;  %vm1655_vm2 = vcmp.ge.f32.partialorder %v6343_v36, 1.0  ;;  %v7983_v28 = vld [vmem:[#allocation59_spill] sm:$0xff] }
  0xc0   :  { %v6367_v24 = vadd.f32 %v6301_v33, %v7973_v42  ;;  %v7981_v16 = vsub.f32 %v7979_v37, %v7980_v25  ;;  %v7985_v42 = vsub.f32 %v7983_v28, %v7984_v26  ;;  %v6394_v51 = vsel %vm1656_vm3, 1.0, %v7562_v1  ;;  %v1492_v28 = vld [vmem:[%s7126_s0 + $0x1c0] sm:$0x3] }
  0xc1   :  { %7966 = vst [vmem:[#allocation54_spill] sm:$0xff] %v6355_v59  ;;  %7970 = vst [vmem:[#allocation56_spill] sm:$0xff] %v6361_v17  ;;  %v6373_v45 = vadd.f32 %v6316_v39, %v7977_v31  ;;  %vm1657_vm4 = vcmp.ge.f32.partialorder %v6355_v59, 1.0  ;;  %v6391_v31 = vsel %vm1655_vm2, 1.0, %v7562_v1  ;;  %vm1658_vm5 = vcmp.ge.f32.partialorder %v6361_v17, 1.0  ;;  %v7997_v36 = vld [vmem:[#allocation70_spill] sm:$0xff] }
  0xc2   :  { %7974 = vst [vmem:[#allocation64_spill] sm:$0xff] %v6367_v24  ;;  %v6379_v63 = vadd.f32 %v6321_v49, %v7981_v16  ;;  %v6388_v55 = vadd.f32 %v6335_v43, %v7985_v42  ;;  %7987 = vst [vmem:[#allocation65_spill] sm:$0xff] %v6391_v31  ;;  %v6397_v16 = vsel %vm1657_vm4, 1.0, %v7562_v1  ;;  %v6407_v25 = vsel %vm1658_vm5, 1.0, %v7562_v1  ;;  %v1549_v42 = vld [vmem:[#allocation2 + $0x1c0] sm:$0x3] }
  0xc3   :  { %7978 = vst [vmem:[#allocation62_spill] sm:$0xff] %v6373_v45  ;;  %7988 = vst [vmem:[#allocation73_spill] sm:$0xff] %v6394_v51  ;;  %vm1659_vm6 = vcmp.ge.f32.partialorder %v6367_v24, 1.0  ;;  %vm1660_vm7 = vcmp.ge.f32.partialorder %v6373_v45, 1.0  ;;  %v1606_v17 = vadd.f32 %v1549_v42, %v1492_v28  ;;  %v3605_v47 = vpack.c.bf16 %v5578_v13, %v5575_v60  ;;  %v7996_v24 = vld [vmem:[#allocation46_spill] sm:$0xff] }
  0xc4   :  { %7982 = vst [vmem:[#allocation57_spill] sm:$0xff] %v6379_v63  ;;  %7986 = vst [vmem:[#allocation67_spill] sm:$0xff] %v6388_v55  ;;  %vm1661_vm8 = vcmp.ge.f32.partialorder %v6379_v63, 1.0  ;;  %v6418_v58 = vsel %vm1659_vm6, 1.0, %v7562_v1  ;;  %v6421_v37 = vsel %vm1660_vm7, 1.0, %v7562_v1  ;;  %vm1662_vm9 = vcmp.ge.f32.partialorder %v6388_v55, 1.0 }
  0xc5   :  { %7989 = vst [vmem:[#allocation58_spill] sm:$0xff] %v6397_v16  ;;  %7990 = vst [vmem:[#allocation74_spill] sm:$0xff] %v6407_v25  ;;  %v6424_v5 = vsel %vm1661_vm8, 1.0, %v7562_v1  ;;  %v6434_v39 = vsel %vm1662_vm9, 1.0, %v7562_v1  ;;  %v3608_v59 = vpack.c.bf16 %v5591_v23, %v5581_v10  ;;  %v3611_v26 = vpack.c.bf16 %v5627_v21, %v5624_v9 }
  0xc6   :  { %7991 = vst [vmem:[#allocation59_spill] sm:$0xff] %v6418_v58  ;;  %7992 = vst [vmem:[#allocation75_spill] sm:$0xff] %v6421_v37  ;;  %v3614_v43 = vpack.c.bf16 %v5650_v46, %v5630_v6  ;;  %v3617_v49 = vpack.c.bf16 %v5714_v44, %v5711_v19  ;;  %v3620_v63 = vpack.c.bf16 %v5727_v8, %v5717_v27  ;;  %vm1663_vm10 = vcmp.ge.f32.partialorder %v1606_v17, 1.0 }
  0xc7   :  { %7993 = vst [vmem:[#allocation131_spill] sm:$0xff] %v6434_v39  ;;  %3823 = vst [vmem:[%s7127_s1 + $0x1c8] sm:$0xff] %v3605_v47   ;;  %v3623_v28 = vpack.c.bf16 %v5763_v12, %v5760_v35  ;;  %v3626_v42 = vpack.c.bf16 %v5786_v22, %v5766_v7  ;;  %v3629_v33 = vpack.c.bf16 %v5850_v61, %v5847_v11  ;;  %v1720_v55 = vsel %vm1663_vm10, 1.0, %v7562_v1 }
  0xc8   :  { %3824 = vst [vmem:[%s7127_s1 + $0x1d0] sm:$0xff] %v3608_v59   ;;  %3825 = vst [vmem:[%s7127_s1 + $0x1d8] sm:$0xff] %v3611_v26   ;;  %v3632_v59 = vpack.c.bf16 %v5863_v3, %v5853_v18  ;;  %v3635_v47 = vpack.c.bf16 %v5899_v30, %v5896_v62  ;;  %v3638_v26 = vpack.c.bf16 %v5922_v56, %v5902_v40 }
  0xc9   :  { %3826 = vst [vmem:[%s7127_s1 + $0x1e0] sm:$0xff] %v3614_v43   ;;  %3827 = vst [vmem:[%s7127_s1 + $0x1e8] sm:$0xff] %v3617_v49   ;;  %v1777_v45 = vsub.f32 %v1606_v17, %v1720_v55  ;;  %v3641_v43 = vpack.c.bf16 %v5986_v14, %v5983_v4  ;;  %v3644_v49 = vpack.c.bf16 %v5999_v34, %v5989_v32 }
  0xca   :  { %3828 = vst [vmem:[%s7127_s1 + $0x1f0] sm:$0xff] %v3620_v63   ;;  %3829 = vst [vmem:[%s7127_s1 + $0x1f8] sm:$0xff] %v3623_v28   ;;  %v3647_v17 = vpack.c.bf16 %v6035_v20, %v6032_v57  ;;  %v3653_v63 = vpack.c.bf16 %v6122_v15, %v6119_v53  ;;  %v3656_v28 = vpack.c.bf16 %v6135_v38, %v6125_v52  ;;  %v8000_v38 = vld [vmem:[#allocation126_spill] sm:$0xff] }
  0xcb   :  { %3830 = vst [vmem:[%s7127_s1 + $0x200] sm:$0xff] %v3626_v42   ;;  %3831 = vst [vmem:[%s7127_s1 + $0x208] sm:$0xff] %v3629_v33   ;;  %v3650_v33 = vpack.c.bf16 %v6058_v41, %v6038_v48  ;;  %v7994_v42 = vld [vmem:[#allocation118_spill] sm:$0xff]  ;;  %v3665_v29 = vpack.c.bf16 %v7996_v24, %v6255_v0 }
  0xcc   :  { %3832 = vst [vmem:[%s7127_s1 + $0x210] sm:$0xff] %v3632_v59   ;;  %3833 = vst [vmem:[%s7127_s1 + $0x218] sm:$0xff] %v3635_v47   ;;  %v3659_v59 = vpack.c.bf16 %v7994_v42, %v6168_v2  ;;  %v7995_v47 = vld [vmem:[#allocation119_spill] sm:$0xff]  ;;  %v7999_v2 = vld [vmem:[#allocation125_spill] sm:$0xff] }
  0xcd   :  { %3834 = vst [vmem:[%s7127_s1 + $0x220] sm:$0xff] %v3638_v26   ;;  %1834 = vst [vmem:[#allocation2 + $0x1c0] sm:$0x3] %v1777_v45  ;;  %v3662_v26 = vpack.c.bf16 %v6194_v50, %v7995_v47  ;;  %v7998_v45 = vld [vmem:[#allocation55_spill] sm:$0xff] }
  0xce   :  { %3835 = vst [vmem:[%s7127_s1 + $0x228] sm:$0xff] %v3641_v43   ;;  %3836 = vst [vmem:[%s7127_s1 + $0x230] sm:$0xff] %v3644_v49   ;;  %v3668_v42 = vpack.c.bf16 %v7998_v45, %v7997_v36  ;;  %v3671_v43 = vpack.c.bf16 %v8000_v38, %v7999_v2  ;;  %v8001_v49 = vld [vmem:[#allocation127_spill] sm:$0xff]  ;;  %v3677_v38 = vpack.c.bf16 %v6394_v51, %v6391_v31 }
  0xcf   :  { %3837 = vst [vmem:[%s7127_s1 + $0x238] sm:$0xff] %v3647_v17   ;;  %3838 = vst [vmem:[%s7127_s1 + $0x240] sm:$0xff] %v3650_v33   ;;  %v3674_v17 = vpack.c.bf16 %v6330_v54, %v8001_v49  ;;  %v3680_v33 = vpack.c.bf16 %v6407_v25, %v6397_v16  ;;  %v8005_v16 = vld [vmem:[#allocation77_spill] sm:$0xff]  ;;  %v8006_v51 = vld [vmem:[#allocation63_spill] sm:$0xff] }
  0xd0   :  { %3839 = vst [vmem:[%s7127_s1 + $0x248] sm:$0xff] %v3653_v63   ;;  %3840 = vst [vmem:[%s7127_s1 + $0x250] sm:$0xff] %v3656_v28   ;;  %v3683_v63 = vpack.c.bf16 %v6421_v37, %v6418_v58  ;;  %v3686_v28 = vpack.c.bf16 %v6434_v39, %v6424_v5  ;;  %v8002_v37 = vld [vmem:[#allocation76_spill] sm:$0xff]  ;;  %v8003_v58 = vld [vmem:[#allocation61_spill] sm:$0xff] }
  0xd1   :  { %3841 = vst [vmem:[%s7127_s1 + $0x258] sm:$0xff] %v3659_v59   ;;  %3842 = vst [vmem:[%s7127_s1 + $0x260] sm:$0xff] %v3662_v26   ;;  %v3381_v59 = vpack.c.bf16 %v1720_v55, %v1720_v55  ;;  %v8004_v26 = vsub.f32 %v8003_v58, %v5575_v60  ;;  %v8008_v60 = vld [vmem:[#allocation78_spill] sm:$0xff]  ;;  %v8009_v55 = vld [vmem:[#allocation3_spill] sm:$0xff] }
  0xd2   :  { %3843 = vst [vmem:[%s7127_s1 + $0x268] sm:$0xff] %v3665_v29   ;;  %3844 = vst [vmem:[%s7127_s1 + $0x270] sm:$0xff] %v3668_v42   ;;  %v8007_v29 = vsub.f32 %v8006_v51, %v5578_v13  ;;  %v8010_v13 = vsub.f32 %v8009_v55, %v5581_v10  ;;  %v8012_v58 = vld [vmem:[#allocation4_spill] sm:$0xff]  ;;  %v8020_v10 = vld [vmem:[#allocation82_spill] sm:$0xff] }
  0xd3   :  { %3845 = vst [vmem:[%s7127_s1 + $0x278] sm:$0xff] %v3671_v43   ;;  %v2236_v25 = vadd.f32 %v8004_v26, %v8002_v37  ;;  %3846 = vst [vmem:[%s7127_s1 + $0x280] sm:$0xff] %v3674_v17   ;;  %v8013_v37 = vsub.f32 %v8012_v58, %v5591_v23  ;;  %v8014_v43 = vld [vmem:[#allocation80_spill] sm:$0xff]  ;;  %v8021_v23 = vld [vmem:[#allocation7_spill] sm:$0xff] }
  0xd4   :  { %v2237_v31 = vadd.f32 %v8007_v29, %v8005_v16  ;;  %3847 = vst [vmem:[%s7127_s1 + $0x288] sm:$0xff] %v3677_v38   ;;  %3848 = vst [vmem:[%s7127_s1 + $0x290] sm:$0xff] %v3680_v33   ;;  %v2238_v51 = vadd.f32 %v8010_v13, %v8008_v60  ;;  %v8011_v16 = vld [vmem:[#allocation79_spill] sm:$0xff]  ;;  %v8015_v38 = vld [vmem:[#allocation5_spill] sm:$0xff] }
  0xd5   :  { %3849 = vst [vmem:[%s7127_s1 + $0x298] sm:$0xff] %v3683_v63   ;;  %v2239_v42 = vadd.f32 %v8013_v37, %v8011_v16  ;;  %v8016_v17 = vsub.f32 %v8015_v38, %v5624_v9  ;;  %v8017_v33 = vld [vmem:[#allocation81_spill] sm:$0xff]  ;;  %v8018_v29 = vld [vmem:[#allocation6_spill] sm:$0xff]  ;;  %3850 = vst [vmem:[%s7127_s1 + $0x2a0] sm:$0xff] %v3686_v28   ;;  %vm2293_vm11 = vcmp.ge.f32.partialorder %v2236_v25, 1.0  ;;  %v8022_v9 = vsub.f32 %v8021_v23, %v5630_v6 }
  0xd6   :  { %v8019_v39 = vsub.f32 %v8018_v29, %v5627_v21  ;;  %3096 = vst [vmem:[%s7127_s1 + $0x2a8] sm:$0x1] %v3381_v59  ;;  %vm2294_vm12 = vcmp.ge.f32.partialorder %v2237_v31, 1.0  ;;  %v8023_v55 = vld [vmem:[#allocation66_spill] sm:$0xff]  ;;  %v8024_v13 = vld [vmem:[#allocation8_spill] sm:$0xff]  ;;  %v6615_v16 = vsel %vm2293_vm11, 1.0, %v7562_v1 }
  0xd7   :  { %v2240_v26 = vadd.f32 %v8016_v17, %v8014_v43  ;;  %v2242_v60 = vadd.f32 %v8022_v9, %v8020_v10  ;;  %v8025_v21 = vsub.f32 %v8024_v13, %v5650_v46  ;;  %v6618_v28 = vsel %vm2294_vm12, 1.0, %v7562_v1  ;;  %v8026_v58 = vld [vmem:[#allocation83_spill] sm:$0xff]  ;;  %v8027_v37 = vld [vmem:[#allocation9_spill] sm:$0xff]  ;;  %v8029_v38 = vld [vmem:[#allocation84_spill] sm:$0xff] }
  0xd8   :  { %v2241_v63 = vadd.f32 %v8019_v39, %v8017_v33  ;;  %vm2295_vm13 = vcmp.ge.f32.partialorder %v2238_v51, 1.0  ;;  %vm2296_vm14 = vcmp.ge.f32.partialorder %v2239_v42, 1.0  ;;  %v8028_v42 = vsub.f32 %v8027_v37, %v5711_v19  ;;  %v8030_v17 = vld [vmem:[#allocation10_spill] sm:$0xff]  ;;  %v8032_v29 = vld [vmem:[#allocation85_spill] sm:$0xff]  ;;  %v8041_v37 = vld [vmem:[#allocation88_spill] sm:$0xff] }
  0xd9   :  { %v2243_v39 = vadd.f32 %v8025_v21, %v8023_v55  ;;  %v6621_v31 = vsel %vm2295_vm13, 1.0, %v7562_v1  ;;  %v6624_v25 = vsel %vm2296_vm14, 1.0, %v7562_v1  ;;  %vm2297_vm15 = vcmp.ge.f32.partialorder %v2240_v26, 1.0  ;;  %v8035_v9 = vld [vmem:[#allocation86_spill] sm:$0xff]  ;;  %v8038_v21 = vld [vmem:[#allocation87_spill] sm:$0xff] }
  0xda   :  { %vm2298_vm0 = vcmp.ge.f32.partialorder %v2241_v63, 1.0  ;;  %v6627_v6 = vsel %vm2297_vm15, 1.0, %v7562_v1  ;;  %vm2299_vm1 = vcmp.ge.f32.partialorder %v2242_v60, 1.0  ;;  %v2244_v43 = vadd.f32 %v8028_v42, %v8026_v58  ;;  %v8033_v63 = vld [vmem:[#allocation11_spill] sm:$0xff]  ;;  %v8036_v60 = vld [vmem:[#allocation12_spill] sm:$0xff]  ;;  %v8042_v42 = vld [vmem:[#allocation14_spill] sm:$0xff] }
  0xdb   :  { %v6630_v46 = vsel %vm2298_vm0, 1.0, %v7562_v1  ;;  %vm2300_vm2 = vcmp.ge.f32.partialorder %v2243_v39, 1.0  ;;  %v6633_v59 = vsel %vm2299_vm1, 1.0, %v7562_v1  ;;  %v8031_v26 = vsub.f32 %v8030_v17, %v5714_v44  ;;  %v8039_v39 = vld [vmem:[#allocation13_spill] sm:$0xff] }
  0xdc   :  { %v6636_v51 = vsel %vm2300_vm2, 1.0, %v7562_v1  ;;  %v8034_v10 = vsub.f32 %v8033_v63, %v5717_v27  ;;  %v8037_v55 = vsub.f32 %v8036_v60, %v5727_v8  ;;  %v8040_v19 = vsub.f32 %v8039_v39, %v5760_v35  ;;  %v8044_v17 = vld [vmem:[#allocation89_spill] sm:$0xff]  ;;  %v8045_v27 = vld [vmem:[#allocation15_spill] sm:$0xff]  ;;  %v8047_v63 = vld [vmem:[#allocation90_spill] sm:$0xff] }
  0xdd   :  { %v2245_v33 = vadd.f32 %v8031_v26, %v8029_v38  ;;  %v8043_v44 = vsub.f32 %v8042_v42, %v5763_v12  ;;  %vm2301_vm3 = vcmp.ge.f32.partialorder %v2244_v43, 1.0  ;;  %v8046_v26 = vsub.f32 %v8045_v27, %v5766_v7  ;;  %v8048_v8 = vld [vmem:[#allocation16_spill] sm:$0xff] }
  0xde   :  { %v2246_v23 = vadd.f32 %v8034_v10, %v8032_v29  ;;  %v2247_v13 = vadd.f32 %v8037_v55, %v8035_v9  ;;  %v2248_v58 = vadd.f32 %v8040_v19, %v8038_v21  ;;  %v8049_v10 = vsub.f32 %v8048_v8, %v5786_v22  ;;  %v8050_v55 = vld [vmem:[#allocation91_spill] sm:$0xff]  ;;  %v8053_v19 = vld [vmem:[#allocation92_spill] sm:$0xff] }
  0xdf   :  { %v2249_v38 = vadd.f32 %v8043_v44, %v8041_v37  ;;  %vm2302_vm4 = vcmp.ge.f32.partialorder %v2245_v33, 1.0  ;;  %v2250_v29 = vadd.f32 %v8046_v26, %v8044_v17  ;;  %v6671_v35 = vsel %vm2301_vm3, 1.0, %v7562_v1  ;;  %v8056_v44 = vld [vmem:[#allocation93_spill] sm:$0xff]  ;;  %v8059_v26 = vld [vmem:[#allocation94_spill] sm:$0xff] }
  0xe0   :  { %v2251_v9 = vadd.f32 %v8049_v10, %v8047_v63  ;;  %v6674_v60 = vsel %vm2302_vm4, 1.0, %v7562_v1  ;;  %vm2303_vm5 = vcmp.ge.f32.partialorder %v2246_v23, 1.0  ;;  %vm2304_vm6 = vcmp.ge.f32.partialorder %v2247_v13, 1.0  ;;  %v8051_v13 = vld [vmem:[#allocation17_spill] sm:$0xff]  ;;  %v8062_v10 = vld [vmem:[#allocation95_spill] sm:$0xff] }
  0xe1   :  { %v6677_v12 = vsel %vm2303_vm5, 1.0, %v7562_v1  ;;  %v6680_v43 = vsel %vm2304_vm6, 1.0, %v7562_v1  ;;  %vm2305_vm7 = vcmp.ge.f32.partialorder %v2248_v58, 1.0  ;;  %vm2306_vm8 = vcmp.ge.f32.partialorder %v2249_v38, 1.0  ;;  %v8054_v58 = vld [vmem:[#allocation18_spill] sm:$0xff]  ;;  %v8057_v38 = vld [vmem:[#allocation19_spill] sm:$0xff] }
  0xe2   :  { %v6683_v7 = vsel %vm2305_vm7, 1.0, %v7562_v1  ;;  %v6686_v22 = vsel %vm2306_vm8, 1.0, %v7562_v1  ;;  %vm2307_vm9 = vcmp.ge.f32.partialorder %v2250_v29, 1.0  ;;  %vm2308_vm10 = vcmp.ge.f32.partialorder %v2251_v9, 1.0  ;;  %v8060_v29 = vld [vmem:[#allocation20_spill] sm:$0xff]  ;;  %v8063_v9 = vld [vmem:[#allocation21_spill] sm:$0xff] }
  0xe3   :  { %v6689_v33 = vsel %vm2307_vm9, 1.0, %v7562_v1  ;;  %v6692_v23 = vsel %vm2308_vm10, 1.0, %v7562_v1  ;;  %v8052_v21 = vsub.f32 %v8051_v13, %v5847_v11  ;;  %v8055_v37 = vsub.f32 %v8054_v58, %v5850_v61  ;;  %v8065_v13 = vld [vmem:[#allocation96_spill] sm:$0xff]  ;;  %v8068_v58 = vld [vmem:[#allocation97_spill] sm:$0xff] }
  0xe4   :  { %v8058_v17 = vsub.f32 %v8057_v38, %v5853_v18  ;;  %v8061_v63 = vsub.f32 %v8060_v29, %v5863_v3  ;;  %v8064_v11 = vsub.f32 %v8063_v9, %v5896_v62  ;;  %v8069_v18 = vld [vmem:[#allocation23_spill] sm:$0xff]  ;;  %v8071_v38 = vld [vmem:[#allocation98_spill] sm:$0xff]  ;;  %v8072_v3 = vld [vmem:[#allocation24_spill] sm:$0xff] }
  0xe5   :  { %v2252_v39 = vadd.f32 %v8052_v21, %v8050_v55  ;;  %v2253_v42 = vadd.f32 %v8055_v37, %v8053_v19  ;;  %v8066_v21 = vld [vmem:[#allocation22_spill] sm:$0xff]  ;;  %v8070_v37 = vsub.f32 %v8069_v18, %v5902_v40 }
  0xe6   :  { %v2254_v27 = vadd.f32 %v8058_v17, %v8056_v44  ;;  %v2255_v8 = vadd.f32 %v8061_v63, %v8059_v26  ;;  %v2256_v55 = vadd.f32 %v8064_v11, %v8062_v10  ;;  %v8067_v61 = vsub.f32 %v8066_v21, %v5899_v30  ;;  %v8074_v63 = vld [vmem:[#allocation99_spill] sm:$0xff]  ;;  %v8077_v11 = vld [vmem:[#allocation100_spill] sm:$0xff] }
  0xe7   :  { %vm2309_vm11 = vcmp.ge.f32.partialorder %v2252_v39, 1.0  ;;  %vm2310_vm12 = vcmp.ge.f32.partialorder %v2253_v42, 1.0  ;;  %v2258_v44 = vadd.f32 %v8070_v37, %v8068_v58  ;;  %v8073_v17 = vsub.f32 %v8072_v3, %v5922_v56  ;;  %v8083_v37 = vld [vmem:[#allocation102_spill] sm:$0xff] }
  0xe8   :  { %v2257_v19 = vadd.f32 %v8067_v61, %v8065_v13  ;;  %v6727_v62 = vsel %vm2309_vm11, 1.0, %v7562_v1  ;;  %v6730_v29 = vsel %vm2310_vm12, 1.0, %v7562_v1  ;;  %vm2311_vm13 = vcmp.ge.f32.partialorder %v2254_v27, 1.0  ;;  %v8080_v61 = vld [vmem:[#allocation101_spill] sm:$0xff] }
  0xe9   :  { %v2259_v26 = vadd.f32 %v8073_v17, %v8071_v38  ;;  %vm2312_vm14 = vcmp.ge.f32.partialorder %v2255_v8, 1.0  ;;  %v6733_v30 = vsel %vm2311_vm13, 1.0, %v7562_v1  ;;  %vm2313_vm15 = vcmp.ge.f32.partialorder %v2256_v55, 1.0  ;;  %v8075_v8 = vld [vmem:[#allocation25_spill] sm:$0xff]  ;;  %v8078_v55 = vld [vmem:[#allocation26_spill] sm:$0xff]  ;;  %v8086_v17 = vld [vmem:[#allocation103_spill] sm:$0xff] }
  0xea   :  { %v6736_v39 = vsel %vm2312_vm14, 1.0, %v7562_v1  ;;  %vm2314_vm0 = vcmp.ge.f32.partialorder %v2257_v19, 1.0  ;;  %v6739_v40 = vsel %vm2313_vm15, 1.0, %v7562_v1  ;;  %vm2315_vm1 = vcmp.ge.f32.partialorder %v2258_v44, 1.0  ;;  %v8081_v19 = vld [vmem:[#allocation27_spill] sm:$0xff]  ;;  %v8084_v44 = vld [vmem:[#allocation28_spill] sm:$0xff] }
  0xeb   :  { %v6742_v56 = vsel %vm2314_vm0, 1.0, %v7562_v1  ;;  %vm2316_vm2 = vcmp.ge.f32.partialorder %v2259_v26, 1.0  ;;  %v6745_v42 = vsel %vm2315_vm1, 1.0, %v7562_v1  ;;  %v8076_v10 = vsub.f32 %v8075_v8, %v5983_v4  ;;  %v8087_v26 = vld [vmem:[#allocation29_spill] sm:$0xff]  ;;  %v8089_v8 = vld [vmem:[#allocation104_spill] sm:$0xff] }
  0xec   :  { %v6748_v27 = vsel %vm2316_vm2, 1.0, %v7562_v1  ;;  %v8079_v13 = vsub.f32 %v8078_v55, %v5986_v14  ;;  %v8082_v58 = vsub.f32 %v8081_v19, %v5989_v32  ;;  %v8085_v38 = vsub.f32 %v8084_v44, %v5999_v34  ;;  %v8092_v55 = vld [vmem:[#allocation105_spill] sm:$0xff]  ;;  %v8093_v32 = vld [vmem:[#allocation31_spill] sm:$0xff]  ;;  %v8095_v19 = vld [vmem:[#allocation106_spill] sm:$0xff] }
  0xed   :  { %v2260_v9 = vadd.f32 %v8076_v10, %v8074_v63  ;;  %v8088_v4 = vsub.f32 %v8087_v26, %v6032_v57  ;;  %v8090_v10 = vld [vmem:[#allocation30_spill] sm:$0xff]  ;;  %v8096_v34 = vld [vmem:[#allocation32_spill] sm:$0xff] }
  0xee   :  { %v2261_v21 = vadd.f32 %v8079_v13, %v8077_v11  ;;  %v2262_v18 = vadd.f32 %v8082_v58, %v8080_v61  ;;  %v2263_v3 = vadd.f32 %v8085_v38, %v8083_v37  ;;  %v8091_v14 = vsub.f32 %v8090_v10, %v6035_v20  ;;  %v8101_v38 = vld [vmem:[#allocation107_spill] sm:$0xff] }
  0xef   :  { %v2264_v63 = vadd.f32 %v8088_v4, %v8086_v17  ;;  %vm2317_vm3 = vcmp.ge.f32.partialorder %v2260_v9, 1.0  ;;  %v8094_v13 = vsub.f32 %v8093_v32, %v6038_v48  ;;  %v8097_v58 = vsub.f32 %v8096_v34, %v6058_v41  ;;  %v8104_v4 = vld [vmem:[#allocation108_spill] sm:$0xff] }
  0xf0   :  { %v2265_v11 = vadd.f32 %v8091_v14, %v8089_v8  ;;  %vm2318_vm4 = vcmp.ge.f32.partialorder %v2261_v21, 1.0  ;;  %v6783_v57 = vsel %vm2317_vm3, 1.0, %v7562_v1  ;;  %vm2319_vm5 = vcmp.ge.f32.partialorder %v2262_v18, 1.0  ;;  %v8107_v14 = vld [vmem:[#allocation109_spill] sm:$0xff] }
  0xf1   :  { %v2266_v61 = vadd.f32 %v8094_v13, %v8092_v55  ;;  %v2267_v37 = vadd.f32 %v8097_v58, %v8095_v19  ;;  %v6786_v44 = vsel %vm2318_vm4, 1.0, %v7562_v1  ;;  %vm2320_vm6 = vcmp.ge.f32.partialorder %v2263_v3, 1.0  ;;  %v8102_v3 = vld [vmem:[#allocation33_spill] sm:$0xff]  ;;  %v8110_v13 = vld [vmem:[#allocation110_spill] sm:$0xff]  ;;  %v8112_v19 = vld [vmem:[#allocation39_spill] sm:$0xff] }
  0xf2   :  { %v6789_v20 = vsel %vm2319_vm5, 1.0, %v7562_v1  ;;  %v6792_v9 = vsel %vm2320_vm6, 1.0, %v7562_v1  ;;  %vm2321_vm7 = vcmp.ge.f32.partialorder %v2264_v63, 1.0  ;;  %vm2322_vm8 = vcmp.ge.f32.partialorder %v2265_v11, 1.0  ;;  %v8105_v63 = vld [vmem:[#allocation34_spill] sm:$0xff]  ;;  %v8108_v11 = vld [vmem:[#allocation35_spill] sm:$0xff] }
  0xf3   :  { %v6795_v48 = vsel %vm2321_vm7, 1.0, %v7562_v1  ;;  %v6798_v41 = vsel %vm2322_vm8, 1.0, %v7562_v1  ;;  %vm2323_vm9 = vcmp.ge.f32.partialorder %v2266_v61, 1.0  ;;  %vm2324_vm10 = vcmp.ge.f32.partialorder %v2267_v37, 1.0  ;;  %v8111_v61 = vld [vmem:[#allocation36_spill] sm:$0xff]  ;;  %v8114_v37 = vld [vmem:[#allocation111_spill] sm:$0xff] }
  0xf4   :  { %8098 = vst [vmem:[#allocation119_spill] sm:$0xff] %v6798_v41  ;;  %v6801_v21 = vsel %vm2323_vm9, 1.0, %v7562_v1  ;;  %v6804_v18 = vsel %vm2324_vm10, 1.0, %v7562_v1  ;;  %v8103_v17 = vsub.f32 %v8102_v3, %v6119_v53  ;;  %v8106_v8 = vsub.f32 %v8105_v63, %v6122_v15  ;;  %v8118_v3 = vld [vmem:[#allocation112_spill] sm:$0xff]  ;;  %v8120_v41 = vld [vmem:[#allocation118_spill] sm:$0xff]  ;;  %v8122_v63 = vld [vmem:[#allocation113_spill] sm:$0xff] }
  0xf5   :  { %8099 = vst [vmem:[#allocation46_spill] sm:$0xff] %v6801_v21  ;;  %8100 = vst [vmem:[#allocation70_spill] sm:$0xff] %v6804_v18  ;;  %v8109_v55 = vsub.f32 %v8108_v11, %v6125_v52  ;;  %v8113_v34 = vsub.f32 %v8111_v61, %v8112_v19  ;;  %v8115_v18 = vld [vmem:[#allocation37_spill] sm:$0xff]  ;;  %v8123_v52 = vld [vmem:[#allocation38_spill] sm:$0xff] }
  0xf6   :  { %v2268_v26 = vadd.f32 %v8103_v17, %v8101_v38  ;;  %v2269_v10 = vadd.f32 %v8106_v8, %v8104_v4  ;;  %v8116_v21 = vld [vmem:[#allocation117_spill] sm:$0xff]  ;;  %v8124_v8 = vsub.f32 %v8123_v52, %v7995_v47  ;;  %v8125_v11 = vld [vmem:[#allocation114_spill] sm:$0xff]  ;;  %v8129_v19 = vld [vmem:[#allocation68_spill] sm:$0xff] }
  0xf7   :  { %v2270_v32 = vadd.f32 %v8109_v55, %v8107_v14  ;;  %v2271_v58 = vadd.f32 %v8113_v34, %v8110_v13  ;;  %v8117_v53 = vsub.f32 %v8115_v18, %v8116_v21  ;;  %v8119_v17 = vld [vmem:[#allocation41_spill] sm:$0xff]  ;;  %v8126_v55 = vld [vmem:[#allocation42_spill] sm:$0xff]  ;;  %v8130_v34 = vld [vmem:[#allocation43_spill] sm:$0xff] }
  0xf8   :  { %v8121_v15 = vsub.f32 %v8119_v17, %v8120_v41  ;;  %vm2325_vm11 = vcmp.ge.f32.partialorder %v2268_v26, 1.0  ;;  %vm2326_vm12 = vcmp.ge.f32.partialorder %v2269_v10, 1.0  ;;  %v2274_v14 = vadd.f32 %v8124_v8, %v8122_v63  ;;  %v8138_v8 = vld [vmem:[#allocation115_spill] sm:$0xff] }
  0xf9   :  { %v2272_v38 = vadd.f32 %v8117_v53, %v8114_v37  ;;  %v8127_v13 = vsub.f32 %v8126_v55, %v6194_v50  ;;  %v6839_v21 = vsel %vm2325_vm11, 1.0, %v7562_v1  ;;  %v6842_v18 = vsel %vm2326_vm12, 1.0, %v7562_v1  ;;  %v8132_v53 = vld [vmem:[#allocation40_spill] sm:$0xff] }
  0xfa   :  { %v2273_v4 = vadd.f32 %v8121_v15, %v8118_v3  ;;  %vm2327_vm13 = vcmp.ge.f32.partialorder %v2270_v32, 1.0  ;;  %vm2328_vm14 = vcmp.ge.f32.partialorder %v2271_v58, 1.0  ;;  %vm2331_vm1 = vcmp.ge.f32.partialorder %v2274_v14, 1.0  ;;  %v8135_v15 = vld [vmem:[#allocation69_spill] sm:$0xff]  ;;  %v8139_v14 = vld [vmem:[#allocation50_spill] sm:$0xff] }
  0xfb   :  { %v2275_v61 = vadd.f32 %v8127_v13, %v8125_v11  ;;  %v6845_v41 = vsel %vm2327_vm13, 1.0, %v7562_v1  ;;  %v6848_v26 = vsel %vm2328_vm14, 1.0, %v7562_v1  ;;  %vm2329_vm15 = vcmp.ge.f32.partialorder %v2272_v38, 1.0  ;;  %v8133_v38 = vld [vmem:[#allocation48_spill] sm:$0xff] }
  0xfc   :  { %vm2330_vm0 = vcmp.ge.f32.partialorder %v2273_v4, 1.0  ;;  %v6851_v47 = vsel %vm2329_vm15, 1.0, %v7562_v1  ;;  %v6857_v10 = vsel %vm2331_vm1, 1.0, %v7562_v1  ;;  %v8131_v58 = vsub.f32 %v8130_v34, %v6255_v0  ;;  %v8136_v4 = vld [vmem:[#allocation44_spill] sm:$0xff] }
  0xfd   :  { %v6854_v50 = vsel %vm2330_vm0, 1.0, %v7562_v1  ;;  %vm2332_vm2 = vcmp.ge.f32.partialorder %v2275_v61, 1.0  ;;  %v8134_v3 = vsub.f32 %v8133_v38, %v7996_v24  ;;  %v8137_v63 = vsub.f32 %v8136_v4, %v7997_v36  ;;  %v8141_v13 = vld [vmem:[#allocation116_spill] sm:$0xff]  ;;  %v8142_v61 = vld [vmem:[#allocation45_spill] sm:$0xff]  ;;  %v8151_v4 = vld [vmem:[#allocation122_spill] sm:$0xff] }
  0xfe   :  { %v6860_v32 = vsel %vm2332_vm2, 1.0, %v7562_v1  ;;  %v2276_v37 = vadd.f32 %v8131_v58, %v8129_v19  ;;  %v8140_v11 = vsub.f32 %v8139_v14, %v7998_v45  ;;  %v8143_v0 = vsub.f32 %v8142_v61, %v7999_v2  ;;  %v8144_v34 = vld [vmem:[#allocation120_spill] sm:$0xff]  ;;  %v8145_v58 = vld [vmem:[#allocation49_spill] sm:$0xff]  ;;  %v8152_v45 = vld [vmem:[#allocation51_spill] sm:$0xff] }
  0xff   :  { %8128 = vst [vmem:[#allocation55_spill] sm:$0xff] %v6860_v32  ;;  %v2277_v17 = vadd.f32 %v8134_v3, %v8132_v53  ;;  %v2278_v52 = vadd.f32 %v8137_v63, %v8135_v15  ;;  %v8146_v32 = vld [vmem:[#allocation126_spill] sm:$0xff]  ;;  %v8148_v38 = vld [vmem:[#allocation121_spill] sm:$0xff]  ;;  %v8153_v63 = vsub.f32 %v8152_v45, %v6330_v54  ;;  %v8172_v45 = vld [vmem:[#allocation123_spill] sm:$0xff] }
 0x100   :  { %v2279_v55 = vadd.f32 %v8140_v11, %v8138_v8  ;;  %v2280_v19 = vadd.f32 %v8143_v0, %v8141_v13  ;;  %v8147_v24 = vsub.f32 %v8145_v58, %v8146_v32  ;;  %vm2333_vm3 = vcmp.ge.f32.partialorder %v2276_v37, 1.0  ;;  %v8149_v36 = vld [vmem:[#allocation53_spill] sm:$0xff]  ;;  %v8160_v11 = vld [vmem:[#allocation71_spill] sm:$0xff] }
 0x101   :  { %vm2334_vm4 = vcmp.ge.f32.partialorder %v2277_v17, 1.0  ;;  %v8150_v3 = vsub.f32 %v8149_v36, %v8001_v49  ;;  %v2283_v8 = vadd.f32 %v8153_v63, %v8151_v4  ;;  %v6895_v2 = vsel %vm2333_vm3, 1.0, %v7562_v1  ;;  %v8162_v13 = vld [vmem:[#allocation65_spill] sm:$0xff]  ;;  %v8169_v36 = vld [vmem:[#allocation54_spill] sm:$0xff]  ;;  %v8173_v63 = vld [vmem:[#allocation56_spill] sm:$0xff] }
 0x102   :  { %v2281_v53 = vadd.f32 %v8147_v24, %v8144_v34  ;;  %v6898_v14 = vsel %vm2334_vm4, 1.0, %v7562_v1  ;;  %vm2335_vm5 = vcmp.ge.f32.partialorder %v2278_v52, 1.0  ;;  %vm2336_vm6 = vcmp.ge.f32.partialorder %v2279_v55, 1.0  ;;  %v8161_v55 = vld [vmem:[#allocation52_spill] sm:$0xff]  ;;  %v8166_v58 = vld [vmem:[#allocation73_spill] sm:$0xff] }
 0x103   :  { %v2282_v15 = vadd.f32 %v8150_v3, %v8148_v38  ;;  %v6901_v32 = vsel %vm2335_vm5, 1.0, %v7562_v1  ;;  %v6904_v37 = vsel %vm2336_vm6, 1.0, %v7562_v1  ;;  %vm2337_vm7 = vcmp.ge.f32.partialorder %v2280_v19, 1.0  ;;  %v8164_v19 = vld [vmem:[#allocation47_spill] sm:$0xff]  ;;  %v8165_v34 = vld [vmem:[#allocation60_spill] sm:$0xff]  ;;  %v8170_v3 = vld [vmem:[#allocation58_spill] sm:$0xff] }
 0x104   :  { %8154 = vst [vmem:[#allocation125_spill] sm:$0xff] %v6901_v32  ;;  %8155 = vst [vmem:[#allocation127_spill] sm:$0xff] %v6904_v37  ;;  %vm2338_vm8 = vcmp.ge.f32.partialorder %v2281_v53, 1.0  ;;  %v6907_v49 = vsel %vm2337_vm7, 1.0, %v7562_v1  ;;  %vm2340_vm10 = vcmp.ge.f32.partialorder %v2283_v8, 1.0  ;;  %v8163_v61 = vsub.f32 %v8161_v55, %v8162_v13  ;;  %v8168_v38 = vld [vmem:[#allocation72_spill] sm:$0xff] }
 0x105   :  { %8156 = vst [vmem:[#allocation76_spill] sm:$0xff] %v6907_v49  ;;  %v6910_v54 = vsel %vm2338_vm8, 1.0, %v7562_v1  ;;  %vm2339_vm9 = vcmp.ge.f32.partialorder %v2282_v15, 1.0  ;;  %v6916_v52 = vsel %vm2340_vm10, 1.0, %v7562_v1  ;;  %v8167_v24 = vsub.f32 %v8165_v34, %v8166_v58  ;;  %v8174_v8 = vld [vmem:[#allocation74_spill] sm:$0xff]  ;;  %v8177_v49 = vld [vmem:[#allocation64_spill] sm:$0xff] }
 0x106   :  { %8157 = vst [vmem:[#allocation61_spill] sm:$0xff] %v6910_v54  ;;  %v6913_v17 = vsel %vm2339_vm9, 1.0, %v7562_v1  ;;  %8159 = vst [vmem:[#allocation63_spill] sm:$0xff] %v6916_v52  ;;  %v2284_v0 = vadd.f32 %v8163_v61, %v8160_v11  ;;  %v8171_v15 = vsub.f32 %v8169_v36, %v8170_v3  ;;  %v8176_v54 = vld [vmem:[#allocation124_spill] sm:$0xff]  ;;  %v8178_v37 = vld [vmem:[#allocation59_spill] sm:$0xff] }
 0x107   :  { %8158 = vst [vmem:[#allocation77_spill] sm:$0xff] %v6913_v17  ;;  %v2285_v53 = vadd.f32 %v8167_v24, %v8164_v19  ;;  %v8175_v17 = vsub.f32 %v8173_v63, %v8174_v8  ;;  %v8179_v55 = vsub.f32 %v8177_v49, %v8178_v37  ;;  %v8180_v13 = vld [vmem:[#allocation128_spill] sm:$0xff]  ;;  %v8181_v61 = vld [vmem:[#allocation62_spill] sm:$0xff]  ;;  %v8182_v32 = vld [vmem:[#allocation75_spill] sm:$0xff] }
 0x108   :  { %v2286_v4 = vadd.f32 %v8171_v15, %v8168_v38  ;;  %v8183_v34 = vsub.f32 %v8181_v61, %v8182_v32  ;;  %vm2341_vm11 = vcmp.ge.f32.partialorder %v2284_v0, 1.0  ;;  %v8184_v58 = vld [vmem:[#allocation129_spill] sm:$0xff]  ;;  %v8187_v3 = vld [vmem:[#allocation130_spill] sm:$0xff]  ;;  %v8188_v15 = vld [vmem:[#allocation67_spill] sm:$0xff]  ;;  %v3692_v61 = vpack.c.bf16 %v6627_v6, %v6624_v25 }
 0x109   :  { %v2287_v52 = vadd.f32 %v8175_v17, %v8172_v45  ;;  %v2288_v11 = vadd.f32 %v8179_v55, %v8176_v54  ;;  %vm2342_vm12 = vcmp.ge.f32.partialorder %v2285_v53, 1.0  ;;  %v8185_v24 = vld [vmem:[#allocation57_spill] sm:$0xff]  ;;  %v8189_v17 = vld [vmem:[#allocation131_spill] sm:$0xff]  ;;  %v6951_v37 = vsel %vm2341_vm11, 1.0, %v7562_v1  ;;  %v2235_v0 = vld [vmem:[#allocation2 + $0x1c0] sm:$0x3] }
 0x10a   :  { %v2289_v19 = vadd.f32 %v8183_v34, %v8180_v13  ;;  %v8186_v38 = vsub.f32 %v8185_v24, %v6424_v5  ;;  %v8190_v45 = vsub.f32 %v8188_v15, %v8189_v17  ;;  %v6954_v49 = vsel %vm2342_vm12, 1.0, %v7562_v1  ;;  %v2178_v5 = vld [vmem:[%s7126_s0 + $0x1c0] sm:$0x3]  ;;  %3852 = vst [vmem:[%s7127_s1 + $0x2b8] sm:$0xff] %v3692_v61  }
 0x10b   :  { %vm2343_vm13 = vcmp.ge.f32.partialorder %v2286_v4, 1.0  ;;  %vm2344_vm14 = vcmp.ge.f32.partialorder %v2287_v52, 1.0  ;;  %vm2345_vm15 = vcmp.ge.f32.partialorder %v2288_v11, 1.0  ;;  %v2292_v55 = vadd.f32 %v2235_v0, %v2178_v5 }
 0x10c   :  { %v2290_v36 = vadd.f32 %v8186_v38, %v8184_v58  ;;  %v2291_v63 = vadd.f32 %v8190_v45, %v8187_v3  ;;  %v6957_v32 = vsel %vm2343_vm13, 1.0, %v7562_v1  ;;  %v6960_v54 = vsel %vm2344_vm14, 1.0, %v7562_v1 }
 0x10d   :  { %vm2346_vm0 = vcmp.ge.f32.partialorder %v2289_v19, 1.0  ;;  %v6966_v53 = vsel %vm2345_vm15, 1.0, %v7562_v1  ;;  %v3382_v11 = vpack.c.bf16 %v6615_v16, %v6615_v16  ;;  %v3689_v13 = vpack.c.bf16 %v6621_v31, %v6618_v28 }
 0x10e   :  { %v6969_v8 = vsel %vm2346_vm0, 1.0, %v7562_v1  ;;  %vm2347_vm1 = vcmp.ge.f32.partialorder %v2290_v36, 1.0  ;;  %vm2348_vm2 = vcmp.ge.f32.partialorder %v2291_v63, 1.0  ;;  %v3695_v34 = vpack.c.bf16 %v6633_v59, %v6630_v46 }
 0x10f   :  { %v6972_v52 = vsel %vm2347_vm1, 1.0, %v7562_v1  ;;  %v6975_v4 = vsel %vm2348_vm2, 1.0, %v7562_v1  ;;  %v3698_v19 = vpack.c.bf16 %v6671_v35, %v6636_v51  ;;  %vm2349_vm3 = vcmp.ge.f32.partialorder %v2292_v55, 1.0  ;;  %3154 = vst [vmem:[%s7127_s1 + $0x2ac] sm:$0xf] %v3382_v11  ;;  %3851 = vst [vmem:[%s7127_s1 + $0x2b0] sm:$0xff] %v3689_v13  }
 0x110   :  { %v3701_v16 = vpack.c.bf16 %v6677_v12, %v6674_v60  ;;  %v3704_v28 = vpack.c.bf16 %v6683_v7, %v6680_v43  ;;  %v3707_v31 = vpack.c.bf16 %v6689_v33, %v6686_v22  ;;  %v2406_v25 = vsel %vm2349_vm3, 1.0, %v7562_v1  ;;  %3853 = vst [vmem:[%s7127_s1 + $0x2c0] sm:$0xff] %v3695_v34   ;;  %v8191_v43 = vld [vmem:[#allocation119_spill] sm:$0xff]  ;;  %v8192_v7 = vld [vmem:[#allocation46_spill] sm:$0xff] }
 0x111   :  { %3854 = vst [vmem:[%s7127_s1 + $0x2c8] sm:$0xff] %v3698_v19   ;;  %v3710_v6 = vpack.c.bf16 %v6727_v62, %v6692_v23  ;;  %v3713_v1 = vpack.c.bf16 %v6733_v30, %v6730_v29  ;;  %v3716_v46 = vpack.c.bf16 %v6739_v40, %v6736_v39  ;;  %v2463_v59 = vsub.f32 %v2292_v55, %v2406_v25  ;;  %v8193_v33 = vld [vmem:[#allocation70_spill] sm:$0xff]  ;;  %v8194_v39 = vld [vmem:[#allocation55_spill] sm:$0xff] }
 0x112   :  { %3855 = vst [vmem:[%s7127_s1 + $0x2d0] sm:$0xff] %v3701_v16   ;;  %3856 = vst [vmem:[%s7127_s1 + $0x2d8] sm:$0xff] %v3704_v28   ;;  %v3719_v51 = vpack.c.bf16 %v6745_v42, %v6742_v56  ;;  %v3722_v35 = vpack.c.bf16 %v6783_v57, %v6748_v27  ;;  %v3725_v60 = vpack.c.bf16 %v6789_v20, %v6786_v44  ;;  %v8195_v56 = vld [vmem:[#allocation125_spill] sm:$0xff]  ;;  %v8196_v27 = vld [vmem:[#allocation127_spill] sm:$0xff] }
 0x113   :  { %3857 = vst [vmem:[%s7127_s1 + $0x2e0] sm:$0xff] %v3707_v31   ;;  %3858 = vst [vmem:[%s7127_s1 + $0x2e8] sm:$0xff] %v3710_v6   ;;  %v3728_v12 = vpack.c.bf16 %v6795_v48, %v6792_v9  ;;  %v3731_v22 = vpack.c.bf16 %v8192_v7, %v8191_v43  ;;  %v3734_v23 = vpack.c.bf16 %v6839_v21, %v8193_v33  ;;  %v8197_v57 = vld [vmem:[#allocation76_spill] sm:$0xff]  ;;  %v8198_v20 = vld [vmem:[#allocation61_spill] sm:$0xff] }
 0x114   :  { %3859 = vst [vmem:[%s7127_s1 + $0x2f0] sm:$0xff] %v3713_v1   ;;  %3860 = vst [vmem:[%s7127_s1 + $0x2f8] sm:$0xff] %v3716_v46   ;;  %v3737_v62 = vpack.c.bf16 %v6845_v41, %v6842_v18  ;;  %v3740_v29 = vpack.c.bf16 %v6851_v47, %v6848_v26  ;;  %v3743_v30 = vpack.c.bf16 %v6857_v10, %v6854_v50  ;;  %v8199_v9 = vld [vmem:[#allocation77_spill] sm:$0xff]  ;;  %v8200_v21 = vld [vmem:[#allocation63_spill] sm:$0xff] }
 0x115   :  { %2520 = vst [vmem:[#allocation2 + $0x1c0] sm:$0x3] %v2463_v59  ;;  %3861 = vst [vmem:[%s7127_s1 + $0x300] sm:$0xff] %v3719_v51   ;;  %v3746_v40 = vpack.c.bf16 %v6895_v2, %v8194_v39  ;;  %v3749_v42 = vpack.c.bf16 %v8195_v56, %v6898_v14  ;;  %v3752_v44 = vpack.c.bf16 %v8197_v57, %v8196_v27 }
 0x116   :  { %3862 = vst [vmem:[%s7127_s1 + $0x308] sm:$0xff] %v3722_v35   ;;  %3863 = vst [vmem:[%s7127_s1 + $0x310] sm:$0xff] %v3725_v60   ;;  %v3755_v48 = vpack.c.bf16 %v8199_v9, %v8198_v20  ;;  %v3758_v18 = vpack.c.bf16 %v6951_v37, %v8200_v21  ;;  %v3761_v41 = vpack.c.bf16 %v6957_v32, %v6954_v49 }
 0x117   :  { %3864 = vst [vmem:[%s7127_s1 + $0x318] sm:$0xff] %v3728_v12   ;;  %3865 = vst [vmem:[%s7127_s1 + $0x320] sm:$0xff] %v3731_v22   ;;  %v3764_v26 = vpack.c.bf16 %v6966_v53, %v6960_v54  ;;  %v3767_v47 = vpack.c.bf16 %v6972_v52, %v6969_v8  ;;  %v3437_v50 = vpack.c.bf16 %v6975_v4, %v6975_v4 }
 0x118   :  { %3866 = vst [vmem:[%s7127_s1 + $0x328] sm:$0xff] %v3734_v23   ;;  %3867 = vst [vmem:[%s7127_s1 + $0x330] sm:$0xff] %v3737_v62   ;;  %v3438_v10 = vpack.c.bf16 %v2406_v25, %v2406_v25 }
 0x119   :  { %3868 = vst [vmem:[%s7127_s1 + $0x338] sm:$0xff] %v3740_v29   ;;  %3869 = vst [vmem:[%s7127_s1 + $0x340] sm:$0xff] %v3743_v30  }
 0x11a   :  { %3870 = vst [vmem:[%s7127_s1 + $0x348] sm:$0xff] %v3746_v40   ;;  %3871 = vst [vmem:[%s7127_s1 + $0x350] sm:$0xff] %v3749_v42  }
 0x11b   :  { %3872 = vst [vmem:[%s7127_s1 + $0x358] sm:$0xff] %v3752_v44   ;;  %3873 = vst [vmem:[%s7127_s1 + $0x360] sm:$0xff] %v3755_v48  }
 0x11c   :  { %3874 = vst [vmem:[%s7127_s1 + $0x368] sm:$0xff] %v3758_v18   ;;  %3875 = vst [vmem:[%s7127_s1 + $0x370] sm:$0xff] %v3761_v41  }
 0x11d   :  { %3876 = vst [vmem:[%s7127_s1 + $0x378] sm:$0xff] %v3764_v26   ;;  %3877 = vst [vmem:[%s7127_s1 + $0x380] sm:$0xff] %v3767_v47  }
 0x11e   :  { %3209 = vst [vmem:[%s7127_s1 + $0x388] sm:$0xf] %v3437_v50  ;;  %3210 = vst [vmem:[%s7127_s1 + $0x38c] sm:$0x1] %v3438_v10 }

// kernel: s_alexnet_forward.17
= control target key start
LH: loop header
LB: loop body
LE: loop exit
PB: predicated region body
PF: predicated region fallthrough
CT: control target
= control target key end

     0   :  { %s1816_s12 = smov 0   ;;  %s1818_s13 = smov 0   ;;  %s2295_s0 = inlined_call_operand.vmem [shape: bf16[400,3200], index: 0, kind: input, shape index: {}]   ;;  %s2296_s1 = inlined_call_operand.vmem [shape: bf16[3200,128], index: 1, kind: input, shape index: {}]   ;;  %s2297_s2 = inlined_call_operand.vmem [shape: f32[1,128], index: 2, kind: input, shape index: {}]   ;;  %s2298_s3 = inlined_call_operand.vmem [shape: f32[400,128], index: 3, kind: output, shape index: {}]  }
   0x1   :  { %s1820_s14 = smov 0   ;;  %s1822_s15 = smov 0  }
   0x2   :  { %s1824_s16 = smov 0  }
   0x3 LB: > { %s25_s17 = sadd.s32 1, %s1787_s15  ;;  %p48_p1 = scmp.ne.s32.totalorder %s1779_s13, %s1775_s12  ;;  %s1791_s16 = sphi %s1824_s16, %s13_s16   ;;  %s1787_s15 = sphi %s1822_s15, %s2302_s15   ;;  %s1783_s14 = sphi %s1820_s14, %s2301_s14   ;;  %s1779_s13 = sphi %s1818_s13, %s2300_s13   ;;  %s1775_s12 = sphi %s1816_s12, %s2299_s12  }
   0x4   : > { %p26_p0 = scmp.ge.s32.totalorder %s25_s17, 25  ;;  %p49_p2 = scmp.eq.s32.totalorder %s1791_s16, 0 }
   0x5   : > { %s41_s19 = sadd.s32 1, %s1779_s13  ;;  %p1465_p5 = scmp.ge.s32.totalorder %s1791_s16, 25 }
   0x6   : > { %s2304_s17 = smov (%p26_p0, %s25_s17), 0  ;;  %p50_p3 = por %p49_p2, %p48_p1 }
   0x7   : > { %s37_s18 = ssub.s32 %s1787_s15, %s2304_s17  ;;  %162 = sbr.rel (%p1465_p5) target bundleno = 51 (0x33), region = 20 }
   0x8   : > { %p39_p4 = scmp.eq.s32.totalorder %s37_s18, 0 }
   0xa   : > { %s1851_s20 = scalar_select %p39_p4, %s1779_s13, %s41_s19  }
   0xe   : > { %165 = sbr.rel (!%p50_p3) target bundleno = 51 (0x33), region = 24  ;;  %s167_s21 = sand.u32 (%p50_p3), 1, %s1779_s13  }
   0xf   : > { %s1466_s22 = sshll.u32 (%p50_p3), %s1787_s15, 2  ;;  %s1675_s23 = smul.u32 (%p50_p3), 200, %s167_s21 }
  0x10   : > { %s1859_s26 = scalar_lea.vmem (%p50_p3), %s2295_s0, %s1466_s22 }
  0x11   : > { %v190_v0 = vld [vmem:[%s1859_s26] sm:$0xf] (%p50_p3)  ;;  %v192_v1 = vld [vmem:[%s1859_s26 + $0x64] sm:$0xf] (%p50_p3)  ;;  %v194_v2 = vld [vmem:[%s1859_s26 + $0xc8] sm:$0xf] (%p50_p3) }
  0x12   : > { %v196_v3 = vld [vmem:[%s1859_s26 + $0x12c] sm:$0xf] (%p50_p3)  ;;  %v198_v4 = vld [vmem:[%s1859_s26 + $0x190] sm:$0xf] (%p50_p3)  ;;  %s1866_s27 = scalar_lea.vmem (%p50_p3), [#allocation3], %s1675_s23 }
  0x13   : > { %191 = vst [vmem:[%s1866_s27] sm:$0xf] (%p50_p3), %v190_v0  ;;  %193 = vst [vmem:[%s1866_s27 + $0x4] sm:$0xf] (%p50_p3), %v192_v1  ;;  %v200_v5 = vld [vmem:[%s1859_s26 + $0x1f4] sm:$0xf] (%p50_p3) }
  0x14   : > { %195 = vst [vmem:[%s1866_s27 + $0x8] sm:$0xf] (%p50_p3), %v194_v2  ;;  %197 = vst [vmem:[%s1866_s27 + $0xc] sm:$0xf] (%p50_p3), %v196_v3  ;;  %v202_v6 = vld [vmem:[%s1859_s26 + $0x258] sm:$0xf] (%p50_p3) }
  0x15   : > { %199 = vst [vmem:[%s1866_s27 + $0x10] sm:$0xf] %v198_v4  ;;  %v204_v7 = vld [vmem:[%s1859_s26 + $0x2bc] sm:$0xf]  ;;  %201 = vst [vmem:[%s1866_s27 + $0x14] sm:$0xf] %v200_v5 }
  0x16   : > { %203 = vst [vmem:[%s1866_s27 + $0x18] sm:$0xf] %v202_v6  ;;  %205 = vst [vmem:[%s1866_s27 + $0x1c] sm:$0xf] %v204_v7  ;;  %v206_v8 = vld [vmem:[%s1859_s26 + $0x320] sm:$0xf] }
  0x17   : > { %v208_v9 = vld [vmem:[%s1859_s26 + $0x384] sm:$0xf]  ;;  %v210_v10 = vld [vmem:[%s1859_s26 + $0x3e8] sm:$0xf]  ;;  %207 = vst [vmem:[%s1866_s27 + $0x20] sm:$0xf] %v206_v8 }
  0x18   : > { %209 = vst [vmem:[%s1866_s27 + $0x24] sm:$0xf] %v208_v9  ;;  %211 = vst [vmem:[%s1866_s27 + $0x28] sm:$0xf] %v210_v10  ;;  %v212_v11 = vld [vmem:[%s1859_s26 + $0x44c] sm:$0xf] }
  0x19   : > { %v214_v12 = vld [vmem:[%s1859_s26 + $0x4b0] sm:$0xf]  ;;  %v216_v13 = vld [vmem:[%s1859_s26 + $0x514] sm:$0xf]  ;;  %213 = vst [vmem:[%s1866_s27 + $0x2c] sm:$0xf] %v212_v11 }
  0x1a   : > { %215 = vst [vmem:[%s1866_s27 + $0x30] sm:$0xf] %v214_v12  ;;  %217 = vst [vmem:[%s1866_s27 + $0x34] sm:$0xf] %v216_v13  ;;  %v218_v14 = vld [vmem:[%s1859_s26 + $0x578] sm:$0xf] }
  0x1b   : > { %v220_v15 = vld [vmem:[%s1859_s26 + $0x5dc] sm:$0xf]  ;;  %v222_v16 = vld [vmem:[%s1859_s26 + $0x640] sm:$0xf]  ;;  %219 = vst [vmem:[%s1866_s27 + $0x38] sm:$0xf] %v218_v14 }
  0x1c   : > { %221 = vst [vmem:[%s1866_s27 + $0x3c] sm:$0xf] %v220_v15  ;;  %223 = vst [vmem:[%s1866_s27 + $0x40] sm:$0xf] %v222_v16  ;;  %v224_v17 = vld [vmem:[%s1859_s26 + $0x6a4] sm:$0xf] }
  0x1d   : > { %v226_v18 = vld [vmem:[%s1859_s26 + $0x708] sm:$0xf]  ;;  %v228_v19 = vld [vmem:[%s1859_s26 + $0x76c] sm:$0xf]  ;;  %225 = vst [vmem:[%s1866_s27 + $0x44] sm:$0xf] %v224_v17 }
  0x1e   : > { %227 = vst [vmem:[%s1866_s27 + $0x48] sm:$0xf] %v226_v18  ;;  %229 = vst [vmem:[%s1866_s27 + $0x4c] sm:$0xf] %v228_v19  ;;  %v230_v20 = vld [vmem:[%s1859_s26 + $0x7d0] sm:$0xf] }
  0x1f   : > { %v232_v21 = vld [vmem:[%s1859_s26 + $0x834] sm:$0xf]  ;;  %v234_v22 = vld [vmem:[%s1859_s26 + $0x898] sm:$0xf]  ;;  %231 = vst [vmem:[%s1866_s27 + $0x50] sm:$0xf] %v230_v20 }
  0x20   : > { %233 = vst [vmem:[%s1866_s27 + $0x54] sm:$0xf] %v232_v21  ;;  %235 = vst [vmem:[%s1866_s27 + $0x58] sm:$0xf] %v234_v22  ;;  %v236_v23 = vld [vmem:[%s1859_s26 + $0x8fc] sm:$0xf] }
  0x21   : > { %v238_v24 = vld [vmem:[%s1859_s26 + $0x960] sm:$0xf]  ;;  %v240_v25 = vld [vmem:[%s1859_s26 + $0x9c4] sm:$0xf]  ;;  %237 = vst [vmem:[%s1866_s27 + $0x5c] sm:$0xf] %v236_v23 }
  0x22   : > { %239 = vst [vmem:[%s1866_s27 + $0x60] sm:$0xf] %v238_v24  ;;  %241 = vst [vmem:[%s1866_s27 + $0x64] sm:$0xf] %v240_v25  ;;  %v242_v26 = vld [vmem:[%s1859_s26 + $0xa28] sm:$0xf] }
  0x23   : > { %v244_v27 = vld [vmem:[%s1859_s26 + $0xa8c] sm:$0xf]  ;;  %v246_v28 = vld [vmem:[%s1859_s26 + $0xaf0] sm:$0xf]  ;;  %243 = vst [vmem:[%s1866_s27 + $0x68] sm:$0xf] %v242_v26 }
  0x24   : > { %245 = vst [vmem:[%s1866_s27 + $0x6c] sm:$0xf] %v244_v27  ;;  %247 = vst [vmem:[%s1866_s27 + $0x70] sm:$0xf] %v246_v28  ;;  %v248_v29 = vld [vmem:[%s1859_s26 + $0xb54] sm:$0xf] }
  0x25   : > { %v250_v30 = vld [vmem:[%s1859_s26 + $0xbb8] sm:$0xf]  ;;  %v252_v31 = vld [vmem:[%s1859_s26 + $0xc1c] sm:$0xf]  ;;  %249 = vst [vmem:[%s1866_s27 + $0x74] sm:$0xf] %v248_v29 }
  0x26   : > { %251 = vst [vmem:[%s1866_s27 + $0x78] sm:$0xf] %v250_v30  ;;  %253 = vst [vmem:[%s1866_s27 + $0x7c] sm:$0xf] %v252_v31  ;;  %v254_v32 = vld [vmem:[%s1859_s26 + $0xc80] sm:$0xf] }
  0x27   : > { %v256_v33 = vld [vmem:[%s1859_s26 + $0xce4] sm:$0xf]  ;;  %v258_v34 = vld [vmem:[%s1859_s26 + $0xd48] sm:$0xf]  ;;  %255 = vst [vmem:[%s1866_s27 + $0x80] sm:$0xf] %v254_v32 }
  0x28   : > { %257 = vst [vmem:[%s1866_s27 + $0x84] sm:$0xf] %v256_v33  ;;  %259 = vst [vmem:[%s1866_s27 + $0x88] sm:$0xf] %v258_v34  ;;  %v260_v35 = vld [vmem:[%s1859_s26 + $0xdac] sm:$0xf] }
  0x29   : > { %v262_v36 = vld [vmem:[%s1859_s26 + $0xe10] sm:$0xf]  ;;  %v264_v37 = vld [vmem:[%s1859_s26 + $0xe74] sm:$0xf]  ;;  %261 = vst [vmem:[%s1866_s27 + $0x8c] sm:$0xf] %v260_v35 }
  0x2a   : > { %263 = vst [vmem:[%s1866_s27 + $0x90] sm:$0xf] %v262_v36  ;;  %265 = vst [vmem:[%s1866_s27 + $0x94] sm:$0xf] %v264_v37  ;;  %v266_v38 = vld [vmem:[%s1859_s26 + $0xed8] sm:$0xf] }
  0x2b   : > { %v268_v39 = vld [vmem:[%s1859_s26 + $0xf3c] sm:$0xf]  ;;  %v270_v40 = vld [vmem:[%s1859_s26 + $0xfa0] sm:$0xf]  ;;  %267 = vst [vmem:[%s1866_s27 + $0x98] sm:$0xf] %v266_v38 }
  0x2c   : > { %269 = vst [vmem:[%s1866_s27 + $0x9c] sm:$0xf] %v268_v39  ;;  %271 = vst [vmem:[%s1866_s27 + $0xa0] sm:$0xf] %v270_v40  ;;  %v272_v41 = vld [vmem:[%s1859_s26 + $0x1004] sm:$0xf] }
  0x2d   : > { %v274_v42 = vld [vmem:[%s1859_s26 + $0x1068] sm:$0xf]  ;;  %v276_v43 = vld [vmem:[%s1859_s26 + $0x10cc] sm:$0xf]  ;;  %273 = vst [vmem:[%s1866_s27 + $0xa4] sm:$0xf] %v272_v41 }
  0x2e   : > { %275 = vst [vmem:[%s1866_s27 + $0xa8] sm:$0xf] %v274_v42  ;;  %277 = vst [vmem:[%s1866_s27 + $0xac] sm:$0xf] %v276_v43  ;;  %v278_v44 = vld [vmem:[%s1859_s26 + $0x1130] sm:$0xf] }
  0x2f   : > { %v280_v45 = vld [vmem:[%s1859_s26 + $0x1194] sm:$0xf]  ;;  %v282_v46 = vld [vmem:[%s1859_s26 + $0x11f8] sm:$0xf]  ;;  %279 = vst [vmem:[%s1866_s27 + $0xb0] sm:$0xf] %v278_v44 }
  0x30   : > { %281 = vst [vmem:[%s1866_s27 + $0xb4] sm:$0xf] %v280_v45  ;;  %283 = vst [vmem:[%s1866_s27 + $0xb8] sm:$0xf] %v282_v46  ;;  %v284_v47 = vld [vmem:[%s1859_s26 + $0x125c] sm:$0xf] }
  0x31   : > { %v286_v48 = vld [vmem:[%s1859_s26 + $0x12c0] sm:$0xf]  ;;  %v288_v49 = vld [vmem:[%s1859_s26 + $0x1324] sm:$0xf]  ;;  %285 = vst [vmem:[%s1866_s27 + $0xbc] sm:$0xf] %v284_v47 }
  0x32   : > { %287 = vst [vmem:[%s1866_s27 + $0xc0] sm:$0xf] %v286_v48  ;;  %289 = vst [vmem:[%s1866_s27 + $0xc4] sm:$0xf] %v288_v49 }
  0x33 PF: > { %p1467_p6 = scmp.ge.s32.totalorder %s1791_s16, 1  ;;  %p423_p7 = scmp.lt.s32.totalorder %s1791_s16, 26 }
  0x35   : > { %p424_p8 = pnand %p1467_p6, %p423_p7 }
  0x36   : > { %s430_s28 = sand.u32 (!%p424_p8), 1, %s1775_s12   ;;  %s1468_s29 = sshll.u32 (!%p424_p8), %s1783_s14, 4 }
  0x37   : > { %427 = sbr.rel (%p424_p8) target bundleno = 445 (0x1bd), region = 69  ;;  %p469_p9 = scmp.lt.s32.totalorder (!%p424_p8), %s1468_s29, 399 }
  0x38   : > { %s1676_s30 = smul.u32 (!%p424_p8), 200, %s430_s28  ;;  %p1470_p10 = scmp.ne.s32.totalorder (!%p424_p8), %s1783_s14, 0 }
  0x3a   : > { %s1972_s8 = scalar_lea.vmem (!%p424_p8), [#allocation3], %s1676_s30 }
  0x3e   : > { %s2306_s29 = smov (!%p469_p9, %s1468_s29), 399  ;;  %493 = sbr.rel (%p1470_p10) target bundleno = 89 (0x59), region = 77 }
  0x3f   : > { %s1469_s4 = sshll.u32 %s2306_s29, 2  ;;  %v1793_v50 = vmov (!%p1470_p10), 0.0  }
  0x40   : > { %s1970_s7 = scalar_lea.vmem %s2296_s1, %s1469_s4  ;;  %494 = vst [vmem:[#allocation2] sm:$0xff] (!%p1470_p10), %v1793_v50  ;;  %495 = vst [vmem:[#allocation2 + $0x8] sm:$0xff] (!%p1470_p10), %v1793_v50 }
  0x41   : > { %496 = vst [vmem:[#allocation2 + $0x10] sm:$0xff] (!%p1470_p10), %v1793_v50  ;;  %497 = vst [vmem:[#allocation2 + $0x18] sm:$0xff] (!%p1470_p10), %v1793_v50 }
  0x42   : > { %498 = vst [vmem:[#allocation2 + $0x20] sm:$0xff] (!%p1470_p10), %v1793_v50  ;;  %499 = vst [vmem:[#allocation2 + $0x28] sm:$0xff] (!%p1470_p10), %v1793_v50 }
  0x43   : > { %500 = vst [vmem:[#allocation2 + $0x30] sm:$0xff] (!%p1470_p10), %v1793_v50  ;;  %501 = vst [vmem:[#allocation2 + $0x38] sm:$0xff] (!%p1470_p10), %v1793_v50 }
  0x44   : > { %502 = vst [vmem:[#allocation2 + $0x40] sm:$0xff] (!%p1470_p10), %v1793_v50  ;;  %503 = vst [vmem:[#allocation2 + $0x48] sm:$0xff] (!%p1470_p10), %v1793_v50 }
  0x45   : > { %504 = vst [vmem:[#allocation2 + $0x50] sm:$0xff] %v1793_v50  ;;  %505 = vst [vmem:[#allocation2 + $0x58] sm:$0xff] %v1793_v50 }
  0x46   : > { %506 = vst [vmem:[#allocation2 + $0x60] sm:$0xff] %v1793_v50  ;;  %507 = vst [vmem:[#allocation2 + $0x68] sm:$0xff] %v1793_v50 }
  0x47   : > { %508 = vst [vmem:[#allocation2 + $0x70] sm:$0xff] %v1793_v50  ;;  %509 = vst [vmem:[#allocation2 + $0x78] sm:$0xff] %v1793_v50 }
  0x48   : > { %510 = vst [vmem:[#allocation2 + $0x80] sm:$0xff] %v1793_v50  ;;  %511 = vst [vmem:[#allocation2 + $0x88] sm:$0xff] %v1793_v50 }
  0x49   : > { %512 = vst [vmem:[#allocation2 + $0x90] sm:$0xff] %v1793_v50  ;;  %513 = vst [vmem:[#allocation2 + $0x98] sm:$0xff] %v1793_v50 }
  0x4a   : > { %514 = vst [vmem:[#allocation2 + $0xa0] sm:$0xff] %v1793_v50  ;;  %515 = vst [vmem:[#allocation2 + $0xa8] sm:$0xff] %v1793_v50 }
  0x4b   : > { %516 = vst [vmem:[#allocation2 + $0xb0] sm:$0xff] %v1793_v50  ;;  %517 = vst [vmem:[#allocation2 + $0xb8] sm:$0xff] %v1793_v50 }
  0x4c   : > { %518 = vst [vmem:[#allocation2 + $0xc0] sm:$0xff] %v1793_v50  ;;  %519 = vst [vmem:[#allocation2 + $0xc8] sm:$0xff] %v1793_v50 }
  0x4d   : > { %520 = vst [vmem:[#allocation2 + $0xd0] sm:$0xff] %v1793_v50  ;;  %521 = vst [vmem:[#allocation2 + $0xd8] sm:$0xff] %v1793_v50 }
  0x4e   : > { %522 = vst [vmem:[#allocation2 + $0xe0] sm:$0xff] %v1793_v50  ;;  %523 = vst [vmem:[#allocation2 + $0xe8] sm:$0xff] %v1793_v50 }
  0x4f   : > { %524 = vst [vmem:[#allocation2 + $0xf0] sm:$0xff] %v1793_v50  ;;  %525 = vst [vmem:[#allocation2 + $0xf8] sm:$0xff] %v1793_v50 }
  0x50   : > { %526 = vst [vmem:[#allocation2 + $0x100] sm:$0xff] %v1793_v50  ;;  %527 = vst [vmem:[#allocation2 + $0x108] sm:$0xff] %v1793_v50 }
  0x51   : > { %528 = vst [vmem:[#allocation2 + $0x110] sm:$0xff] %v1793_v50  ;;  %529 = vst [vmem:[#allocation2 + $0x118] sm:$0xff] %v1793_v50 }
  0x52   : > { %530 = vst [vmem:[#allocation2 + $0x120] sm:$0xff] %v1793_v50  ;;  %531 = vst [vmem:[#allocation2 + $0x128] sm:$0xff] %v1793_v50 }
  0x53   : > { %532 = vst [vmem:[#allocation2 + $0x130] sm:$0xff] %v1793_v50  ;;  %533 = vst [vmem:[#allocation2 + $0x138] sm:$0xff] %v1793_v50 }
  0x54   : > { %534 = vst [vmem:[#allocation2 + $0x140] sm:$0xff] %v1793_v50  ;;  %535 = vst [vmem:[#allocation2 + $0x148] sm:$0xff] %v1793_v50 }
  0x55   : > { %536 = vst [vmem:[#allocation2 + $0x150] sm:$0xff] %v1793_v50  ;;  %537 = vst [vmem:[#allocation2 + $0x158] sm:$0xff] %v1793_v50 }
  0x56   : > { %538 = vst [vmem:[#allocation2 + $0x160] sm:$0xff] %v1793_v50  ;;  %539 = vst [vmem:[#allocation2 + $0x168] sm:$0xff] %v1793_v50 }
  0x57   : > { %540 = vst [vmem:[#allocation2 + $0x170] sm:$0xff] %v1793_v50  ;;  %541 = vst [vmem:[#allocation2 + $0x178] sm:$0xff] %v1793_v50 }
  0x58   : > { %542 = vst [vmem:[#allocation2 + $0x180] sm:$0xff] %v1793_v50  ;;  %543 = vst [vmem:[#allocation2 + $0x188] sm:$0xff] %v1793_v50 }
  0x59 PF: > { %v1720_v51 = vld [vmem:[%s1970_s7] sm:$0xff]   ;;  %v1794_v52 = vmov 0.0   ;;  %v1721_v53 = vld [vmem:[%s1970_s7 + $0x8] sm:$0xff]   ;;  %vm1795_vm0 = vmmov 0   ;;  %v1722_v54 = vld [vmem:[%s1970_s7 + $0x10] sm:$0xff]   ;;  %p1504_p11 = scmp.ne.s32.totalorder %s1783_s14, 24 }
  0x5a   : > { %1543 = vmatprep.subr.bf16.mxu0 %v1794_v52  ;;  %1659 = vmatprep.subr.bf16.mxu1 %v1794_v52  ;;  %v1723_v55 = vld [vmem:[%s1970_s7 + $0x18] sm:$0xff]   ;;  %v1724_v56 = vld [vmem:[%s1970_s7 + $0x20] sm:$0xff]   ;;  %v1725_v57 = vld [vmem:[%s1970_s7 + $0x28] sm:$0xff]  }
  0x5b   : > { %1544 = vmatpush3.bf16.msra.mxu0 %v1720_v51  ;;  %1667 = vmatpush3.bf16.msra.mxu1 %v1720_v51  ;;  %v1726_v58 = vld [vmem:[%s1970_s7 + $0x30] sm:$0xff]   ;;  %v1727_v59 = vld [vmem:[%s1970_s7 + $0x38] sm:$0xff]   ;;  %v1731_v63 = vld [vmem:[%s1972_s8 + $0x70] sm:$0xff]  }
  0x5c   : > { %1545 = vmatprep.subr.bf16.mxu0 %v1794_v52  ;;  %1660 = vmatprep.subr.bf16.mxu1 %v1794_v52  ;;  %v1728_v60 = vld [vmem:[%s1972_s8] sm:$0xff]   ;;  %v1729_v61 = vld [vmem:[%s1972_s8 + $0x68] sm:$0xff]   ;;  %v1732_v0 = vld [vmem:[%s1972_s8 + $0x10] sm:$0xff]  }
  0x5d   : > { %1559 = vmatprep.mubr.msk.bf16.mxu0 %vm1795_vm0, %v1794_v52  ;;  %1611 = vmatprep.mubr.msk.bf16.mxu1 %vm1795_vm0, %v1794_v52  ;;  %v1730_v62 = vld [vmem:[%s1972_s8 + $0x8] sm:$0xff]   ;;  %v1733_v1 = vld [vmem:[%s1972_s8 + $0x78] sm:$0xff]   ;;  %v1735_v3 = vld [vmem:[%s1972_s8 + $0x80] sm:$0xff]  }
  0x5e   : > { %v1734_v2 = vld [vmem:[%s1972_s8 + $0x18] sm:$0xff]   ;;  %v1736_v4 = vld [vmem:[%s1972_s8 + $0x20] sm:$0xff]   ;;  %v1737_v5 = vld [vmem:[%s1972_s8 + $0x88] sm:$0xff]  }
  0x5f   : > { %1546 = vmatpush3.bf16.msra.mxu0 %v1721_v53  ;;  %1668 = vmatpush3.bf16.msra.mxu1 %v1721_v53  ;;  %v1738_v6 = vld [vmem:[%s1972_s8 + $0x28] sm:$0xff]   ;;  %v1739_v7 = vld [vmem:[%s1972_s8 + $0x90] sm:$0xff]   ;;  %v1741_v9 = vld [vmem:[%s1972_s8 + $0x98] sm:$0xff]  }
  0x60   : > { %1547 = vmatprep.subr.bf16.mxu0 %v1794_v52  ;;  %1661 = vmatprep.subr.bf16.mxu1 %v1794_v52  ;;  %v1740_v8 = vld [vmem:[%s1972_s8 + $0x30] sm:$0xff]   ;;  %v1742_v10 = vld [vmem:[%s1972_s8 + $0x38] sm:$0xff]   ;;  %v1743_v11 = vld [vmem:[%s1972_s8 + $0xa0] sm:$0xff]  }
  0x61   : > { %v1744_v12 = vld [vmem:[%s1972_s8 + $0x40] sm:$0xff]   ;;  %v1745_v13 = vld [vmem:[%s1972_s8 + $0xa8] sm:$0xff]   ;;  %v1747_v15 = vld [vmem:[%s1972_s8 + $0xb0] sm:$0xff]  }
  0x62   : > { %v1746_v14 = vld [vmem:[%s1972_s8 + $0x48] sm:$0xff]   ;;  %v1748_v16 = vld [vmem:[%s1972_s8 + $0x50] sm:$0xff]   ;;  %v1749_v17 = vld [vmem:[%s1972_s8 + $0xb8] sm:$0xff]  }
  0x63   : > { %1548 = vmatpush3.bf16.msra.mxu0 %v1722_v54  ;;  %1669 = vmatpush3.bf16.msra.mxu1 %v1722_v54  ;;  %v1750_v18 = vld [vmem:[%s1972_s8 + $0x58] sm:$0xff]   ;;  %v1751_v19 = vld [vmem:[%s1972_s8 + $0xc0] sm:$0xff]   ;;  %v544_v21 = vld [vmem:[#allocation2] sm:$0xff] }
  0x64   : > { %1549 = vmatprep.subr.bf16.mxu0 %v1794_v52  ;;  %1662 = vmatprep.subr.bf16.mxu1 %v1794_v52  ;;  %v1752_v20 = vld [vmem:[%s1972_s8 + $0x60] sm:$0xff]   ;;  %v545_v24 = vld [vmem:[#allocation2 + $0x8] sm:$0xff]  ;;  %v572_v38 = vld [vmem:[#allocation2 + $0xe0] sm:$0xff] }
  0x65   : > { %v570_v22 = vld [vmem:[#allocation2 + $0xd0] sm:$0xff]  ;;  %v571_v26 = vld [vmem:[#allocation2 + $0xd8] sm:$0xff]  ;;  %v573_v42 = vld [vmem:[#allocation2 + $0xe8] sm:$0xff] }
  0x66   : > { %v546_v37 = vld [vmem:[#allocation2 + $0x10] sm:$0xff]  ;;  %v547_v40 = vld [vmem:[#allocation2 + $0x18] sm:$0xff]  ;;  %v548_v53 = vld [vmem:[#allocation2 + $0x20] sm:$0xff] }
  0x67   : > { %1550 = vmatpush3.bf16.msra.mxu0 %v1723_v55  ;;  %1670 = vmatpush3.bf16.msra.mxu1 %v1723_v55  ;;  %v574_v54 = vld [vmem:[#allocation2 + $0xf0] sm:$0xff] }
  0x68   : > { %1551 = vmatprep.subr.bf16.mxu0 %v1794_v52  ;;  %1663 = vmatprep.subr.bf16.mxu1 %v1794_v52 }
  0x6b   : > { %1552 = vmatpush3.bf16.msra.mxu0 %v1724_v56  ;;  %1671 = vmatpush3.bf16.msra.mxu1 %v1724_v56  ;;  %v549_v56 = vld [vmem:[#allocation2 + $0x28] sm:$0xff] }
  0x6c   : > { %1553 = vmatprep.subr.bf16.mxu0 %v1794_v52  ;;  %1664 = vmatprep.subr.bf16.mxu1 %v1794_v52 }
  0x6f   : > { %1554 = vmatpush3.bf16.msra.mxu0 %v1725_v57  ;;  %1672 = vmatpush3.bf16.msra.mxu1 %v1725_v57 }
  0x70   : > { %1555 = vmatprep.subr.bf16.mxu0 %v1794_v52  ;;  %1665 = vmatprep.subr.bf16.mxu1 %v1794_v52 }
  0x73   : > { %1556 = vmatpush3.bf16.msra.mxu0 %v1726_v58  ;;  %1673 = vmatpush3.bf16.msra.mxu1 %v1726_v58  ;;  %v575_v58 = vld [vmem:[#allocation2 + $0xf8] sm:$0xff] }
  0x74   : > { %1557 = vmatprep.subr.bf16.mxu0 %v1794_v52  ;;  %1666 = vmatprep.subr.bf16.mxu1 %v1794_v52 }
  0x77   : > { %1558 = vmatpush3.bf16.msra.mxu0 %v1727_v59  ;;  %1674 = vmatpush3.bf16.msra.mxu1 %v1727_v59 }
  0x7a   : > { %1560 = vmatmul.mubr.bf16.vlgmr.msra.gmra.mrb[0].mxu0 %v1728_v60  ;;  %1612 = vmatmul.mubr.bf16.vlgmr.msra.gmra.mrb[0].mxu1 %v1729_v61 }
  0x7b   : > { %1563 = vmatprep.mubr.msk.bf16.mxu0 %vm1795_vm0, %v1794_v52  ;;  %1615 = vmatprep.mubr.msk.bf16.mxu1 %vm1795_vm0, %v1794_v52 }
  0x82   : > { %1564 = vmatmul.mubr.bf16.gmra.mrb[4].mxu0 %v1730_v62  ;;  %1616 = vmatmul.mubr.bf16.gmra.mrb[4].mxu1 %v1731_v63 }
  0x83   : > { %1567 = vmatprep.mubr.msk.bf16.mxu0 %vm1795_vm0, %v1794_v52  ;;  %1619 = vmatprep.mubr.msk.bf16.mxu1 %vm1795_vm0, %v1794_v52 }
  0x8a   : > { %1568 = vmatmul.mubr.bf16.gmra.mrb[8].mxu0 %v1732_v0  ;;  %1620 = vmatmul.mubr.bf16.gmra.mrb[8].mxu1 %v1733_v1 }
  0x8b   : > { %1571 = vmatprep.mubr.msk.bf16.mxu0 %vm1795_vm0, %v1794_v52  ;;  %1623 = vmatprep.mubr.msk.bf16.mxu1 %vm1795_vm0, %v1794_v52 }
  0x92   : > { %1572 = vmatmul.mubr.bf16.gmra.mrb[12].mxu0 %v1734_v2  ;;  %1624 = vmatmul.mubr.bf16.gmra.mrb[12].mxu1 %v1735_v3 }
  0x93   : > { %1575 = vmatprep.mubr.msk.bf16.mxu0 %vm1795_vm0, %v1794_v52  ;;  %1627 = vmatprep.mubr.msk.bf16.mxu1 %vm1795_vm0, %v1794_v52 }
  0x9a   : > { %1576 = vmatmul.mubr.bf16.gmra.mrb[16].mxu0 %v1736_v4  ;;  %1628 = vmatmul.mubr.bf16.gmra.mrb[16].mxu1 %v1737_v5  ;;  %v550_v5 = vld [vmem:[#allocation2 + $0x30] sm:$0xff] }
  0x9b   : > { %1579 = vmatprep.mubr.msk.bf16.mxu0 %vm1795_vm0, %v1794_v52  ;;  %1631 = vmatprep.mubr.msk.bf16.mxu1 %vm1795_vm0, %v1794_v52 }
  0xa2   : > { %1580 = vmatmul.mubr.bf16.gmra.mrb[20].mxu0 %v1738_v6  ;;  %1632 = vmatmul.mubr.bf16.gmra.mrb[20].mxu1 %v1739_v7  ;;  %v576_v6 = vld [vmem:[#allocation2 + $0x100] sm:$0xff] }
  0xa3   : > { %1583 = vmatprep.mubr.msk.bf16.mxu0 %vm1795_vm0, %v1794_v52  ;;  %1635 = vmatprep.mubr.msk.bf16.mxu1 %vm1795_vm0, %v1794_v52 }
  0xaa   : > { %1584 = vmatmul.mubr.bf16.gmra.mrb[24].mxu0 %v1740_v8  ;;  %1636 = vmatmul.mubr.bf16.gmra.mrb[24].mxu1 %v1741_v9  ;;  %v551_v8 = vld [vmem:[#allocation2 + $0x38] sm:$0xff] }
  0xab   : > { %1587 = vmatprep.mubr.msk.bf16.mxu0 %vm1795_vm0, %v1794_v52  ;;  %1639 = vmatprep.mubr.msk.bf16.mxu1 %vm1795_vm0, %v1794_v52 }
  0xb2   : > { %1588 = vmatmul.mubr.bf16.gmra.mrb[28].mxu0 %v1742_v10  ;;  %1640 = vmatmul.mubr.bf16.gmra.mrb[28].mxu1 %v1743_v11  ;;  %v577_v10 = vld [vmem:[#allocation2 + $0x108] sm:$0xff] }
  0xb3   : > { %1591 = vmatprep.mubr.msk.bf16.mxu0 %vm1795_vm0, %v1794_v52  ;;  %1643 = vmatprep.mubr.msk.bf16.mxu1 %vm1795_vm0, %v1794_v52 }
  0xba   : > { %1592 = vmatmul.mubr.bf16.gmra.mrb[32].mxu0 %v1744_v12  ;;  %1644 = vmatmul.mubr.bf16.gmra.mrb[32].mxu1 %v1745_v13 }
  0xbb   : > { %1595 = vmatprep.mubr.msk.bf16.mxu0 %vm1795_vm0, %v1794_v52  ;;  %1647 = vmatprep.mubr.msk.bf16.mxu1 %vm1795_vm0, %v1794_v52 }
  0xc2   : > { %1596 = vmatmul.mubr.bf16.gmra.mrb[36].mxu0 %v1746_v14  ;;  %1648 = vmatmul.mubr.bf16.gmra.mrb[36].mxu1 %v1747_v15 }
  0xc3   : > { %1599 = vmatprep.mubr.msk.bf16.mxu0 %vm1795_vm0, %v1794_v52  ;;  %1651 = vmatprep.mubr.msk.bf16.mxu1 %vm1795_vm0, %v1794_v52 }
  0xca   : > { %1600 = vmatmul.mubr.bf16.gmra.mrb[40].mxu0 %v1748_v16  ;;  %1652 = vmatmul.mubr.bf16.gmra.mrb[40].mxu1 %v1749_v17 }
  0xcb   : > { %1603 = vmatprep.mubr.msk.bf16.mxu0 %vm1795_vm0, %v1794_v52  ;;  %1655 = vmatprep.mubr.msk.bf16.mxu1 %vm1795_vm0, %v1794_v52 }
  0xd2   : > { %1604 = vmatmul.mubr.bf16.gmra.mrb[44].mxu0 %v1750_v18  ;;  %1656 = vmatmul.mubr.bf16.gmra.mrb[44].mxu1 %v1751_v19 }
  0xd3   : > { %1607 = vmatprep.mubr.msk.bf16.mxu0 %vm1795_vm0, %v1794_v52 }
  0xda   : > { %1608 = vmatmul.mubr.bf16.gmra.mrb[48].mxu0 %v1752_v20 }
 0x14d   : > { %v892_v23 = vpop.f32.mrb[0].mxu0  ;;  %v996_v25 = vpop.f32.mrb[0].mxu1 }
 0x14e   : > { %v1091_v27 = vadd.f32 %v892_v23, %v544_v21  ;;  %v1561_v28 = vpop.f32.mrb[1].mxu0  ;;  %v1117_v29 = vadd.f32 %v996_v25, %v570_v22  ;;  %v1613_v30 = vpop.f32.mrb[1].mxu1  ;;  %v552_v21 = vld [vmem:[#allocation2 + $0x40] sm:$0xff]  ;;  %v578_v22 = vld [vmem:[#allocation2 + $0x110] sm:$0xff] }
 0x14f   : > { %v895_v31 = vpop.f32.mrb[2].mxu0  ;;  %v999_v32 = vpop.f32.mrb[2].mxu1 }
 0x150   : > { %1141 = vst [vmem:[#allocation2] sm:$0xff] %v1091_v27  ;;  %v1092_v33 = vadd.f32 %v895_v31, %v545_v24  ;;  %v1562_v34 = vpop.f32.mrb[3].mxu0  ;;  %1167 = vst [vmem:[#allocation2 + $0xd0] sm:$0xff] %v1117_v29  ;;  %v1118_v35 = vadd.f32 %v999_v32, %v571_v26  ;;  %v1614_v36 = vpop.f32.mrb[3].mxu1  ;;  %v553_v24 = vld [vmem:[#allocation2 + $0x48] sm:$0xff]  ;;  %v579_v26 = vld [vmem:[#allocation2 + $0x118] sm:$0xff] }
 0x152   : > { %1142 = vst [vmem:[#allocation2 + $0x8] sm:$0xff] %v1092_v33  ;;  %1168 = vst [vmem:[#allocation2 + $0xd8] sm:$0xff] %v1118_v35 }
 0x155   : > { %v900_v39 = vpop.f32.mrb[4].mxu0  ;;  %v1004_v41 = vpop.f32.mrb[4].mxu1 }
 0x156   : > { %v1093_v43 = vadd.f32 %v900_v39, %v546_v37  ;;  %v1565_v44 = vpop.f32.mrb[5].mxu0  ;;  %v1119_v45 = vadd.f32 %v1004_v41, %v572_v38  ;;  %v1617_v46 = vpop.f32.mrb[5].mxu1  ;;  %v554_v37 = vld [vmem:[#allocation2 + $0x50] sm:$0xff]  ;;  %v580_v38 = vld [vmem:[#allocation2 + $0x120] sm:$0xff] }
 0x157   : > { %v903_v47 = vpop.f32.mrb[6].mxu0  ;;  %v1007_v48 = vpop.f32.mrb[6].mxu1 }
 0x158   : > { %1143 = vst [vmem:[#allocation2 + $0x10] sm:$0xff] %v1093_v43  ;;  %v1094_v49 = vadd.f32 %v903_v47, %v547_v40  ;;  %v1566_v50 = vpop.f32.mrb[7].mxu0  ;;  %1169 = vst [vmem:[#allocation2 + $0xe0] sm:$0xff] %v1119_v45  ;;  %v1120_v51 = vadd.f32 %v1007_v48, %v573_v42  ;;  %v1618_v52 = vpop.f32.mrb[7].mxu1  ;;  %v555_v40 = vld [vmem:[#allocation2 + $0x58] sm:$0xff]  ;;  %v581_v42 = vld [vmem:[#allocation2 + $0x128] sm:$0xff] }
 0x15a   : > { %1144 = vst [vmem:[#allocation2 + $0x18] sm:$0xff] %v1094_v49  ;;  %1170 = vst [vmem:[#allocation2 + $0xe8] sm:$0xff] %v1120_v51 }
 0x15d   : > { %v908_v55 = vpop.f32.mrb[8].mxu0  ;;  %v1012_v57 = vpop.f32.mrb[8].mxu1 }
 0x15e   : > { %v1095_v59 = vadd.f32 %v908_v55, %v548_v53  ;;  %v1569_v60 = vpop.f32.mrb[9].mxu0  ;;  %v1121_v61 = vadd.f32 %v1012_v57, %v574_v54  ;;  %v1621_v62 = vpop.f32.mrb[9].mxu1  ;;  %v556_v53 = vld [vmem:[#allocation2 + $0x60] sm:$0xff]  ;;  %v582_v54 = vld [vmem:[#allocation2 + $0x130] sm:$0xff] }
 0x15f   : > { %v911_v63 = vpop.f32.mrb[10].mxu0  ;;  %v1015_v0 = vpop.f32.mrb[10].mxu1 }
 0x160   : > { %1145 = vst [vmem:[#allocation2 + $0x20] sm:$0xff] %v1095_v59  ;;  %v1096_v1 = vadd.f32 %v911_v63, %v549_v56  ;;  %v1570_v2 = vpop.f32.mrb[11].mxu0  ;;  %1171 = vst [vmem:[#allocation2 + $0xf0] sm:$0xff] %v1121_v61  ;;  %v1122_v3 = vadd.f32 %v1015_v0, %v575_v58  ;;  %v1622_v4 = vpop.f32.mrb[11].mxu1  ;;  %v557_v56 = vld [vmem:[#allocation2 + $0x68] sm:$0xff]  ;;  %v583_v58 = vld [vmem:[#allocation2 + $0x138] sm:$0xff] }
 0x162   : > { %1146 = vst [vmem:[#allocation2 + $0x28] sm:$0xff] %v1096_v1  ;;  %1172 = vst [vmem:[#allocation2 + $0xf8] sm:$0xff] %v1122_v3 }
 0x165   : > { %v916_v7 = vpop.f32.mrb[12].mxu0  ;;  %v1020_v9 = vpop.f32.mrb[12].mxu1 }
 0x166   : > { %v1097_v11 = vadd.f32 %v916_v7, %v550_v5  ;;  %v1573_v12 = vpop.f32.mrb[13].mxu0  ;;  %v1123_v13 = vadd.f32 %v1020_v9, %v576_v6  ;;  %v1625_v14 = vpop.f32.mrb[13].mxu1  ;;  %v558_v5 = vld [vmem:[#allocation2 + $0x70] sm:$0xff]  ;;  %v584_v6 = vld [vmem:[#allocation2 + $0x140] sm:$0xff] }
 0x167   : > { %v919_v15 = vpop.f32.mrb[14].mxu0  ;;  %v1023_v16 = vpop.f32.mrb[14].mxu1 }
 0x168   : > { %1147 = vst [vmem:[#allocation2 + $0x30] sm:$0xff] %v1097_v11  ;;  %v1098_v17 = vadd.f32 %v919_v15, %v551_v8  ;;  %v1574_v18 = vpop.f32.mrb[15].mxu0  ;;  %1173 = vst [vmem:[#allocation2 + $0x100] sm:$0xff] %v1123_v13  ;;  %v1124_v19 = vadd.f32 %v1023_v16, %v577_v10  ;;  %v1626_v20 = vpop.f32.mrb[15].mxu1  ;;  %v559_v8 = vld [vmem:[#allocation2 + $0x78] sm:$0xff]  ;;  %v585_v10 = vld [vmem:[#allocation2 + $0x148] sm:$0xff] }
 0x16a   : > { %1148 = vst [vmem:[#allocation2 + $0x38] sm:$0xff] %v1098_v17  ;;  %1174 = vst [vmem:[#allocation2 + $0x108] sm:$0xff] %v1124_v19 }
 0x16d   : > { %v924_v23 = vpop.f32.mrb[16].mxu0  ;;  %v1028_v25 = vpop.f32.mrb[16].mxu1 }
 0x16e   : > { %v1099_v27 = vadd.f32 %v924_v23, %v552_v21  ;;  %v1577_v28 = vpop.f32.mrb[17].mxu0  ;;  %v1125_v29 = vadd.f32 %v1028_v25, %v578_v22  ;;  %v1629_v30 = vpop.f32.mrb[17].mxu1  ;;  %v560_v21 = vld [vmem:[#allocation2 + $0x80] sm:$0xff]  ;;  %v586_v22 = vld [vmem:[#allocation2 + $0x150] sm:$0xff] }
 0x16f   : > { %v927_v31 = vpop.f32.mrb[18].mxu0  ;;  %v1031_v32 = vpop.f32.mrb[18].mxu1 }
 0x170   : > { %1149 = vst [vmem:[#allocation2 + $0x40] sm:$0xff] %v1099_v27  ;;  %v1100_v33 = vadd.f32 %v927_v31, %v553_v24  ;;  %v1578_v34 = vpop.f32.mrb[19].mxu0  ;;  %1175 = vst [vmem:[#allocation2 + $0x110] sm:$0xff] %v1125_v29  ;;  %v1126_v35 = vadd.f32 %v1031_v32, %v579_v26  ;;  %v1630_v36 = vpop.f32.mrb[19].mxu1  ;;  %v561_v24 = vld [vmem:[#allocation2 + $0x88] sm:$0xff]  ;;  %v587_v26 = vld [vmem:[#allocation2 + $0x158] sm:$0xff] }
 0x172   : > { %1150 = vst [vmem:[#allocation2 + $0x48] sm:$0xff] %v1100_v33  ;;  %1176 = vst [vmem:[#allocation2 + $0x118] sm:$0xff] %v1126_v35 }
 0x175   : > { %v932_v39 = vpop.f32.mrb[20].mxu0  ;;  %v1036_v41 = vpop.f32.mrb[20].mxu1 }
 0x176   : > { %v1101_v43 = vadd.f32 %v932_v39, %v554_v37  ;;  %v1581_v44 = vpop.f32.mrb[21].mxu0  ;;  %v1127_v45 = vadd.f32 %v1036_v41, %v580_v38  ;;  %v1633_v46 = vpop.f32.mrb[21].mxu1  ;;  %v562_v37 = vld [vmem:[#allocation2 + $0x90] sm:$0xff]  ;;  %v588_v38 = vld [vmem:[#allocation2 + $0x160] sm:$0xff] }
 0x177   : > { %v935_v47 = vpop.f32.mrb[22].mxu0  ;;  %v1039_v48 = vpop.f32.mrb[22].mxu1 }
 0x178   : > { %1151 = vst [vmem:[#allocation2 + $0x50] sm:$0xff] %v1101_v43  ;;  %v1102_v49 = vadd.f32 %v935_v47, %v555_v40  ;;  %v1582_v50 = vpop.f32.mrb[23].mxu0  ;;  %1177 = vst [vmem:[#allocation2 + $0x120] sm:$0xff] %v1127_v45  ;;  %v1128_v51 = vadd.f32 %v1039_v48, %v581_v42  ;;  %v1634_v52 = vpop.f32.mrb[23].mxu1  ;;  %v563_v40 = vld [vmem:[#allocation2 + $0x98] sm:$0xff]  ;;  %v589_v42 = vld [vmem:[#allocation2 + $0x168] sm:$0xff] }
 0x17a   : > { %1152 = vst [vmem:[#allocation2 + $0x58] sm:$0xff] %v1102_v49  ;;  %1178 = vst [vmem:[#allocation2 + $0x128] sm:$0xff] %v1128_v51 }
 0x17d   : > { %v940_v55 = vpop.f32.mrb[24].mxu0  ;;  %v1044_v57 = vpop.f32.mrb[24].mxu1 }
 0x17e   : > { %v1103_v59 = vadd.f32 %v940_v55, %v556_v53  ;;  %v1585_v60 = vpop.f32.mrb[25].mxu0  ;;  %v1129_v61 = vadd.f32 %v1044_v57, %v582_v54  ;;  %v1637_v62 = vpop.f32.mrb[25].mxu1  ;;  %v564_v53 = vld [vmem:[#allocation2 + $0xa0] sm:$0xff]  ;;  %v590_v54 = vld [vmem:[#allocation2 + $0x170] sm:$0xff] }
 0x17f   : > { %v943_v63 = vpop.f32.mrb[26].mxu0  ;;  %v1047_v0 = vpop.f32.mrb[26].mxu1 }
 0x180   : > { %1153 = vst [vmem:[#allocation2 + $0x60] sm:$0xff] %v1103_v59  ;;  %v1104_v1 = vadd.f32 %v943_v63, %v557_v56  ;;  %v1586_v2 = vpop.f32.mrb[27].mxu0  ;;  %1179 = vst [vmem:[#allocation2 + $0x130] sm:$0xff] %v1129_v61  ;;  %v1130_v3 = vadd.f32 %v1047_v0, %v583_v58  ;;  %v1638_v4 = vpop.f32.mrb[27].mxu1  ;;  %v565_v56 = vld [vmem:[#allocation2 + $0xa8] sm:$0xff]  ;;  %v591_v58 = vld [vmem:[#allocation2 + $0x178] sm:$0xff] }
 0x182   : > { %1154 = vst [vmem:[#allocation2 + $0x68] sm:$0xff] %v1104_v1  ;;  %1180 = vst [vmem:[#allocation2 + $0x138] sm:$0xff] %v1130_v3 }
 0x185   : > { %v948_v7 = vpop.f32.mrb[28].mxu0  ;;  %v1052_v9 = vpop.f32.mrb[28].mxu1 }
 0x186   : > { %v1105_v11 = vadd.f32 %v948_v7, %v558_v5  ;;  %v1589_v12 = vpop.f32.mrb[29].mxu0  ;;  %v1131_v13 = vadd.f32 %v1052_v9, %v584_v6  ;;  %v1641_v14 = vpop.f32.mrb[29].mxu1  ;;  %v566_v5 = vld [vmem:[#allocation2 + $0xb0] sm:$0xff]  ;;  %v592_v6 = vld [vmem:[#allocation2 + $0x180] sm:$0xff] }
 0x187   : > { %v951_v15 = vpop.f32.mrb[30].mxu0  ;;  %v1055_v16 = vpop.f32.mrb[30].mxu1 }
 0x188   : > { %1155 = vst [vmem:[#allocation2 + $0x70] sm:$0xff] %v1105_v11  ;;  %v1106_v17 = vadd.f32 %v951_v15, %v559_v8  ;;  %v1590_v18 = vpop.f32.mrb[31].mxu0  ;;  %1181 = vst [vmem:[#allocation2 + $0x140] sm:$0xff] %v1131_v13  ;;  %v1132_v19 = vadd.f32 %v1055_v16, %v585_v10  ;;  %v1642_v20 = vpop.f32.mrb[31].mxu1  ;;  %v567_v8 = vld [vmem:[#allocation2 + $0xb8] sm:$0xff]  ;;  %v593_v10 = vld [vmem:[#allocation2 + $0x188] sm:$0xff] }
 0x18a   : > { %1156 = vst [vmem:[#allocation2 + $0x78] sm:$0xff] %v1106_v17  ;;  %1182 = vst [vmem:[#allocation2 + $0x148] sm:$0xff] %v1132_v19 }
 0x18d   : > { %v956_v23 = vpop.f32.mrb[32].mxu0  ;;  %v1060_v25 = vpop.f32.mrb[32].mxu1 }
 0x18e   : > { %v1107_v27 = vadd.f32 %v956_v23, %v560_v21  ;;  %v1593_v28 = vpop.f32.mrb[33].mxu0  ;;  %v1133_v29 = vadd.f32 %v1060_v25, %v586_v22  ;;  %v1645_v30 = vpop.f32.mrb[33].mxu1  ;;  %v568_v21 = vld [vmem:[#allocation2 + $0xc0] sm:$0xff]  ;;  %v569_v23 = vld [vmem:[#allocation2 + $0xc8] sm:$0xff] }
 0x18f   : > { %v959_v31 = vpop.f32.mrb[34].mxu0  ;;  %v1063_v32 = vpop.f32.mrb[34].mxu1  ;;  %v2078_v30 = vld [vmem:[%s2297_s2] ss:$0 sm:$0xff] (!%p1504_p11) }
 0x190   : > { %1157 = vst [vmem:[#allocation2 + $0x80] sm:$0xff] %v1107_v27  ;;  %v1108_v33 = vadd.f32 %v959_v31, %v561_v24  ;;  %v1594_v34 = vpop.f32.mrb[35].mxu0  ;;  %1183 = vst [vmem:[#allocation2 + $0x150] sm:$0xff] %v1133_v29  ;;  %v1134_v35 = vadd.f32 %v1063_v32, %v587_v26  ;;  %v1646_v36 = vpop.f32.mrb[35].mxu1  ;;  %v1195_v29 = vld [vmem:[#allocation2] sm:$0xff] (!%p1504_p11)  ;;  %v1196_v31 = vld [vmem:[#allocation2 + $0x8] sm:$0xff] (!%p1504_p11) }
 0x191   : > { %v1252_v32 = vadd.f32 (!%p1504_p11), %v2078_v30, %v1195_v29  ;;  %v1197_v34 = vld [vmem:[#allocation2 + $0x10] sm:$0xff] (!%p1504_p11)  ;;  %v1199_v36 = vld [vmem:[#allocation2 + $0x20] sm:$0xff] (!%p1504_p11) }
 0x192   : > { %1158 = vst [vmem:[#allocation2 + $0x88] sm:$0xff] %v1108_v33  ;;  %1184 = vst [vmem:[#allocation2 + $0x158] sm:$0xff] %v1134_v35  ;;  %v1253_v33 = vadd.f32 (!%p1504_p11), %v2078_v30, %v1196_v31  ;;  %v1198_v35 = vld [vmem:[#allocation2 + $0x18] sm:$0xff] (!%p1504_p11)  ;;  %v1227_v31 = vld [vmem:[#allocation2 + $0x100] sm:$0xff] (!%p1504_p11) }
 0x193   : > { %1302 = vst [vmem:[%s2298_s3] sm:$0xff] (!%p1504_p11), %v1252_v32  ;;  %v1228_v32 = vld [vmem:[#allocation2 + $0x108] sm:$0xff] (!%p1504_p11) }
 0x194   : > { %1303 = vst [vmem:[%s2298_s3 + $0x8] sm:$0xff] (!%p1504_p11), %v1253_v33  ;;  %v1229_v33 = vld [vmem:[#allocation2 + $0x110] sm:$0xff] (!%p1504_p11) }
 0x195   : > { %v964_v39 = vpop.f32.mrb[36].mxu0  ;;  %v1068_v41 = vpop.f32.mrb[36].mxu1 }
 0x196   : > { %v1109_v43 = vadd.f32 %v964_v39, %v562_v37  ;;  %v1597_v44 = vpop.f32.mrb[37].mxu0  ;;  %v1135_v45 = vadd.f32 %v1068_v41, %v588_v38  ;;  %v1649_v46 = vpop.f32.mrb[37].mxu1  ;;  %v1254_v37 = vadd.f32 (!%p1504_p11), %v2078_v30, %v1197_v34  ;;  %v1255_v38 = vadd.f32 (!%p1504_p11), %v2078_v30, %v1198_v35  ;;  %v1201_v41 = vld [vmem:[#allocation2 + $0x30] sm:$0xff] (!%p1504_p11) }
 0x197   : > { %v967_v47 = vpop.f32.mrb[38].mxu0  ;;  %v1071_v48 = vpop.f32.mrb[38].mxu1  ;;  %v1256_v39 = vadd.f32 (!%p1504_p11), %v2078_v30, %v1199_v36  ;;  %v1258_v44 = vadd.f32 (!%p1504_p11), %v2078_v30, %v1201_v41  ;;  %v1203_v46 = vld [vmem:[#allocation2 + $0x40] sm:$0xff] (!%p1504_p11)  ;;  %v1284_v34 = vadd.f32 (!%p1504_p11), %v2078_v30, %v1227_v31  ;;  %v1285_v35 = vadd.f32 (!%p1504_p11), %v2078_v30, %v1228_v32 }
 0x198   : > { %1159 = vst [vmem:[#allocation2 + $0x90] sm:$0xff] %v1109_v43  ;;  %v1110_v49 = vadd.f32 %v967_v47, %v563_v40  ;;  %v1598_v50 = vpop.f32.mrb[39].mxu0  ;;  %1185 = vst [vmem:[#allocation2 + $0x160] sm:$0xff] %v1135_v45  ;;  %v1136_v51 = vadd.f32 %v1071_v48, %v589_v42  ;;  %v1650_v52 = vpop.f32.mrb[39].mxu1  ;;  %v1200_v40 = vld [vmem:[#allocation2 + $0x28] sm:$0xff] (!%p1504_p11)  ;;  %v1202_v42 = vld [vmem:[#allocation2 + $0x38] sm:$0xff] (!%p1504_p11)  ;;  %v1286_v36 = vadd.f32 (!%p1504_p11), %v2078_v30, %v1229_v33 }
 0x199   : > { %v1257_v43 = vadd.f32 (!%p1504_p11), %v2078_v30, %v1200_v40  ;;  %v1259_v45 = vadd.f32 (!%p1504_p11), %v2078_v30, %v1202_v42  ;;  %v1204_v47 = vld [vmem:[#allocation2 + $0x48] sm:$0xff] (!%p1504_p11)  ;;  %v1205_v48 = vld [vmem:[#allocation2 + $0x50] sm:$0xff] (!%p1504_p11)  ;;  %1304 = vst [vmem:[%s2298_s3 + $0x10] sm:$0xff] (!%p1504_p11), %v1254_v37  ;;  %1305 = vst [vmem:[%s2298_s3 + $0x18] sm:$0xff] (!%p1504_p11), %v1255_v38 }
 0x19a   : > { %1160 = vst [vmem:[#allocation2 + $0x98] sm:$0xff] %v1110_v49  ;;  %1186 = vst [vmem:[#allocation2 + $0x168] sm:$0xff] %v1136_v51  ;;  %v1260_v49 = vadd.f32 (!%p1504_p11), %v2078_v30, %v1203_v46  ;;  %v1261_v50 = vadd.f32 (!%p1504_p11), %v2078_v30, %v1204_v47  ;;  %v1262_v51 = vadd.f32 (!%p1504_p11), %v2078_v30, %v1205_v48  ;;  %v1206_v52 = vld [vmem:[#allocation2 + $0x58] sm:$0xff] (!%p1504_p11)  ;;  %v1231_v38 = vld [vmem:[#allocation2 + $0x120] sm:$0xff] (!%p1504_p11) }
 0x19b   : > { %1306 = vst [vmem:[%s2298_s3 + $0x20] sm:$0xff] (!%p1504_p11), %v1256_v39  ;;  %1307 = vst [vmem:[%s2298_s3 + $0x28] sm:$0xff] (!%p1504_p11), %v1257_v43  ;;  %v1230_v37 = vld [vmem:[#allocation2 + $0x118] sm:$0xff] (!%p1504_p11)  ;;  %v1232_v39 = vld [vmem:[#allocation2 + $0x128] sm:$0xff] (!%p1504_p11)  ;;  %v1288_v41 = vadd.f32 (!%p1504_p11), %v2078_v30, %v1231_v38 }
 0x19c   : > { %1308 = vst [vmem:[%s2298_s3 + $0x30] sm:$0xff] (!%p1504_p11), %v1258_v44  ;;  %1309 = vst [vmem:[%s2298_s3 + $0x38] sm:$0xff] (!%p1504_p11), %v1259_v45  ;;  %v1287_v40 = vadd.f32 (!%p1504_p11), %v2078_v30, %v1230_v37  ;;  %v1289_v42 = vadd.f32 (!%p1504_p11), %v2078_v30, %v1232_v39  ;;  %v1233_v43 = vld [vmem:[#allocation2 + $0x130] sm:$0xff] (!%p1504_p11)  ;;  %v1234_v44 = vld [vmem:[#allocation2 + $0x138] sm:$0xff] (!%p1504_p11) }
 0x19d   : > { %v972_v55 = vpop.f32.mrb[40].mxu0  ;;  %v1076_v57 = vpop.f32.mrb[40].mxu1  ;;  %1310 = vst [vmem:[%s2298_s3 + $0x40] sm:$0xff] (!%p1504_p11), %v1260_v49  ;;  %1311 = vst [vmem:[%s2298_s3 + $0x48] sm:$0xff] (!%p1504_p11), %v1261_v50  ;;  %v1235_v45 = vld [vmem:[#allocation2 + $0x140] sm:$0xff] (!%p1504_p11)  ;;  %v1290_v46 = vadd.f32 (!%p1504_p11), %v2078_v30, %v1233_v43  ;;  %v1291_v47 = vadd.f32 (!%p1504_p11), %v2078_v30, %v1234_v44  ;;  %v1236_v49 = vld [vmem:[#allocation2 + $0x148] sm:$0xff] (!%p1504_p11) }
 0x19e   : > { %v1111_v59 = vadd.f32 %v972_v55, %v564_v53  ;;  %v1601_v60 = vpop.f32.mrb[41].mxu0  ;;  %v1137_v61 = vadd.f32 %v1076_v57, %v590_v54  ;;  %v1653_v62 = vpop.f32.mrb[41].mxu1  ;;  %v1207_v53 = vld [vmem:[#allocation2 + $0x60] sm:$0xff] (!%p1504_p11)  ;;  %v1208_v54 = vld [vmem:[#allocation2 + $0x68] sm:$0xff] (!%p1504_p11)  ;;  %v1263_v55 = vadd.f32 (!%p1504_p11), %v2078_v30, %v1206_v52  ;;  %1312 = vst [vmem:[%s2298_s3 + $0x50] sm:$0xff] (!%p1504_p11), %v1262_v51  ;;  %1334 = vst [vmem:[%s2298_s3 + $0x100] sm:$0xff] (!%p1504_p11), %v1284_v34 }
 0x19f   : > { %v975_v63 = vpop.f32.mrb[42].mxu0  ;;  %v1079_v0 = vpop.f32.mrb[42].mxu1  ;;  %v1265_v57 = vadd.f32 (!%p1504_p11), %v2078_v30, %v1208_v54  ;;  %v1211_v60 = vld [vmem:[#allocation2 + $0x80] sm:$0xff] (!%p1504_p11)  ;;  %1335 = vst [vmem:[%s2298_s3 + $0x108] sm:$0xff] (!%p1504_p11), %v1285_v35  ;;  %1336 = vst [vmem:[%s2298_s3 + $0x110] sm:$0xff] (!%p1504_p11), %v1286_v36  ;;  %v1292_v48 = vadd.f32 (!%p1504_p11), %v2078_v30, %v1235_v45  ;;  %v1237_v50 = vld [vmem:[#allocation2 + $0x150] sm:$0xff] (!%p1504_p11)  ;;  %v1293_v52 = vadd.f32 (!%p1504_p11), %v2078_v30, %v1236_v49 }
 0x1a0   : > { %1161 = vst [vmem:[#allocation2 + $0xa0] sm:$0xff] %v1111_v59  ;;  %v1112_v1 = vadd.f32 %v975_v63, %v565_v56  ;;  %v1602_v2 = vpop.f32.mrb[43].mxu0  ;;  %1187 = vst [vmem:[#allocation2 + $0x170] sm:$0xff] %v1137_v61  ;;  %v1138_v3 = vadd.f32 %v1079_v0, %v591_v58  ;;  %v1654_v4 = vpop.f32.mrb[43].mxu1  ;;  %v1264_v56 = vadd.f32 (!%p1504_p11), %v2078_v30, %v1207_v53  ;;  %v1209_v58 = vld [vmem:[#allocation2 + $0x70] sm:$0xff] (!%p1504_p11)  ;;  %v1210_v59 = vld [vmem:[#allocation2 + $0x78] sm:$0xff] (!%p1504_p11) }
 0x1a1   : > { %v1266_v61 = vadd.f32 (!%p1504_p11), %v2078_v30, %v1209_v58  ;;  %v1267_v62 = vadd.f32 (!%p1504_p11), %v2078_v30, %v1210_v59  ;;  %v1268_v63 = vadd.f32 (!%p1504_p11), %v2078_v30, %v1211_v60  ;;  %v1212_v0 = vld [vmem:[#allocation2 + $0x88] sm:$0xff] (!%p1504_p11)  ;;  %v1214_v2 = vld [vmem:[#allocation2 + $0x98] sm:$0xff] (!%p1504_p11)  ;;  %1313 = vst [vmem:[%s2298_s3 + $0x58] sm:$0xff] (!%p1504_p11), %v1263_v55  ;;  %1315 = vst [vmem:[%s2298_s3 + $0x68] sm:$0xff] (!%p1504_p11), %v1265_v57 }
 0x1a2   : > { %1162 = vst [vmem:[#allocation2 + $0xa8] sm:$0xff] %v1112_v1  ;;  %1188 = vst [vmem:[#allocation2 + $0x178] sm:$0xff] %v1138_v3  ;;  %v1213_v1 = vld [vmem:[#allocation2 + $0x90] sm:$0xff] (!%p1504_p11)  ;;  %v1269_v3 = vadd.f32 (!%p1504_p11), %v2078_v30, %v1212_v0  ;;  %v1238_v51 = vld [vmem:[#allocation2 + $0x158] sm:$0xff] (!%p1504_p11)  ;;  %v1294_v53 = vadd.f32 (!%p1504_p11), %v2078_v30, %v1237_v50 }
 0x1a3   : > { %1314 = vst [vmem:[%s2298_s3 + $0x60] sm:$0xff] (!%p1504_p11), %v1264_v56  ;;  %v1270_v4 = vadd.f32 (!%p1504_p11), %v2078_v30, %v1213_v1  ;;  %1316 = vst [vmem:[%s2298_s3 + $0x70] sm:$0xff] (!%p1504_p11), %v1266_v61  ;;  %v1295_v54 = vadd.f32 (!%p1504_p11), %v2078_v30, %v1238_v51  ;;  %v1239_v55 = vld [vmem:[#allocation2 + $0x160] sm:$0xff] (!%p1504_p11)  ;;  %v1240_v56 = vld [vmem:[#allocation2 + $0x168] sm:$0xff] (!%p1504_p11) }
 0x1a4   : > { %1317 = vst [vmem:[%s2298_s3 + $0x78] sm:$0xff] (!%p1504_p11), %v1267_v62  ;;  %1318 = vst [vmem:[%s2298_s3 + $0x80] sm:$0xff] (!%p1504_p11), %v1268_v63  ;;  %v1296_v58 = vadd.f32 (!%p1504_p11), %v2078_v30, %v1239_v55  ;;  %v1297_v59 = vadd.f32 (!%p1504_p11), %v2078_v30, %v1240_v56 }
 0x1a5   : > { %v980_v7 = vpop.f32.mrb[44].mxu0  ;;  %v1084_v9 = vpop.f32.mrb[44].mxu1  ;;  %1319 = vst [vmem:[%s2298_s3 + $0x88] sm:$0xff] (!%p1504_p11), %v1269_v3  ;;  %1320 = vst [vmem:[%s2298_s3 + $0x90] sm:$0xff] (!%p1504_p11), %v1270_v4 }
 0x1a6   : > { %v1113_v11 = vadd.f32 %v980_v7, %v566_v5  ;;  %v1605_v12 = vpop.f32.mrb[45].mxu0  ;;  %v1139_v13 = vadd.f32 %v1084_v9, %v592_v6  ;;  %v1657_v14 = vpop.f32.mrb[45].mxu1  ;;  %v1271_v5 = vadd.f32 (!%p1504_p11), %v2078_v30, %v1214_v2  ;;  %1337 = vst [vmem:[%s2298_s3 + $0x118] sm:$0xff] (!%p1504_p11), %v1287_v40  ;;  %1338 = vst [vmem:[%s2298_s3 + $0x120] sm:$0xff] (!%p1504_p11), %v1288_v41 }
 0x1a7   : > { %v983_v15 = vpop.f32.mrb[46].mxu0  ;;  %v1087_v16 = vpop.f32.mrb[46].mxu1  ;;  %v1215_v6 = vld [vmem:[#allocation2 + $0xa0] sm:$0xff] (!%p1504_p11)  ;;  %1339 = vst [vmem:[%s2298_s3 + $0x128] sm:$0xff] (!%p1504_p11), %v1289_v42  ;;  %v1241_v57 = vld [vmem:[#allocation2 + $0x170] sm:$0xff] (!%p1504_p11)  ;;  %1340 = vst [vmem:[%s2298_s3 + $0x130] sm:$0xff] (!%p1504_p11), %v1290_v46 }
 0x1a8   : > { %1163 = vst [vmem:[#allocation2 + $0xb0] sm:$0xff] %v1113_v11  ;;  %v1114_v17 = vadd.f32 %v983_v15, %v567_v8  ;;  %v1606_v18 = vpop.f32.mrb[47].mxu0  ;;  %1189 = vst [vmem:[#allocation2 + $0x180] sm:$0xff] %v1139_v13  ;;  %v1140_v19 = vadd.f32 %v1087_v16, %v593_v10  ;;  %v1658_v20 = vpop.f32.mrb[47].mxu1  ;;  %v1272_v9 = vadd.f32 (!%p1504_p11), %v2078_v30, %v1215_v6 }
 0x1a9   : > { %v1216_v7 = vld [vmem:[#allocation2 + $0xa8] sm:$0xff] (!%p1504_p11)  ;;  %1321 = vst [vmem:[%s2298_s3 + $0x98] sm:$0xff] (!%p1504_p11), %v1271_v5  ;;  %v1221_v18 = vld [vmem:[#allocation2 + $0xd0] sm:$0xff] (!%p1504_p11)  ;;  %v1223_v20 = vld [vmem:[#allocation2 + $0xe0] sm:$0xff] (!%p1504_p11)  ;;  %v1298_v60 = vadd.f32 (!%p1504_p11), %v2078_v30, %v1241_v57 }
 0x1aa   : > { %1164 = vst [vmem:[#allocation2 + $0xb8] sm:$0xff] %v1114_v17  ;;  %1190 = vst [vmem:[#allocation2 + $0x188] sm:$0xff] %v1140_v19  ;;  %v1273_v10 = vadd.f32 (!%p1504_p11), %v2078_v30, %v1216_v7  ;;  %v1222_v19 = vld [vmem:[#allocation2 + $0xd8] sm:$0xff] (!%p1504_p11) }
 0x1ab   : > { %1322 = vst [vmem:[%s2298_s3 + $0xa0] sm:$0xff] (!%p1504_p11), %v1272_v9  ;;  %1341 = vst [vmem:[%s2298_s3 + $0x138] sm:$0xff] (!%p1504_p11), %v1291_v47  ;;  %v1242_v61 = vld [vmem:[#allocation2 + $0x178] sm:$0xff] (!%p1504_p11) }
 0x1ac   : > { %1194 = sbr.rel (%p1504_p11) target bundleno = 445 (0x1bd), region = 81  ;;  %1323 = vst [vmem:[%s2298_s3 + $0xa8] sm:$0xff] (!%p1504_p11), %v1273_v10  ;;  %1342 = vst [vmem:[%s2298_s3 + $0x140] sm:$0xff] (!%p1504_p11), %v1292_v48  ;;  %v1299_v0 = vadd.f32 (!%p1504_p11), %v2078_v30, %v1242_v61 }
 0x1ad   : > { %v988_v22 = vpop.f32.mrb[48].mxu0  ;;  %1343 = vst [vmem:[%s2298_s3 + $0x148] sm:$0xff] (!%p1504_p11), %v1293_v52  ;;  %1344 = vst [vmem:[%s2298_s3 + $0x150] sm:$0xff] (!%p1504_p11), %v1294_v53 }
 0x1ae   : > { %v1115_v24 = vadd.f32 %v988_v22, %v568_v21  ;;  %v1609_v25 = vpop.f32.mrb[49].mxu0  ;;  %v1278_v21 = vadd.f32 (!%p1504_p11), %v2078_v30, %v1221_v18  ;;  %v1279_v22 = vadd.f32 (!%p1504_p11), %v2078_v30, %v1222_v19  ;;  %1345 = vst [vmem:[%s2298_s3 + $0x158] sm:$0xff] (!%p1504_p11), %v1295_v54  ;;  %1346 = vst [vmem:[%s2298_s3 + $0x160] sm:$0xff] (!%p1504_p11), %v1296_v58 }
 0x1af   : > { %v991_v26 = vpop.f32.mrb[50].mxu0  ;;  %v1217_v8 = vld [vmem:[#allocation2 + $0xb0] sm:$0xff] (!%p1504_p11)  ;;  %v1243_v62 = vld [vmem:[#allocation2 + $0x180] sm:$0xff] (!%p1504_p11)  ;;  %1347 = vst [vmem:[%s2298_s3 + $0x168] sm:$0xff] (!%p1504_p11), %v1297_v59  ;;  %1348 = vst [vmem:[%s2298_s3 + $0x170] sm:$0xff] (!%p1504_p11), %v1298_v60 }
 0x1b0   : > { %1165 = vst [vmem:[#allocation2 + $0xc0] sm:$0xff] %v1115_v24  ;;  %v1116_v27 = vadd.f32 %v991_v26, %v569_v23  ;;  %v1610_v28 = vpop.f32.mrb[51].mxu0  ;;  %v1274_v11 = vadd.f32 (!%p1504_p11), %v2078_v30, %v1217_v8  ;;  %v1280_v23 = vadd.f32 (!%p1504_p11), %v2078_v30, %v1223_v20  ;;  %v1224_v24 = vld [vmem:[#allocation2 + $0xe8] sm:$0xff] (!%p1504_p11)  ;;  %v1225_v25 = vld [vmem:[#allocation2 + $0xf0] sm:$0xff] (!%p1504_p11)  ;;  %v1226_v26 = vld [vmem:[#allocation2 + $0xf8] sm:$0xff] (!%p1504_p11)  ;;  %v1300_v1 = vadd.f32 (!%p1504_p11), %v2078_v30, %v1243_v62 }
 0x1b1   : > { %v1218_v12 = vld [vmem:[#allocation2 + $0xb8] sm:$0xff] (!%p1504_p11)  ;;  %v1282_v28 = vadd.f32 (!%p1504_p11), %v2078_v30, %v1225_v25  ;;  %v1283_v29 = vadd.f32 (!%p1504_p11), %v2078_v30, %v1226_v26  ;;  %1328 = vst [vmem:[%s2298_s3 + $0xd0] sm:$0xff] (!%p1504_p11), %v1278_v21  ;;  %1329 = vst [vmem:[%s2298_s3 + $0xd8] sm:$0xff] (!%p1504_p11), %v1279_v22  ;;  %v1244_v63 = vld [vmem:[#allocation2 + $0x188] sm:$0xff] (!%p1504_p11) }
 0x1b2   : > { %1166 = vst [vmem:[#allocation2 + $0xc8] sm:$0xff] %v1116_v27  ;;  %v1275_v15 = vadd.f32 (!%p1504_p11), %v2078_v30, %v1218_v12  ;;  %1324 = vst [vmem:[%s2298_s3 + $0xb0] sm:$0xff] (!%p1504_p11), %v1274_v11  ;;  %v1281_v27 = vadd.f32 (!%p1504_p11), %v2078_v30, %v1224_v24  ;;  %v1301_v2 = vadd.f32 (!%p1504_p11), %v2078_v30, %v1244_v63 }
 0x1b3   : > { %1330 = vst [vmem:[%s2298_s3 + $0xe0] sm:$0xff] %v1280_v23  ;;  %1332 = vst [vmem:[%s2298_s3 + $0xf0] sm:$0xff] %v1282_v28 }
 0x1b4   : > { %1325 = vst [vmem:[%s2298_s3 + $0xb8] sm:$0xff] %v1275_v15  ;;  %1331 = vst [vmem:[%s2298_s3 + $0xe8] sm:$0xff] %v1281_v27 }
 0x1b5   : > { %1333 = vst [vmem:[%s2298_s3 + $0xf8] sm:$0xff] %v1283_v29  ;;  %1349 = vst [vmem:[%s2298_s3 + $0x178] sm:$0xff] %v1299_v0 }
 0x1b6   : > { %1350 = vst [vmem:[%s2298_s3 + $0x180] sm:$0xff] %v1300_v1  ;;  %1351 = vst [vmem:[%s2298_s3 + $0x188] sm:$0xff] %v1301_v2 }
 0x1b7   : > { %v1219_v13 = vld [vmem:[#allocation2 + $0xc0] sm:$0xff] }
 0x1b8   : > { %v1276_v16 = vadd.f32 %v2078_v30, %v1219_v13 }
 0x1b9   : > { %v1220_v14 = vld [vmem:[#allocation2 + $0xc8] sm:$0xff] }
 0x1ba   : > { %v1277_v17 = vadd.f32 %v2078_v30, %v1220_v14  ;;  %1326 = vst [vmem:[%s2298_s3 + $0xc0] sm:$0xff] %v1276_v16 }
 0x1bc   : > { %1327 = vst [vmem:[%s2298_s3 + $0xc8] sm:$0xff] %v1277_v17 }
 0x1bd PF: > { %s13_s16 = sadd.s32 1, %s1791_s16   ;;  %s2299_s12 = smov %s1779_s13 }
 0x1be   : > { %p10_p12 = scmp.ge.s32.totalorder %s13_s16, 27   ;;  %s2300_s13 = smov %s1851_s20 }
 0x1bf   : > { %s2301_s14 = smov %s1787_s15  ;;  %s2302_s15 = smov %s2304_s17 }
 0x1c0   :  { %12 = sbr.rel (!%p10_p12) target bundleno = 3 (0x3), region = 122 }

// kernel: s_alexnet_forward.18
= control target key start
LH: loop header
LB: loop body
LE: loop exit
PB: predicated region body
PF: predicated region fallthrough
CT: control target
= control target key end

     0   :  { %v929_v0 = vmov 0.0   ;;  %s1488_s0 = inlined_call_operand.vmem [shape: f32[4,98,128], index: 0, kind: input, shape index: {}]   ;;  %s1489_s1 = inlined_call_operand.vmem [shape: bf16[4,98,128], index: 1, kind: output, shape index: {}]  }
   0x1   :  { %20 = vst [vmem:[#allocation2 + $0x60] sm:$0x3] %v929_v0  ;;  %v944_v1 = vld [vmem:[%s1488_s0] sm:$0xff]  ;;  %v949_v2 = vld [vmem:[%s1488_s0 + $0x8] sm:$0xff]  ;;  %v954_v3 = vld [vmem:[%s1488_s0 + $0x10] sm:$0xff] }
   0x2   :  { %v959_v4 = vld [vmem:[%s1488_s0 + $0x18] sm:$0xff]  ;;  %v964_v5 = vld [vmem:[%s1488_s0 + $0x20] sm:$0xff]  ;;  %v969_v6 = vld [vmem:[%s1488_s0 + $0x28] sm:$0xff]  ;;  %vm60_vm0 = vcmp.ge.f32.partialorder %v944_v1, 1.0  ;;  %vm61_vm1 = vcmp.ge.f32.partialorder %v949_v2, 1.0  ;;  %vm62_vm2 = vcmp.ge.f32.partialorder %v954_v3, 1.0 }
   0x3   :  { %v974_v7 = vld [vmem:[%s1488_s0 + $0x30] sm:$0xff]  ;;  %v980_v8 = vsel %vm60_vm0, 1.0, %v929_v0  ;;  %v983_v9 = vsel %vm61_vm1, 1.0, %v929_v0  ;;  %v986_v10 = vsel %vm62_vm2, 1.0, %v929_v0  ;;  %vm63_vm3 = vcmp.ge.f32.partialorder %v959_v4, 1.0  ;;  %v992_v11 = vld [vmem:[%s1488_s0 + $0x38] sm:$0xff] }
   0x4   :  { %v86_v12 = vsub.f32 %v944_v1, %v980_v8  ;;  %v87_v13 = vsub.f32 %v949_v2, %v983_v9  ;;  %v88_v14 = vsub.f32 %v954_v3, %v986_v10  ;;  %v1001_v15 = vsel %vm63_vm3, 1.0, %v929_v0  ;;  %v1006_v16 = vld [vmem:[%s1488_s0 + $0x40] sm:$0xff]  ;;  %v1011_v17 = vld [vmem:[%s1488_s0 + $0x48] sm:$0xff]  ;;  %v1016_v18 = vld [vmem:[%s1488_s0 + $0x50] sm:$0xff] }
   0x5   :  { %v89_v19 = vsub.f32 %v959_v4, %v1001_v15  ;;  %vm64_vm4 = vcmp.ge.f32.partialorder %v964_v5, 1.0  ;;  %vm65_vm5 = vcmp.ge.f32.partialorder %v969_v6, 1.0  ;;  %vm66_vm6 = vcmp.ge.f32.partialorder %v974_v7, 1.0  ;;  %v1026_v20 = vld [vmem:[%s1488_s0 + $0x58] sm:$0xff]  ;;  %v33_v21 = vld [vmem:[%s1488_s0 + $0x60] sm:$0x3] }
   0x6   :  { %v77_v22 = vsel %vm64_vm4, 1.0, %v929_v0  ;;  %v78_v23 = vsel %vm65_vm5, 1.0, %v929_v0  ;;  %v79_v24 = vsel %vm66_vm6, 1.0, %v929_v0  ;;  %vm67_vm7 = vcmp.ge.f32.partialorder %v992_v11, 1.0  ;;  %v672_v37 = vld [vmem:[%s1488_s0 + $0x68] sm:$0xff]  ;;  %v673_v41 = vld [vmem:[%s1488_s0 + $0x70] sm:$0xff] }
   0x7   :  { %v90_v26 = vsub.f32 %v964_v5, %v77_v22  ;;  %v91_v27 = vsub.f32 %v969_v6, %v78_v23  ;;  %v92_v28 = vsub.f32 %v974_v7, %v79_v24  ;;  %v80_v29 = vsel %vm67_vm7, 1.0, %v929_v0  ;;  %v674_v42 = vld [vmem:[%s1488_s0 + $0x78] sm:$0xff]  ;;  %v675_v43 = vld [vmem:[%s1488_s0 + $0x80] sm:$0xff]  ;;  %v676_v48 = vld [vmem:[%s1488_s0 + $0x88] sm:$0xff] }
   0x8   :  { %v46_v25 = vld [vmem:[#allocation2 + $0x60] sm:$0x3]  ;;  %vm68_vm8 = vcmp.ge.f32.partialorder %v1006_v16, 1.0  ;;  %v842_v31 = vpack.c.bf16 %v983_v9, %v980_v8  ;;  %v93_v32 = vsub.f32 %v992_v11, %v80_v29  ;;  %vm69_vm9 = vcmp.ge.f32.partialorder %v1011_v17, 1.0  ;;  %v677_v49 = vld [vmem:[%s1488_s0 + $0x90] sm:$0xff]  ;;  %v678_v50 = vld [vmem:[%s1488_s0 + $0x98] sm:$0xff] }
   0x9   :  { %v59_v30 = vadd.f32 %v46_v25, %v33_v21  ;;  %v1044_v33 = vsel %vm68_vm8, 1.0, %v929_v0  ;;  %vm70_vm10 = vcmp.ge.f32.partialorder %v1016_v18, 1.0  ;;  %v1051_v35 = vsel %vm69_vm9, 1.0, %v929_v0  ;;  %v679_v55 = vld [vmem:[%s1488_s0 + $0xa0] sm:$0xff]  ;;  %v680_v9 = vld [vmem:[%s1488_s0 + $0xa8] sm:$0xff]  ;;  %v681_v11 = vld [vmem:[%s1488_s0 + $0xb0] sm:$0xff] }
   0xa   :  { %v94_v34 = vsub.f32 %v1006_v16, %v1044_v33  ;;  %v1054_v36 = vsel %vm70_vm10, 1.0, %v929_v0  ;;  %vm71_vm11 = vcmp.ge.f32.partialorder %v1026_v20, 1.0  ;;  %843 = vst [vmem:[%s1489_s1] sm:$0xff] %v842_v31   ;;  %v95_v38 = vsub.f32 %v1011_v17, %v1051_v35 }
   0xb   :  { %v96_v39 = vsub.f32 %v1016_v18, %v1054_v36  ;;  %v1068_v40 = vsel %vm71_vm11, 1.0, %v929_v0  ;;  %vm72_vm12 = vcmp.ge.f32.partialorder %v59_v30, 1.0  ;;  %v845_v46 = vpack.c.bf16 %v1001_v15, %v986_v10 }
   0xc   :  { %v97_v44 = vsub.f32 %v1026_v20, %v1068_v40  ;;  %v85_v45 = vsel %vm72_vm12, 1.0, %v929_v0  ;;  %v848_v47 = vpack.c.bf16 %v78_v23, %v77_v22  ;;  %v851_v52 = vpack.c.bf16 %v80_v29, %v79_v24  ;;  %v684_v20 = vld [vmem:[%s1488_s0 + $0xc8] sm:$0x3] }
   0xd   :  { %v98_v51 = vsub.f32 %v59_v30, %v85_v45  ;;  %v854_v53 = vpack.c.bf16 %v1051_v35, %v1044_v33  ;;  %v857_v54 = vpack.c.bf16 %v1068_v40, %v1054_v36  ;;  %907 = vst [vmem:[%s1489_s1 + $0x8] sm:$0xff] %v845_v46   ;;  %v801_v56 = vpack.c.bf16 %v85_v45, %v85_v45  ;;  %v711_v35 = vld [vmem:[%s1488_s0 + $0xd0] sm:$0xff]  ;;  %v712_v40 = vld [vmem:[%s1488_s0 + $0xd8] sm:$0xff]  ;;  %v714_v45 = vld [vmem:[%s1488_s0 + $0xe8] sm:$0xff] }
   0xe   :  { %908 = vst [vmem:[%s1489_s1 + $0x10] sm:$0xff] %v848_v47   ;;  %v1106_v57 = vadd.f32 %v672_v37, %v86_v12  ;;  %v1108_v58 = vadd.f32 %v673_v41, %v87_v13  ;;  %v1110_v59 = vadd.f32 %v674_v42, %v88_v14  ;;  %909 = vst [vmem:[%s1489_s1 + $0x18] sm:$0xff] %v851_v52   ;;  %v682_v12 = vld [vmem:[%s1488_s0 + $0xb8] sm:$0xff]  ;;  %v683_v13 = vld [vmem:[%s1488_s0 + $0xc0] sm:$0xff] }
   0xf   :  { %111 = vst [vmem:[#allocation2 + $0x60] sm:$0x3] %v98_v51  ;;  %910 = vst [vmem:[%s1489_s1 + $0x20] sm:$0xff] %v854_v53   ;;  %v1121_v60 = vadd.f32 %v675_v43, %v89_v19  ;;  %v1123_v61 = vadd.f32 %v676_v48, %v90_v26  ;;  %v1125_v62 = vadd.f32 %v677_v49, %v91_v27  ;;  %v713_v41 = vld [vmem:[%s1488_s0 + $0xe0] sm:$0xff]  ;;  %v715_v46 = vld [vmem:[%s1488_s0 + $0xf0] sm:$0xff] }
  0x10   :  { %911 = vst [vmem:[%s1489_s1 + $0x28] sm:$0xff] %v857_v54   ;;  %v1127_v63 = vadd.f32 %v678_v50, %v92_v28  ;;  %177 = vst [vmem:[%s1489_s1 + $0x30] sm:$0x1] %v801_v56  ;;  %vm218_vm13 = vcmp.ge.f32.partialorder %v1106_v57, 1.0  ;;  %vm219_vm14 = vcmp.ge.f32.partialorder %v1108_v58, 1.0  ;;  %vm220_vm15 = vcmp.ge.f32.partialorder %v1110_v59, 1.0 }
  0x11   :  { %v1135_v1 = vadd.f32 %v679_v55, %v93_v32  ;;  %v1138_v2 = vsel %vm218_vm13, 1.0, %v929_v0  ;;  %v1141_v3 = vsel %vm219_vm14, 1.0, %v929_v0  ;;  %v1144_v4 = vsel %vm220_vm15, 1.0, %v929_v0  ;;  %v716_v47 = vld [vmem:[%s1488_s0 + $0xf8] sm:$0xff]  ;;  %v717_v52 = vld [vmem:[%s1488_s0 + $0x100] sm:$0xff] }
  0x12   :  { %vm221_vm0 = vcmp.ge.f32.partialorder %v1121_v60, 1.0  ;;  %v244_v5 = vsub.f32 %v1106_v57, %v1138_v2  ;;  %v245_v6 = vsub.f32 %v1108_v58, %v1141_v3  ;;  %v246_v7 = vsub.f32 %v1110_v59, %v1144_v4 }
  0x13   :  { %v1154_v8 = vsel %vm221_vm0, 1.0, %v929_v0  ;;  %vm222_vm1 = vcmp.ge.f32.partialorder %v1123_v61, 1.0  ;;  %vm223_vm2 = vcmp.ge.f32.partialorder %v1125_v62, 1.0  ;;  %vm224_vm3 = vcmp.ge.f32.partialorder %v1127_v63, 1.0 }
  0x14   :  { %v247_v10 = vsub.f32 %v1121_v60, %v1154_v8  ;;  %v235_v14 = vsel %vm222_vm1, 1.0, %v929_v0  ;;  %v236_v15 = vsel %vm223_vm2, 1.0, %v929_v0  ;;  %v1176_v19 = vsel %vm224_vm3, 1.0, %v929_v0 }
  0x15   :  { %vm225_vm4 = vcmp.ge.f32.partialorder %v1135_v1, 1.0  ;;  %v248_v21 = vsub.f32 %v1123_v61, %v235_v14  ;;  %v249_v22 = vsub.f32 %v1125_v62, %v236_v15  ;;  %v250_v23 = vsub.f32 %v1127_v63, %v1176_v19 }
  0x16   :  { %v1187_v24 = vsel %vm225_vm4, 1.0, %v929_v0  ;;  %v1194_v26 = vadd.f32 %v680_v9, %v94_v34  ;;  %v1199_v27 = vadd.f32 %v681_v11, %v95_v38  ;;  %v1204_v28 = vadd.f32 %v682_v12, %v96_v39  ;;  %v204_v29 = vld [vmem:[#allocation2 + $0x60] sm:$0x3]  ;;  %v722_v12 = vld [vmem:[%s1488_s0 + $0x128] sm:$0xff] }
  0x17   :  { %v251_v25 = vsub.f32 %v1135_v1, %v1187_v24  ;;  %v1206_v30 = vadd.f32 %v683_v13, %v97_v44  ;;  %v217_v31 = vadd.f32 %v684_v20, %v204_v29  ;;  %v802_v32 = vpack.c.bf16 %v1138_v2, %v1138_v2  ;;  %v721_v11 = vld [vmem:[%s1488_s0 + $0x120] sm:$0xff]  ;;  %v723_v1 = vld [vmem:[%s1488_s0 + $0x130] sm:$0x3] }
  0x18   :  { %v860_v16 = vpack.c.bf16 %v1144_v4, %v1141_v3  ;;  %vm226_vm5 = vcmp.ge.f32.partialorder %v1194_v26, 1.0  ;;  %vm227_vm6 = vcmp.ge.f32.partialorder %v1199_v27, 1.0  ;;  %vm228_vm7 = vcmp.ge.f32.partialorder %v1204_v28, 1.0  ;;  %v718_v3 = vld [vmem:[%s1488_s0 + $0x108] sm:$0xff] }
  0x19   :  { %v863_v17 = vpack.c.bf16 %v235_v14, %v1154_v8  ;;  %v1217_v18 = vsel %vm226_vm5, 1.0, %v929_v0  ;;  %v1220_v33 = vsel %vm227_vm6, 1.0, %v929_v0  ;;  %v1223_v34 = vsel %vm228_vm7, 1.0, %v929_v0  ;;  %698 = vst [vmem:[%s1489_s1 + $0x34] sm:$0xf] %v802_v32  ;;  %v720_v8 = vld [vmem:[%s1488_s0 + $0x118] sm:$0xff] }
  0x1a   :  { %vm229_vm8 = vcmp.ge.f32.partialorder %v1206_v30, 1.0  ;;  %912 = vst [vmem:[%s1489_s1 + $0x38] sm:$0xff] %v860_v16   ;;  %v252_v36 = vsub.f32 %v1194_v26, %v1217_v18  ;;  %v253_v37 = vsub.f32 %v1199_v27, %v1220_v33  ;;  %v254_v38 = vsub.f32 %v1204_v28, %v1223_v34 }
  0x1b   :  { %v242_v39 = vsel %vm229_vm8, 1.0, %v929_v0  ;;  %913 = vst [vmem:[%s1489_s1 + $0x40] sm:$0xff] %v863_v17   ;;  %vm230_vm9 = vcmp.ge.f32.partialorder %v217_v31, 1.0  ;;  %v866_v43 = vpack.c.bf16 %v1176_v19, %v236_v15  ;;  %v869_v44 = vpack.c.bf16 %v1217_v18, %v1187_v24 }
  0x1c   :  { %v255_v42 = vsub.f32 %v1206_v30, %v242_v39  ;;  %v243_v48 = vsel %vm230_vm9, 1.0, %v929_v0  ;;  %v872_v49 = vpack.c.bf16 %v1223_v34, %v1220_v33  ;;  %v813_v50 = vpack.c.bf16 %v242_v39, %v242_v39  ;;  %v750_v33 = vld [vmem:[%s1488_s0 + $0x138] sm:$0xff]  ;;  %v751_v34 = vld [vmem:[%s1488_s0 + $0x140] sm:$0xff] }
  0x1d   :  { %v1267_v51 = vadd.f32 %v711_v35, %v244_v5  ;;  %v256_v53 = vsub.f32 %v217_v31, %v243_v48  ;;  %914 = vst [vmem:[%s1489_s1 + $0x48] sm:$0xff] %v866_v43   ;;  %915 = vst [vmem:[%s1489_s1 + $0x50] sm:$0xff] %v869_v44   ;;  %v814_v54 = vpack.c.bf16 %v243_v48, %v243_v48  ;;  %v752_v35 = vld [vmem:[%s1488_s0 + $0x148] sm:$0xff] }
  0x1e   :  { %v1281_v55 = vadd.f32 %v712_v40, %v245_v6  ;;  %v1286_v56 = vadd.f32 %v713_v41, %v246_v7  ;;  %916 = vst [vmem:[%s1489_s1 + $0x58] sm:$0xff] %v872_v49   ;;  %709 = vst [vmem:[%s1489_s1 + $0x60] sm:$0xf] %v813_v50  ;;  %v1298_v57 = vadd.f32 %v714_v45, %v247_v10  ;;  %v719_v7 = vld [vmem:[%s1488_s0 + $0x110] sm:$0xff]  ;;  %v754_v41 = vld [vmem:[%s1488_s0 + $0x158] sm:$0xff] }
  0x1f   :  { %vm377_vm10 = vcmp.ge.f32.partialorder %v1267_v51, 1.0  ;;  %v1300_v58 = vadd.f32 %v715_v46, %v248_v21  ;;  %v1302_v59 = vadd.f32 %v716_v47, %v249_v22  ;;  %269 = vst [vmem:[#allocation2 + $0x60] sm:$0x3] %v256_v53  ;;  %710 = vst [vmem:[%s1489_s1 + $0x64] sm:$0x1] %v814_v54  ;;  %v1312_v62 = vadd.f32 %v717_v52, %v250_v23  ;;  %v753_v40 = vld [vmem:[%s1488_s0 + $0x150] sm:$0xff] }
  0x20   :  { %v1308_v61 = vsel %vm377_vm10, 1.0, %v929_v0  ;;  %vm378_vm11 = vcmp.ge.f32.partialorder %v1281_v55, 1.0  ;;  %vm379_vm12 = vcmp.ge.f32.partialorder %v1286_v56, 1.0  ;;  %vm380_vm13 = vcmp.ge.f32.partialorder %v1298_v57, 1.0 }
  0x21   :  { %v403_v60 = vsub.f32 %v1267_v51, %v1308_v61  ;;  %v391_v63 = vsel %vm378_vm11, 1.0, %v929_v0  ;;  %v392_v2 = vsel %vm379_vm12, 1.0, %v929_v0  ;;  %v393_v6 = vsel %vm380_vm13, 1.0, %v929_v0 }
  0x22   :  { %v404_v4 = vsub.f32 %v1281_v55, %v391_v63  ;;  %v405_v5 = vsub.f32 %v1286_v56, %v392_v2  ;;  %vm381_vm14 = vcmp.ge.f32.partialorder %v1300_v58, 1.0  ;;  %v406_v9 = vsub.f32 %v1298_v57, %v393_v6 }
  0x23   :  { %v394_v10 = vsel %vm381_vm14, 1.0, %v929_v0  ;;  %vm382_vm15 = vcmp.ge.f32.partialorder %v1302_v59, 1.0  ;;  %vm383_vm0 = vcmp.ge.f32.partialorder %v1312_v62, 1.0  ;;  %v1350_v19 = vadd.f32 %v718_v3, %v251_v25  ;;  %v760_v3 = vld [vmem:[%s1488_s0 + $0x188] sm:$0xff] }
  0x24   :  { %v407_v13 = vsub.f32 %v1300_v58, %v394_v10  ;;  %v395_v14 = vsel %vm382_vm15, 1.0, %v929_v0  ;;  %v1345_v15 = vsel %vm383_vm0, 1.0, %v929_v0  ;;  %v1355_v22 = vadd.f32 %v719_v7, %v252_v36  ;;  %v756_v58 = vld [vmem:[%s1488_s0 + $0x168] sm:$0xff] }
  0x25   :  { %v408_v20 = vsub.f32 %v1302_v59, %v395_v14  ;;  %v409_v21 = vsub.f32 %v1312_v62, %v1345_v15  ;;  %v1357_v23 = vadd.f32 %v720_v8, %v253_v37  ;;  %vm384_vm1 = vcmp.ge.f32.partialorder %v1350_v19, 1.0  ;;  %v757_v59 = vld [vmem:[%s1488_s0 + $0x170] sm:$0xff] }
  0x26   :  { %v1360_v26 = vadd.f32 %v721_v11, %v254_v38  ;;  %v1362_v27 = vadd.f32 %v722_v12, %v255_v42  ;;  %v875_v24 = vpack.c.bf16 %v391_v63, %v1308_v61  ;;  %v1369_v25 = vsel %vm384_vm1, 1.0, %v929_v0  ;;  %v363_v28 = vld [vmem:[#allocation2 + $0x60] sm:$0x3]  ;;  %v758_v63 = vld [vmem:[%s1488_s0 + $0x178] sm:$0xff] }
  0x27   :  { %vm385_vm2 = vcmp.ge.f32.partialorder %v1355_v22, 1.0  ;;  %vm386_vm3 = vcmp.ge.f32.partialorder %v1357_v23, 1.0  ;;  %v878_v29 = vpack.c.bf16 %v393_v6, %v392_v2  ;;  %v410_v30 = vsub.f32 %v1350_v19, %v1369_v25  ;;  %v755_v42 = vld [vmem:[%s1488_s0 + $0x160] sm:$0xff]  ;;  %v762_v19 = vld [vmem:[%s1488_s0 + $0x198] sm:$0x3] }
  0x28   :  { %v398_v31 = vsel %vm385_vm2, 1.0, %v929_v0  ;;  %v399_v32 = vsel %vm386_vm3, 1.0, %v929_v0  ;;  %vm387_vm4 = vcmp.ge.f32.partialorder %v1360_v26, 1.0  ;;  %917 = vst [vmem:[%s1489_s1 + $0x68] sm:$0xff] %v875_v24   ;;  %vm388_vm5 = vcmp.ge.f32.partialorder %v1362_v27, 1.0  ;;  %v759_v2 = vld [vmem:[%s1488_s0 + $0x180] sm:$0xff] }
  0x29   :  { %v411_v16 = vsub.f32 %v1355_v22, %v398_v31  ;;  %v412_v17 = vsub.f32 %v1357_v23, %v399_v32  ;;  %v400_v18 = vsel %vm387_vm4, 1.0, %v929_v0  ;;  %918 = vst [vmem:[%s1489_s1 + $0x70] sm:$0xff] %v878_v29   ;;  %v401_v37 = vsel %vm388_vm5, 1.0, %v929_v0 }
  0x2a   :  { %v413_v36 = vsub.f32 %v1360_v26, %v400_v18  ;;  %v376_v38 = vadd.f32 %v723_v1, %v363_v28  ;;  %v881_v39 = vpack.c.bf16 %v395_v14, %v394_v10  ;;  %v414_v43 = vsub.f32 %v1362_v27, %v401_v37 }
  0x2b   :  { %v884_v44 = vpack.c.bf16 %v1369_v25, %v1345_v15  ;;  %v887_v45 = vpack.c.bf16 %v399_v32, %v398_v31  ;;  %v890_v46 = vpack.c.bf16 %v401_v37, %v400_v18  ;;  %v523_v47 = vadd.f32 %v750_v33, %v403_v60 }
  0x2c   :  { %vm389_vm6 = vcmp.ge.f32.partialorder %v376_v38, 1.0  ;;  %919 = vst [vmem:[%s1489_s1 + $0x78] sm:$0xff] %v881_v39   ;;  %v524_v48 = vadd.f32 %v751_v34, %v404_v4  ;;  %v525_v49 = vadd.f32 %v752_v35, %v405_v5  ;;  %v526_v51 = vadd.f32 %v753_v40, %v406_v9  ;;  %v761_v4 = vld [vmem:[%s1488_s0 + $0x190] sm:$0xff] }
  0x2d   :  { %v402_v50 = vsel %vm389_vm6, 1.0, %v929_v0  ;;  %920 = vst [vmem:[%s1489_s1 + $0x80] sm:$0xff] %v884_v44   ;;  %921 = vst [vmem:[%s1489_s1 + $0x88] sm:$0xff] %v887_v45   ;;  %v527_v52 = vadd.f32 %v754_v41, %v407_v13  ;;  %v528_v53 = vadd.f32 %v755_v42, %v408_v20  ;;  %vm536_vm7 = vcmp.ge.f32.partialorder %v523_v47, 1.0 }
  0x2e   :  { %922 = vst [vmem:[%s1489_s1 + $0x90] sm:$0xff] %v890_v46   ;;  %v415_v54 = vsub.f32 %v376_v38, %v402_v50  ;;  %v827_v55 = vpack.c.bf16 %v402_v50, %v402_v50  ;;  %vm537_vm8 = vcmp.ge.f32.partialorder %v524_v48, 1.0  ;;  %v549_v56 = vsel %vm536_vm7, 1.0, %v929_v0 }
  0x2f   :  { %v550_v57 = vsel %vm537_vm8, 1.0, %v929_v0  ;;  %vm538_vm9 = vcmp.ge.f32.partialorder %v525_v49, 1.0  ;;  %vm539_vm10 = vcmp.ge.f32.partialorder %v526_v51, 1.0  ;;  %vm540_vm11 = vcmp.ge.f32.partialorder %v527_v52, 1.0 }
  0x30   :  { %428 = vst [vmem:[#allocation2 + $0x60] sm:$0x3] %v415_v54  ;;  %749 = vst [vmem:[%s1489_s1 + $0x98] sm:$0x1] %v827_v55  ;;  %v551_v61 = vsel %vm538_vm9, 1.0, %v929_v0  ;;  %v552_v60 = vsel %vm539_vm10, 1.0, %v929_v0  ;;  %v529_v7 = vadd.f32 %v756_v58, %v409_v21  ;;  %v530_v8 = vadd.f32 %v757_v59, %v410_v30 }
  0x31   :  { %vm541_vm12 = vcmp.ge.f32.partialorder %v528_v53, 1.0  ;;  %v553_v5 = vsel %vm540_vm11, 1.0, %v929_v0  ;;  %v531_v9 = vadd.f32 %v758_v63, %v411_v16  ;;  %v532_v10 = vadd.f32 %v759_v2, %v412_v17 }
  0x32   :  { %v554_v6 = vsel %vm541_vm12, 1.0, %v929_v0  ;;  %vm542_vm13 = vcmp.ge.f32.partialorder %v529_v7, 1.0  ;;  %vm543_vm14 = vcmp.ge.f32.partialorder %v530_v8, 1.0  ;;  %v533_v11 = vadd.f32 %v760_v3, %v413_v36 }
  0x33   :  { %v534_v12 = vadd.f32 %v761_v4, %v414_v43  ;;  %v555_v13 = vsel %vm542_vm13, 1.0, %v929_v0  ;;  %v556_v14 = vsel %vm543_vm14, 1.0, %v929_v0  ;;  %vm544_vm15 = vcmp.ge.f32.partialorder %v531_v9, 1.0 }
  0x34   :  { %vm545_vm0 = vcmp.ge.f32.partialorder %v532_v10, 1.0  ;;  %v557_v62 = vsel %vm544_vm15, 1.0, %v929_v0  ;;  %vm546_vm1 = vcmp.ge.f32.partialorder %v533_v11, 1.0  ;;  %v828_v26 = vpack.c.bf16 %v549_v56, %v549_v56 }
  0x35   :  { %v558_v15 = vsel %vm545_vm0, 1.0, %v929_v0  ;;  %vm547_vm2 = vcmp.ge.f32.partialorder %v534_v12, 1.0  ;;  %v559_v21 = vsel %vm546_vm1, 1.0, %v929_v0  ;;  %v893_v27 = vpack.c.bf16 %v551_v61, %v550_v57 }
  0x36   :  { %v560_v22 = vsel %vm547_vm2, 1.0, %v929_v0  ;;  %v896_v1 = vpack.c.bf16 %v553_v5, %v552_v60  ;;  %776 = vst [vmem:[%s1489_s1 + $0x9c] sm:$0xf] %v828_v26  ;;  %v899_v24 = vpack.c.bf16 %v555_v13, %v554_v6  ;;  %v902_v25 = vpack.c.bf16 %v557_v62, %v556_v14 }
  0x37   :  { %v522_v20 = vld [vmem:[#allocation2 + $0x60] sm:$0x3]  ;;  %v905_v28 = vpack.c.bf16 %v559_v21, %v558_v15  ;;  %923 = vst [vmem:[%s1489_s1 + $0xa0] sm:$0xff] %v893_v27   ;;  %v839_v30 = vpack.c.bf16 %v560_v22, %v560_v22 }
  0x38   :  { %v535_v23 = vadd.f32 %v762_v19, %v522_v20  ;;  %924 = vst [vmem:[%s1489_s1 + $0xa8] sm:$0xff] %v896_v1   ;;  %925 = vst [vmem:[%s1489_s1 + $0xb0] sm:$0xff] %v899_v24  }
  0x39   :  { %926 = vst [vmem:[%s1489_s1 + $0xb8] sm:$0xff] %v902_v25   ;;  %927 = vst [vmem:[%s1489_s1 + $0xc0] sm:$0xff] %v905_v28  }
  0x3a   :  { %vm548_vm3 = vcmp.ge.f32.partialorder %v535_v23, 1.0  ;;  %787 = vst [vmem:[%s1489_s1 + $0xc8] sm:$0xf] %v839_v30 }
  0x3b   :  { %v561_v29 = vsel %vm548_vm3, 1.0, %v929_v0 }
  0x3c   :  { %v574_v31 = vsub.f32 %v535_v23, %v561_v29  ;;  %v840_v0 = vpack.c.bf16 %v561_v29, %v561_v29 }
  0x3e   :  { %587 = vst [vmem:[#allocation2 + $0x60] sm:$0x3] %v574_v31  ;;  %788 = vst [vmem:[%s1489_s1 + $0xcc] sm:$0x1] %v840_v0 }

// kernel: s_alexnet_forward.19
= control target key start
LH: loop header
LB: loop body
LE: loop exit
PB: predicated region body
PF: predicated region fallthrough
CT: control target
= control target key end

     0   :  { %s1280_s12 = smov 0   ;;  %s1282_s13 = smov 0   ;;  %s1485_s0 = inlined_call_operand.vmem [shape: bf16[80,1152], index: 0, kind: input, shape index: {}]   ;;  %s1486_s1 = inlined_call_operand.vmem [shape: bf16[1152,128], index: 1, kind: input, shape index: {}]   ;;  %s1487_s2 = inlined_call_operand.vmem [shape: f32[1,128], index: 2, kind: input, shape index: {}]   ;;  %s1488_s3 = inlined_call_operand.vmem [shape: f32[80,128], index: 3, kind: output, shape index: {}]  }
   0x1   :  { %s1284_s14 = smov 0   ;;  %s1286_s15 = smov 0  }
   0x2   :  { %s1288_s16 = smov 0  }
   0x3 LB: > { %s25_s17 = sadd.s32 1, %s1251_s15  ;;  %p48_p1 = scmp.ne.s32.totalorder %s1243_s13, %s1239_s12  ;;  %s1255_s16 = sphi %s1288_s16, %s13_s16   ;;  %s1251_s15 = sphi %s1286_s15, %s1492_s15   ;;  %s1247_s14 = sphi %s1284_s14, %s1491_s14   ;;  %s1243_s13 = sphi %s1282_s13, %s1490_s13   ;;  %s1239_s12 = sphi %s1280_s12, %s1489_s12  }
   0x4   : > { %p26_p0 = scmp.ge.s32.totalorder %s25_s17, 3  ;;  %p49_p2 = scmp.eq.s32.totalorder %s1255_s16, 0 }
   0x5   : > { %s41_s19 = sadd.s32 1, %s1243_s13  ;;  %p962_p5 = scmp.ge.s32.totalorder %s1255_s16, 3 }
   0x6   : > { %s1494_s17 = smov (%p26_p0, %s25_s17), 0  ;;  %p50_p3 = por %p49_p2, %p48_p1 }
   0x7   : > { %s37_s18 = ssub.s32 %s1251_s15, %s1494_s17  ;;  %162 = sbr.rel (%p962_p5) target bundleno = 30 (0x1e), region = 20 }
   0x8   : > { %p39_p4 = scmp.eq.s32.totalorder %s37_s18, 0 }
   0xa   : > { %s1315_s20 = scalar_select %p39_p4, %s1243_s13, %s41_s19  }
   0xe   : > { %165 = sbr.rel (!%p50_p3) target bundleno = 30 (0x1e), region = 24  ;;  %s167_s21 = sand.u32 (%p50_p3), 1, %s1243_s13  }
   0xf   : > { %s1032_s22 = smul.u32 (%p50_p3), 12, %s1251_s15 }
  0x10   : > { %s1128_s23 = smul.u32 (%p50_p3), 120, %s167_s21 }
  0x11   : > { %s1323_s26 = scalar_lea.vmem (%p50_p3), %s1485_s0, %s1032_s22 }
  0x12   : > { %v190_v0 = vld [vmem:[%s1323_s26] sm:$0xff] (%p50_p3)  ;;  %v194_v2 = vld [vmem:[%s1323_s26 + $0x48] sm:$0xff] (%p50_p3)  ;;  %s1328_s27 = scalar_lea.vmem (%p50_p3), [#allocation3], %s1128_s23  ;;  %v198_v4 = vld [vmem:[%s1323_s26 + $0x90] sm:$0xff] (%p50_p3) }
  0x13   : > { %v192_v1 = vld [vmem:[%s1323_s26 + $0x24] sm:$0xff] (%p50_p3)  ;;  %191 = vst [vmem:[%s1328_s27] sm:$0xff] (%p50_p3), %v190_v0  ;;  %195 = vst [vmem:[%s1328_s27 + $0x18] sm:$0xff] (%p50_p3), %v194_v2  ;;  %v196_v3 = vld [vmem:[%s1323_s26 + $0x6c] sm:$0xff] (%p50_p3) }
  0x14   : > { %193 = vst [vmem:[%s1328_s27 + $0xc] sm:$0xff] (%p50_p3), %v192_v1  ;;  %v200_v5 = vld [vmem:[%s1323_s26 + $0xb4] sm:$0xff] (%p50_p3)  ;;  %197 = vst [vmem:[%s1328_s27 + $0x24] sm:$0xff] (%p50_p3), %v196_v3  ;;  %v204_v7 = vld [vmem:[%s1323_s26 + $0xfc] sm:$0xff] (%p50_p3) }
  0x15   : > { %199 = vst [vmem:[%s1328_s27 + $0x30] sm:$0xff] %v198_v4  ;;  %201 = vst [vmem:[%s1328_s27 + $0x3c] sm:$0xff] %v200_v5  ;;  %v202_v6 = vld [vmem:[%s1323_s26 + $0xd8] sm:$0xff]  ;;  %v206_v8 = vld [vmem:[%s1323_s26 + $0x120] sm:$0xff] }
  0x16   : > { %203 = vst [vmem:[%s1328_s27 + $0x48] sm:$0xff] %v202_v6  ;;  %205 = vst [vmem:[%s1328_s27 + $0x54] sm:$0xff] %v204_v7  ;;  %v208_v9 = vld [vmem:[%s1323_s26 + $0x144] sm:$0xff]  ;;  %v966_v11 = vld [vmem:[%s1323_s26 + $0x2c] sm:$0xf] }
  0x17   : > { %207 = vst [vmem:[%s1328_s27 + $0x60] sm:$0xff] %v206_v8  ;;  %v964_v10 = vld [vmem:[%s1323_s26 + $0x8] sm:$0xf]  ;;  %209 = vst [vmem:[%s1328_s27 + $0x6c] sm:$0xff] %v208_v9  ;;  %v968_v12 = vld [vmem:[%s1323_s26 + $0x50] sm:$0xf] }
  0x18   : > { %965 = vst [vmem:[%s1328_s27 + $0x8] sm:$0xf] %v964_v10  ;;  %967 = vst [vmem:[%s1328_s27 + $0x14] sm:$0xf] %v966_v11  ;;  %v970_v13 = vld [vmem:[%s1323_s26 + $0x74] sm:$0xf] }
  0x19   : > { %v972_v14 = vld [vmem:[%s1323_s26 + $0x98] sm:$0xf]  ;;  %969 = vst [vmem:[%s1328_s27 + $0x20] sm:$0xf] %v968_v12  ;;  %971 = vst [vmem:[%s1328_s27 + $0x2c] sm:$0xf] %v970_v13 }
  0x1a   : > { %973 = vst [vmem:[%s1328_s27 + $0x38] sm:$0xf] %v972_v14  ;;  %v974_v15 = vld [vmem:[%s1323_s26 + $0xbc] sm:$0xf]  ;;  %v976_v16 = vld [vmem:[%s1323_s26 + $0xe0] sm:$0xf] }
  0x1b   : > { %v978_v17 = vld [vmem:[%s1323_s26 + $0x104] sm:$0xf]  ;;  %975 = vst [vmem:[%s1328_s27 + $0x44] sm:$0xf] %v974_v15  ;;  %977 = vst [vmem:[%s1328_s27 + $0x50] sm:$0xf] %v976_v16 }
  0x1c   : > { %979 = vst [vmem:[%s1328_s27 + $0x5c] sm:$0xf] %v978_v17  ;;  %v980_v18 = vld [vmem:[%s1323_s26 + $0x128] sm:$0xf]  ;;  %v982_v19 = vld [vmem:[%s1323_s26 + $0x14c] sm:$0xf] }
  0x1d   : > { %981 = vst [vmem:[%s1328_s27 + $0x68] sm:$0xf] %v980_v18  ;;  %983 = vst [vmem:[%s1328_s27 + $0x74] sm:$0xf] %v982_v19 }
  0x1e PF: > { %p984_p6 = scmp.ge.s32.totalorder %s1255_s16, 1  ;;  %p253_p7 = scmp.lt.s32.totalorder %s1255_s16, 4 }
  0x20   : > { %p254_p8 = pnand %p984_p6, %p253_p7 }
  0x21   : > { %s260_s28 = sand.u32 (!%p254_p8), 1, %s1239_s12   ;;  %s299_s29 = smul.u32 (!%p254_p8), 48, %s1247_s14 }
  0x22   : > { %257 = sbr.rel (%p254_p8) target bundleno = 345 (0x159), region = 54  ;;  %p986_p10 = scmp.ne.s32.totalorder (!%p254_p8), %s1247_s14, 0 }
  0x23   : > { %s1129_s30 = smul.u32 (!%p254_p8), 120, %s260_s28  ;;  %p300_p9 = scmp.lt.s32.totalorder (!%p254_p8), %s299_s29, 143 }
  0x25   : > { %s1376_s8 = scalar_lea.vmem (!%p254_p8), [#allocation3], %s1129_s30 }
  0x29   : > { %s1496_s29 = smov (!%p300_p9, %s299_s29), 143  ;;  %324 = sbr.rel (%p986_p10) target bundleno = 48 (0x30), region = 62 }
  0x2a   : > { %s985_s4 = sshll.u32 %s1496_s29, 2  ;;  %v1257_v20 = vmov (!%p986_p10), 0.0  }
  0x2b   : > { %s1374_s7 = scalar_lea.vmem %s1486_s1, %s985_s4  ;;  %325 = vst [vmem:[#allocation2] sm:$0xff] (!%p986_p10), %v1257_v20  ;;  %326 = vst [vmem:[#allocation2 + $0x8] sm:$0xff] (!%p986_p10), %v1257_v20 }
  0x2c   : > { %327 = vst [vmem:[#allocation2 + $0x10] sm:$0xff] (!%p986_p10), %v1257_v20  ;;  %328 = vst [vmem:[#allocation2 + $0x18] sm:$0xff] (!%p986_p10), %v1257_v20 }
  0x2d   : > { %329 = vst [vmem:[#allocation2 + $0x20] sm:$0xff] (!%p986_p10), %v1257_v20  ;;  %330 = vst [vmem:[#allocation2 + $0x28] sm:$0xff] (!%p986_p10), %v1257_v20 }
  0x2e   : > { %331 = vst [vmem:[#allocation2 + $0x30] sm:$0xff] (!%p986_p10), %v1257_v20  ;;  %332 = vst [vmem:[#allocation2 + $0x38] sm:$0xff] (!%p986_p10), %v1257_v20 }
  0x2f   : > { %333 = vst [vmem:[#allocation2 + $0x40] sm:$0xff] (!%p986_p10), %v1257_v20  ;;  %334 = vst [vmem:[#allocation2 + $0x48] sm:$0xff] (!%p986_p10), %v1257_v20 }
  0x30 PF: > { %v1173_v21 = vld [vmem:[%s1374_s7 + $0x40] sm:$0xff]   ;;  %v1258_v22 = vmov 0.0   ;;  %vm1259_vm0 = vmmov 0   ;;  %v1176_v25 = vld [vmem:[%s1374_s7 + $0x48] sm:$0xff]   ;;  %v1179_v28 = vld [vmem:[%s1374_s7 + $0x50] sm:$0xff]   ;;  %p1026_p11 = scmp.ne.s32.totalorder %s1247_s14, 2 }
  0x31   : > { %1092 = vmatprep.subr.bf16.mxu1 %v1258_v22  ;;  %v1174_v23 = vld [vmem:[%s1374_s7] sm:$0xff]   ;;  %1033 = vmatprep.subr.bf16.mxu0 %v1173_v21  ;;  %v1177_v26 = vld [vmem:[%s1374_s7 + $0x8] sm:$0xff]   ;;  %v1180_v29 = vld [vmem:[%s1374_s7 + $0x10] sm:$0xff]  }
  0x32   : > { %v1175_v24 = vld [vmem:[%s1374_s7 + $0x80] sm:$0xff]   ;;  %1108 = vmatprep.mubr.msk.bf16.mxu1 %vm1259_vm0, %v1258_v22  ;;  %1034 = vmatpush3.bf16.msra.mxu0 %v1174_v23  ;;  %v1178_v27 = vld [vmem:[%s1374_s7 + $0x88] sm:$0xff]   ;;  %v1181_v30 = vld [vmem:[%s1374_s7 + $0x90] sm:$0xff]  }
  0x33   : > { %1093 = vmatpush3.bf16.msra.mxu1 %v1175_v24  ;;  %1035 = vmatprep.subr.bf16.mxu0 %v1176_v25  ;;  %v1182_v31 = vld [vmem:[%s1374_s7 + $0x58] sm:$0xff]   ;;  %v1185_v34 = vld [vmem:[%s1374_s7 + $0x60] sm:$0xff]   ;;  %v1188_v37 = vld [vmem:[%s1374_s7 + $0x68] sm:$0xff]  }
  0x34   : > { %1094 = vmatprep.subr.bf16.mxu1 %v1258_v22  ;;  %v1183_v32 = vld [vmem:[%s1374_s7 + $0x18] sm:$0xff]   ;;  %v1186_v35 = vld [vmem:[%s1374_s7 + $0x20] sm:$0xff]   ;;  %v1189_v38 = vld [vmem:[%s1374_s7 + $0x28] sm:$0xff]  }
  0x35   : > { %v1184_v33 = vld [vmem:[%s1374_s7 + $0x98] sm:$0xff]   ;;  %v1187_v36 = vld [vmem:[%s1374_s7 + $0xa0] sm:$0xff]   ;;  %v1190_v39 = vld [vmem:[%s1374_s7 + $0xa8] sm:$0xff]  }
  0x36   : > { %1036 = vmatpush3.bf16.msra.mxu0 %v1177_v26  ;;  %v1191_v40 = vld [vmem:[%s1374_s7 + $0x70] sm:$0xff]   ;;  %v1194_v43 = vld [vmem:[%s1374_s7 + $0x78] sm:$0xff]   ;;  %v335_v3 = vld [vmem:[#allocation2] sm:$0xff] }
  0x37   : > { %1095 = vmatpush3.bf16.msra.mxu1 %v1178_v27  ;;  %1037 = vmatprep.subr.bf16.mxu0 %v1179_v28  ;;  %v1192_v41 = vld [vmem:[%s1374_s7 + $0x30] sm:$0xff]   ;;  %v1195_v45 = vld [vmem:[%s1374_s7 + $0x38] sm:$0xff]   ;;  %v336_v9 = vld [vmem:[#allocation2 + $0x8] sm:$0xff] }
  0x38   : > { %1096 = vmatprep.subr.bf16.mxu1 %v1258_v22  ;;  %v1193_v42 = vld [vmem:[%s1374_s7 + $0xb0] sm:$0xff]   ;;  %v1196_v46 = vld [vmem:[%s1374_s7 + $0xb8] sm:$0xff]  }
  0x39   : > { %v1199_v44 = vld [vmem:[%s1376_s8 + $0x4] ss:$12 sps:$4 sm:$0xff]   ;;  %v1197_v47 = vld [vmem:[%s1376_s8] ss:$12 sps:$4 sm:$0xff]   ;;  %v1200_v48 = vld [vmem:[%s1376_s8 + $0x8] ss:$12 sps:$4 sm:$0xff]  }
  0x3a   : > { %1038 = vmatpush3.bf16.msra.mxu0 %v1180_v29  ;;  %669 = vmatprep.mubr.bf16.mxu0 %v1199_v44  ;;  %v1201_v49 = vld [vmem:[%s1376_s8 + $0x1c] ss:$12 sps:$4 sm:$0xff]   ;;  %v1203_v50 = vld [vmem:[%s1376_s8 + $0x18] ss:$12 sps:$4 sm:$0xff]   ;;  %v1204_v51 = vld [vmem:[%s1376_s8 + $0x20] ss:$12 sps:$4 sm:$0xff]  }
  0x3b   : > { %1097 = vmatpush3.bf16.msra.mxu1 %v1181_v30  ;;  %1039 = vmatprep.subr.bf16.mxu0 %v1182_v31  ;;  %v1205_v52 = vld [vmem:[%s1376_s8 + $0x34] ss:$12 sps:$4 sm:$0xff]   ;;  %v1207_v53 = vld [vmem:[%s1376_s8 + $0x30] ss:$12 sps:$4 sm:$0xff]   ;;  %v1208_v54 = vld [vmem:[%s1376_s8 + $0x38] ss:$12 sps:$4 sm:$0xff]  }
  0x3c   : > { %1098 = vmatprep.subr.bf16.mxu1 %v1258_v22  ;;  %v1209_v55 = vld [vmem:[%s1376_s8 + $0x4c] ss:$12 sps:$4 sm:$0xff]   ;;  %v1211_v56 = vld [vmem:[%s1376_s8 + $0x48] ss:$12 sps:$4 sm:$0xff]   ;;  %v1212_v57 = vld [vmem:[%s1376_s8 + $0x50] ss:$12 sps:$4 sm:$0xff]  }
  0x3d   : > { %v1213_v58 = vld [vmem:[%s1376_s8 + $0x64] ss:$12 sps:$4 sm:$0xff]   ;;  %v1215_v59 = vld [vmem:[%s1376_s8 + $0x60] ss:$12 sps:$4 sm:$0xff]   ;;  %v1216_v60 = vld [vmem:[%s1376_s8 + $0x68] ss:$12 sps:$4 sm:$0xff]  }
  0x3e   : > { %1040 = vmatpush3.bf16.msra.mxu0 %v1183_v32  ;;  %v337_v19 = vld [vmem:[#allocation2 + $0x10] sm:$0xff]  ;;  %v338_v25 = vld [vmem:[#allocation2 + $0x18] sm:$0xff] }
  0x3f   : > { %1099 = vmatpush3.bf16.msra.mxu1 %v1184_v33  ;;  %1041 = vmatprep.subr.bf16.mxu0 %v1185_v34 }
  0x40   : > { %1100 = vmatprep.subr.bf16.mxu1 %v1258_v22 }
  0x42   : > { %1042 = vmatpush3.bf16.msra.mxu0 %v1186_v35  ;;  %v339_v35 = vld [vmem:[#allocation2 + $0x20] sm:$0xff] }
  0x43   : > { %1101 = vmatpush3.bf16.msra.mxu1 %v1187_v36  ;;  %1043 = vmatprep.subr.bf16.mxu0 %v1188_v37 }
  0x44   : > { %1102 = vmatprep.subr.bf16.mxu1 %v1258_v22 }
  0x46   : > { %1044 = vmatpush3.bf16.msra.mxu0 %v1189_v38 }
  0x47   : > { %1103 = vmatpush3.bf16.msra.mxu1 %v1190_v39  ;;  %1045 = vmatprep.subr.bf16.mxu0 %v1191_v40 }
  0x48   : > { %1104 = vmatprep.subr.bf16.mxu1 %v1258_v22 }
  0x4a   : > { %1046 = vmatpush3.bf16.msra.mxu0 %v1192_v41  ;;  %v340_v41 = vld [vmem:[#allocation2 + $0x28] sm:$0xff] }
  0x4b   : > { %1105 = vmatpush3.bf16.msra.mxu1 %v1193_v42  ;;  %1047 = vmatprep.subr.bf16.mxu0 %v1194_v43 }
  0x4c   : > { %1106 = vmatprep.subr.bf16.mxu1 %v1258_v22 }
  0x4e   : > { %1048 = vmatpush3.bf16.msra.mxu0 %v1195_v45 }
  0x4f   : > { %1107 = vmatpush3.bf16.msra.mxu1 %v1196_v46 }
  0x51   : > { %670 = vmatmul.mubr.bf16.vlgmr.msra.gmra.mrb[0].mxu0 %v1197_v47 }
  0x52   : > { %1109 = vmatmul.mubr.bf16.vlgmr.msra.gmra.mrb[0].mxu1 %v1200_v48  ;;  %677 = vmatprep.mubr.bf16.mxu0 %v1201_v49 }
  0x53   : > { %1112 = vmatprep.mubr.msk.bf16.mxu1 %vm1259_vm0, %v1258_v22 }
  0x59   : > { %678 = vmatmul.mubr.bf16.gmra.mrb[4].mxu0 %v1203_v50 }
  0x5a   : > { %1113 = vmatmul.mubr.bf16.gmra.mrb[4].mxu1 %v1204_v51  ;;  %685 = vmatprep.mubr.bf16.mxu0 %v1205_v52  ;;  %v341_v51 = vld [vmem:[#allocation2 + $0x30] sm:$0xff] }
  0x5b   : > { %1116 = vmatprep.mubr.msk.bf16.mxu1 %vm1259_vm0, %v1258_v22 }
  0x61   : > { %686 = vmatmul.mubr.bf16.gmra.mrb[8].mxu0 %v1207_v53 }
  0x62   : > { %1117 = vmatmul.mubr.bf16.gmra.mrb[8].mxu1 %v1208_v54  ;;  %693 = vmatprep.mubr.bf16.mxu0 %v1209_v55 }
  0x63   : > { %1120 = vmatprep.mubr.msk.bf16.mxu1 %vm1259_vm0, %v1258_v22 }
  0x69   : > { %694 = vmatmul.mubr.bf16.gmra.mrb[12].mxu0 %v1211_v56 }
  0x6a   : > { %1121 = vmatmul.mubr.bf16.gmra.mrb[12].mxu1 %v1212_v57  ;;  %701 = vmatprep.mubr.bf16.mxu0 %v1213_v58  ;;  %v342_v57 = vld [vmem:[#allocation2 + $0x38] sm:$0xff] }
  0x6b   : > { %1124 = vmatprep.mubr.msk.bf16.mxu1 %vm1259_vm0, %v1258_v22 }
  0x71   : > { %702 = vmatmul.mubr.bf16.gmra.mrb[16].mxu0 %v1215_v59 }
  0x72   : > { %1125 = vmatmul.mubr.bf16.gmra.mrb[16].mxu1 %v1216_v60 }
 0x124   : > { %v1049_v61 = vpop.f32.mrb[0].mxu0 }
 0x125   : > { %v744_v62 = vpop.f32.mrb[0].mxu1  ;;  %v1050_v63 = vpop.f32.mrb[1].mxu0 }
 0x126   : > { %v1051_v0 = vadd.f32 %v1050_v63, %v1049_v61  ;;  %v1110_v1 = vpop.f32.mrb[1].mxu1  ;;  %v1052_v2 = vpop.f32.mrb[2].mxu0 }
 0x127   : > { %v747_v4 = vpop.f32.mrb[2].mxu1  ;;  %v1053_v5 = vpop.f32.mrb[3].mxu0 }
 0x128   : > { %v745_v6 = vadd.f32 %v1051_v0, %v744_v62  ;;  %v1054_v7 = vadd.f32 %v1053_v5, %v1052_v2  ;;  %v1111_v8 = vpop.f32.mrb[3].mxu1 }
 0x12a   : > { %v783_v10 = vadd.f32 %v745_v6, %v335_v3  ;;  %v748_v11 = vadd.f32 %v1054_v7, %v747_v4  ;;  %v343_v3 = vld [vmem:[#allocation2 + $0x40] sm:$0xff] }
 0x12c   : > { %793 = vst [vmem:[#allocation2] sm:$0xff] %v783_v10  ;;  %v784_v12 = vadd.f32 %v748_v11, %v336_v9  ;;  %v1055_v13 = vpop.f32.mrb[4].mxu0  ;;  %v344_v9 = vld [vmem:[#allocation2 + $0x48] sm:$0xff] }
 0x12d   : > { %v752_v14 = vpop.f32.mrb[4].mxu1  ;;  %v1056_v15 = vpop.f32.mrb[5].mxu0 }
 0x12e   : > { %794 = vst [vmem:[#allocation2 + $0x8] sm:$0xff] %v784_v12  ;;  %v1057_v16 = vadd.f32 %v1056_v15, %v1055_v13  ;;  %v1114_v17 = vpop.f32.mrb[5].mxu1  ;;  %v1058_v18 = vpop.f32.mrb[6].mxu0 }
 0x12f   : > { %v755_v20 = vpop.f32.mrb[6].mxu1  ;;  %v1059_v21 = vpop.f32.mrb[7].mxu0 }
 0x130   : > { %v753_v22 = vadd.f32 %v1057_v16, %v752_v14  ;;  %v1060_v23 = vadd.f32 %v1059_v21, %v1058_v18  ;;  %v1115_v24 = vpop.f32.mrb[7].mxu1  ;;  %v1027_v14 = vld [vmem:[%s1487_s2] ss:$0 sm:$0xff] (!%p1026_p11) }
 0x132   : > { %v785_v26 = vadd.f32 %v753_v22, %v337_v19  ;;  %v756_v27 = vadd.f32 %v1060_v23, %v755_v20 }
 0x133   : > { %v807_v13 = vld [vmem:[#allocation2] sm:$0xff] (!%p1026_p11) }
 0x134   : > { %795 = vst [vmem:[#allocation2 + $0x10] sm:$0xff] %v785_v26  ;;  %v786_v28 = vadd.f32 %v756_v27, %v338_v25  ;;  %v1061_v29 = vpop.f32.mrb[8].mxu0  ;;  %v824_v16 = vadd.f32 (!%p1026_p11), %v1027_v14, %v807_v13 }
 0x135   : > { %v760_v30 = vpop.f32.mrb[8].mxu1  ;;  %v1062_v31 = vpop.f32.mrb[9].mxu0  ;;  %v808_v15 = vld [vmem:[#allocation2 + $0x8] sm:$0xff] (!%p1026_p11) }
 0x136   : > { %796 = vst [vmem:[#allocation2 + $0x18] sm:$0xff] %v786_v28  ;;  %v1063_v32 = vadd.f32 %v1062_v31, %v1061_v29  ;;  %v1118_v33 = vpop.f32.mrb[9].mxu1  ;;  %v1064_v34 = vpop.f32.mrb[10].mxu0  ;;  %v825_v17 = vadd.f32 (!%p1026_p11), %v1027_v14, %v808_v15  ;;  %834 = vst [vmem:[%s1488_s3] sm:$0xff] (!%p1026_p11), %v824_v16 }
 0x137   : > { %v763_v36 = vpop.f32.mrb[10].mxu1  ;;  %v1065_v37 = vpop.f32.mrb[11].mxu0 }
 0x138   : > { %v761_v38 = vadd.f32 %v1063_v32, %v760_v30  ;;  %v1066_v39 = vadd.f32 %v1065_v37, %v1064_v34  ;;  %v1119_v40 = vpop.f32.mrb[11].mxu1  ;;  %835 = vst [vmem:[%s1488_s3 + $0x8] sm:$0xff] (!%p1026_p11), %v825_v17 }
 0x13a   : > { %v787_v42 = vadd.f32 %v761_v38, %v339_v35  ;;  %v764_v43 = vadd.f32 %v1066_v39, %v763_v36 }
 0x13b   : > { %v809_v18 = vld [vmem:[#allocation2 + $0x10] sm:$0xff] (!%p1026_p11) }
 0x13c   : > { %797 = vst [vmem:[#allocation2 + $0x20] sm:$0xff] %v787_v42  ;;  %v788_v44 = vadd.f32 %v764_v43, %v340_v41  ;;  %v1067_v45 = vpop.f32.mrb[12].mxu0  ;;  %v826_v21 = vadd.f32 (!%p1026_p11), %v1027_v14, %v809_v18 }
 0x13d   : > { %v768_v46 = vpop.f32.mrb[12].mxu1  ;;  %v1068_v47 = vpop.f32.mrb[13].mxu0  ;;  %v810_v19 = vld [vmem:[#allocation2 + $0x18] sm:$0xff] (!%p1026_p11) }
 0x13e   : > { %798 = vst [vmem:[#allocation2 + $0x28] sm:$0xff] %v788_v44  ;;  %v1069_v48 = vadd.f32 %v1068_v47, %v1067_v45  ;;  %v1122_v49 = vpop.f32.mrb[13].mxu1  ;;  %v1070_v50 = vpop.f32.mrb[14].mxu0  ;;  %v827_v22 = vadd.f32 (!%p1026_p11), %v1027_v14, %v810_v19  ;;  %836 = vst [vmem:[%s1488_s3 + $0x10] sm:$0xff] (!%p1026_p11), %v826_v21 }
 0x13f   : > { %v771_v52 = vpop.f32.mrb[14].mxu1  ;;  %v1071_v53 = vpop.f32.mrb[15].mxu0 }
 0x140   : > { %v769_v54 = vadd.f32 %v1069_v48, %v768_v46  ;;  %v1072_v55 = vadd.f32 %v1071_v53, %v1070_v50  ;;  %v1123_v56 = vpop.f32.mrb[15].mxu1  ;;  %837 = vst [vmem:[%s1488_s3 + $0x18] sm:$0xff] (!%p1026_p11), %v827_v22 }
 0x142   : > { %v789_v58 = vadd.f32 %v769_v54, %v341_v51  ;;  %v772_v59 = vadd.f32 %v1072_v55, %v771_v52 }
 0x143   : > { %v811_v20 = vld [vmem:[#allocation2 + $0x20] sm:$0xff] (!%p1026_p11) }
 0x144   : > { %799 = vst [vmem:[#allocation2 + $0x30] sm:$0xff] %v789_v58  ;;  %v790_v60 = vadd.f32 %v772_v59, %v342_v57  ;;  %v1073_v61 = vpop.f32.mrb[16].mxu0  ;;  %v828_v23 = vadd.f32 (!%p1026_p11), %v1027_v14, %v811_v20 }
 0x145   : > { %v776_v62 = vpop.f32.mrb[16].mxu1  ;;  %v1074_v63 = vpop.f32.mrb[17].mxu0  ;;  %v812_v24 = vld [vmem:[#allocation2 + $0x28] sm:$0xff] (!%p1026_p11) }
 0x146   : > { %800 = vst [vmem:[#allocation2 + $0x38] sm:$0xff] %v790_v60  ;;  %v1075_v0 = vadd.f32 %v1074_v63, %v1073_v61  ;;  %v1126_v1 = vpop.f32.mrb[17].mxu1  ;;  %v1076_v2 = vpop.f32.mrb[18].mxu0  ;;  %v829_v27 = vadd.f32 (!%p1026_p11), %v1027_v14, %v812_v24  ;;  %838 = vst [vmem:[%s1488_s3 + $0x20] sm:$0xff] (!%p1026_p11), %v828_v23 }
 0x147   : > { %v779_v4 = vpop.f32.mrb[18].mxu1  ;;  %v1077_v5 = vpop.f32.mrb[19].mxu0 }
 0x148   : > { %v777_v6 = vadd.f32 %v1075_v0, %v776_v62  ;;  %v1078_v7 = vadd.f32 %v1077_v5, %v1076_v2  ;;  %v1127_v8 = vpop.f32.mrb[19].mxu1  ;;  %806 = sbr.rel (%p1026_p11) target bundleno = 345 (0x159), region = 66  ;;  %839 = vst [vmem:[%s1488_s3 + $0x28] sm:$0xff] (!%p1026_p11), %v829_v27 }
 0x14a   : > { %v791_v10 = vadd.f32 %v777_v6, %v343_v3  ;;  %v780_v11 = vadd.f32 %v1078_v7, %v779_v4 }
 0x14b   : > { %v813_v25 = vld [vmem:[#allocation2 + $0x30] sm:$0xff] (!%p1026_p11) }
 0x14c   : > { %801 = vst [vmem:[#allocation2 + $0x40] sm:$0xff] %v791_v10  ;;  %v792_v12 = vadd.f32 %v780_v11, %v344_v9  ;;  %v830_v28 = vadd.f32 (!%p1026_p11), %v1027_v14, %v813_v25 }
 0x14d   : > { %v814_v26 = vld [vmem:[#allocation2 + $0x38] sm:$0xff] (!%p1026_p11) }
 0x14e   : > { %802 = vst [vmem:[#allocation2 + $0x48] sm:$0xff] %v792_v12  ;;  %v831_v29 = vadd.f32 (!%p1026_p11), %v1027_v14, %v814_v26  ;;  %840 = vst [vmem:[%s1488_s3 + $0x30] sm:$0xff] (!%p1026_p11), %v830_v28 }
 0x150   : > { %841 = vst [vmem:[%s1488_s3 + $0x38] sm:$0xff] %v831_v29 }
 0x153   : > { %v815_v30 = vld [vmem:[#allocation2 + $0x40] sm:$0xff] }
 0x154   : > { %v832_v32 = vadd.f32 %v1027_v14, %v815_v30 }
 0x155   : > { %v816_v31 = vld [vmem:[#allocation2 + $0x48] sm:$0xff] }
 0x156   : > { %v833_v33 = vadd.f32 %v1027_v14, %v816_v31  ;;  %842 = vst [vmem:[%s1488_s3 + $0x40] sm:$0xff] %v832_v32 }
 0x158   : > { %843 = vst [vmem:[%s1488_s3 + $0x48] sm:$0xff] %v833_v33 }
 0x159 PF: > { %s13_s16 = sadd.s32 1, %s1255_s16   ;;  %s1489_s12 = smov %s1243_s13 }
 0x15a   : > { %p10_p12 = scmp.ge.s32.totalorder %s13_s16, 5   ;;  %s1490_s13 = smov %s1315_s20 }
 0x15b   : > { %s1491_s14 = smov %s1251_s15  ;;  %s1492_s15 = smov %s1494_s17 }
 0x15c   :  { %12 = sbr.rel (!%p10_p12) target bundleno = 3 (0x3), region = 113 }

// kernel: s_alexnet_forward.20
= control target key start
LH: loop header
LB: loop body
LE: loop exit
PB: predicated region body
PF: predicated region fallthrough
CT: control target
= control target key end

     0   :  { %v219_v0 = vmov 0.0   ;;  %s309_s0 = inlined_call_operand.vmem [shape: f32[4,18,128], index: 0, kind: input, shape index: {}]   ;;  %s310_s1 = inlined_call_operand.vmem [shape: bf16[4,18,128], index: 1, kind: output, shape index: {}]  }
   0x1   :  { %10 = vst [vmem:[#allocation2 + $0x10] sm:$0x3] %v219_v0  ;;  %v11_v1 = vld [vmem:[%s309_s0] sm:$0xff]  ;;  %v12_v2 = vld [vmem:[%s309_s0 + $0x8] sm:$0xff]  ;;  %v172_v5 = vld [vmem:[%s309_s0 + $0x18] sm:$0xff] }
   0x2   :  { %vm20_vm0 = vcmp.ge.f32.partialorder %v11_v1, 1.0  ;;  %vm21_vm1 = vcmp.ge.f32.partialorder %v12_v2, 1.0  ;;  %v173_v6 = vld [vmem:[%s309_s0 + $0x20] sm:$0xff]  ;;  %v13_v9 = vld [vmem:[%s309_s0 + $0x10] sm:$0x3]  ;;  %v182_v18 = vld [vmem:[%s309_s0 + $0x38] sm:$0xff] }
   0x3   :  { %v23_v3 = vsel %vm20_vm0, 1.0, %v219_v0  ;;  %v24_v4 = vsel %vm21_vm1, 1.0, %v219_v0  ;;  %v181_v17 = vld [vmem:[%s309_s0 + $0x30] sm:$0xff]  ;;  %v190_v30 = vld [vmem:[%s309_s0 + $0x48] sm:$0xff]  ;;  %v183_v47 = vld [vmem:[%s309_s0 + $0x40] sm:$0x3] }
   0x4   :  { %v26_v7 = vsub.f32 %v11_v1, %v23_v3  ;;  %v27_v8 = vsub.f32 %v12_v2, %v24_v4  ;;  %v212_v10 = vpack.c.bf16 %v24_v4, %v23_v3  ;;  %v191_v31 = vld [vmem:[%s309_s0 + $0x50] sm:$0xff]  ;;  %v174_v35 = vld [vmem:[%s309_s0 + $0x28] sm:$0x3]  ;;  %v192_v53 = vld [vmem:[%s309_s0 + $0x58] sm:$0x3] }
   0x6   :  { %213 = vst [vmem:[%s310_s1] sm:$0xff] %v212_v10   ;;  %v55_v12 = vadd.f32 %v172_v5, %v26_v7  ;;  %v56_v13 = vadd.f32 %v173_v6, %v27_v8 }
   0x8   :  { %v16_v11 = vld [vmem:[#allocation2 + $0x10] sm:$0x3]  ;;  %vm58_vm2 = vcmp.ge.f32.partialorder %v55_v12, 1.0  ;;  %vm59_vm3 = vcmp.ge.f32.partialorder %v56_v13, 1.0 }
   0x9   :  { %v19_v14 = vadd.f32 %v16_v11, %v13_v9  ;;  %v61_v15 = vsel %vm58_vm2, 1.0, %v219_v0  ;;  %v62_v16 = vsel %vm59_vm3, 1.0, %v219_v0 }
   0xa   :  { %v64_v20 = vsub.f32 %v55_v12, %v61_v15  ;;  %v65_v21 = vsub.f32 %v56_v13, %v62_v16  ;;  %v202_v22 = vpack.c.bf16 %v61_v15, %v61_v15  ;;  %v203_v25 = vpack.c.bf16 %v62_v16, %v62_v16 }
   0xb   :  { %vm22_vm4 = vcmp.ge.f32.partialorder %v19_v14, 1.0 }
   0xc   :  { %v25_v19 = vsel %vm22_vm4, 1.0, %v219_v0  ;;  %178 = vst [vmem:[%s310_s1 + $0xc] sm:$0xf] %v202_v22  ;;  %v94_v26 = vadd.f32 %v181_v17, %v64_v20  ;;  %v95_v27 = vadd.f32 %v182_v18, %v65_v21  ;;  %179 = vst [vmem:[%s310_s1 + $0x10] sm:$0xf] %v203_v25 }
   0xd   :  { %v28_v23 = vsub.f32 %v19_v14, %v25_v19  ;;  %v201_v24 = vpack.c.bf16 %v25_v19, %v25_v19 }
   0xe   :  { %vm97_vm5 = vcmp.ge.f32.partialorder %v94_v26, 1.0  ;;  %vm98_vm6 = vcmp.ge.f32.partialorder %v95_v27, 1.0 }
   0xf   :  { %31 = vst [vmem:[#allocation2 + $0x10] sm:$0x3] %v28_v23  ;;  %47 = vst [vmem:[%s310_s1 + $0x8] sm:$0x1] %v201_v24  ;;  %v100_v28 = vsel %vm97_vm5, 1.0, %v219_v0  ;;  %v101_v29 = vsel %vm98_vm6, 1.0, %v219_v0 }
  0x10   :  { %v103_v32 = vsub.f32 %v94_v26, %v100_v28  ;;  %v104_v33 = vsub.f32 %v95_v27, %v101_v29  ;;  %v215_v34 = vpack.c.bf16 %v101_v29, %v100_v28 }
  0x12   :  { %217 = vst [vmem:[%s310_s1 + $0x18] sm:$0xff] %v215_v34   ;;  %v133_v36 = vadd.f32 %v190_v30, %v103_v32  ;;  %v134_v37 = vadd.f32 %v191_v31, %v104_v33 }
  0x14   :  { %vm136_vm7 = vcmp.ge.f32.partialorder %v133_v36, 1.0  ;;  %vm137_vm8 = vcmp.ge.f32.partialorder %v134_v37, 1.0 }
  0x15   :  { %v139_v40 = vsel %vm136_vm7, 1.0, %v219_v0  ;;  %v140_v41 = vsel %vm137_vm8, 1.0, %v219_v0 }
  0x16   :  { %v54_v38 = vld [vmem:[#allocation2 + $0x10] sm:$0x3]  ;;  %v208_v42 = vpack.c.bf16 %v139_v40, %v139_v40  ;;  %v209_v43 = vpack.c.bf16 %v140_v41, %v140_v41 }
  0x17   :  { %v57_v39 = vadd.f32 %v174_v35, %v54_v38 }
  0x18   :  { %196 = vst [vmem:[%s310_s1 + $0x24] sm:$0xf] %v208_v42  ;;  %197 = vst [vmem:[%s310_s1 + $0x28] sm:$0xf] %v209_v43 }
  0x19   :  { %vm60_vm9 = vcmp.ge.f32.partialorder %v57_v39, 1.0 }
  0x1a   :  { %v63_v44 = vsel %vm60_vm9, 1.0, %v219_v0 }
  0x1b   :  { %v66_v45 = vsub.f32 %v57_v39, %v63_v44  ;;  %v204_v46 = vpack.c.bf16 %v63_v44, %v63_v44 }
  0x1d   :  { %69 = vst [vmem:[#allocation2 + $0x10] sm:$0x3] %v66_v45  ;;  %180 = vst [vmem:[%s310_s1 + $0x14] sm:$0x1] %v204_v46 }
  0x24   :  { %v93_v48 = vld [vmem:[#allocation2 + $0x10] sm:$0x3] }
  0x25   :  { %v96_v49 = vadd.f32 %v183_v47, %v93_v48 }
  0x27   :  { %vm99_vm10 = vcmp.ge.f32.partialorder %v96_v49, 1.0 }
  0x28   :  { %v102_v50 = vsel %vm99_vm10, 1.0, %v219_v0 }
  0x29   :  { %v105_v51 = vsub.f32 %v96_v49, %v102_v50  ;;  %v207_v52 = vpack.c.bf16 %v102_v50, %v102_v50 }
  0x2b   :  { %108 = vst [vmem:[#allocation2 + $0x10] sm:$0x3] %v105_v51  ;;  %189 = vst [vmem:[%s310_s1 + $0x20] sm:$0x1] %v207_v52 }
  0x32   :  { %v132_v54 = vld [vmem:[#allocation2 + $0x10] sm:$0x3] }
  0x33   :  { %v135_v55 = vadd.f32 %v192_v53, %v132_v54 }
  0x35   :  { %vm138_vm11 = vcmp.ge.f32.partialorder %v135_v55, 1.0 }
  0x36   :  { %v141_v56 = vsel %vm138_vm11, 1.0, %v219_v0 }
  0x37   :  { %v144_v57 = vsub.f32 %v135_v55, %v141_v56  ;;  %v210_v58 = vpack.c.bf16 %v141_v56, %v141_v56 }
  0x39   :  { %147 = vst [vmem:[#allocation2 + $0x10] sm:$0x3] %v144_v57  ;;  %198 = vst [vmem:[%s310_s1 + $0x2c] sm:$0x1] %v210_v58 }

// kernel: s_alexnet_forward.23
= control target key start
LH: loop header
LB: loop body
LE: loop exit
PB: predicated region body
PF: predicated region fallthrough
CT: control target
= control target key end

     0   :  { %s960_s12 = smov 0   ;;  %s962_s13 = smov 0   ;;  %s1067_s0 = inlined_call_operand.vmem [shape: bf16[16,1152], index: 0, kind: input, shape index: {}]   ;;  %s1068_s1 = inlined_call_operand.vmem [shape: bf16[1152,128], index: 1, kind: input, shape index: {}]   ;;  %s1069_s2 = inlined_call_operand.vmem [shape: f32[1,128], index: 2, kind: input, shape index: {}]   ;;  %s1070_s3 = inlined_call_operand.vmem [shape: f32[16,128], index: 3, kind: output, shape index: {}]  }
   0x1   :  { %s964_s14 = smov 0   ;;  %s966_s15 = smov 0  }
   0x2   :  { %s968_s16 = smov 0  }
   0x3 LB: > { %s25_s17 = sadd.s32 1, %s931_s15  ;;  %p48_p1 = scmp.ne.s32.totalorder %s923_s13, %s919_s12  ;;  %s935_s16 = sphi %s968_s16, %s13_s16   ;;  %s931_s15 = sphi %s966_s15, %s1074_s15   ;;  %s927_s14 = sphi %s964_s14, %s1073_s14   ;;  %s923_s13 = sphi %s962_s13, %s1072_s13   ;;  %s919_s12 = sphi %s960_s12, %s1071_s12  }
   0x4   : > { %p26_p0 = scmp.ge.s32.totalorder %s25_s17, 3  ;;  %p49_p2 = scmp.eq.s32.totalorder %s935_s16, 0 }
   0x5   : > { %s41_s19 = sadd.s32 1, %s923_s13  ;;  %p730_p5 = scmp.ge.s32.totalorder %s935_s16, 3 }
   0x6   : > { %s1076_s17 = smov (%p26_p0, %s25_s17), 0  ;;  %p50_p3 = por %p49_p2, %p48_p1 }
   0x7   : > { %s37_s18 = ssub.s32 %s931_s15, %s1076_s17  ;;  %162 = sbr.rel (%p730_p5) target bundleno = 21 (0x15), region = 20 }
   0x8   : > { %p39_p4 = scmp.eq.s32.totalorder %s37_s18, 0 }
   0xa   : > { %s995_s20 = scalar_select %p39_p4, %s923_s13, %s41_s19  }
   0xe   : > { %165 = sbr.rel (!%p50_p3) target bundleno = 21 (0x15), region = 24  ;;  %s167_s21 = sand.u32 (%p50_p3), 1, %s923_s13  }
   0xf   : > { %s772_s22 = smul.u32 (%p50_p3), 12, %s931_s15 }
  0x10   : > { %s824_s23 = smul.u32 (%p50_p3), 24, %s167_s21 }
  0x11   : > { %s175_s26 = scalar_lea.vmem (%p50_p3), %s1067_s0, %s772_s22 }
  0x12   : > { %v190_v0 = vld [vmem:[%s175_s26] sm:$0xff] (%p50_p3)  ;;  %v732_v2 = vld [vmem:[%s175_s26 + $0x8] sm:$0xf] (%p50_p3)  ;;  %s169_s27 = scalar_lea.vmem (%p50_p3), [#allocation3], %s824_s23  ;;  %v734_v3 = vld [vmem:[%s175_s26 + $0x2c] sm:$0xf] (%p50_p3) }
  0x13   : > { %v192_v1 = vld [vmem:[%s175_s26 + $0x24] sm:$0xff] (%p50_p3)  ;;  %191 = vst [vmem:[%s169_s27] sm:$0xff] (%p50_p3), %v190_v0  ;;  %733 = vst [vmem:[%s169_s27 + $0x8] sm:$0xf] (%p50_p3), %v732_v2 }
  0x14   : > { %193 = vst [vmem:[%s169_s27 + $0xc] sm:$0xff] (%p50_p3), %v192_v1  ;;  %735 = vst [vmem:[%s169_s27 + $0x14] sm:$0xf] (%p50_p3), %v734_v3 }
  0x15 PF: > { %p736_p6 = scmp.ge.s32.totalorder %s935_s16, 1  ;;  %p221_p7 = scmp.lt.s32.totalorder %s935_s16, 4 }
  0x17   : > { %p222_p8 = pnand %p736_p6, %p221_p7 }
  0x18   : > { %s228_s28 = sand.u32 (!%p222_p8), 1, %s919_s12   ;;  %s267_s29 = smul.u32 (!%p222_p8), 48, %s927_s14 }
  0x19   : > { %225 = sbr.rel (%p222_p8) target bundleno = 304 (0x130), region = 54  ;;  %p738_p10 = scmp.ne.s32.totalorder (!%p222_p8), %s927_s14, 0 }
  0x1a   : > { %s825_s30 = smul.u32 (!%p222_p8), 24, %s228_s28  ;;  %p268_p9 = scmp.lt.s32.totalorder (!%p222_p8), %s267_s29, 143 }
  0x1c   : > { %s1012_s8 = scalar_lea.vmem (!%p222_p8), [#allocation3], %s825_s30 }
  0x20   : > { %s1078_s29 = smov (!%p268_p9, %s267_s29), 143  ;;  %292 = sbr.rel (%p738_p10) target bundleno = 39 (0x27), region = 62 }
  0x21   : > { %s737_s4 = sshll.u32 %s1078_s29, 2  ;;  %v937_v4 = vmov (!%p738_p10), 0.0  }
  0x22   : > { %s1010_s7 = scalar_lea.vmem %s1068_s1, %s737_s4  ;;  %293 = vst [vmem:[#allocation2] sm:$0xff] (!%p738_p10), %v937_v4  ;;  %294 = vst [vmem:[#allocation2 + $0x8] sm:$0xff] (!%p738_p10), %v937_v4 }
  0x27 PF: > { %v869_v5 = vld [vmem:[%s1010_s7 + $0x40] sm:$0xff]   ;;  %v938_v6 = vmov 0.0   ;;  %vm939_vm0 = vmmov 0   ;;  %v872_v9 = vld [vmem:[%s1010_s7 + $0x48] sm:$0xff]   ;;  %v875_v12 = vld [vmem:[%s1010_s7 + $0x50] sm:$0xff]   ;;  %p766_p11 = scmp.ne.s32.totalorder %s927_s14, 2 }
  0x28   : > { %804 = vmatprep.subr.bf16.mxu1 %v938_v6  ;;  %v870_v7 = vld [vmem:[%s1010_s7] sm:$0xff]   ;;  %773 = vmatprep.subr.bf16.mxu0 %v869_v5  ;;  %v873_v10 = vld [vmem:[%s1010_s7 + $0x8] sm:$0xff]   ;;  %v876_v13 = vld [vmem:[%s1010_s7 + $0x10] sm:$0xff]  }
  0x29   : > { %v871_v8 = vld [vmem:[%s1010_s7 + $0x80] sm:$0xff]   ;;  %820 = vmatprep.mubr.msk.bf16.mxu1 %vm939_vm0, %v938_v6  ;;  %774 = vmatpush3.bf16.msra.mxu0 %v870_v7  ;;  %v874_v11 = vld [vmem:[%s1010_s7 + $0x88] sm:$0xff]   ;;  %v877_v14 = vld [vmem:[%s1010_s7 + $0x90] sm:$0xff]  }
  0x2a   : > { %805 = vmatpush3.bf16.msra.mxu1 %v871_v8  ;;  %775 = vmatprep.subr.bf16.mxu0 %v872_v9  ;;  %v878_v15 = vld [vmem:[%s1010_s7 + $0x58] sm:$0xff]   ;;  %v881_v18 = vld [vmem:[%s1010_s7 + $0x60] sm:$0xff]   ;;  %v884_v21 = vld [vmem:[%s1010_s7 + $0x68] sm:$0xff]  }
  0x2b   : > { %806 = vmatprep.subr.bf16.mxu1 %v938_v6  ;;  %v879_v16 = vld [vmem:[%s1010_s7 + $0x18] sm:$0xff]   ;;  %v882_v19 = vld [vmem:[%s1010_s7 + $0x20] sm:$0xff]   ;;  %v885_v22 = vld [vmem:[%s1010_s7 + $0x28] sm:$0xff]  }
  0x2c   : > { %v880_v17 = vld [vmem:[%s1010_s7 + $0x98] sm:$0xff]   ;;  %v883_v20 = vld [vmem:[%s1010_s7 + $0xa0] sm:$0xff]   ;;  %v886_v23 = vld [vmem:[%s1010_s7 + $0xa8] sm:$0xff]  }
  0x2d   : > { %776 = vmatpush3.bf16.msra.mxu0 %v873_v10  ;;  %v887_v24 = vld [vmem:[%s1010_s7 + $0x70] sm:$0xff]   ;;  %v890_v27 = vld [vmem:[%s1010_s7 + $0x78] sm:$0xff]   ;;  %v295_v39 = vld [vmem:[#allocation2] sm:$0xff] }
  0x2e   : > { %807 = vmatpush3.bf16.msra.mxu1 %v874_v11  ;;  %777 = vmatprep.subr.bf16.mxu0 %v875_v12  ;;  %v888_v25 = vld [vmem:[%s1010_s7 + $0x30] sm:$0xff]   ;;  %v891_v29 = vld [vmem:[%s1010_s7 + $0x38] sm:$0xff]   ;;  %v296_v45 = vld [vmem:[#allocation2 + $0x8] sm:$0xff] }
  0x2f   : > { %808 = vmatprep.subr.bf16.mxu1 %v938_v6  ;;  %v889_v26 = vld [vmem:[%s1010_s7 + $0xb0] sm:$0xff]   ;;  %v892_v30 = vld [vmem:[%s1010_s7 + $0xb8] sm:$0xff]   ;;  %v767_v50 = vld [vmem:[%s1069_s2] ss:$0 sm:$0xff] (!%p766_p11) }
  0x30   : > { %v895_v28 = vld [vmem:[%s1012_s8 + $0x4] ss:$12 sps:$4 sm:$0xff]   ;;  %v893_v31 = vld [vmem:[%s1012_s8] ss:$12 sps:$4 sm:$0xff]   ;;  %v896_v32 = vld [vmem:[%s1012_s8 + $0x8] ss:$12 sps:$4 sm:$0xff]  }
  0x31   : > { %778 = vmatpush3.bf16.msra.mxu0 %v876_v13  ;;  %541 = vmatprep.mubr.bf16.mxu0 %v895_v28 }
  0x32   : > { %809 = vmatpush3.bf16.msra.mxu1 %v877_v14  ;;  %779 = vmatprep.subr.bf16.mxu0 %v878_v15 }
  0x33   : > { %810 = vmatprep.subr.bf16.mxu1 %v938_v6 }
  0x35   : > { %780 = vmatpush3.bf16.msra.mxu0 %v879_v16 }
  0x36   : > { %811 = vmatpush3.bf16.msra.mxu1 %v880_v17  ;;  %781 = vmatprep.subr.bf16.mxu0 %v881_v18 }
  0x37   : > { %812 = vmatprep.subr.bf16.mxu1 %v938_v6 }
  0x39   : > { %782 = vmatpush3.bf16.msra.mxu0 %v882_v19 }
  0x3a   : > { %813 = vmatpush3.bf16.msra.mxu1 %v883_v20  ;;  %783 = vmatprep.subr.bf16.mxu0 %v884_v21 }
  0x3b   : > { %814 = vmatprep.subr.bf16.mxu1 %v938_v6 }
  0x3d   : > { %784 = vmatpush3.bf16.msra.mxu0 %v885_v22 }
  0x3e   : > { %815 = vmatpush3.bf16.msra.mxu1 %v886_v23  ;;  %785 = vmatprep.subr.bf16.mxu0 %v887_v24 }
  0x3f   : > { %816 = vmatprep.subr.bf16.mxu1 %v938_v6 }
  0x41   : > { %786 = vmatpush3.bf16.msra.mxu0 %v888_v25 }
  0x42   : > { %817 = vmatpush3.bf16.msra.mxu1 %v889_v26  ;;  %787 = vmatprep.subr.bf16.mxu0 %v890_v27 }
  0x43   : > { %818 = vmatprep.subr.bf16.mxu1 %v938_v6 }
  0x45   : > { %788 = vmatpush3.bf16.msra.mxu0 %v891_v29 }
  0x46   : > { %819 = vmatpush3.bf16.msra.mxu1 %v892_v30 }
  0x48   : > { %542 = vmatmul.mubr.bf16.vlgmr.msra.gmra.mrb[0].mxu0 %v893_v31 }
  0x49   : > { %821 = vmatmul.mubr.bf16.vlgmr.msra.gmra.mrb[0].mxu1 %v896_v32 }
 0x11b   : > { %v789_v33 = vpop.f32.mrb[0].mxu0 }
 0x11c   : > { %v584_v34 = vpop.f32.mrb[0].mxu1  ;;  %v790_v35 = vpop.f32.mrb[1].mxu0 }
 0x11d   : > { %v791_v36 = vadd.f32 %v790_v35, %v789_v33  ;;  %v822_v37 = vpop.f32.mrb[1].mxu1  ;;  %v792_v38 = vpop.f32.mrb[2].mxu0 }
 0x11e   : > { %v587_v40 = vpop.f32.mrb[2].mxu1  ;;  %v793_v41 = vpop.f32.mrb[3].mxu0 }
 0x11f   : > { %v585_v42 = vadd.f32 %v791_v36, %v584_v34  ;;  %v794_v43 = vadd.f32 %v793_v41, %v792_v38  ;;  %v823_v44 = vpop.f32.mrb[3].mxu1  ;;  %598 = sbr.rel (%p766_p11) target bundleno = 304 (0x130), region = 66 }
 0x121   : > { %v591_v46 = vadd.f32 %v585_v42, %v295_v39  ;;  %v588_v47 = vadd.f32 %v794_v43, %v587_v40 }
 0x123   : > { %593 = vst [vmem:[#allocation2] sm:$0xff] %v591_v46  ;;  %v592_v48 = vadd.f32 %v588_v47, %v296_v45 }
 0x125   : > { %594 = vst [vmem:[#allocation2 + $0x8] sm:$0xff] %v592_v48 }
 0x12a   : > { %v599_v49 = vld [vmem:[#allocation2] sm:$0xff] }
 0x12b   : > { %v608_v52 = vadd.f32 %v767_v50, %v599_v49 }
 0x12c   : > { %v600_v51 = vld [vmem:[#allocation2 + $0x8] sm:$0xff] }
 0x12d   : > { %v609_v53 = vadd.f32 %v767_v50, %v600_v51  ;;  %610 = vst [vmem:[%s1070_s3] sm:$0xff] %v608_v52 }
 0x12f   : > { %611 = vst [vmem:[%s1070_s3 + $0x8] sm:$0xff] %v609_v53 }
 0x130 PF: > { %s13_s16 = sadd.s32 1, %s935_s16   ;;  %s1071_s12 = smov %s923_s13 }
 0x131   : > { %p10_p12 = scmp.ge.s32.totalorder %s13_s16, 5   ;;  %s1072_s13 = smov %s995_s20 }
 0x132   : > { %s1073_s14 = smov %s931_s15  ;;  %s1074_s15 = smov %s1076_s17 }
 0x133   :  { %12 = sbr.rel (!%p10_p12) target bundleno = 3 (0x3), region = 113 }

// kernel: s_alexnet_forward.24
= control target key start
LH: loop header
LB: loop body
LE: loop exit
PB: predicated region body
PF: predicated region fallthrough
CT: control target
= control target key end

     0   :  { %v62_v0 = vmov 0.0   ;;  %s97_s0 = inlined_call_operand.vmem [shape: f32[4,2,128], index: 0, kind: input, shape index: {}]   ;;  %s98_s1 = inlined_call_operand.vmem [shape: bf16[4,2,128], index: 1, kind: output, shape index: {}]  }
   0x1   :  { %8 = vst [vmem:[#allocation2] sm:$0x3] %v62_v0  ;;  %v9_v1 = vld [vmem:[%s97_s0] sm:$0x3]  ;;  %v55_v7 = vld [vmem:[%s97_s0 + $0x2] sm:$0x3] }
   0x2   :  { %v57_v13 = vld [vmem:[%s97_s0 + $0x4] sm:$0x3]  ;;  %v59_v19 = vld [vmem:[%s97_s0 + $0x6] sm:$0x3] }
   0x8   :  { %v10_v2 = vld [vmem:[#allocation2] sm:$0x3] }
   0x9   :  { %v11_v3 = vadd.f32 %v10_v2, %v9_v1 }
   0xb   :  { %vm12_vm0 = vcmp.ge.f32.partialorder %v11_v3, 1.0 }
   0xc   :  { %v13_v4 = vsel %vm12_vm0, 1.0, %v62_v0 }
   0xd   :  { %v14_v5 = vsub.f32 %v11_v3, %v13_v4  ;;  %v16_v6 = vpack.c.bf16 %v13_v4, %v13_v4 }
   0xf   :  { %15 = vst [vmem:[#allocation2] sm:$0x3] %v14_v5  ;;  %17 = vst [vmem:[%s98_s1] sm:$0x1] %v16_v6 }
  0x16   :  { %v20_v8 = vld [vmem:[#allocation2] sm:$0x3] }
  0x17   :  { %v21_v9 = vadd.f32 %v55_v7, %v20_v8 }
  0x19   :  { %vm22_vm1 = vcmp.ge.f32.partialorder %v21_v9, 1.0 }
  0x1a   :  { %v23_v10 = vsel %vm22_vm1, 1.0, %v62_v0 }
  0x1b   :  { %v24_v11 = vsub.f32 %v21_v9, %v23_v10  ;;  %v26_v12 = vpack.c.bf16 %v23_v10, %v23_v10 }
  0x1d   :  { %25 = vst [vmem:[#allocation2] sm:$0x3] %v24_v11  ;;  %56 = vst [vmem:[%s98_s1 + $0x1] sm:$0x1] %v26_v12 }
  0x24   :  { %v31_v14 = vld [vmem:[#allocation2] sm:$0x3] }
  0x25   :  { %v32_v15 = vadd.f32 %v57_v13, %v31_v14 }
  0x27   :  { %vm33_vm2 = vcmp.ge.f32.partialorder %v32_v15, 1.0 }
  0x28   :  { %v34_v16 = vsel %vm33_vm2, 1.0, %v62_v0 }
  0x29   :  { %v35_v17 = vsub.f32 %v32_v15, %v34_v16  ;;  %v37_v18 = vpack.c.bf16 %v34_v16, %v34_v16 }
  0x2b   :  { %36 = vst [vmem:[#allocation2] sm:$0x3] %v35_v17  ;;  %58 = vst [vmem:[%s98_s1 + $0x2] sm:$0x1] %v37_v18 }
  0x32   :  { %v42_v20 = vld [vmem:[#allocation2] sm:$0x3] }
  0x33   :  { %v43_v21 = vadd.f32 %v59_v19, %v42_v20 }
  0x35   :  { %vm44_vm3 = vcmp.ge.f32.partialorder %v43_v21, 1.0 }
  0x36   :  { %v45_v22 = vsel %vm44_vm3, 1.0, %v62_v0 }
  0x37   :  { %v46_v23 = vsub.f32 %v43_v21, %v45_v22  ;;  %v48_v24 = vpack.c.bf16 %v45_v22, %v45_v22 }
  0x39   :  { %47 = vst [vmem:[#allocation2] sm:$0x3] %v46_v23  ;;  %60 = vst [vmem:[%s98_s1 + $0x3] sm:$0x1] %v48_v24 }

// kernel: s_alexnet_forward.25
= control target key start
LH: loop header
LB: loop body
LE: loop exit
PB: predicated region body
PF: predicated region fallthrough
CT: control target
= control target key end

     0   :  { %v210_v0 = vmov 0.0   ;;  %vm211_vm0 = vmmov 0   ;;  %s268_s1 = inlined_call_operand.vmem [shape: bf16[128,128], index: 1, kind: input, shape index: {}]   ;;  %s269_s0 = inlined_call_operand.vmem [shape: bf16[16,128], index: 0, kind: input, shape index: {}]   ;;  %s270_s2 = inlined_call_operand.vmem [shape: f32[1,128], index: 2, kind: input, shape index: {}]   ;;  %s271_s3 = inlined_call_operand.vmem [shape: f32[16,128], index: 3, kind: output, shape index: {}]  }
   0x1   :  { %179 = vmatprep.subr.bf16.mxu0 %v210_v0  ;;  %v201_v1 = vld [vmem:[%s268_s1] sm:$0xff]   ;;  %195 = vmatprep.mubr.msk.bf16.mxu0 %vm211_vm0, %v210_v0  ;;  %v202_v2 = vld [vmem:[%s268_s1 + $0x8] sm:$0xff]   ;;  %v203_v3 = vld [vmem:[%s268_s1 + $0x10] sm:$0xff]  }
   0x2   :  { %180 = vmatpush3.bf16.msra.mxu0 %v201_v1  ;;  %v204_v4 = vld [vmem:[%s268_s1 + $0x18] sm:$0xff]   ;;  %v205_v5 = vld [vmem:[%s268_s1 + $0x20] sm:$0xff]   ;;  %v206_v6 = vld [vmem:[%s268_s1 + $0x28] sm:$0xff]  }
   0x3   :  { %181 = vmatprep.subr.bf16.mxu0 %v210_v0  ;;  %v207_v7 = vld [vmem:[%s268_s1 + $0x30] sm:$0xff]   ;;  %v208_v8 = vld [vmem:[%s268_s1 + $0x38] sm:$0xff]   ;;  %v209_v9 = vld [vmem:[%s269_s0] sm:$0xff]  }
   0x4   :  { %v169_v10 = vld [vmem:[%s270_s2] ss:$0 sm:$0xff] }
   0x6   :  { %182 = vmatpush3.bf16.msra.mxu0 %v202_v2 }
   0x7   :  { %183 = vmatprep.subr.bf16.mxu0 %v210_v0 }
   0xa   :  { %184 = vmatpush3.bf16.msra.mxu0 %v203_v3 }
   0xb   :  { %185 = vmatprep.subr.bf16.mxu0 %v210_v0 }
   0xe   :  { %186 = vmatpush3.bf16.msra.mxu0 %v204_v4 }
   0xf   :  { %187 = vmatprep.subr.bf16.mxu0 %v210_v0 }
  0x12   :  { %188 = vmatpush3.bf16.msra.mxu0 %v205_v5 }
  0x13   :  { %189 = vmatprep.subr.bf16.mxu0 %v210_v0 }
  0x16   :  { %190 = vmatpush3.bf16.msra.mxu0 %v206_v6 }
  0x17   :  { %191 = vmatprep.subr.bf16.mxu0 %v210_v0 }
  0x1a   :  { %192 = vmatpush3.bf16.msra.mxu0 %v207_v7 }
  0x1b   :  { %193 = vmatprep.subr.bf16.mxu0 %v210_v0 }
  0x1e   :  { %194 = vmatpush3.bf16.msra.mxu0 %v208_v8 }
  0x21   :  { %196 = vmatmul.mubr.bf16.vlgmr.msra.gmra.mrb[0].mxu0 %v209_v9 }
  0xf4   :  { %v129_v11 = vpop.f32.mrb[0].mxu0 }
  0xf5   :  { %v152_v12 = vadd.f32 %v169_v10, %v129_v11  ;;  %v197_v13 = vpop.f32.mrb[1].mxu0 }
  0xf6   :  { %v132_v14 = vpop.f32.mrb[2].mxu0 }
  0xf7   :  { %154 = vst [vmem:[%s271_s3] sm:$0xff] %v152_v12  ;;  %v153_v15 = vadd.f32 %v169_v10, %v132_v14  ;;  %v198_v16 = vpop.f32.mrb[3].mxu0 }
  0xf9   :  { %155 = vst [vmem:[%s271_s3 + $0x8] sm:$0xff] %v153_v15 }

</bundles_post_ra>
